<compile_context>
chip_gen: v6e
topology: v6e:2x2x1
jax: 0.10.0
libtpu: 0.0.40
codegen_flags: <defaults>
</compile_context>

<pallas_src>
import functools

import jax
import jax.numpy as jnp
from jax.experimental import pallas as pl
from jax.experimental.pallas import tpu as pltpu


# ---------------------------------------------------------------------------
# Pallas kernels
# ---------------------------------------------------------------------------

def _conv_act_kernel(x_ref, w_ref, b_ref, o_ref, *, kh, kw, Wp, Lv, act):
    """Direct conv for one sample; taps formed in-kernel as flat lane slices.

    x_ref : (1, Cin, Le)        bf16  zero-padded image, flattened row-major,
                                      with extra zero rows at the bottom so
                                      every tap slice stays in bounds.
    w_ref : (kh*kw, Cout, Cin)  bf16  per-tap weight matrices.
    b_ref : (Cout, 1)           f32
    o_ref : (1, Cout, Lv)       bf16  conv output on the padded Hp x Wp grid
                                      (borders are junk; host slices valid part).
    """
    acc = None
    for t in range(kh * kw):
        i, j = t // kw, t % kw
        s = i * Wp + j                           # static flat tap offset
        xs = x_ref[0, :, s:s + Lv]               # (Cin, Lv)  bf16
        wt = w_ref[t]                            # (Cout, Cin) bf16
        p = jnp.dot(wt, xs, preferred_element_type=jnp.float32)
        acc = p if acc is None else acc + p
    y = acc + b_ref[...]                         # f32 epilogue, lane broadcast
    if act == "tanh":
        y = jnp.tanh(y)
    elif act == "sigmoid":
        y = jax.nn.sigmoid(y)
    o_ref[0, :, :] = y.astype(o_ref.dtype)


def conv2d_act(x, w, b, padding, act):
    """PyTorch-style Conv2d (stride 1) + activation as a single Pallas call.

    x: (N, Cin, H, W) float, w: (Cout, Cin, kh, kw), b: (Cout,)
    returns (N, Cout, Ho, Wo) bf16.
    """
    N, Cin, H, W = x.shape
    Cout, _, kh, kw = w.shape
    p = (kh - 1) // 2 if padding == "same" else 0
    Hp, Wp = H + 2 * p, W + 2 * p
    Ho, Wo = Hp - kh + 1, Wp - kw + 1
    Lv = Hp * Wp
    # Extra zero rows so slice [s, s+Lv) is in bounds for the largest tap.
    extra = (kh - 1) + (1 if kw > 1 else 0)
    Le = (Hp + extra) * Wp

    xp = jnp.pad(x.astype(jnp.bfloat16),
                 ((0, 0), (0, 0), (p, p + extra), (p, p)))
    xf = xp.reshape(N, Cin, Le)                                        # free
    wf = jnp.transpose(w, (2, 3, 0, 1)).reshape(kh * kw, Cout, Cin)
    wf = wf.astype(jnp.bfloat16)
    bf = b.reshape(Cout, 1).astype(jnp.float32)

    y = pl.pallas_call(
        functools.partial(_conv_act_kernel, kh=kh, kw=kw, Wp=Wp, Lv=Lv, act=act),
        out_shape=jax.ShapeDtypeStruct((N, Cout, Lv), jnp.bfloat16),
        grid_spec=pltpu.PrefetchScalarGridSpec(
            num_scalar_prefetch=0,
            grid=(N,),
            in_specs=[
                pl.BlockSpec((1, Cin, Le), lambda n: (n, 0, 0)),
                pl.BlockSpec((kh * kw, Cout, Cin), lambda n: (0, 0, 0)),
                pl.BlockSpec((Cout, 1), lambda n: (0, 0)),
            ],
            out_specs=pl.BlockSpec((1, Cout, Lv), lambda n: (n, 0, 0)),
        ),
        compiler_params=pltpu.CompilerParams(
            dimension_semantics=("parallel",)),
    )(xf, wf, bf)
    # Drop the junk borders of the padded grid -> valid conv output.
    return y.reshape(N, Cout, Hp, Wp)[:, :, :Ho, :Wo]


def _attn_gate_kernel(g_ref, d_ref, o_ref, *, Hdim):
    """out = d * AttentionMask(g) for the whole batch in one step.

    Reference: x / (sum over H,W) * xshape[1] * xshape[2] * 0.5, here C_g == 1
    so the scale is 1 * H * 0.5.  HW equals the full (unpadded) array dim, so
    the lane reduction sums exactly the real pixels.
    """
    g = g_ref[...].astype(jnp.float32)                   # (N, HW)
    s = jnp.sum(g, axis=1, keepdims=True)                # (N, 1)
    mask = g * (0.5 * Hdim) * pl.reciprocal(s, approx=True)
    d = d_ref[...].astype(jnp.float32)                   # (N, C, HW)
    o_ref[...] = (d * mask[:, None, :]).astype(o_ref.dtype)


def attention_gate(d, g):
    """d: (N, C, H, W), g: (N, 1, H, W)  ->  d * AttentionMask(g)  (bf16)."""
    N, C, H, W = d.shape
    HW = H * W
    gf = g.reshape(N, HW)
    df = d.reshape(N, C, HW)
    out = pl.pallas_call(
        functools.partial(_attn_gate_kernel, Hdim=H),
        out_shape=jax.ShapeDtypeStruct((N, C, HW), jnp.bfloat16),
        grid_spec=pltpu.PrefetchScalarGridSpec(
            num_scalar_prefetch=0,
            grid=(1,),
            in_specs=[
                pl.BlockSpec((N, HW), lambda i: (0, 0)),
                pl.BlockSpec((N, C, HW), lambda i: (0, 0, 0)),
            ],
            out_specs=pl.BlockSpec((N, C, HW), lambda i: (0, 0, 0)),
        ),
        compiler_params=pltpu.CompilerParams(
            dimension_semantics=("arbitrary",)),
    )(gf, df)
    return out.reshape(N, C, H, W)


def _fc_head_kernel(x_ref, w1_ref, b1_ref, w2_ref, b2_ref, o_ref):
    """out = (tanh(x @ W1 + b1)) @ W2 + b2, single step, all in f32."""
    x = x_ref[...].astype(jnp.float32)
    h = jnp.tanh(jnp.dot(x, w1_ref[...], preferred_element_type=jnp.float32)
                 + b1_ref[...])
    o_ref[...] = (jnp.dot(h, w2_ref[...], preferred_element_type=jnp.float32)
                  + b2_ref[...]).astype(o_ref.dtype)


def fc_head(x, w1, b1, w2, b2):
    """x: (N, F) -> (N, 1) f32.  One tiny single-step Pallas call."""
    N, F = x.shape
    Hd = w1.shape[1]
    return pl.pallas_call(
        _fc_head_kernel,
        out_shape=jax.ShapeDtypeStruct((N, 1), jnp.float32),
        grid_spec=pltpu.PrefetchScalarGridSpec(
            num_scalar_prefetch=0,
            grid=(1,),
            in_specs=[
                pl.BlockSpec((N, F), lambda i: (0, 0)),
                pl.BlockSpec((F, Hd), lambda i: (0, 0)),
                pl.BlockSpec((1, Hd), lambda i: (0, 0)),
                pl.BlockSpec((Hd, 1), lambda i: (0, 0)),
                pl.BlockSpec((1, 1), lambda i: (0, 0)),
            ],
            out_specs=pl.BlockSpec((N, 1), lambda i: (0, 0)),
        ),
        compiler_params=pltpu.CompilerParams(
            dimension_semantics=("arbitrary",)),
    )(x, w1, b1.reshape(1, Hd), w2, b2.reshape(1, 1))


# ---------------------------------------------------------------------------
# JAX glue: TSM shift, avg-pool (pure data movement, jit-fused)
# ---------------------------------------------------------------------------

def tsm_shift(x, n_frame, fold_div=3):
    """Temporal shift module (matches the PyTorch TSM forward exactly)."""
    b, c, h, w = x.shape
    x5 = x.reshape(-1, n_frame, c, h, w)
    fold = c // fold_div
    out1 = x5[:, :, :fold]
    out2 = x5[:, :, fold:2 * fold]
    out3 = x5[:, :, 2 * fold:]
    # shift left in time (drop first frame, zero-pad at the end)
    out1 = jnp.concatenate([out1[:, 1:], jnp.zeros_like(out1[:, :1])], axis=1)
    # shift right in time (zero-pad at the start, drop last frame)
    out2 = jnp.concatenate([jnp.zeros_like(out2[:, :1]), out2[:, :-1]], axis=1)
    out = jnp.concatenate([out1, out2, out3], axis=2)
    return out.reshape(-1, c, h, w)


def avgpool2(x):
    """AvgPool2d(kernel=2, stride=2), floor behaviour (drops odd edge)."""
    N, C, H, W = x.shape
    Ho, Wo = H // 2, W // 2
    x = x[:, :, :Ho * 2, :Wo * 2].reshape(N, C, Ho, 2, Wo, 2)
    return x.mean(axis=(3, 5))


# ---------------------------------------------------------------------------
# Model: parameters + forward
# ---------------------------------------------------------------------------

def init_params(key, in_channels, c1, c2, hidden):
    keys = jax.random.split(key, 24)
    k = iter(keys)

    def conv_p(cout, cin, kh, kw):
        w = 0.1 * jax.random.normal(next(k), (cout, cin, kh, kw), jnp.float32)
        b = 0.05 * jax.random.normal(next(k), (cout,), jnp.float32)
        return w, b

    p = {}
    p["tsm_conv1"] = conv_p(c1, in_channels, 3, 3)
    p["tsm_conv2"] = conv_p(c1, c1, 3, 3)
    p["reg_conv1"] = conv_p(c1, in_channels, 3, 3)
    p["reg_conv2"] = conv_p(c1, c1, 3, 3)
    p["g1_conv"] = conv_p(1, c1, 1, 1)
    p["tsm_conv3"] = conv_p(c2, c1, 3, 3)
    p["tsm_conv4"] = conv_p(c2, c2, 3, 3)
    p["reg_conv3"] = conv_p(c2, c1, 3, 3)
    p["reg_conv4"] = conv_p(c2, c2, 3, 3)
    p["g2_conv"] = conv_p(1, c2, 1, 1)
    p["fc1_w"] = 0.05 * jax.random.normal(next(k), (c2 * 7 * 7, hidden), jnp.float32)
    p["fc1_b"] = 0.05 * jax.random.normal(next(k), (hidden,), jnp.float32)
    p["fc2_w"] = 0.05 * jax.random.normal(next(k), (hidden, 1), jnp.float32)
    p["fc2_b"] = 0.05 * jax.random.normal(next(k), (1,), jnp.float32)
    return p


def temporal_shift_can_forward(params, x_motion, x_appearance, n_frame):
    def tsm_conv(x, name, padding):
        w, b = params[name]
        return conv2d_act(tsm_shift(x, n_frame), w, b, padding, "tanh")

    def reg_conv(x, name, padding, act="tanh"):
        w, b = params[name]
        return conv2d_act(x, w, b, padding, act)

    d1 = tsm_conv(x_motion, "tsm_conv1", "same")
    d2 = tsm_conv(d1, "tsm_conv2", "valid")
    r1 = reg_conv(x_appearance, "reg_conv1", "same")
    r2 = reg_conv(r1, "reg_conv2", "valid")
    g1 = reg_conv(r2, "g1_conv", "same", act="sigmoid")

    gated1 = attention_gate(d2, g1)            # d2 * AttentionMask(g1)
    d3 = avgpool2(gated1)
    d4 = d3                                    # dropout(0.25) -> identity (eval)
    r3 = avgpool2(r2)
    r4 = r3                                    # dropout(0.25) -> identity (eval)

    d5 = tsm_conv(d4, "tsm_conv3", "same")
    d6 = tsm_conv(d5, "tsm_conv4", "valid")
    r5 = reg_conv(r4, "reg_conv3", "same")
    r6 = reg_conv(r5, "reg_conv4", "valid")
    g2 = reg_conv(r6, "g2_conv", "same", act="sigmoid")

    gated2 = attention_gate(d6, g2)
    d7 = avgpool2(gated2)
    d8 = d7                                    # dropout(0.25) -> identity (eval)
    d9 = d8.reshape(d8.shape[0], -1)           # (N, C2*7*7), NCHW flatten order
    d11_in = d9                                # dropout(0.5) after fc1 -> identity
    out = fc_head(d11_in, params["fc1_w"], params["fc1_b"],
                  params["fc2_w"], params["fc2_b"])
    return out                                 # (N, 1) f32


# ---------------------------------------------------------------------------

if __name__ == "__main__":
    # Small config consistent with the module:
    #   n_frame=4, two clips -> N=8 frames, 3 input channels,
    #   out_channels_1 = out_channels_2 = 8, hidden_size = 16.
    # Spatial 36x36 so that after (valid conv, pool) x2 the map is 7x7,
    # matching fc1.in_features = out_channels_2 * 7 * 7.
    n_frame = 4
    N = 8
    C_in, C1, C2, HIDDEN = 3, 8, 8, 16
    H = W = 36

    key = jax.random.PRNGKey(0)
    k_m, k_a, k_p = jax.random.split(key, 3)
    x_motion = jax.random.normal(k_m, (N, C_in, H, W), jnp.float32)
    x_appearance = jax.random.normal(k_a, (N, C_in, H, W), jnp.float32)
    params = init_params(k_p, C_in, C1, C2, HIDDEN)

    fwd = jax.jit(temporal_shift_can_forward, static_argnums=(3,))
    out = fwd(params, x_motion, x_appearance, n_frame)
    out = jax.block_until_ready(out)
    assert out.shape == (N, 1) and out.dtype == jnp.float32
    assert bool(jnp.all(jnp.isfinite(out)))
    print("KERNEL_OK")
</pallas_src>

<mosaic_0001>
module attributes {stable_mosaic.version = 11 : i64} {
  func.func @_conv_act_kernel(%arg0: i32, %arg1: memref<1x3x1558xbf16, #tpu.memory_space<vmem>>, %arg2: memref<9x8x3xbf16, #tpu.memory_space<vmem>>, %arg3: memref<8x1xf32, #tpu.memory_space<vmem>>, %arg4: memref<1x8x1444xbf16, #tpu.memory_space<vmem>>) attributes {dimension_semantics = [#tpu.dimension_semantics<parallel>], iteration_bounds = array<i64: 8>, scalar_prefetch = 0 : i64, scratch_operands = 0 : i64, tpu.core_type = #tpu.core_type<tc>, window_params = [{transform_indices = @transform_0, window_bounds = array<i64: 1, 3, 1558>}, {pipeline_mode = #tpu.pipeline_mode<synchronous>, transform_indices = @transform_1, window_bounds = array<i64: 9, 8, 3>}, {pipeline_mode = #tpu.pipeline_mode<synchronous>, transform_indices = @transform_2, window_bounds = array<i64: 8, 1>}, {transform_indices = @transform_3, window_bounds = array<i64: 1, 8, 1444>}]} {
    %c0 = arith.constant 0 : index
    %c0_0 = arith.constant 0 : index
    %c0_1 = arith.constant 0 : index
    %0 = vector.load %arg1[%c0, %c0_0, %c0_1] : memref<1x3x1558xbf16, #tpu.memory_space<vmem>>, vector<1x3x1444xbf16>
    %1 = vector.shape_cast %0 : vector<1x3x1444xbf16> to vector<3x1444xbf16>
    %c0_2 = arith.constant 0 : index
    %c0_3 = arith.constant 0 : index
    %c0_4 = arith.constant 0 : index
    %2 = vector.load %arg2[%c0_2, %c0_3, %c0_4] : memref<9x8x3xbf16, #tpu.memory_space<vmem>>, vector<1x8x3xbf16>
    %3 = vector.shape_cast %2 : vector<1x8x3xbf16> to vector<8x3xbf16>
    %cst = arith.constant dense<0.000000e+00> : vector<8x1444xf32>
    %4 = tpu.matmul %3, %1, %cst {dimension_numbers = #tpu.dot_dimension_numbers<[1], [0], [0], [1], [0, 0, 1, 1], [], []>} : vector<8x3xbf16>, vector<3x1444xbf16>, vector<8x1444xf32> -> vector<8x1444xf32>
    %c0_5 = arith.constant 0 : index
    %c0_6 = arith.constant 0 : index
    %c1 = arith.constant 1 : index
    %5 = vector.load %arg1[%c0_5, %c0_6, %c1] : memref<1x3x1558xbf16, #tpu.memory_space<vmem>>, vector<1x3x1444xbf16>
    %6 = vector.shape_cast %5 : vector<1x3x1444xbf16> to vector<3x1444xbf16>
    %c1_7 = arith.constant 1 : index
    %c0_8 = arith.constant 0 : index
    %c0_9 = arith.constant 0 : index
    %7 = vector.load %arg2[%c1_7, %c0_8, %c0_9] : memref<9x8x3xbf16, #tpu.memory_space<vmem>>, vector<1x8x3xbf16>
    %8 = vector.shape_cast %7 : vector<1x8x3xbf16> to vector<8x3xbf16>
    %cst_10 = arith.constant dense<0.000000e+00> : vector<8x1444xf32>
    %9 = tpu.matmul %8, %6, %cst_10 {dimension_numbers = #tpu.dot_dimension_numbers<[1], [0], [0], [1], [0, 0, 1, 1], [], []>} : vector<8x3xbf16>, vector<3x1444xbf16>, vector<8x1444xf32> -> vector<8x1444xf32>
    %10 = arith.addf %4, %9 : vector<8x1444xf32>
    %c0_11 = arith.constant 0 : index
    %c0_12 = arith.constant 0 : index
    %c2 = arith.constant 2 : index
    %11 = vector.load %arg1[%c0_11, %c0_12, %c2] : memref<1x3x1558xbf16, #tpu.memory_space<vmem>>, vector<1x3x1444xbf16>
    %12 = vector.shape_cast %11 : vector<1x3x1444xbf16> to vector<3x1444xbf16>
    %c2_13 = arith.constant 2 : index
    %c0_14 = arith.constant 0 : index
    %c0_15 = arith.constant 0 : index
    %13 = vector.load %arg2[%c2_13, %c0_14, %c0_15] : memref<9x8x3xbf16, #tpu.memory_space<vmem>>, vector<1x8x3xbf16>
    %14 = vector.shape_cast %13 : vector<1x8x3xbf16> to vector<8x3xbf16>
    %cst_16 = arith.constant dense<0.000000e+00> : vector<8x1444xf32>
    %15 = tpu.matmul %14, %12, %cst_16 {dimension_numbers = #tpu.dot_dimension_numbers<[1], [0], [0], [1], [0, 0, 1, 1], [], []>} : vector<8x3xbf16>, vector<3x1444xbf16>, vector<8x1444xf32> -> vector<8x1444xf32>
    %16 = arith.addf %10, %15 : vector<8x1444xf32>
    %c0_17 = arith.constant 0 : index
    %c0_18 = arith.constant 0 : index
    %c38 = arith.constant 38 : index
    %17 = vector.load %arg1[%c0_17, %c0_18, %c38] : memref<1x3x1558xbf16, #tpu.memory_space<vmem>>, vector<1x3x1444xbf16>
    %18 = vector.shape_cast %17 : vector<1x3x1444xbf16> to vector<3x1444xbf16>
    %c3 = arith.constant 3 : index
    %c0_19 = arith.constant 0 : index
    %c0_20 = arith.constant 0 : index
    %19 = vector.load %arg2[%c3, %c0_19, %c0_20] : memref<9x8x3xbf16, #tpu.memory_space<vmem>>, vector<1x8x3xbf16>
    %20 = vector.shape_cast %19 : vector<1x8x3xbf16> to vector<8x3xbf16>
    %cst_21 = arith.constant dense<0.000000e+00> : vector<8x1444xf32>
    %21 = tpu.matmul %20, %18, %cst_21 {dimension_numbers = #tpu.dot_dimension_numbers<[1], [0], [0], [1], [0, 0, 1, 1], [], []>} : vector<8x3xbf16>, vector<3x1444xbf16>, vector<8x1444xf32> -> vector<8x1444xf32>
    %22 = arith.addf %16, %21 : vector<8x1444xf32>
    %c0_22 = arith.constant 0 : index
    %c0_23 = arith.constant 0 : index
    %c39 = arith.constant 39 : index
    %23 = vector.load %arg1[%c0_22, %c0_23, %c39] : memref<1x3x1558xbf16, #tpu.memory_space<vmem>>, vector<1x3x1444xbf16>
    %24 = vector.shape_cast %23 : vector<1x3x1444xbf16> to vector<3x1444xbf16>
    %c4 = arith.constant 4 : index
    %c0_24 = arith.constant 0 : index
    %c0_25 = arith.constant 0 : index
    %25 = vector.load %arg2[%c4, %c0_24, %c0_25] : memref<9x8x3xbf16, #tpu.memory_space<vmem>>, vector<1x8x3xbf16>
    %26 = vector.shape_cast %25 : vector<1x8x3xbf16> to vector<8x3xbf16>
    %cst_26 = arith.constant dense<0.000000e+00> : vector<8x1444xf32>
    %27 = tpu.matmul %26, %24, %cst_26 {dimension_numbers = #tpu.dot_dimension_numbers<[1], [0], [0], [1], [0, 0, 1, 1], [], []>} : vector<8x3xbf16>, vector<3x1444xbf16>, vector<8x1444xf32> -> vector<8x1444xf32>
    %28 = arith.addf %22, %27 : vector<8x1444xf32>
    %c0_27 = arith.constant 0 : index
    %c0_28 = arith.constant 0 : index
    %c40 = arith.constant 40 : index
    %29 = vector.load %arg1[%c0_27, %c0_28, %c40] : memref<1x3x1558xbf16, #tpu.memory_space<vmem>>, vector<1x3x1444xbf16>
    %30 = vector.shape_cast %29 : vector<1x3x1444xbf16> to vector<3x1444xbf16>
    %c5 = arith.constant 5 : index
    %c0_29 = arith.constant 0 : index
    %c0_30 = arith.constant 0 : index
    %31 = vector.load %arg2[%c5, %c0_29, %c0_30] : memref<9x8x3xbf16, #tpu.memory_space<vmem>>, vector<1x8x3xbf16>
    %32 = vector.shape_cast %31 : vector<1x8x3xbf16> to vector<8x3xbf16>
    %cst_31 = arith.constant dense<0.000000e+00> : vector<8x1444xf32>
    %33 = tpu.matmul %32, %30, %cst_31 {dimension_numbers = #tpu.dot_dimension_numbers<[1], [0], [0], [1], [0, 0, 1, 1], [], []>} : vector<8x3xbf16>, vector<3x1444xbf16>, vector<8x1444xf32> -> vector<8x1444xf32>
    %34 = arith.addf %28, %33 : vector<8x1444xf32>
    %c0_32 = arith.constant 0 : index
    %c0_33 = arith.constant 0 : index
    %c76 = arith.constant 76 : index
    %35 = vector.load %arg1[%c0_32, %c0_33, %c76] : memref<1x3x1558xbf16, #tpu.memory_space<vmem>>, vector<1x3x1444xbf16>
    %36 = vector.shape_cast %35 : vector<1x3x1444xbf16> to vector<3x1444xbf16>
    %c6 = arith.constant 6 : index
    %c0_34 = arith.constant 0 : index
    %c0_35 = arith.constant 0 : index
    %37 = vector.load %arg2[%c6, %c0_34, %c0_35] : memref<9x8x3xbf16, #tpu.memory_space<vmem>>, vector<1x8x3xbf16>
    %38 = vector.shape_cast %37 : vector<1x8x3xbf16> to vector<8x3xbf16>
    %cst_36 = arith.constant dense<0.000000e+00> : vector<8x1444xf32>
    %39 = tpu.matmul %38, %36, %cst_36 {dimension_numbers = #tpu.dot_dimension_numbers<[1], [0], [0], [1], [0, 0, 1, 1], [], []>} : vector<8x3xbf16>, vector<3x1444xbf16>, vector<8x1444xf32> -> vector<8x1444xf32>
    %40 = arith.addf %34, %39 : vector<8x1444xf32>
    %c0_37 = arith.constant 0 : index
    %c0_38 = arith.constant 0 : index
    %c77 = arith.constant 77 : index
    %41 = vector.load %arg1[%c0_37, %c0_38, %c77] : memref<1x3x1558xbf16, #tpu.memory_space<vmem>>, vector<1x3x1444xbf16>
    %42 = vector.shape_cast %41 : vector<1x3x1444xbf16> to vector<3x1444xbf16>
    %c7 = arith.constant 7 : index
    %c0_39 = arith.constant 0 : index
    %c0_40 = arith.constant 0 : index
    %43 = vector.load %arg2[%c7, %c0_39, %c0_40] : memref<9x8x3xbf16, #tpu.memory_space<vmem>>, vector<1x8x3xbf16>
    %44 = vector.shape_cast %43 : vector<1x8x3xbf16> to vector<8x3xbf16>
    %cst_41 = arith.constant dense<0.000000e+00> : vector<8x1444xf32>
    %45 = tpu.matmul %44, %42, %cst_41 {dimension_numbers = #tpu.dot_dimension_numbers<[1], [0], [0], [1], [0, 0, 1, 1], [], []>} : vector<8x3xbf16>, vector<3x1444xbf16>, vector<8x1444xf32> -> vector<8x1444xf32>
    %46 = arith.addf %40, %45 : vector<8x1444xf32>
    %c0_42 = arith.constant 0 : index
    %c0_43 = arith.constant 0 : index
    %c78 = arith.constant 78 : index
    %47 = vector.load %arg1[%c0_42, %c0_43, %c78] : memref<1x3x1558xbf16, #tpu.memory_space<vmem>>, vector<1x3x1444xbf16>
    %48 = vector.shape_cast %47 : vector<1x3x1444xbf16> to vector<3x1444xbf16>
    %c8 = arith.constant 8 : index
    %c0_44 = arith.constant 0 : index
    %c0_45 = arith.constant 0 : index
    %49 = vector.load %arg2[%c8, %c0_44, %c0_45] : memref<9x8x3xbf16, #tpu.memory_space<vmem>>, vector<1x8x3xbf16>
    %50 = vector.shape_cast %49 : vector<1x8x3xbf16> to vector<8x3xbf16>
    %cst_46 = arith.constant dense<0.000000e+00> : vector<8x1444xf32>
    %51 = tpu.matmul %50, %48, %cst_46 {dimension_numbers = #tpu.dot_dimension_numbers<[1], [0], [0], [1], [0, 0, 1, 1], [], []>} : vector<8x3xbf16>, vector<3x1444xbf16>, vector<8x1444xf32> -> vector<8x1444xf32>
    %52 = arith.addf %46, %51 : vector<8x1444xf32>
    %c0_47 = arith.constant 0 : index
    %c0_48 = arith.constant 0 : index
    %53 = vector.load %arg3[%c0_47, %c0_48] : memref<8x1xf32, #tpu.memory_space<vmem>>, vector<8x1xf32>
    %54 = vector.broadcast %53 : vector<8x1xf32> to vector<8x1444xf32>
    %55 = arith.addf %52, %54 : vector<8x1444xf32>
    %56 = math.tanh %55 : vector<8x1444xf32>
    %57 = arith.truncf %56 : vector<8x1444xf32> to vector<8x1444xbf16>
    %c0_49 = arith.constant 0 : index
    %c0_50 = arith.constant 0 : index
    %c0_51 = arith.constant 0 : index
    %58 = vector.load %arg4[%c0_49, %c0_50, %c0_51] : memref<1x8x1444xbf16, #tpu.memory_space<vmem>>, vector<1x8x1444xbf16>
    %59 = vector.shape_cast %58 : vector<1x8x1444xbf16> to vector<8x1444xbf16>
    %60 = vector.shape_cast %57 : vector<8x1444xbf16> to vector<1x8x1444xbf16>
    tpu.vector_store %arg4[%c0_49, %c0_50, %c0_51], %60 {strides = array<i32>} : memref<1x8x1444xbf16, #tpu.memory_space<vmem>>, vector<1x8x1444xbf16>,
    return
  }
  func.func @transform_0(%arg0: i32) -> (i32, i32, i32) {
    %c0_i32 = arith.constant 0 : i32
    %c0_i32_0 = arith.constant 0 : i32
    %c0_i32_1 = arith.constant 0 : i32
    return %arg0, %c0_i32, %c0_i32_0 : i32, i32, i32
  }
  func.func @transform_1(%arg0: i32) -> (i32, i32, i32) {
    %c0_i32 = arith.constant 0 : i32
    %c0_i32_0 = arith.constant 0 : i32
    %c0_i32_1 = arith.constant 0 : i32
    %c0_i32_2 = arith.constant 0 : i32
    return %c0_i32, %c0_i32_0, %c0_i32_1 : i32, i32, i32
  }
  func.func @transform_2(%arg0: i32) -> (i32, i32) {
    %c0_i32 = arith.constant 0 : i32
    %c0_i32_0 = arith.constant 0 : i32
    %c0_i32_1 = arith.constant 0 : i32
    return %c0_i32, %c0_i32_0 : i32, i32
  }
  func.func @transform_3(%arg0: i32) -> (i32, i32, i32) {
    %c0_i32 = arith.constant 0 : i32
    %c0_i32_0 = arith.constant 0 : i32
    %c0_i32_1 = arith.constant 0 : i32
    return %arg0, %c0_i32, %c0_i32_0 : i32, i32, i32
  }
}

module attributes {stable_mosaic.version = 11 : i64} {
  func.func @_conv_act_kernel(%arg0: i32, %arg1: memref<1x8x1404xbf16, #tpu.memory_space<vmem>>, %arg2: memref<9x8x8xbf16, #tpu.memory_space<vmem>>, %arg3: memref<8x1xf32, #tpu.memory_space<vmem>>, %arg4: memref<1x8x1296xbf16, #tpu.memory_space<vmem>>) attributes {dimension_semantics = [#tpu.dimension_semantics<parallel>], iteration_bounds = array<i64: 8>, scalar_prefetch = 0 : i64, scratch_operands = 0 : i64, tpu.core_type = #tpu.core_type<tc>, window_params = [{transform_indices = @transform_0, window_bounds = array<i64: 1, 8, 1404>}, {pipeline_mode = #tpu.pipeline_mode<synchronous>, transform_indices = @transform_1, window_bounds = array<i64: 9, 8, 8>}, {pipeline_mode = #tpu.pipeline_mode<synchronous>, transform_indices = @transform_2, window_bounds = array<i64: 8, 1>}, {transform_indices = @transform_3, window_bounds = array<i64: 1, 8, 1296>}]} {
    %c0 = arith.constant 0 : index
    %c0_0 = arith.constant 0 : index
    %c0_1 = arith.constant 0 : index
    %0 = vector.load %arg1[%c0, %c0_0, %c0_1] : memref<1x8x1404xbf16, #tpu.memory_space<vmem>>, vector<1x8x1296xbf16>
    %1 = vector.shape_cast %0 : vector<1x8x1296xbf16> to vector<8x1296xbf16>
    %c0_2 = arith.constant 0 : index
    %c0_3 = arith.constant 0 : index
    %c0_4 = arith.constant 0 : index
    %2 = vector.load %arg2[%c0_2, %c0_3, %c0_4] : memref<9x8x8xbf16, #tpu.memory_space<vmem>>, vector<1x8x8xbf16>
    %3 = vector.shape_cast %2 : vector<1x8x8xbf16> to vector<8x8xbf16>
    %cst = arith.constant dense<0.000000e+00> : vector<8x1296xf32>
    %4 = tpu.matmul %3, %1, %cst {dimension_numbers = #tpu.dot_dimension_numbers<[1], [0], [0], [1], [0, 0, 1, 1], [], []>} : vector<8x8xbf16>, vector<8x1296xbf16>, vector<8x1296xf32> -> vector<8x1296xf32>
    %c0_5 = arith.constant 0 : index
    %c0_6 = arith.constant 0 : index
    %c1 = arith.constant 1 : index
    %5 = vector.load %arg1[%c0_5, %c0_6, %c1] : memref<1x8x1404xbf16, #tpu.memory_space<vmem>>, vector<1x8x1296xbf16>
    %6 = vector.shape_cast %5 : vector<1x8x1296xbf16> to vector<8x1296xbf16>
    %c1_7 = arith.constant 1 : index
    %c0_8 = arith.constant 0 : index
    %c0_9 = arith.constant 0 : index
    %7 = vector.load %arg2[%c1_7, %c0_8, %c0_9] : memref<9x8x8xbf16, #tpu.memory_space<vmem>>, vector<1x8x8xbf16>
    %8 = vector.shape_cast %7 : vector<1x8x8xbf16> to vector<8x8xbf16>
    %cst_10 = arith.constant dense<0.000000e+00> : vector<8x1296xf32>
    %9 = tpu.matmul %8, %6, %cst_10 {dimension_numbers = #tpu.dot_dimension_numbers<[1], [0], [0], [1], [0, 0, 1, 1], [], []>} : vector<8x8xbf16>, vector<8x1296xbf16>, vector<8x1296xf32> -> vector<8x1296xf32>
    %10 = arith.addf %4, %9 : vector<8x1296xf32>
    %c0_11 = arith.constant 0 : index
    %c0_12 = arith.constant 0 : index
    %c2 = arith.constant 2 : index
    %11 = vector.load %arg1[%c0_11, %c0_12, %c2] : memref<1x8x1404xbf16, #tpu.memory_space<vmem>>, vector<1x8x1296xbf16>
    %12 = vector.shape_cast %11 : vector<1x8x1296xbf16> to vector<8x1296xbf16>
    %c2_13 = arith.constant 2 : index
    %c0_14 = arith.constant 0 : index
    %c0_15 = arith.constant 0 : index
    %13 = vector.load %arg2[%c2_13, %c0_14, %c0_15] : memref<9x8x8xbf16, #tpu.memory_space<vmem>>, vector<1x8x8xbf16>
    %14 = vector.shape_cast %13 : vector<1x8x8xbf16> to vector<8x8xbf16>
    %cst_16 = arith.constant dense<0.000000e+00> : vector<8x1296xf32>
    %15 = tpu.matmul %14, %12, %cst_16 {dimension_numbers = #tpu.dot_dimension_numbers<[1], [0], [0], [1], [0, 0, 1, 1], [], []>} : vector<8x8xbf16>, vector<8x1296xbf16>, vector<8x1296xf32> -> vector<8x1296xf32>
    %16 = arith.addf %10, %15 : vector<8x1296xf32>
    %c0_17 = arith.constant 0 : index
    %c0_18 = arith.constant 0 : index
    %c36 = arith.constant 36 : index
    %17 = vector.load %arg1[%c0_17, %c0_18, %c36] : memref<1x8x1404xbf16, #tpu.memory_space<vmem>>, vector<1x8x1296xbf16>
    %18 = vector.shape_cast %17 : vector<1x8x1296xbf16> to vector<8x1296xbf16>
    %c3 = arith.constant 3 : index
    %c0_19 = arith.constant 0 : index
    %c0_20 = arith.constant 0 : index
    %19 = vector.load %arg2[%c3, %c0_19, %c0_20] : memref<9x8x8xbf16, #tpu.memory_space<vmem>>, vector<1x8x8xbf16>
    %20 = vector.shape_cast %19 : vector<1x8x8xbf16> to vector<8x8xbf16>
    %cst_21 = arith.constant dense<0.000000e+00> : vector<8x1296xf32>
    %21 = tpu.matmul %20, %18, %cst_21 {dimension_numbers = #tpu.dot_dimension_numbers<[1], [0], [0], [1], [0, 0, 1, 1], [], []>} : vector<8x8xbf16>, vector<8x1296xbf16>, vector<8x1296xf32> -> vector<8x1296xf32>
    %22 = arith.addf %16, %21 : vector<8x1296xf32>
    %c0_22 = arith.constant 0 : index
    %c0_23 = arith.constant 0 : index
    %c37 = arith.constant 37 : index
    %23 = vector.load %arg1[%c0_22, %c0_23, %c37] : memref<1x8x1404xbf16, #tpu.memory_space<vmem>>, vector<1x8x1296xbf16>
    %24 = vector.shape_cast %23 : vector<1x8x1296xbf16> to vector<8x1296xbf16>
    %c4 = arith.constant 4 : index
    %c0_24 = arith.constant 0 : index
    %c0_25 = arith.constant 0 : index
    %25 = vector.load %arg2[%c4, %c0_24, %c0_25] : memref<9x8x8xbf16, #tpu.memory_space<vmem>>, vector<1x8x8xbf16>
    %26 = vector.shape_cast %25 : vector<1x8x8xbf16> to vector<8x8xbf16>
    %cst_26 = arith.constant dense<0.000000e+00> : vector<8x1296xf32>
    %27 = tpu.matmul %26, %24, %cst_26 {dimension_numbers = #tpu.dot_dimension_numbers<[1], [0], [0], [1], [0, 0, 1, 1], [], []>} : vector<8x8xbf16>, vector<8x1296xbf16>, vector<8x1296xf32> -> vector<8x1296xf32>
    %28 = arith.addf %22, %27 : vector<8x1296xf32>
    %c0_27 = arith.constant 0 : index
    %c0_28 = arith.constant 0 : index
    %c38 = arith.constant 38 : index
    %29 = vector.load %arg1[%c0_27, %c0_28, %c38] : memref<1x8x1404xbf16, #tpu.memory_space<vmem>>, vector<1x8x1296xbf16>
    %30 = vector.shape_cast %29 : vector<1x8x1296xbf16> to vector<8x1296xbf16>
    %c5 = arith.constant 5 : index
    %c0_29 = arith.constant 0 : index
    %c0_30 = arith.constant 0 : index
    %31 = vector.load %arg2[%c5, %c0_29, %c0_30] : memref<9x8x8xbf16, #tpu.memory_space<vmem>>, vector<1x8x8xbf16>
    %32 = vector.shape_cast %31 : vector<1x8x8xbf16> to vector<8x8xbf16>
    %cst_31 = arith.constant dense<0.000000e+00> : vector<8x1296xf32>
    %33 = tpu.matmul %32, %30, %cst_31 {dimension_numbers = #tpu.dot_dimension_numbers<[1], [0], [0], [1], [0, 0, 1, 1], [], []>} : vector<8x8xbf16>, vector<8x1296xbf16>, vector<8x1296xf32> -> vector<8x1296xf32>
    %34 = arith.addf %28, %33 : vector<8x1296xf32>
    %c0_32 = arith.constant 0 : index
    %c0_33 = arith.constant 0 : index
    %c72 = arith.constant 72 : index
    %35 = vector.load %arg1[%c0_32, %c0_33, %c72] : memref<1x8x1404xbf16, #tpu.memory_space<vmem>>, vector<1x8x1296xbf16>
    %36 = vector.shape_cast %35 : vector<1x8x1296xbf16> to vector<8x1296xbf16>
    %c6 = arith.constant 6 : index
    %c0_34 = arith.constant 0 : index
    %c0_35 = arith.constant 0 : index
    %37 = vector.load %arg2[%c6, %c0_34, %c0_35] : memref<9x8x8xbf16, #tpu.memory_space<vmem>>, vector<1x8x8xbf16>
    %38 = vector.shape_cast %37 : vector<1x8x8xbf16> to vector<8x8xbf16>
    %cst_36 = arith.constant dense<0.000000e+00> : vector<8x1296xf32>
    %39 = tpu.matmul %38, %36, %cst_36 {dimension_numbers = #tpu.dot_dimension_numbers<[1], [0], [0], [1], [0, 0, 1, 1], [], []>} : vector<8x8xbf16>, vector<8x1296xbf16>, vector<8x1296xf32> -> vector<8x1296xf32>
    %40 = arith.addf %34, %39 : vector<8x1296xf32>
    %c0_37 = arith.constant 0 : index
    %c0_38 = arith.constant 0 : index
    %c73 = arith.constant 73 : index
    %41 = vector.load %arg1[%c0_37, %c0_38, %c73] : memref<1x8x1404xbf16, #tpu.memory_space<vmem>>, vector<1x8x1296xbf16>
    %42 = vector.shape_cast %41 : vector<1x8x1296xbf16> to vector<8x1296xbf16>
    %c7 = arith.constant 7 : index
    %c0_39 = arith.constant 0 : index
    %c0_40 = arith.constant 0 : index
    %43 = vector.load %arg2[%c7, %c0_39, %c0_40] : memref<9x8x8xbf16, #tpu.memory_space<vmem>>, vector<1x8x8xbf16>
    %44 = vector.shape_cast %43 : vector<1x8x8xbf16> to vector<8x8xbf16>
    %cst_41 = arith.constant dense<0.000000e+00> : vector<8x1296xf32>
    %45 = tpu.matmul %44, %42, %cst_41 {dimension_numbers = #tpu.dot_dimension_numbers<[1], [0], [0], [1], [0, 0, 1, 1], [], []>} : vector<8x8xbf16>, vector<8x1296xbf16>, vector<8x1296xf32> -> vector<8x1296xf32>
    %46 = arith.addf %40, %45 : vector<8x1296xf32>
    %c0_42 = arith.constant 0 : index
    %c0_43 = arith.constant 0 : index
    %c74 = arith.constant 74 : index
    %47 = vector.load %arg1[%c0_42, %c0_43, %c74] : memref<1x8x1404xbf16, #tpu.memory_space<vmem>>, vector<1x8x1296xbf16>
    %48 = vector.shape_cast %47 : vector<1x8x1296xbf16> to vector<8x1296xbf16>
    %c8 = arith.constant 8 : index
    %c0_44 = arith.constant 0 : index
    %c0_45 = arith.constant 0 : index
    %49 = vector.load %arg2[%c8, %c0_44, %c0_45] : memref<9x8x8xbf16, #tpu.memory_space<vmem>>, vector<1x8x8xbf16>
    %50 = vector.shape_cast %49 : vector<1x8x8xbf16> to vector<8x8xbf16>
    %cst_46 = arith.constant dense<0.000000e+00> : vector<8x1296xf32>
    %51 = tpu.matmul %50, %48, %cst_46 {dimension_numbers = #tpu.dot_dimension_numbers<[1], [0], [0], [1], [0, 0, 1, 1], [], []>} : vector<8x8xbf16>, vector<8x1296xbf16>, vector<8x1296xf32> -> vector<8x1296xf32>
    %52 = arith.addf %46, %51 : vector<8x1296xf32>
    %c0_47 = arith.constant 0 : index
    %c0_48 = arith.constant 0 : index
    %53 = vector.load %arg3[%c0_47, %c0_48] : memref<8x1xf32, #tpu.memory_space<vmem>>, vector<8x1xf32>
    %54 = vector.broadcast %53 : vector<8x1xf32> to vector<8x1296xf32>
    %55 = arith.addf %52, %54 : vector<8x1296xf32>
    %56 = math.tanh %55 : vector<8x1296xf32>
    %57 = arith.truncf %56 : vector<8x1296xf32> to vector<8x1296xbf16>
    %c0_49 = arith.constant 0 : index
    %c0_50 = arith.constant 0 : index
    %c0_51 = arith.constant 0 : index
    %58 = vector.load %arg4[%c0_49, %c0_50, %c0_51] : memref<1x8x1296xbf16, #tpu.memory_space<vmem>>, vector<1x8x1296xbf16>
    %59 = vector.shape_cast %58 : vector<1x8x1296xbf16> to vector<8x1296xbf16>
    %60 = vector.shape_cast %57 : vector<8x1296xbf16> to vector<1x8x1296xbf16>
    tpu.vector_store %arg4[%c0_49, %c0_50, %c0_51], %60 {strides = array<i32>} : memref<1x8x1296xbf16, #tpu.memory_space<vmem>>, vector<1x8x1296xbf16>,
    return
  }
  func.func @transform_0(%arg0: i32) -> (i32, i32, i32) {
    %c0_i32 = arith.constant 0 : i32
    %c0_i32_0 = arith.constant 0 : i32
    %c0_i32_1 = arith.constant 0 : i32
    return %arg0, %c0_i32, %c0_i32_0 : i32, i32, i32
  }
  func.func @transform_1(%arg0: i32) -> (i32, i32, i32) {
    %c0_i32 = arith.constant 0 : i32
    %c0_i32_0 = arith.constant 0 : i32
    %c0_i32_1 = arith.constant 0 : i32
    %c0_i32_2 = arith.constant 0 : i32
    return %c0_i32, %c0_i32_0, %c0_i32_1 : i32, i32, i32
  }
  func.func @transform_2(%arg0: i32) -> (i32, i32) {
    %c0_i32 = arith.constant 0 : i32
    %c0_i32_0 = arith.constant 0 : i32
    %c0_i32_1 = arith.constant 0 : i32
    return %c0_i32, %c0_i32_0 : i32, i32
  }
  func.func @transform_3(%arg0: i32) -> (i32, i32, i32) {
    %c0_i32 = arith.constant 0 : i32
    %c0_i32_0 = arith.constant 0 : i32
    %c0_i32_1 = arith.constant 0 : i32
    return %arg0, %c0_i32, %c0_i32_0 : i32, i32, i32
  }
}

module attributes {stable_mosaic.version = 11 : i64} {
  func.func @_conv_act_kernel(%arg0: i32, %arg1: memref<1x8x1156xbf16, #tpu.memory_space<vmem>>, %arg2: memref<1x1x8xbf16, #tpu.memory_space<vmem>>, %arg3: memref<1x1xf32, #tpu.memory_space<vmem>>, %arg4: memref<1x1x1156xbf16, #tpu.memory_space<vmem>>) attributes {dimension_semantics = [#tpu.dimension_semantics<parallel>], iteration_bounds = array<i64: 8>, scalar_prefetch = 0 : i64, scratch_operands = 0 : i64, tpu.core_type = #tpu.core_type<tc>, window_params = [{transform_indices = @transform_0, window_bounds = array<i64: 1, 8, 1156>}, {pipeline_mode = #tpu.pipeline_mode<synchronous>, transform_indices = @transform_1, window_bounds = array<i64: 1, 1, 8>}, {pipeline_mode = #tpu.pipeline_mode<synchronous>, transform_indices = @transform_2, window_bounds = array<i64: 1, 1>}, {transform_indices = @transform_3, window_bounds = array<i64: 1, 1, 1156>}]} {
    %c0 = arith.constant 0 : index
    %c0_0 = arith.constant 0 : index
    %c0_1 = arith.constant 0 : index
    %0 = vector.load %arg1[%c0, %c0_0, %c0_1] : memref<1x8x1156xbf16, #tpu.memory_space<vmem>>, vector<1x8x1156xbf16>
    %1 = vector.shape_cast %0 : vector<1x8x1156xbf16> to vector<8x1156xbf16>
    %c0_2 = arith.constant 0 : index
    %c0_3 = arith.constant 0 : index
    %c0_4 = arith.constant 0 : index
    %2 = vector.load %arg2[%c0_2, %c0_3, %c0_4] : memref<1x1x8xbf16, #tpu.memory_space<vmem>>, vector<1x1x8xbf16>
    %3 = vector.shape_cast %2 : vector<1x1x8xbf16> to vector<1x8xbf16>
    %cst = arith.constant dense<0.000000e+00> : vector<1x1156xf32>
    %4 = tpu.matmul %3, %1, %cst {dimension_numbers = #tpu.dot_dimension_numbers<[1], [0], [0], [1], [0, 0, 1, 1], [], []>} : vector<1x8xbf16>, vector<8x1156xbf16>, vector<1x1156xf32> -> vector<1x1156xf32>
    %c0_5 = arith.constant 0 : index
    %c0_6 = arith.constant 0 : index
    %5 = vector.load %arg3[%c0_5, %c0_6] : memref<1x1xf32, #tpu.memory_space<vmem>>, vector<1x1xf32>
    %6 = vector.broadcast %5 : vector<1x1xf32> to vector<1x1156xf32>
    %7 = arith.addf %4, %6 : vector<1x1156xf32>
    %8 = arith.negf %7 : vector<1x1156xf32>
    %9 = math.exp %8 : vector<1x1156xf32>
    %cst_7 = arith.constant 1.000000e+00 : f32
    %10 = vector.broadcast %cst_7 : f32 to vector<1x1156xf32>
    %11 = arith.addf %10, %9 : vector<1x1156xf32>
    %12 = arith.divf %10, %11 : vector<1x1156xf32>
    %13 = arith.truncf %12 : vector<1x1156xf32> to vector<1x1156xbf16>
    %c0_8 = arith.constant 0 : index
    %c0_9 = arith.constant 0 : index
    %c0_10 = arith.constant 0 : index
    %14 = vector.load %arg4[%c0_8, %c0_9, %c0_10] : memref<1x1x1156xbf16, #tpu.memory_space<vmem>>, vector<1x1x1156xbf16>
    %15 = vector.shape_cast %14 : vector<1x1x1156xbf16> to vector<1x1156xbf16>
    %16 = vector.shape_cast %13 : vector<1x1156xbf16> to vector<1x1x1156xbf16>
    tpu.vector_store %arg4[%c0_8, %c0_9, %c0_10], %16 {strides = array<i32>} : memref<1x1x1156xbf16, #tpu.memory_space<vmem>>, vector<1x1x1156xbf16>,
    return
  }
  func.func @transform_0(%arg0: i32) -> (i32, i32, i32) {
    %c0_i32 = arith.constant 0 : i32
    %c0_i32_0 = arith.constant 0 : i32
    %c0_i32_1 = arith.constant 0 : i32
    return %arg0, %c0_i32, %c0_i32_0 : i32, i32, i32
  }
  func.func @transform_1(%arg0: i32) -> (i32, i32, i32) {
    %c0_i32 = arith.constant 0 : i32
    %c0_i32_0 = arith.constant 0 : i32
    %c0_i32_1 = arith.constant 0 : i32
    %c0_i32_2 = arith.constant 0 : i32
    return %c0_i32, %c0_i32_0, %c0_i32_1 : i32, i32, i32
  }
  func.func @transform_2(%arg0: i32) -> (i32, i32) {
    %c0_i32 = arith.constant 0 : i32
    %c0_i32_0 = arith.constant 0 : i32
    %c0_i32_1 = arith.constant 0 : i32
    return %c0_i32, %c0_i32_0 : i32, i32
  }
  func.func @transform_3(%arg0: i32) -> (i32, i32, i32) {
    %c0_i32 = arith.constant 0 : i32
    %c0_i32_0 = arith.constant 0 : i32
    %c0_i32_1 = arith.constant 0 : i32
    return %arg0, %c0_i32, %c0_i32_0 : i32, i32, i32
  }
}

module attributes {stable_mosaic.version = 11 : i64} {
  func.func @_attn_gate_kernel(%arg0: i32, %arg1: memref<8x1156xbf16, #tpu.memory_space<vmem>>, %arg2: memref<8x8x1156xbf16, #tpu.memory_space<vmem>>, %arg3: memref<8x8x1156xbf16, #tpu.memory_space<vmem>>) attributes {dimension_semantics = [#tpu.dimension_semantics<arbitrary>], iteration_bounds = array<i64: 1>, scalar_prefetch = 0 : i64, scratch_operands = 0 : i64, tpu.core_type = #tpu.core_type<tc>, window_params = [{pipeline_mode = #tpu.pipeline_mode<synchronous>, transform_indices = @transform_0, window_bounds = array<i64: 8, 1156>}, {pipeline_mode = #tpu.pipeline_mode<synchronous>, transform_indices = @transform_1, window_bounds = array<i64: 8, 8, 1156>}, {pipeline_mode = #tpu.pipeline_mode<synchronous>, transform_indices = @transform_2, window_bounds = array<i64: 8, 8, 1156>}]} {
    %c0 = arith.constant 0 : index
    %c0_0 = arith.constant 0 : index
    %0 = vector.load %arg1[%c0, %c0_0] : memref<8x1156xbf16, #tpu.memory_space<vmem>>, vector<8x1156xbf16>
    %1 = arith.extf %0 : vector<8x1156xbf16> to vector<8x1156xf32>
    %cst = arith.constant dense<0.000000e+00> : vector<8xf32>
    %2 = vector.multi_reduction <add>, %1, %cst [1] : vector<8x1156xf32> to vector<8xf32>
    %3 = vector.shape_cast %2 : vector<8xf32> to vector<8x1xf32>
    %cst_1 = arith.constant 1.700000e+01 : f32
    %4 = vector.broadcast %cst_1 : f32 to vector<8x1156xf32>
    %5 = arith.mulf %1, %4 : vector<8x1156xf32>
    %6 = tpu.reciprocal %3 {approx = true} : vector<8x1xf32> -> vector<8x1xf32>
    %7 = vector.broadcast %6 : vector<8x1xf32> to vector<8x1156xf32>
    %8 = arith.mulf %5, %7 : vector<8x1156xf32>
    %c0_2 = arith.constant 0 : index
    %c0_3 = arith.constant 0 : index
    %c0_4 = arith.constant 0 : index
    %9 = vector.load %arg2[%c0_2, %c0_3, %c0_4] : memref<8x8x1156xbf16, #tpu.memory_space<vmem>>, vector<8x8x1156xbf16>
    %10 = arith.extf %9 : vector<8x8x1156xbf16> to vector<8x8x1156xf32>
    %11 = vector.shape_cast %8 : vector<8x1156xf32> to vector<8x1x1156xf32>
    %12 = vector.broadcast %11 : vector<8x1x1156xf32> to vector<8x8x1156xf32>
    %13 = arith.mulf %10, %12 : vector<8x8x1156xf32>
    %14 = arith.truncf %13 : vector<8x8x1156xf32> to vector<8x8x1156xbf16>
    %c0_5 = arith.constant 0 : index
    %c0_6 = arith.constant 0 : index
    %c0_7 = arith.constant 0 : index
    %15 = vector.load %arg3[%c0_5, %c0_6, %c0_7] : memref<8x8x1156xbf16, #tpu.memory_space<vmem>>, vector<8x8x1156xbf16>
    tpu.vector_store %arg3[%c0_5, %c0_6, %c0_7], %14 {strides = array<i32>} : memref<8x8x1156xbf16, #tpu.memory_space<vmem>>, vector<8x8x1156xbf16>,
    return
  }
  func.func @transform_0(%arg0: i32) -> (i32, i32) {
    %c0_i32 = arith.constant 0 : i32
    %c0_i32_0 = arith.constant 0 : i32
    %c0_i32_1 = arith.constant 0 : i32
    return %c0_i32, %c0_i32_0 : i32, i32
  }
  func.func @transform_1(%arg0: i32) -> (i32, i32, i32) {
    %c0_i32 = arith.constant 0 : i32
    %c0_i32_0 = arith.constant 0 : i32
    %c0_i32_1 = arith.constant 0 : i32
    %c0_i32_2 = arith.constant 0 : i32
    return %c0_i32, %c0_i32_0, %c0_i32_1 : i32, i32, i32
  }
  func.func @transform_2(%arg0: i32) -> (i32, i32, i32) {
    %c0_i32 = arith.constant 0 : i32
    %c0_i32_0 = arith.constant 0 : i32
    %c0_i32_1 = arith.constant 0 : i32
    %c0_i32_2 = arith.constant 0 : i32
    return %c0_i32, %c0_i32_0, %c0_i32_1 : i32, i32, i32
  }
}

module attributes {stable_mosaic.version = 11 : i64} {
  func.func @_conv_act_kernel(%arg0: i32, %arg1: memref<1x8x418xbf16, #tpu.memory_space<vmem>>, %arg2: memref<9x8x8xbf16, #tpu.memory_space<vmem>>, %arg3: memref<8x1xf32, #tpu.memory_space<vmem>>, %arg4: memref<1x8x361xbf16, #tpu.memory_space<vmem>>) attributes {dimension_semantics = [#tpu.dimension_semantics<parallel>], iteration_bounds = array<i64: 8>, scalar_prefetch = 0 : i64, scratch_operands = 0 : i64, tpu.core_type = #tpu.core_type<tc>, window_params = [{transform_indices = @transform_0, window_bounds = array<i64: 1, 8, 418>}, {pipeline_mode = #tpu.pipeline_mode<synchronous>, transform_indices = @transform_1, window_bounds = array<i64: 9, 8, 8>}, {pipeline_mode = #tpu.pipeline_mode<synchronous>, transform_indices = @transform_2, window_bounds = array<i64: 8, 1>}, {transform_indices = @transform_3, window_bounds = array<i64: 1, 8, 361>}]} {
    %c0 = arith.constant 0 : index
    %c0_0 = arith.constant 0 : index
    %c0_1 = arith.constant 0 : index
    %0 = vector.load %arg1[%c0, %c0_0, %c0_1] : memref<1x8x418xbf16, #tpu.memory_space<vmem>>, vector<1x8x361xbf16>
    %1 = vector.shape_cast %0 : vector<1x8x361xbf16> to vector<8x361xbf16>
    %c0_2 = arith.constant 0 : index
    %c0_3 = arith.constant 0 : index
    %c0_4 = arith.constant 0 : index
    %2 = vector.load %arg2[%c0_2, %c0_3, %c0_4] : memref<9x8x8xbf16, #tpu.memory_space<vmem>>, vector<1x8x8xbf16>
    %3 = vector.shape_cast %2 : vector<1x8x8xbf16> to vector<8x8xbf16>
    %cst = arith.constant dense<0.000000e+00> : vector<8x361xf32>
    %4 = tpu.matmul %3, %1, %cst {dimension_numbers = #tpu.dot_dimension_numbers<[1], [0], [0], [1], [0, 0, 1, 1], [], []>} : vector<8x8xbf16>, vector<8x361xbf16>, vector<8x361xf32> -> vector<8x361xf32>
    %c0_5 = arith.constant 0 : index
    %c0_6 = arith.constant 0 : index
    %c1 = arith.constant 1 : index
    %5 = vector.load %arg1[%c0_5, %c0_6, %c1] : memref<1x8x418xbf16, #tpu.memory_space<vmem>>, vector<1x8x361xbf16>
    %6 = vector.shape_cast %5 : vector<1x8x361xbf16> to vector<8x361xbf16>
    %c1_7 = arith.constant 1 : index
    %c0_8 = arith.constant 0 : index
    %c0_9 = arith.constant 0 : index
    %7 = vector.load %arg2[%c1_7, %c0_8, %c0_9] : memref<9x8x8xbf16, #tpu.memory_space<vmem>>, vector<1x8x8xbf16>
    %8 = vector.shape_cast %7 : vector<1x8x8xbf16> to vector<8x8xbf16>
    %cst_10 = arith.constant dense<0.000000e+00> : vector<8x361xf32>
    %9 = tpu.matmul %8, %6, %cst_10 {dimension_numbers = #tpu.dot_dimension_numbers<[1], [0], [0], [1], [0, 0, 1, 1], [], []>} : vector<8x8xbf16>, vector<8x361xbf16>, vector<8x361xf32> -> vector<8x361xf32>
    %10 = arith.addf %4, %9 : vector<8x361xf32>
    %c0_11 = arith.constant 0 : index
    %c0_12 = arith.constant 0 : index
    %c2 = arith.constant 2 : index
    %11 = vector.load %arg1[%c0_11, %c0_12, %c2] : memref<1x8x418xbf16, #tpu.memory_space<vmem>>, vector<1x8x361xbf16>
    %12 = vector.shape_cast %11 : vector<1x8x361xbf16> to vector<8x361xbf16>
    %c2_13 = arith.constant 2 : index
    %c0_14 = arith.constant 0 : index
    %c0_15 = arith.constant 0 : index
    %13 = vector.load %arg2[%c2_13, %c0_14, %c0_15] : memref<9x8x8xbf16, #tpu.memory_space<vmem>>, vector<1x8x8xbf16>
    %14 = vector.shape_cast %13 : vector<1x8x8xbf16> to vector<8x8xbf16>
    %cst_16 = arith.constant dense<0.000000e+00> : vector<8x361xf32>
    %15 = tpu.matmul %14, %12, %cst_16 {dimension_numbers = #tpu.dot_dimension_numbers<[1], [0], [0], [1], [0, 0, 1, 1], [], []>} : vector<8x8xbf16>, vector<8x361xbf16>, vector<8x361xf32> -> vector<8x361xf32>
    %16 = arith.addf %10, %15 : vector<8x361xf32>
    %c0_17 = arith.constant 0 : index
    %c0_18 = arith.constant 0 : index
    %c19 = arith.constant 19 : index
    %17 = vector.load %arg1[%c0_17, %c0_18, %c19] : memref<1x8x418xbf16, #tpu.memory_space<vmem>>, vector<1x8x361xbf16>
    %18 = vector.shape_cast %17 : vector<1x8x361xbf16> to vector<8x361xbf16>
    %c3 = arith.constant 3 : index
    %c0_19 = arith.constant 0 : index
    %c0_20 = arith.constant 0 : index
    %19 = vector.load %arg2[%c3, %c0_19, %c0_20] : memref<9x8x8xbf16, #tpu.memory_space<vmem>>, vector<1x8x8xbf16>
    %20 = vector.shape_cast %19 : vector<1x8x8xbf16> to vector<8x8xbf16>
    %cst_21 = arith.constant dense<0.000000e+00> : vector<8x361xf32>
    %21 = tpu.matmul %20, %18, %cst_21 {dimension_numbers = #tpu.dot_dimension_numbers<[1], [0], [0], [1], [0, 0, 1, 1], [], []>} : vector<8x8xbf16>, vector<8x361xbf16>, vector<8x361xf32> -> vector<8x361xf32>
    %22 = arith.addf %16, %21 : vector<8x361xf32>
    %c0_22 = arith.constant 0 : index
    %c0_23 = arith.constant 0 : index
    %c20 = arith.constant 20 : index
    %23 = vector.load %arg1[%c0_22, %c0_23, %c20] : memref<1x8x418xbf16, #tpu.memory_space<vmem>>, vector<1x8x361xbf16>
    %24 = vector.shape_cast %23 : vector<1x8x361xbf16> to vector<8x361xbf16>
    %c4 = arith.constant 4 : index
    %c0_24 = arith.constant 0 : index
    %c0_25 = arith.constant 0 : index
    %25 = vector.load %arg2[%c4, %c0_24, %c0_25] : memref<9x8x8xbf16, #tpu.memory_space<vmem>>, vector<1x8x8xbf16>
    %26 = vector.shape_cast %25 : vector<1x8x8xbf16> to vector<8x8xbf16>
    %cst_26 = arith.constant dense<0.000000e+00> : vector<8x361xf32>
    %27 = tpu.matmul %26, %24, %cst_26 {dimension_numbers = #tpu.dot_dimension_numbers<[1], [0], [0], [1], [0, 0, 1, 1], [], []>} : vector<8x8xbf16>, vector<8x361xbf16>, vector<8x361xf32> -> vector<8x361xf32>
    %28 = arith.addf %22, %27 : vector<8x361xf32>
    %c0_27 = arith.constant 0 : index
    %c0_28 = arith.constant 0 : index
    %c21 = arith.constant 21 : index
    %29 = vector.load %arg1[%c0_27, %c0_28, %c21] : memref<1x8x418xbf16, #tpu.memory_space<vmem>>, vector<1x8x361xbf16>
    %30 = vector.shape_cast %29 : vector<1x8x361xbf16> to vector<8x361xbf16>
    %c5 = arith.constant 5 : index
    %c0_29 = arith.constant 0 : index
    %c0_30 = arith.constant 0 : index
    %31 = vector.load %arg2[%c5, %c0_29, %c0_30] : memref<9x8x8xbf16, #tpu.memory_space<vmem>>, vector<1x8x8xbf16>
    %32 = vector.shape_cast %31 : vector<1x8x8xbf16> to vector<8x8xbf16>
    %cst_31 = arith.constant dense<0.000000e+00> : vector<8x361xf32>
    %33 = tpu.matmul %32, %30, %cst_31 {dimension_numbers = #tpu.dot_dimension_numbers<[1], [0], [0], [1], [0, 0, 1, 1], [], []>} : vector<8x8xbf16>, vector<8x361xbf16>, vector<8x361xf32> -> vector<8x361xf32>
    %34 = arith.addf %28, %33 : vector<8x361xf32>
    %c0_32 = arith.constant 0 : index
    %c0_33 = arith.constant 0 : index
    %c38 = arith.constant 38 : index
    %35 = vector.load %arg1[%c0_32, %c0_33, %c38] : memref<1x8x418xbf16, #tpu.memory_space<vmem>>, vector<1x8x361xbf16>
    %36 = vector.shape_cast %35 : vector<1x8x361xbf16> to vector<8x361xbf16>
    %c6 = arith.constant 6 : index
    %c0_34 = arith.constant 0 : index
    %c0_35 = arith.constant 0 : index
    %37 = vector.load %arg2[%c6, %c0_34, %c0_35] : memref<9x8x8xbf16, #tpu.memory_space<vmem>>, vector<1x8x8xbf16>
    %38 = vector.shape_cast %37 : vector<1x8x8xbf16> to vector<8x8xbf16>
    %cst_36 = arith.constant dense<0.000000e+00> : vector<8x361xf32>
    %39 = tpu.matmul %38, %36, %cst_36 {dimension_numbers = #tpu.dot_dimension_numbers<[1], [0], [0], [1], [0, 0, 1, 1], [], []>} : vector<8x8xbf16>, vector<8x361xbf16>, vector<8x361xf32> -> vector<8x361xf32>
    %40 = arith.addf %34, %39 : vector<8x361xf32>
    %c0_37 = arith.constant 0 : index
    %c0_38 = arith.constant 0 : index
    %c39 = arith.constant 39 : index
    %41 = vector.load %arg1[%c0_37, %c0_38, %c39] : memref<1x8x418xbf16, #tpu.memory_space<vmem>>, vector<1x8x361xbf16>
    %42 = vector.shape_cast %41 : vector<1x8x361xbf16> to vector<8x361xbf16>
    %c7 = arith.constant 7 : index
    %c0_39 = arith.constant 0 : index
    %c0_40 = arith.constant 0 : index
    %43 = vector.load %arg2[%c7, %c0_39, %c0_40] : memref<9x8x8xbf16, #tpu.memory_space<vmem>>, vector<1x8x8xbf16>
    %44 = vector.shape_cast %43 : vector<1x8x8xbf16> to vector<8x8xbf16>
    %cst_41 = arith.constant dense<0.000000e+00> : vector<8x361xf32>
    %45 = tpu.matmul %44, %42, %cst_41 {dimension_numbers = #tpu.dot_dimension_numbers<[1], [0], [0], [1], [0, 0, 1, 1], [], []>} : vector<8x8xbf16>, vector<8x361xbf16>, vector<8x361xf32> -> vector<8x361xf32>
    %46 = arith.addf %40, %45 : vector<8x361xf32>
    %c0_42 = arith.constant 0 : index
    %c0_43 = arith.constant 0 : index
    %c40 = arith.constant 40 : index
    %47 = vector.load %arg1[%c0_42, %c0_43, %c40] : memref<1x8x418xbf16, #tpu.memory_space<vmem>>, vector<1x8x361xbf16>
    %48 = vector.shape_cast %47 : vector<1x8x361xbf16> to vector<8x361xbf16>
    %c8 = arith.constant 8 : index
    %c0_44 = arith.constant 0 : index
    %c0_45 = arith.constant 0 : index
    %49 = vector.load %arg2[%c8, %c0_44, %c0_45] : memref<9x8x8xbf16, #tpu.memory_space<vmem>>, vector<1x8x8xbf16>
    %50 = vector.shape_cast %49 : vector<1x8x8xbf16> to vector<8x8xbf16>
    %cst_46 = arith.constant dense<0.000000e+00> : vector<8x361xf32>
    %51 = tpu.matmul %50, %48, %cst_46 {dimension_numbers = #tpu.dot_dimension_numbers<[1], [0], [0], [1], [0, 0, 1, 1], [], []>} : vector<8x8xbf16>, vector<8x361xbf16>, vector<8x361xf32> -> vector<8x361xf32>
    %52 = arith.addf %46, %51 : vector<8x361xf32>
    %c0_47 = arith.constant 0 : index
    %c0_48 = arith.constant 0 : index
    %53 = vector.load %arg3[%c0_47, %c0_48] : memref<8x1xf32, #tpu.memory_space<vmem>>, vector<8x1xf32>
    %54 = vector.broadcast %53 : vector<8x1xf32> to vector<8x361xf32>
    %55 = arith.addf %52, %54 : vector<8x361xf32>
    %56 = math.tanh %55 : vector<8x361xf32>
    %57 = arith.truncf %56 : vector<8x361xf32> to vector<8x361xbf16>
    %c0_49 = arith.constant 0 : index
    %c0_50 = arith.constant 0 : index
    %c0_51 = arith.constant 0 : index
    %58 = vector.load %arg4[%c0_49, %c0_50, %c0_51] : memref<1x8x361xbf16, #tpu.memory_space<vmem>>, vector<1x8x361xbf16>
    %59 = vector.shape_cast %58 : vector<1x8x361xbf16> to vector<8x361xbf16>
    %60 = vector.shape_cast %57 : vector<8x361xbf16> to vector<1x8x361xbf16>
    tpu.vector_store %arg4[%c0_49, %c0_50, %c0_51], %60 {strides = array<i32>} : memref<1x8x361xbf16, #tpu.memory_space<vmem>>, vector<1x8x361xbf16>,
    return
  }
  func.func @transform_0(%arg0: i32) -> (i32, i32, i32) {
    %c0_i32 = arith.constant 0 : i32
    %c0_i32_0 = arith.constant 0 : i32
    %c0_i32_1 = arith.constant 0 : i32
    return %arg0, %c0_i32, %c0_i32_0 : i32, i32, i32
  }
  func.func @transform_1(%arg0: i32) -> (i32, i32, i32) {
    %c0_i32 = arith.constant 0 : i32
    %c0_i32_0 = arith.constant 0 : i32
    %c0_i32_1 = arith.constant 0 : i32
    %c0_i32_2 = arith.constant 0 : i32
    return %c0_i32, %c0_i32_0, %c0_i32_1 : i32, i32, i32
  }
  func.func @transform_2(%arg0: i32) -> (i32, i32) {
    %c0_i32 = arith.constant 0 : i32
    %c0_i32_0 = arith.constant 0 : i32
    %c0_i32_1 = arith.constant 0 : i32
    return %c0_i32, %c0_i32_0 : i32, i32
  }
  func.func @transform_3(%arg0: i32) -> (i32, i32, i32) {
    %c0_i32 = arith.constant 0 : i32
    %c0_i32_0 = arith.constant 0 : i32
    %c0_i32_1 = arith.constant 0 : i32
    return %arg0, %c0_i32, %c0_i32_0 : i32, i32, i32
  }
}

module attributes {stable_mosaic.version = 11 : i64} {
  func.func @_conv_act_kernel(%arg0: i32, %arg1: memref<1x8x340xbf16, #tpu.memory_space<vmem>>, %arg2: memref<9x8x8xbf16, #tpu.memory_space<vmem>>, %arg3: memref<8x1xf32, #tpu.memory_space<vmem>>, %arg4: memref<1x8x289xbf16, #tpu.memory_space<vmem>>) attributes {dimension_semantics = [#tpu.dimension_semantics<parallel>], iteration_bounds = array<i64: 8>, scalar_prefetch = 0 : i64, scratch_operands = 0 : i64, tpu.core_type = #tpu.core_type<tc>, window_params = [{transform_indices = @transform_0, window_bounds = array<i64: 1, 8, 340>}, {pipeline_mode = #tpu.pipeline_mode<synchronous>, transform_indices = @transform_1, window_bounds = array<i64: 9, 8, 8>}, {pipeline_mode = #tpu.pipeline_mode<synchronous>, transform_indices = @transform_2, window_bounds = array<i64: 8, 1>}, {transform_indices = @transform_3, window_bounds = array<i64: 1, 8, 289>}]} {
    %c0 = arith.constant 0 : index
    %c0_0 = arith.constant 0 : index
    %c0_1 = arith.constant 0 : index
    %0 = vector.load %arg1[%c0, %c0_0, %c0_1] : memref<1x8x340xbf16, #tpu.memory_space<vmem>>, vector<1x8x289xbf16>
    %1 = vector.shape_cast %0 : vector<1x8x289xbf16> to vector<8x289xbf16>
    %c0_2 = arith.constant 0 : index
    %c0_3 = arith.constant 0 : index
    %c0_4 = arith.constant 0 : index
    %2 = vector.load %arg2[%c0_2, %c0_3, %c0_4] : memref<9x8x8xbf16, #tpu.memory_space<vmem>>, vector<1x8x8xbf16>
    %3 = vector.shape_cast %2 : vector<1x8x8xbf16> to vector<8x8xbf16>
    %cst = arith.constant dense<0.000000e+00> : vector<8x289xf32>
    %4 = tpu.matmul %3, %1, %cst {dimension_numbers = #tpu.dot_dimension_numbers<[1], [0], [0], [1], [0, 0, 1, 1], [], []>} : vector<8x8xbf16>, vector<8x289xbf16>, vector<8x289xf32> -> vector<8x289xf32>
    %c0_5 = arith.constant 0 : index
    %c0_6 = arith.constant 0 : index
    %c1 = arith.constant 1 : index
    %5 = vector.load %arg1[%c0_5, %c0_6, %c1] : memref<1x8x340xbf16, #tpu.memory_space<vmem>>, vector<1x8x289xbf16>
    %6 = vector.shape_cast %5 : vector<1x8x289xbf16> to vector<8x289xbf16>
    %c1_7 = arith.constant 1 : index
    %c0_8 = arith.constant 0 : index
    %c0_9 = arith.constant 0 : index
    %7 = vector.load %arg2[%c1_7, %c0_8, %c0_9] : memref<9x8x8xbf16, #tpu.memory_space<vmem>>, vector<1x8x8xbf16>
    %8 = vector.shape_cast %7 : vector<1x8x8xbf16> to vector<8x8xbf16>
    %cst_10 = arith.constant dense<0.000000e+00> : vector<8x289xf32>
    %9 = tpu.matmul %8, %6, %cst_10 {dimension_numbers = #tpu.dot_dimension_numbers<[1], [0], [0], [1], [0, 0, 1, 1], [], []>} : vector<8x8xbf16>, vector<8x289xbf16>, vector<8x289xf32> -> vector<8x289xf32>
    %10 = arith.addf %4, %9 : vector<8x289xf32>
    %c0_11 = arith.constant 0 : index
    %c0_12 = arith.constant 0 : index
    %c2 = arith.constant 2 : index
    %11 = vector.load %arg1[%c0_11, %c0_12, %c2] : memref<1x8x340xbf16, #tpu.memory_space<vmem>>, vector<1x8x289xbf16>
    %12 = vector.shape_cast %11 : vector<1x8x289xbf16> to vector<8x289xbf16>
    %c2_13 = arith.constant 2 : index
    %c0_14 = arith.constant 0 : index
    %c0_15 = arith.constant 0 : index
    %13 = vector.load %arg2[%c2_13, %c0_14, %c0_15] : memref<9x8x8xbf16, #tpu.memory_space<vmem>>, vector<1x8x8xbf16>
    %14 = vector.shape_cast %13 : vector<1x8x8xbf16> to vector<8x8xbf16>
    %cst_16 = arith.constant dense<0.000000e+00> : vector<8x289xf32>
    %15 = tpu.matmul %14, %12, %cst_16 {dimension_numbers = #tpu.dot_dimension_numbers<[1], [0], [0], [1], [0, 0, 1, 1], [], []>} : vector<8x8xbf16>, vector<8x289xbf16>, vector<8x289xf32> -> vector<8x289xf32>
    %16 = arith.addf %10, %15 : vector<8x289xf32>
    %c0_17 = arith.constant 0 : index
    %c0_18 = arith.constant 0 : index
    %c17 = arith.constant 17 : index
    %17 = vector.load %arg1[%c0_17, %c0_18, %c17] : memref<1x8x340xbf16, #tpu.memory_space<vmem>>, vector<1x8x289xbf16>
    %18 = vector.shape_cast %17 : vector<1x8x289xbf16> to vector<8x289xbf16>
    %c3 = arith.constant 3 : index
    %c0_19 = arith.constant 0 : index
    %c0_20 = arith.constant 0 : index
    %19 = vector.load %arg2[%c3, %c0_19, %c0_20] : memref<9x8x8xbf16, #tpu.memory_space<vmem>>, vector<1x8x8xbf16>
    %20 = vector.shape_cast %19 : vector<1x8x8xbf16> to vector<8x8xbf16>
    %cst_21 = arith.constant dense<0.000000e+00> : vector<8x289xf32>
    %21 = tpu.matmul %20, %18, %cst_21 {dimension_numbers = #tpu.dot_dimension_numbers<[1], [0], [0], [1], [0, 0, 1, 1], [], []>} : vector<8x8xbf16>, vector<8x289xbf16>, vector<8x289xf32> -> vector<8x289xf32>
    %22 = arith.addf %16, %21 : vector<8x289xf32>
    %c0_22 = arith.constant 0 : index
    %c0_23 = arith.constant 0 : index
    %c18 = arith.constant 18 : index
    %23 = vector.load %arg1[%c0_22, %c0_23, %c18] : memref<1x8x340xbf16, #tpu.memory_space<vmem>>, vector<1x8x289xbf16>
    %24 = vector.shape_cast %23 : vector<1x8x289xbf16> to vector<8x289xbf16>
    %c4 = arith.constant 4 : index
    %c0_24 = arith.constant 0 : index
    %c0_25 = arith.constant 0 : index
    %25 = vector.load %arg2[%c4, %c0_24, %c0_25] : memref<9x8x8xbf16, #tpu.memory_space<vmem>>, vector<1x8x8xbf16>
    %26 = vector.shape_cast %25 : vector<1x8x8xbf16> to vector<8x8xbf16>
    %cst_26 = arith.constant dense<0.000000e+00> : vector<8x289xf32>
    %27 = tpu.matmul %26, %24, %cst_26 {dimension_numbers = #tpu.dot_dimension_numbers<[1], [0], [0], [1], [0, 0, 1, 1], [], []>} : vector<8x8xbf16>, vector<8x289xbf16>, vector<8x289xf32> -> vector<8x289xf32>
    %28 = arith.addf %22, %27 : vector<8x289xf32>
    %c0_27 = arith.constant 0 : index
    %c0_28 = arith.constant 0 : index
    %c19 = arith.constant 19 : index
    %29 = vector.load %arg1[%c0_27, %c0_28, %c19] : memref<1x8x340xbf16, #tpu.memory_space<vmem>>, vector<1x8x289xbf16>
    %30 = vector.shape_cast %29 : vector<1x8x289xbf16> to vector<8x289xbf16>
    %c5 = arith.constant 5 : index
    %c0_29 = arith.constant 0 : index
    %c0_30 = arith.constant 0 : index
    %31 = vector.load %arg2[%c5, %c0_29, %c0_30] : memref<9x8x8xbf16, #tpu.memory_space<vmem>>, vector<1x8x8xbf16>
    %32 = vector.shape_cast %31 : vector<1x8x8xbf16> to vector<8x8xbf16>
    %cst_31 = arith.constant dense<0.000000e+00> : vector<8x289xf32>
    %33 = tpu.matmul %32, %30, %cst_31 {dimension_numbers = #tpu.dot_dimension_numbers<[1], [0], [0], [1], [0, 0, 1, 1], [], []>} : vector<8x8xbf16>, vector<8x289xbf16>, vector<8x289xf32> -> vector<8x289xf32>
    %34 = arith.addf %28, %33 : vector<8x289xf32>
    %c0_32 = arith.constant 0 : index
    %c0_33 = arith.constant 0 : index
    %c34 = arith.constant 34 : index
    %35 = vector.load %arg1[%c0_32, %c0_33, %c34] : memref<1x8x340xbf16, #tpu.memory_space<vmem>>, vector<1x8x289xbf16>
    %36 = vector.shape_cast %35 : vector<1x8x289xbf16> to vector<8x289xbf16>
    %c6 = arith.constant 6 : index
    %c0_34 = arith.constant 0 : index
    %c0_35 = arith.constant 0 : index
    %37 = vector.load %arg2[%c6, %c0_34, %c0_35] : memref<9x8x8xbf16, #tpu.memory_space<vmem>>, vector<1x8x8xbf16>
    %38 = vector.shape_cast %37 : vector<1x8x8xbf16> to vector<8x8xbf16>
    %cst_36 = arith.constant dense<0.000000e+00> : vector<8x289xf32>
    %39 = tpu.matmul %38, %36, %cst_36 {dimension_numbers = #tpu.dot_dimension_numbers<[1], [0], [0], [1], [0, 0, 1, 1], [], []>} : vector<8x8xbf16>, vector<8x289xbf16>, vector<8x289xf32> -> vector<8x289xf32>
    %40 = arith.addf %34, %39 : vector<8x289xf32>
    %c0_37 = arith.constant 0 : index
    %c0_38 = arith.constant 0 : index
    %c35 = arith.constant 35 : index
    %41 = vector.load %arg1[%c0_37, %c0_38, %c35] : memref<1x8x340xbf16, #tpu.memory_space<vmem>>, vector<1x8x289xbf16>
    %42 = vector.shape_cast %41 : vector<1x8x289xbf16> to vector<8x289xbf16>
    %c7 = arith.constant 7 : index
    %c0_39 = arith.constant 0 : index
    %c0_40 = arith.constant 0 : index
    %43 = vector.load %arg2[%c7, %c0_39, %c0_40] : memref<9x8x8xbf16, #tpu.memory_space<vmem>>, vector<1x8x8xbf16>
    %44 = vector.shape_cast %43 : vector<1x8x8xbf16> to vector<8x8xbf16>
    %cst_41 = arith.constant dense<0.000000e+00> : vector<8x289xf32>
    %45 = tpu.matmul %44, %42, %cst_41 {dimension_numbers = #tpu.dot_dimension_numbers<[1], [0], [0], [1], [0, 0, 1, 1], [], []>} : vector<8x8xbf16>, vector<8x289xbf16>, vector<8x289xf32> -> vector<8x289xf32>
    %46 = arith.addf %40, %45 : vector<8x289xf32>
    %c0_42 = arith.constant 0 : index
    %c0_43 = arith.constant 0 : index
    %c36 = arith.constant 36 : index
    %47 = vector.load %arg1[%c0_42, %c0_43, %c36] : memref<1x8x340xbf16, #tpu.memory_space<vmem>>, vector<1x8x289xbf16>
    %48 = vector.shape_cast %47 : vector<1x8x289xbf16> to vector<8x289xbf16>
    %c8 = arith.constant 8 : index
    %c0_44 = arith.constant 0 : index
    %c0_45 = arith.constant 0 : index
    %49 = vector.load %arg2[%c8, %c0_44, %c0_45] : memref<9x8x8xbf16, #tpu.memory_space<vmem>>, vector<1x8x8xbf16>
    %50 = vector.shape_cast %49 : vector<1x8x8xbf16> to vector<8x8xbf16>
    %cst_46 = arith.constant dense<0.000000e+00> : vector<8x289xf32>
    %51 = tpu.matmul %50, %48, %cst_46 {dimension_numbers = #tpu.dot_dimension_numbers<[1], [0], [0], [1], [0, 0, 1, 1], [], []>} : vector<8x8xbf16>, vector<8x289xbf16>, vector<8x289xf32> -> vector<8x289xf32>
    %52 = arith.addf %46, %51 : vector<8x289xf32>
    %c0_47 = arith.constant 0 : index
    %c0_48 = arith.constant 0 : index
    %53 = vector.load %arg3[%c0_47, %c0_48] : memref<8x1xf32, #tpu.memory_space<vmem>>, vector<8x1xf32>
    %54 = vector.broadcast %53 : vector<8x1xf32> to vector<8x289xf32>
    %55 = arith.addf %52, %54 : vector<8x289xf32>
    %56 = math.tanh %55 : vector<8x289xf32>
    %57 = arith.truncf %56 : vector<8x289xf32> to vector<8x289xbf16>
    %c0_49 = arith.constant 0 : index
    %c0_50 = arith.constant 0 : index
    %c0_51 = arith.constant 0 : index
    %58 = vector.load %arg4[%c0_49, %c0_50, %c0_51] : memref<1x8x289xbf16, #tpu.memory_space<vmem>>, vector<1x8x289xbf16>
    %59 = vector.shape_cast %58 : vector<1x8x289xbf16> to vector<8x289xbf16>
    %60 = vector.shape_cast %57 : vector<8x289xbf16> to vector<1x8x289xbf16>
    tpu.vector_store %arg4[%c0_49, %c0_50, %c0_51], %60 {strides = array<i32>} : memref<1x8x289xbf16, #tpu.memory_space<vmem>>, vector<1x8x289xbf16>,
    return
  }
  func.func @transform_0(%arg0: i32) -> (i32, i32, i32) {
    %c0_i32 = arith.constant 0 : i32
    %c0_i32_0 = arith.constant 0 : i32
    %c0_i32_1 = arith.constant 0 : i32
    return %arg0, %c0_i32, %c0_i32_0 : i32, i32, i32
  }
  func.func @transform_1(%arg0: i32) -> (i32, i32, i32) {
    %c0_i32 = arith.constant 0 : i32
    %c0_i32_0 = arith.constant 0 : i32
    %c0_i32_1 = arith.constant 0 : i32
    %c0_i32_2 = arith.constant 0 : i32
    return %c0_i32, %c0_i32_0, %c0_i32_1 : i32, i32, i32
  }
  func.func @transform_2(%arg0: i32) -> (i32, i32) {
    %c0_i32 = arith.constant 0 : i32
    %c0_i32_0 = arith.constant 0 : i32
    %c0_i32_1 = arith.constant 0 : i32
    return %c0_i32, %c0_i32_0 : i32, i32
  }
  func.func @transform_3(%arg0: i32) -> (i32, i32, i32) {
    %c0_i32 = arith.constant 0 : i32
    %c0_i32_0 = arith.constant 0 : i32
    %c0_i32_1 = arith.constant 0 : i32
    return %arg0, %c0_i32, %c0_i32_0 : i32, i32, i32
  }
}

module attributes {stable_mosaic.version = 11 : i64} {
  func.func @_conv_act_kernel(%arg0: i32, %arg1: memref<1x8x225xbf16, #tpu.memory_space<vmem>>, %arg2: memref<1x1x8xbf16, #tpu.memory_space<vmem>>, %arg3: memref<1x1xf32, #tpu.memory_space<vmem>>, %arg4: memref<1x1x225xbf16, #tpu.memory_space<vmem>>) attributes {dimension_semantics = [#tpu.dimension_semantics<parallel>], iteration_bounds = array<i64: 8>, scalar_prefetch = 0 : i64, scratch_operands = 0 : i64, tpu.core_type = #tpu.core_type<tc>, window_params = [{transform_indices = @transform_0, window_bounds = array<i64: 1, 8, 225>}, {pipeline_mode = #tpu.pipeline_mode<synchronous>, transform_indices = @transform_1, window_bounds = array<i64: 1, 1, 8>}, {pipeline_mode = #tpu.pipeline_mode<synchronous>, transform_indices = @transform_2, window_bounds = array<i64: 1, 1>}, {transform_indices = @transform_3, window_bounds = array<i64: 1, 1, 225>}]} {
    %c0 = arith.constant 0 : index
    %c0_0 = arith.constant 0 : index
    %c0_1 = arith.constant 0 : index
    %0 = vector.load %arg1[%c0, %c0_0, %c0_1] : memref<1x8x225xbf16, #tpu.memory_space<vmem>>, vector<1x8x225xbf16>
    %1 = vector.shape_cast %0 : vector<1x8x225xbf16> to vector<8x225xbf16>
    %c0_2 = arith.constant 0 : index
    %c0_3 = arith.constant 0 : index
    %c0_4 = arith.constant 0 : index
    %2 = vector.load %arg2[%c0_2, %c0_3, %c0_4] : memref<1x1x8xbf16, #tpu.memory_space<vmem>>, vector<1x1x8xbf16>
    %3 = vector.shape_cast %2 : vector<1x1x8xbf16> to vector<1x8xbf16>
    %cst = arith.constant dense<0.000000e+00> : vector<1x225xf32>
    %4 = tpu.matmul %3, %1, %cst {dimension_numbers = #tpu.dot_dimension_numbers<[1], [0], [0], [1], [0, 0, 1, 1], [], []>} : vector<1x8xbf16>, vector<8x225xbf16>, vector<1x225xf32> -> vector<1x225xf32>
    %c0_5 = arith.constant 0 : index
    %c0_6 = arith.constant 0 : index
    %5 = vector.load %arg3[%c0_5, %c0_6] : memref<1x1xf32, #tpu.memory_space<vmem>>, vector<1x1xf32>
    %6 = vector.broadcast %5 : vector<1x1xf32> to vector<1x225xf32>
    %7 = arith.addf %4, %6 : vector<1x225xf32>
    %8 = arith.negf %7 : vector<1x225xf32>
    %9 = math.exp %8 : vector<1x225xf32>
    %cst_7 = arith.constant 1.000000e+00 : f32
    %10 = vector.broadcast %cst_7 : f32 to vector<1x225xf32>
    %11 = arith.addf %10, %9 : vector<1x225xf32>
    %12 = arith.divf %10, %11 : vector<1x225xf32>
    %13 = arith.truncf %12 : vector<1x225xf32> to vector<1x225xbf16>
    %c0_8 = arith.constant 0 : index
    %c0_9 = arith.constant 0 : index
    %c0_10 = arith.constant 0 : index
    %14 = vector.load %arg4[%c0_8, %c0_9, %c0_10] : memref<1x1x225xbf16, #tpu.memory_space<vmem>>, vector<1x1x225xbf16>
    %15 = vector.shape_cast %14 : vector<1x1x225xbf16> to vector<1x225xbf16>
    %16 = vector.shape_cast %13 : vector<1x225xbf16> to vector<1x1x225xbf16>
    tpu.vector_store %arg4[%c0_8, %c0_9, %c0_10], %16 {strides = array<i32>} : memref<1x1x225xbf16, #tpu.memory_space<vmem>>, vector<1x1x225xbf16>,
    return
  }
  func.func @transform_0(%arg0: i32) -> (i32, i32, i32) {
    %c0_i32 = arith.constant 0 : i32
    %c0_i32_0 = arith.constant 0 : i32
    %c0_i32_1 = arith.constant 0 : i32
    return %arg0, %c0_i32, %c0_i32_0 : i32, i32, i32
  }
  func.func @transform_1(%arg0: i32) -> (i32, i32, i32) {
    %c0_i32 = arith.constant 0 : i32
    %c0_i32_0 = arith.constant 0 : i32
    %c0_i32_1 = arith.constant 0 : i32
    %c0_i32_2 = arith.constant 0 : i32
    return %c0_i32, %c0_i32_0, %c0_i32_1 : i32, i32, i32
  }
  func.func @transform_2(%arg0: i32) -> (i32, i32) {
    %c0_i32 = arith.constant 0 : i32
    %c0_i32_0 = arith.constant 0 : i32
    %c0_i32_1 = arith.constant 0 : i32
    return %c0_i32, %c0_i32_0 : i32, i32
  }
  func.func @transform_3(%arg0: i32) -> (i32, i32, i32) {
    %c0_i32 = arith.constant 0 : i32
    %c0_i32_0 = arith.constant 0 : i32
    %c0_i32_1 = arith.constant 0 : i32
    return %arg0, %c0_i32, %c0_i32_0 : i32, i32, i32
  }
}

module attributes {stable_mosaic.version = 11 : i64} {
  func.func @_attn_gate_kernel(%arg0: i32, %arg1: memref<8x225xbf16, #tpu.memory_space<vmem>>, %arg2: memref<8x8x225xbf16, #tpu.memory_space<vmem>>, %arg3: memref<8x8x225xbf16, #tpu.memory_space<vmem>>) attributes {dimension_semantics = [#tpu.dimension_semantics<arbitrary>], iteration_bounds = array<i64: 1>, scalar_prefetch = 0 : i64, scratch_operands = 0 : i64, tpu.core_type = #tpu.core_type<tc>, window_params = [{pipeline_mode = #tpu.pipeline_mode<synchronous>, transform_indices = @transform_0, window_bounds = array<i64: 8, 225>}, {pipeline_mode = #tpu.pipeline_mode<synchronous>, transform_indices = @transform_1, window_bounds = array<i64: 8, 8, 225>}, {pipeline_mode = #tpu.pipeline_mode<synchronous>, transform_indices = @transform_2, window_bounds = array<i64: 8, 8, 225>}]} {
    %c0 = arith.constant 0 : index
    %c0_0 = arith.constant 0 : index
    %0 = vector.load %arg1[%c0, %c0_0] : memref<8x225xbf16, #tpu.memory_space<vmem>>, vector<8x225xbf16>
    %1 = arith.extf %0 : vector<8x225xbf16> to vector<8x225xf32>
    %cst = arith.constant dense<0.000000e+00> : vector<8xf32>
    %2 = vector.multi_reduction <add>, %1, %cst [1] : vector<8x225xf32> to vector<8xf32>
    %3 = vector.shape_cast %2 : vector<8xf32> to vector<8x1xf32>
    %cst_1 = arith.constant 7.500000e+00 : f32
    %4 = vector.broadcast %cst_1 : f32 to vector<8x225xf32>
    %5 = arith.mulf %1, %4 : vector<8x225xf32>
    %6 = tpu.reciprocal %3 {approx = true} : vector<8x1xf32> -> vector<8x1xf32>
    %7 = vector.broadcast %6 : vector<8x1xf32> to vector<8x225xf32>
    %8 = arith.mulf %5, %7 : vector<8x225xf32>
    %c0_2 = arith.constant 0 : index
    %c0_3 = arith.constant 0 : index
    %c0_4 = arith.constant 0 : index
    %9 = vector.load %arg2[%c0_2, %c0_3, %c0_4] : memref<8x8x225xbf16, #tpu.memory_space<vmem>>, vector<8x8x225xbf16>
    %10 = arith.extf %9 : vector<8x8x225xbf16> to vector<8x8x225xf32>
    %11 = vector.shape_cast %8 : vector<8x225xf32> to vector<8x1x225xf32>
    %12 = vector.broadcast %11 : vector<8x1x225xf32> to vector<8x8x225xf32>
    %13 = arith.mulf %10, %12 : vector<8x8x225xf32>
    %14 = arith.truncf %13 : vector<8x8x225xf32> to vector<8x8x225xbf16>
    %c0_5 = arith.constant 0 : index
    %c0_6 = arith.constant 0 : index
    %c0_7 = arith.constant 0 : index
    %15 = vector.load %arg3[%c0_5, %c0_6, %c0_7] : memref<8x8x225xbf16, #tpu.memory_space<vmem>>, vector<8x8x225xbf16>
    tpu.vector_store %arg3[%c0_5, %c0_6, %c0_7], %14 {strides = array<i32>} : memref<8x8x225xbf16, #tpu.memory_space<vmem>>, vector<8x8x225xbf16>,
    return
  }
  func.func @transform_0(%arg0: i32) -> (i32, i32) {
    %c0_i32 = arith.constant 0 : i32
    %c0_i32_0 = arith.constant 0 : i32
    %c0_i32_1 = arith.constant 0 : i32
    return %c0_i32, %c0_i32_0 : i32, i32
  }
  func.func @transform_1(%arg0: i32) -> (i32, i32, i32) {
    %c0_i32 = arith.constant 0 : i32
    %c0_i32_0 = arith.constant 0 : i32
    %c0_i32_1 = arith.constant 0 : i32
    %c0_i32_2 = arith.constant 0 : i32
    return %c0_i32, %c0_i32_0, %c0_i32_1 : i32, i32, i32
  }
  func.func @transform_2(%arg0: i32) -> (i32, i32, i32) {
    %c0_i32 = arith.constant 0 : i32
    %c0_i32_0 = arith.constant 0 : i32
    %c0_i32_1 = arith.constant 0 : i32
    %c0_i32_2 = arith.constant 0 : i32
    return %c0_i32, %c0_i32_0, %c0_i32_1 : i32, i32, i32
  }
}

module attributes {stable_mosaic.version = 11 : i64} {
  func.func @_fc_head_kernel(%arg0: i32, %arg1: memref<8x392xbf16, #tpu.memory_space<vmem>>, %arg2: memref<392x16xf32, #tpu.memory_space<vmem>>, %arg3: memref<1x16xf32, #tpu.memory_space<vmem>>, %arg4: memref<16x1xf32, #tpu.memory_space<vmem>>, %arg5: memref<1x1xf32, #tpu.memory_space<vmem>>, %arg6: memref<8x1xf32, #tpu.memory_space<vmem>>) attributes {dimension_semantics = [#tpu.dimension_semantics<arbitrary>], iteration_bounds = array<i64: 1>, scalar_prefetch = 0 : i64, scratch_operands = 0 : i64, tpu.core_type = #tpu.core_type<tc>, window_params = [{pipeline_mode = #tpu.pipeline_mode<synchronous>, transform_indices = @transform_0, window_bounds = array<i64: 8, 392>}, {pipeline_mode = #tpu.pipeline_mode<synchronous>, transform_indices = @transform_1, window_bounds = array<i64: 392, 16>}, {pipeline_mode = #tpu.pipeline_mode<synchronous>, transform_indices = @transform_2, window_bounds = array<i64: 1, 16>}, {pipeline_mode = #tpu.pipeline_mode<synchronous>, transform_indices = @transform_3, window_bounds = array<i64: 16, 1>}, {pipeline_mode = #tpu.pipeline_mode<synchronous>, transform_indices = @transform_4, window_bounds = array<i64: 1, 1>}, {pipeline_mode = #tpu.pipeline_mode<synchronous>, transform_indices = @transform_5, window_bounds = array<i64: 8, 1>}]} {
    %c0 = arith.constant 0 : index
    %c0_0 = arith.constant 0 : index
    %0 = vector.load %arg1[%c0, %c0_0] : memref<8x392xbf16, #tpu.memory_space<vmem>>, vector<8x392xbf16>
    %1 = arith.extf %0 : vector<8x392xbf16> to vector<8x392xf32>
    %c0_1 = arith.constant 0 : index
    %c0_2 = arith.constant 0 : index
    %2 = vector.load %arg2[%c0_1, %c0_2] : memref<392x16xf32, #tpu.memory_space<vmem>>, vector<392x16xf32>
    %cst = arith.constant dense<0.000000e+00> : vector<8x16xf32>
    %3 = tpu.matmul %1, %2, %cst {dimension_numbers = #tpu.dot_dimension_numbers<[1], [0], [0], [1], [0, 0, 1, 1], [], []>} : vector<8x392xf32>, vector<392x16xf32>, vector<8x16xf32> -> vector<8x16xf32>
    %c0_3 = arith.constant 0 : index
    %c0_4 = arith.constant 0 : index
    %4 = vector.load %arg3[%c0_3, %c0_4] : memref<1x16xf32, #tpu.memory_space<vmem>>, vector<1x16xf32>
    %5 = vector.broadcast %4 : vector<1x16xf32> to vector<8x16xf32>
    %6 = arith.addf %3, %5 : vector<8x16xf32>
    %7 = math.tanh %6 : vector<8x16xf32>
    %c0_5 = arith.constant 0 : index
    %c0_6 = arith.constant 0 : index
    %8 = vector.load %arg4[%c0_5, %c0_6] : memref<16x1xf32, #tpu.memory_space<vmem>>, vector<16x1xf32>
    %cst_7 = arith.constant dense<0.000000e+00> : vector<8x1xf32>
    %9 = tpu.matmul %7, %8, %cst_7 {dimension_numbers = #tpu.dot_dimension_numbers<[1], [0], [0], [1], [0, 0, 1, 1], [], []>} : vector<8x16xf32>, vector<16x1xf32>, vector<8x1xf32> -> vector<8x1xf32>
    %c0_8 = arith.constant 0 : index
    %c0_9 = arith.constant 0 : index
    %10 = vector.load %arg5[%c0_8, %c0_9] : memref<1x1xf32, #tpu.memory_space<vmem>>, vector<1x1xf32>
    %11 = vector.broadcast %10 : vector<1x1xf32> to vector<8x1xf32>
    %12 = arith.addf %9, %11 : vector<8x1xf32>
    %c0_10 = arith.constant 0 : index
    %c0_11 = arith.constant 0 : index
    %13 = vector.load %arg6[%c0_10, %c0_11] : memref<8x1xf32, #tpu.memory_space<vmem>>, vector<8x1xf32>
    tpu.vector_store %arg6[%c0_10, %c0_11], %12 {strides = array<i32>} : memref<8x1xf32, #tpu.memory_space<vmem>>, vector<8x1xf32>,
    return
  }
  func.func @transform_0(%arg0: i32) -> (i32, i32) {
    %c0_i32 = arith.constant 0 : i32
    %c0_i32_0 = arith.constant 0 : i32
    %c0_i32_1 = arith.constant 0 : i32
    return %c0_i32, %c0_i32_0 : i32, i32
  }
  func.func @transform_1(%arg0: i32) -> (i32, i32) {
    %c0_i32 = arith.constant 0 : i32
    %c0_i32_0 = arith.constant 0 : i32
    %c0_i32_1 = arith.constant 0 : i32
    return %c0_i32, %c0_i32_0 : i32, i32
  }
  func.func @transform_2(%arg0: i32) -> (i32, i32) {
    %c0_i32 = arith.constant 0 : i32
    %c0_i32_0 = arith.constant 0 : i32
    %c0_i32_1 = arith.constant 0 : i32
    return %c0_i32, %c0_i32_0 : i32, i32
  }
  func.func @transform_3(%arg0: i32) -> (i32, i32) {
    %c0_i32 = arith.constant 0 : i32
    %c0_i32_0 = arith.constant 0 : i32
    %c0_i32_1 = arith.constant 0 : i32
    return %c0_i32, %c0_i32_0 : i32, i32
  }
  func.func @transform_4(%arg0: i32) -> (i32, i32) {
    %c0_i32 = arith.constant 0 : i32
    %c0_i32_0 = arith.constant 0 : i32
    %c0_i32_1 = arith.constant 0 : i32
    return %c0_i32, %c0_i32_0 : i32, i32
  }
  func.func @transform_5(%arg0: i32) -> (i32, i32) {
    %c0_i32 = arith.constant 0 : i32
    %c0_i32_0 = arith.constant 0 : i32
    %c0_i32_1 = arith.constant 0 : i32
    return %c0_i32, %c0_i32_0 : i32, i32
  }
}

</mosaic_0001>

<bundles_post_ra>
// kernel: temporal_shift_can_forward.13
= control target key start
LH: loop header
LB: loop body
LE: loop exit
PB: predicated region body
PF: predicated region fallthrough
CT: control target
= control target key end

     0   :  { %s3900_s12 = smov 0   ;;  %s4658_s0 = inlined_call_operand.vmem [shape: bf16[8,3,1558], index: 0, kind: input, shape index: {}]   ;;  %s4659_s1 = inlined_call_operand.vmem [shape: bf16[9,8,3], index: 1, kind: input, shape index: {}]   ;;  %s4660_s2 = inlined_call_operand.vmem [shape: f32[8,1], index: 2, kind: input, shape index: {}]   ;;  %s4661_s3 = inlined_call_operand.vmem [shape: bf16[8,8,1444], index: 3, kind: output, shape index: {}]  }
   0x1 LB: > { %s3729_s13 = sadd.s32 4294967295, %s3867_s12   ;;  %p3733_p0 = scmp.ge.s32.totalorder %s3867_s12, 1  ;;  %s3867_s12 = sphi %s3900_s12, %s13_s12  }
   0x2   : > { %p137_p1 = scmp.lt.s32.totalorder %s3867_s12, 9 }
   0x4   : > { %p138_p2 = pnand %p3733_p0, %p137_p1 }
   0x5   : > { %p161_p3 = scmp.lt.s32.totalorder (!%p138_p2), %s3729_s13, 7  ;;  %s3870_s18 = smov (!%p138_p2), 127  }
   0x6   : > { %141 = sbr.rel (%p138_p2) target bundleno = 575 (0x23f), region = 32  ;;  %s3872_s19 = smov (!%p138_p2), 126  }
   0x7   : > { %s3873_s20 = smov (!%p138_p2), 90   ;;  %s3874_s21 = smov (!%p138_p2), 89  }
   0x8   : > { %s3875_s22 = smov (!%p138_p2), 88   ;;  %s3877_s23 = smov (!%p138_p2), 52  }
   0x9   : > { %s3878_s26 = smov (!%p138_p2), 51   ;;  %s3879_s4 = smov (!%p138_p2), 50  }
   0xb   : > { %v185_v0 = vlaneseq  ;;  %v3869_v1 = vmov 1983009808   ;;  %s4663_s13 = smov (!%p161_p3, %s3729_s13), 7  ;;  %v3871_v14 = vmov 0   ;;  %vm272_vm0 = vcmask 1040384  }
   0xc   : > { %v183_v2 = vunpack.c.l.s4 %v3869_v1  ;;  %s3812_s14 = smul.u32 26, %s4663_s13  ;;  %385 = vmatprep.mubr.bf16.mxu1 %v3871_v14  ;;  %344 = vmatprep.mubr.bf16.mxu0 %v3871_v14  ;;  %vm273_vm1 = vcmask 1041408   ;;  %v3876_v27 = vmov 65535   ;;  %vm256_vm2 = vcmask 1039360   ;;  %v3736_v45 = vld [vmem:[%s4659_s1 + $0x4] sm:$0xf] }
   0xd   : > { %v186_v3 = vshrl.u32 %v185_v0, 7  ;;  %3833 = vset.pattern.permute.xlu0 %v3871_v14  ;;  %v274_v28 = vsel %vm272_vm0, 4294967295, %v3876_v27  ;;  %vm268_vm3 = vcmask 23552   ;;  %v175_v27 = vld [vmem:[%s4659_s1] sm:$0xf]  ;;  %vm926_vm4 = vcmask 1031168  }
   0xe   : > { %v184_v4 = vunpack.c.0.s8 %v183_v2  ;;  %s165_s17 = scalar_lea.vmem %s4658_s0, %s3812_s14  ;;  %v4013_v29 = vsel %vm273_vm1, %v274_v28, 0  ;;  %vm1318_vm5 = vcmask 736256   ;;  %vm1710_vm6 = vcmask 728064  }
   0xf   : > { %v173_v6 = vld [vmem:[%s165_s17 + $0x8] sm:$0xff]  ;;  %v172_v7 = vld [vmem:[%s165_s17] sm:$0xff]  ;;  %v174_v18 = vld [vmem:[%s165_s17 + $0x10] sm:$0xff]  ;;  %vm2102_vm7 = vcmask 719872   ;;  %vm2494_vm8 = vcmask 424960   ;;  %vm2886_vm9 = vcmask 416768  }
  0x10   : > { %v187_v5 = vsub.s32 %v184_v4, %v186_v3  ;;  %v181_v10 = vcombine.high %v172_v7, %v172_v7  ;;  %v198_v13 = vcombine.high %v173_v6, %v173_v6  ;;  %v215_v21 = vcombine.high %v174_v18, %v174_v18 }
  0x11   : > { %vm3278_vm10 = vcmask 408576   ;;  %vm3670_vm11 = vcmask 1043456   ;;  %vm3671_vm12 = vcmask 293892  }
  0x12   : > { %v3914_v8 = vrot.slane %v173_v6, %v187_v5  ;;  %v3916_v9 = vrot.slane %v172_v7, %v187_v5  ;;  %v3920_v11 = vrot.slane %v181_v10, %v187_v5  ;;  %v3939_v17 = vrot.slane %v198_v13, %v187_v5  ;;  %vm3672_vm13 = vmor %vm3671_vm12, %vm3670_vm11 }
  0x13   : > { %v3947_v20 = vrot.slane %v174_v18, %v187_v5  ;;  %v3955_v23 = vrot.slane %v215_v21, %v187_v5 }
  0x14   : > { %240 = vrot.lane.b32.xlu1 %v3914_v8, %s3870_s18  ;;  %232 = vrot.lane.b32.xlu0 %v3916_v9, %s3870_s18  ;;  %v3924_v12 = vcombine.high %v3916_v9, %v3916_v9  ;;  %v3930_v15 = vcombine.high %v3920_v11, %v3920_v11  ;;  %v3937_v16 = vcombine.high %v3914_v8, %v3914_v8 }
  0x15   : > { %v3945_v19 = vcombine.high %v3939_v17, %v3939_v17  ;;  %v3953_v22 = vcombine.high %v3947_v20, %v3947_v20  ;;  %v3961_v24 = vcombine.high %v3955_v23, %v3955_v23  ;;  %v562_v6 = vand.u32 %v4013_v29, %v3916_v9 }
  0x16   : > { %v565_v63 = vand.u32 %v4013_v29, %v3924_v12  ;;  %v571_v1 = vand.u32 %v4013_v29, %v3930_v15  ;;  %v568_v7 = vand.u32 %v4013_v29, %v3920_v11  ;;  %v577_v10 = vand.u32 %v4013_v29, %v3937_v16 }
  0x17   : > { %v583_v13 = vand.u32 %v4013_v29, %v3945_v19  ;;  %v574_v28 = vand.u32 %v4013_v29, %v3914_v8 }
  0x18   : > { %234 = vrot.lane.b32.xlu0 %v3924_v12, %s3870_s18  ;;  %238 = vrot.lane.b32.xlu1 %v3930_v15, %s3870_s18 }
  0x1c   : > { %236 = vrot.lane.b32.xlu0 %v3920_v11, %s3870_s18  ;;  %242 = vrot.lane.b32.xlu1 %v3937_v16, %s3870_s18 }
  0x20   : > { %244 = vrot.lane.b32.xlu0 %v3939_v17, %s3870_s18  ;;  %246 = vrot.lane.b32.xlu1 %v3945_v19, %s3870_s18 }
  0x24   : > { %248 = vrot.lane.b32.xlu0 %v3947_v20, %s3870_s18  ;;  %250 = vrot.lane.b32.xlu1 %v3953_v22, %s3870_s18 }
  0x28   : > { %252 = vrot.lane.b32.xlu0 %v3955_v23, %s3870_s18  ;;  %254 = vrot.lane.b32.xlu1 %v3961_v24, %s3870_s18 }
  0x2c   : > { %904 = vrot.lane.b32.xlu0 %v3924_v12, %s3872_s19  ;;  %906 = vrot.lane.b32.xlu1 %v3920_v11, %s3872_s19 }
  0x30   : > { %908 = vrot.lane.b32.xlu0 %v3930_v15, %s3872_s19  ;;  %910 = vrot.lane.b32.xlu1 %v3914_v8, %s3872_s19 }
  0x34   : > { %902 = vrot.lane.b32.xlu0 %v3916_v9, %s3872_s19  ;;  %912 = vrot.lane.b32.xlu1 %v3937_v16, %s3872_s19 }
  0x38   : > { %914 = vrot.lane.b32.xlu0 %v3939_v17, %s3872_s19  ;;  %916 = vrot.lane.b32.xlu1 %v3945_v19, %s3872_s19 }
  0x3c   : > { %918 = vrot.lane.b32.xlu0 %v3947_v20, %s3872_s19  ;;  %920 = vrot.lane.b32.xlu1 %v3953_v22, %s3872_s19 }
  0x40   : > { %922 = vrot.lane.b32.xlu0 %v3955_v23, %s3872_s19  ;;  %924 = vrot.lane.b32.xlu1 %v3961_v24, %s3872_s19 }
  0x44   : > { %1296 = vrot.lane.b32.xlu0 %v3924_v12, %s3873_s20  ;;  %1298 = vrot.lane.b32.xlu1 %v3920_v11, %s3873_s20 }
  0x48   : > { %1300 = vrot.lane.b32.xlu0 %v3930_v15, %s3873_s20  ;;  %1302 = vrot.lane.b32.xlu1 %v3914_v8, %s3873_s20 }
  0x4c   : > { %1294 = vrot.lane.b32.xlu0 %v3916_v9, %s3873_s20  ;;  %1304 = vrot.lane.b32.xlu1 %v3937_v16, %s3873_s20 }
  0x50   : > { %1306 = vrot.lane.b32.xlu0 %v3939_v17, %s3873_s20  ;;  %1308 = vrot.lane.b32.xlu1 %v3945_v19, %s3873_s20 }
  0x54   : > { %1310 = vrot.lane.b32.xlu0 %v3947_v20, %s3873_s20  ;;  %1312 = vrot.lane.b32.xlu1 %v3953_v22, %s3873_s20 }
  0x58   : > { %1314 = vrot.lane.b32.xlu0 %v3955_v23, %s3873_s20  ;;  %1316 = vrot.lane.b32.xlu1 %v3961_v24, %s3873_s20 }
  0x5c   : > { %1688 = vrot.lane.b32.xlu0 %v3924_v12, %s3874_s21  ;;  %1690 = vrot.lane.b32.xlu1 %v3920_v11, %s3874_s21 }
  0x60   : > { %1692 = vrot.lane.b32.xlu0 %v3930_v15, %s3874_s21  ;;  %1694 = vrot.lane.b32.xlu1 %v3914_v8, %s3874_s21 }
  0x64   : > { %1686 = vrot.lane.b32.xlu0 %v3916_v9, %s3874_s21  ;;  %1696 = vrot.lane.b32.xlu1 %v3937_v16, %s3874_s21 }
  0x68   : > { %1698 = vrot.lane.b32.xlu0 %v3939_v17, %s3874_s21  ;;  %1700 = vrot.lane.b32.xlu1 %v3945_v19, %s3874_s21 }
  0x6c   : > { %1702 = vrot.lane.b32.xlu0 %v3947_v20, %s3874_s21  ;;  %1704 = vrot.lane.b32.xlu1 %v3953_v22, %s3874_s21 }
  0x70   : > { %1706 = vrot.lane.b32.xlu0 %v3955_v23, %s3874_s21  ;;  %1708 = vrot.lane.b32.xlu1 %v3961_v24, %s3874_s21  ;;  %s3813_s21 = smul.u32 48, %s4663_s13 }
  0x74   : > { %2080 = vrot.lane.b32.xlu0 %v3924_v12, %s3875_s22  ;;  %2082 = vrot.lane.b32.xlu1 %v3920_v11, %s3875_s22 }
  0x78   : > { %2084 = vrot.lane.b32.xlu0 %v3930_v15, %s3875_s22  ;;  %2086 = vrot.lane.b32.xlu1 %v3914_v8, %s3875_s22 }
  0x7c   : > { %2078 = vrot.lane.b32.xlu0 %v3916_v9, %s3875_s22  ;;  %2088 = vrot.lane.b32.xlu1 %v3937_v16, %s3875_s22 }
  0x80   : > { %2090 = vrot.lane.b32.xlu0 %v3939_v17, %s3875_s22  ;;  %2092 = vrot.lane.b32.xlu1 %v3945_v19, %s3875_s22 }
  0x84   : > { %2094 = vrot.lane.b32.xlu0 %v3947_v20, %s3875_s22  ;;  %2096 = vrot.lane.b32.xlu1 %v3953_v22, %s3875_s22 }
  0x86   : > { %v241_v25 = vpop.permute.xlu1 %240  ;;  %v233_v26 = vpop.permute.xlu0 %232 }
  0x88   : > { %2098 = vrot.lane.b32.xlu0 %v3955_v23, %s3875_s22  ;;  %2100 = vrot.lane.b32.xlu1 %v3961_v24, %s3875_s22 }
  0x8a   : > { %v235_v30 = vpop.permute.xlu0 %234  ;;  %v239_v31 = vpop.permute.xlu1 %238 }
  0x8b   : > { %v260_v32 = vsel %vm256_vm2, %v239_v31, %v241_v25  ;;  %v257_v34 = vsel %vm256_vm2, %v233_v26, %v235_v30 }
  0x8c   : > { %v286_v33 = vand.u32 %v4013_v29, %v260_v32  ;;  %2472 = vrot.lane.b32.xlu0 %v3924_v12, %s3877_s23  ;;  %2474 = vrot.lane.b32.xlu1 %v3920_v11, %s3877_s23  ;;  %v277_v41 = vand.u32 %v4013_v29, %v257_v34  ;;  %v595_v32 = vand.u32 %v4013_v29, %v3961_v24 }
  0x8e   : > { %v237_v35 = vpop.permute.xlu0 %236  ;;  %367 = vmatprep.subr.bf16.mxu1 %v286_v33  ;;  %v243_v36 = vpop.permute.xlu1 %242 }
  0x8f   : > { %v259_v37 = vsel %vm256_vm2, %v237_v35, %v239_v31  ;;  %v258_v38 = vsel %vm256_vm2, %v235_v30, %v237_v35  ;;  %v261_v42 = vsel %vm256_vm2, %v241_v25, %v243_v36  ;;  %v580_v30 = vand.u32 %v4013_v29, %v3939_v17 }
  0x90   : > { %v280_v39 = vand.u32 %v4013_v29, %v258_v38  ;;  %v283_v40 = vand.u32 %v4013_v29, %v259_v37  ;;  %2476 = vrot.lane.b32.xlu0 %v3930_v15, %s3877_s23  ;;  %2478 = vrot.lane.b32.xlu1 %v3914_v8, %s3877_s23  ;;  %v289_v48 = vand.u32 %v4013_v29, %v261_v42 }
  0x91   : > { %v589_v31 = vand.u32 %v4013_v29, %v3953_v22 }
  0x92   : > { %326 = vmatprep.subr.bf16.mxu0 %v280_v39  ;;  %v245_v43 = vpop.permute.xlu0 %244  ;;  %368 = vmatpush1.bf16.msra.mxu1 %v283_v40  ;;  %v247_v44 = vpop.permute.xlu1 %246  ;;  %v586_v39 = vand.u32 %v4013_v29, %v3947_v20  ;;  %v592_v40 = vand.u32 %v4013_v29, %v3955_v23 }
  0x93   : > { %v262_v46 = vsel %vm256_vm2, %v243_v36, %v245_v43  ;;  %327 = vmatpush1.bf16.msra.mxu0 %v277_v41  ;;  %v263_v49 = vsel %vm256_vm2, %v245_v43, %v247_v44 }
  0x94   : > { %v292_v47 = vand.u32 %v4013_v29, %v262_v46  ;;  %2470 = vrot.lane.b32.xlu0 %v3916_v9, %s3877_s23  ;;  %2480 = vrot.lane.b32.xlu1 %v3937_v16, %s3877_s23  ;;  %v295_v54 = vand.u32 %v4013_v29, %v263_v49 }
  0x95   : > { %3738 = vmatmul.mubr.msk.bf16.vlgmr.msra.gmra.mxu1 %vm268_vm3, %v3736_v45 }
  0x96   : > { %3737 = vmatmul.mubr.msk.bf16.vlgmr.msra.gmra.mxu0 %vm268_vm3, %v3736_v45  ;;  %v249_v50 = vpop.permute.xlu0 %248  ;;  %408 = vmatprep.subr.bf16.mxu0 %v292_v47  ;;  %v251_v51 = vpop.permute.xlu1 %250 }
  0x97   : > { %v264_v52 = vsel %vm256_vm2, %v247_v44, %v249_v50  ;;  %409 = vmatpush1.bf16.msra.mxu0 %v289_v48  ;;  %426 = vmatprep.mubr.bf16.mxu0 %v3871_v14  ;;  %v265_v57 = vsel %vm256_vm2, %v249_v50, %v251_v51 }
  0x98   : > { %v298_v53 = vand.u32 %v4013_v29, %v264_v52  ;;  %467 = vmatprep.mubr.bf16.mxu1 %v3871_v14  ;;  %2482 = vrot.lane.b32.xlu0 %v3939_v17, %s3877_s23  ;;  %v301_v0 = vand.u32 %v4013_v29, %v265_v57 }
  0x99   : > { %2484 = vrot.lane.b32.xlu1 %v3945_v19, %s3877_s23 }
  0x9a   : > { %v253_v55 = vpop.permute.xlu0 %252  ;;  %449 = vmatprep.subr.bf16.mxu1 %v298_v53  ;;  %v255_v56 = vpop.permute.xlu1 %254 }
  0x9b   : > { %v266_v58 = vsel %vm256_vm2, %v251_v51, %v253_v55  ;;  %450 = vmatpush1.bf16.msra.mxu1 %v295_v54  ;;  %v267_v59 = vsel %vm256_vm2, %v253_v55, %v255_v56  ;;  %v310_v60 = vand.u32 %v4013_v29, %v255_v56 }
  0x9c   : > { %v304_v61 = vand.u32 %v4013_v29, %v266_v58  ;;  %v307_v62 = vand.u32 %v4013_v29, %v267_v59  ;;  %2486 = vrot.lane.b32.xlu0 %v3947_v20, %s3877_s23 }
  0x9d   : > { %531 = vmatprep.subr.bf16.mxu1 %v310_v60  ;;  %2488 = vrot.lane.b32.xlu1 %v3953_v22, %s3877_s23 }
  0x9e   : > { %3739 = vmatmul.mubr.msk.bf16.vlgmr.msra.gmra.mxu0 %vm268_vm3, %v3736_v45  ;;  %3740 = vmatmul.mubr.msk.bf16.vlgmr.msra.gmra.mxu1 %vm268_vm3, %v3736_v45  ;;  %v4071_v2 = vpop.permute.xlu0 %904  ;;  %v4073_v3 = vpop.permute.xlu1 %906 }
  0x9f   : > { %490 = vmatprep.subr.bf16.mxu0 %v304_v61  ;;  %532 = vmatpush1.bf16.msra.mxu1 %v307_v62  ;;  %v928_v35 = vsel %vm926_vm4, %v4071_v2, %v4073_v3 }
  0xa0   : > { %491 = vmatpush1.bf16.msra.mxu0 %v301_v0  ;;  %508 = vmatprep.mubr.bf16.mxu0 %v3871_v14  ;;  %v945_v41 = vand.u32 %v928_v35, %v4013_v29 }
  0xa1   : > { %549 = vmatprep.mubr.bf16.mxu1 %v3871_v14  ;;  %611 = vmatprep.subr.bf16.mxu0 %v565_v63  ;;  %v3749_v63 = vld [vmem:[%s4659_s1 + $0x8] sm:$0xf] }
  0xa2   : > { %652 = vmatprep.subr.bf16.mxu1 %v571_v1  ;;  %2490 = vrot.lane.b32.xlu0 %v3955_v23, %s3877_s23  ;;  %v909_v4 = vpop.permute.xlu0 %908  ;;  %v4079_v5 = vpop.permute.xlu1 %910 }
  0xa3   : > { %2492 = vrot.lane.b32.xlu1 %v3961_v24, %s3877_s23  ;;  %v930_v36 = vsel %vm926_vm4, %v909_v4, %v4079_v5  ;;  %s4645_s23 = scalar_lea.vmem %s4661_s3, %s3813_s21 }
  0xa4   : > { %v951_v42 = vand.u32 %v930_v36, %v4013_v29 }
  0xa6   : > { %3741 = vmatmul.mubr.msk.bf16.vlgmr.msra.gmra.mxu0 %vm268_vm3, %v3736_v45  ;;  %3742 = vmatmul.mubr.msk.bf16.vlgmr.msra.gmra.mxu1 %vm268_vm3, %v3736_v45  ;;  %v903_v18 = vpop.permute.xlu0 %902  ;;  %v4093_v21 = vpop.permute.xlu1 %912  ;;  %v929_v45 = vsel %vm926_vm4, %v4073_v3, %v909_v4 }
  0xa7   : > { %612 = vmatpush1.bf16.msra.mxu0 %v562_v6  ;;  %653 = vmatpush1.bf16.msra.mxu1 %v568_v7  ;;  %v927_v46 = vsel %vm926_vm4, %v903_v18, %v4071_v2  ;;  %v948_v50 = vand.u32 %v929_v45, %v4013_v29  ;;  %v931_v58 = vsel %vm926_vm4, %v4079_v5, %v4093_v21 }
  0xa8   : > { %629 = vmatprep.mubr.bf16.mxu0 %v3871_v14  ;;  %670 = vmatprep.mubr.bf16.mxu1 %v3871_v14  ;;  %v942_v52 = vand.u32 %v927_v46, %v4013_v29  ;;  %v954_v0 = vand.u32 %v931_v58, %v4013_v29 }
  0xa9   : > { %693 = vmatprep.subr.bf16.mxu0 %v577_v10  ;;  %734 = vmatprep.subr.bf16.mxu1 %v583_v13 }
  0xaa   : > { %2864 = vrot.lane.b32.xlu0 %v3924_v12, %s3878_s26  ;;  %v915_v25 = vpop.permute.xlu0 %914  ;;  %2866 = vrot.lane.b32.xlu1 %v3920_v11, %s3878_s26  ;;  %v917_v26 = vpop.permute.xlu1 %916 }
  0xab   : > { %v932_v47 = vsel %vm926_vm4, %v4093_v21, %v915_v25  ;;  %v933_v57 = vsel %vm926_vm4, %v915_v25, %v917_v26 }
  0xac   : > { %v957_v53 = vand.u32 %v932_v47, %v4013_v29  ;;  %v960_v62 = vand.u32 %v933_v57, %v4013_v29 }
  0xae   : > { %3743 = vmatmul.mubr.msk.bf16.vlgmr.msra.gmra.mxu0 %vm268_vm3, %v175_v27  ;;  %3744 = vmatmul.mubr.msk.bf16.vlgmr.msra.gmra.mxu1 %vm268_vm3, %v175_v27  ;;  %v4114_v33 = vpop.permute.xlu0 %918  ;;  %v4116_v34 = vpop.permute.xlu1 %920 }
  0xaf   : > { %694 = vmatpush1.bf16.msra.mxu0 %v574_v28  ;;  %735 = vmatpush1.bf16.msra.mxu1 %v580_v30  ;;  %v934_v51 = vsel %vm926_vm4, %v917_v26, %v4114_v33  ;;  %v935_v7 = vsel %vm926_vm4, %v4114_v33, %v4116_v34 }
  0xb0   : > { %711 = vmatprep.mubr.bf16.mxu0 %v3871_v14  ;;  %752 = vmatprep.mubr.bf16.mxu1 %v3871_v14  ;;  %v963_v54 = vand.u32 %v934_v51, %v4013_v29  ;;  %v966_v25 = vand.u32 %v935_v7, %v4013_v29 }
  0xb1   : > { %2868 = vrot.lane.b32.xlu0 %v3930_v15, %s3878_s26  ;;  %775 = vmatprep.subr.bf16.mxu0 %v589_v31 }
  0xb2   : > { %816 = vmatprep.subr.bf16.mxu1 %v595_v32  ;;  %2870 = vrot.lane.b32.xlu1 %v3914_v8, %s3878_s26  ;;  %v923_v37 = vpop.permute.xlu0 %922  ;;  %v4129_v38 = vpop.permute.xlu1 %924 }
  0xb3   : > { %v936_v59 = vsel %vm926_vm4, %v4116_v34, %v923_v37  ;;  %v975_v2 = vand.u32 %v4129_v38, %v4013_v29  ;;  %v937_v5 = vsel %vm926_vm4, %v923_v37, %v4129_v38 }
  0xb4   : > { %v969_v1 = vand.u32 %v936_v59, %v4013_v29 }
  0xb5   : > { %2862 = vrot.lane.b32.xlu0 %v3916_v9, %s3878_s26 }
  0xb6   : > { %3745 = vmatmul.mubr.msk.bf16.vlgmr.msra.gmra.mxu0 %vm268_vm3, %v175_v27  ;;  %3746 = vmatmul.mubr.msk.bf16.vlgmr.msra.gmra.mxu1 %vm268_vm3, %v175_v27  ;;  %v4141_v43 = vpop.permute.xlu0 %1296  ;;  %v4143_v44 = vpop.permute.xlu1 %1298 }
  0xb7   : > { %776 = vmatpush1.bf16.msra.mxu0 %v586_v39  ;;  %817 = vmatpush1.bf16.msra.mxu1 %v592_v40  ;;  %v1320_v6 = vsel %vm1318_vm5, %v4141_v43, %v4143_v44 }
  0xb8   : > { %991 = vmatprep.subr.bf16.mxu0 %v945_v41  ;;  %793 = vmatprep.mubr.bf16.mxu0 %v3871_v14  ;;  %v1337_v21 = vand.u32 %v1320_v6, %v4013_v29 }
  0xb9   : > { %834 = vmatprep.mubr.bf16.mxu1 %v3871_v14  ;;  %1032 = vmatprep.subr.bf16.mxu1 %v951_v42  ;;  %v3756_v42 = vld [vmem:[%s4659_s1 + $0xc] sm:$0xf] }
  0xba   : > { %2874 = vrot.lane.b32.xlu0 %v3939_v17, %s3878_s26  ;;  %2872 = vrot.lane.b32.xlu1 %v3937_v16, %s3878_s26  ;;  %v4157_v48 = vpop.permute.xlu0 %1300  ;;  %v4159_v49 = vpop.permute.xlu1 %1302 }
  0xbb   : > { %v1322_v18 = vsel %vm1318_vm5, %v4157_v48, %v4159_v49  ;;  %v1321_v30 = vsel %vm1318_vm5, %v4143_v44, %v4157_v48 }
  0xbc   : > { %v1343_v26 = vand.u32 %v1322_v18, %v4013_v29 }
  0xbe   : > { %3747 = vmatmul.mubr.msk.bf16.vlgmr.msra.gmra.mxu0 %vm268_vm3, %v175_v27  ;;  %3748 = vmatmul.mubr.msk.bf16.vlgmr.msra.gmra.mxu1 %vm268_vm3, %v175_v27  ;;  %v1295_v55 = vpop.permute.xlu0 %1294  ;;  %v4169_v56 = vpop.permute.xlu1 %1304 }
  0xbf   : > { %992 = vmatpush1.bf16.msra.mxu0 %v942_v52  ;;  %1033 = vmatpush1.bf16.msra.mxu1 %v948_v50 }
  0xc0   : > { %2878 = vrot.lane.b32.xlu0 %v3947_v20, %s3878_s26  ;;  %1009 = vmatprep.mubr.bf16.mxu0 %v3871_v14 }
  0xc1   : > { %1073 = vmatprep.subr.bf16.mxu0 %v957_v53  ;;  %1050 = vmatprep.mubr.bf16.mxu1 %v3871_v14 }
  0xc2   : > { %1114 = vmatprep.subr.bf16.mxu1 %v963_v54  ;;  %2876 = vrot.lane.b32.xlu1 %v3945_v19, %s3878_s26  ;;  %v4183_v60 = vpop.permute.xlu0 %1306  ;;  %v4185_v61 = vpop.permute.xlu1 %1308 }
  0xc3   : > { %v1324_v31 = vsel %vm1318_vm5, %v4169_v56, %v4183_v60 }
  0xc4   : > { %2882 = vrot.lane.b32.xlu0 %v3955_v23, %s3878_s26  ;;  %v1349_v35 = vand.u32 %v1324_v31, %v4013_v29 }
  0xc6   : > { %3750 = vmatmul.mubr.msk.bf16.vlgmr.msra.gmra.mxu0 %vm268_vm3, %v3749_v63  ;;  %3751 = vmatmul.mubr.msk.bf16.vlgmr.msra.gmra.mxu1 %vm268_vm3, %v3749_v63  ;;  %v4199_v3 = vpop.permute.xlu0 %1310  ;;  %v4201_v4 = vpop.permute.xlu1 %1312 }
  0xc7   : > { %1074 = vmatpush1.bf16.msra.mxu0 %v954_v0  ;;  %1115 = vmatpush1.bf16.msra.mxu1 %v960_v62  ;;  %v1327_v48 = vsel %vm1318_vm5, %v4199_v3, %v4201_v4 }
  0xc8   : > { %2880 = vrot.lane.b32.xlu1 %v3953_v22, %s3878_s26  ;;  %3256 = vrot.lane.b32.xlu0 %v3924_v12, %s3879_s4  ;;  %v972_v12 = vand.u32 %v937_v5, %v4013_v29  ;;  %v1358_v53 = vand.u32 %v1327_v48, %v4013_v29  ;;  %v3770_v48 = vld [vmem:[%s4659_s1 + $0x14] sm:$0xf] }
  0xc9   : > { %1091 = vmatprep.mubr.bf16.mxu0 %v3871_v14  ;;  %1155 = vmatprep.subr.bf16.mxu0 %v969_v1 }
  0xca   : > { %1132 = vmatprep.mubr.bf16.mxu1 %v3871_v14  ;;  %1196 = vmatprep.subr.bf16.mxu1 %v975_v2  ;;  %v4217_v10 = vpop.permute.xlu0 %1314  ;;  %v4219_v13 = vpop.permute.xlu1 %1316 }
  0xcb   : > { %v1328_v39 = vsel %vm1318_vm5, %v4201_v4, %v4217_v10 }
  0xcc   : > { %2884 = vrot.lane.b32.xlu1 %v3961_v24, %s3878_s26  ;;  %3260 = vrot.lane.b32.xlu0 %v3930_v15, %s3879_s4  ;;  %v1319_v15 = vsel %vm1318_vm5, %v1295_v55, %v4141_v43  ;;  %v1361_v44 = vand.u32 %v1328_v39, %v4013_v29 }
  0xcd   : > { %v1334_v34 = vand.u32 %v1319_v15, %v4013_v29 }
  0xce   : > { %3752 = vmatmul.mubr.msk.bf16.vlgmr.msra.gmra.mxu0 %vm268_vm3, %v3749_v63  ;;  %3753 = vmatmul.mubr.msk.bf16.vlgmr.msra.gmra.mxu1 %vm268_vm3, %v3749_v63  ;;  %v4234_v27 = vpop.permute.xlu0 %1688  ;;  %v4236_v28 = vpop.permute.xlu1 %1690 }
  0xcf   : > { %1156 = vmatpush1.bf16.msra.mxu0 %v966_v25  ;;  %1197 = vmatpush1.bf16.msra.mxu1 %v972_v12  ;;  %v1712_v47 = vsel %vm1710_vm6, %v4234_v27, %v4236_v28 }
  0xd0   : > { %1383 = vmatprep.subr.bf16.mxu0 %v1337_v21  ;;  %3258 = vrot.lane.b32.xlu1 %v3920_v11, %s3879_s4  ;;  %v1340_v11 = vand.u32 %v1321_v30, %v4013_v29  ;;  %v1729_v52 = vand.u32 %v1712_v47, %v4013_v29 }
  0xd1   : > { %3254 = vrot.lane.b32.xlu0 %v3916_v9, %s3879_s4  ;;  %1173 = vmatprep.mubr.bf16.mxu0 %v3871_v14  ;;  %v1326_v9 = vsel %vm1318_vm5, %v4185_v61, %v4199_v3 }
  0xd2   : > { %1214 = vmatprep.mubr.bf16.mxu1 %v3871_v14  ;;  %1424 = vmatprep.subr.bf16.mxu1 %v1343_v26  ;;  %v4252_v32 = vpop.permute.xlu0 %1692  ;;  %v4254_v33 = vpop.permute.xlu1 %1694  ;;  %v1355_v36 = vand.u32 %v1326_v9, %v4013_v29 }
  0xd4   : > { %3262 = vrot.lane.b32.xlu1 %v3914_v8, %s3879_s4  ;;  %v1325_v8 = vsel %vm1318_vm5, %v4183_v60, %v4185_v61 }
  0xd5   : > { %3266 = vrot.lane.b32.xlu0 %v3939_v17, %s3879_s4  ;;  %v1323_v17 = vsel %vm1318_vm5, %v4159_v49, %v4169_v56  ;;  %v1713_v56 = vsel %vm1710_vm6, %v4236_v28, %v4252_v32 }
  0xd6   : > { %3754 = vmatmul.mubr.msk.bf16.vlgmr.msra.gmra.mxu0 %vm268_vm3, %v3749_v63  ;;  %3755 = vmatmul.mubr.msk.bf16.vlgmr.msra.gmra.mxu1 %vm268_vm3, %v3749_v63  ;;  %v1687_v37 = vpop.permute.xlu0 %1686  ;;  %v4269_v38 = vpop.permute.xlu1 %1696  ;;  %v1346_v43 = vand.u32 %v1323_v17, %v4013_v29  ;;  %v1732_v61 = vand.u32 %v1713_v56, %v4013_v29 }
  0xd7   : > { %1384 = vmatpush1.bf16.msra.mxu0 %v1334_v34  ;;  %1425 = vmatpush1.bf16.msra.mxu1 %v1340_v11  ;;  %v1711_v57 = vsel %vm1710_vm6, %v1687_v37, %v4234_v27  ;;  %v1715_v5 = vsel %vm1710_vm6, %v4254_v33, %v4269_v38 }
  0xd8   : > { %3264 = vrot.lane.b32.xlu1 %v3937_v16, %s3879_s4  ;;  %1401 = vmatprep.mubr.bf16.mxu0 %v3871_v14  ;;  %v1352_v16 = vand.u32 %v1325_v8, %v4013_v29  ;;  %v1726_v63 = vand.u32 %v1711_v57, %v4013_v29  ;;  %v1738_v18 = vand.u32 %v1715_v5, %v4013_v29  ;;  %v3587_v5 = vld [vmem:[%s4660_s2] sm:$0xff] }
  0xd9   : > { %1465 = vmatprep.subr.bf16.mxu0 %v1349_v35  ;;  %1442 = vmatprep.mubr.bf16.mxu1 %v3871_v14 }
  0xda   : > { %1506 = vmatprep.subr.bf16.mxu1 %v1355_v36  ;;  %3270 = vrot.lane.b32.xlu0 %v3947_v20, %s3879_s4  ;;  %v1699_v40 = vpop.permute.xlu0 %1698  ;;  %v1701_v41 = vpop.permute.xlu1 %1700  ;;  %v1367_v20 = vand.u32 %v4219_v13, %v4013_v29 }
  0xdb   : > { %v1717_v3 = vsel %vm1710_vm6, %v1699_v40, %v1701_v41 }
  0xdc   : > { %3268 = vrot.lane.b32.xlu1 %v3945_v19, %s3879_s4  ;;  %v1329_v19 = vsel %vm1318_vm5, %v4217_v10, %v4219_v13  ;;  %v1744_v10 = vand.u32 %v1717_v3, %v4013_v29  ;;  %v3763_v13 = vld [vmem:[%s4659_s1 + $0x10] sm:$0xf] }
  0xdd   : > { %v1364_v51 = vand.u32 %v1329_v19, %v4013_v29 }
  0xde   : > { %3757 = vmatmul.mubr.msk.bf16.vlgmr.msra.gmra.mxu0 %vm268_vm3, %v3756_v42  ;;  %3758 = vmatmul.mubr.msk.bf16.vlgmr.msra.gmra.mxu1 %vm268_vm3, %v3756_v42  ;;  %v4298_v45 = vpop.permute.xlu0 %1702  ;;  %v4300_v46 = vpop.permute.xlu1 %1704 }
  0xdf   : > { %1466 = vmatpush1.bf16.msra.mxu0 %v1346_v43  ;;  %1507 = vmatpush1.bf16.msra.mxu1 %v1352_v16  ;;  %v1718_v58 = vsel %vm1710_vm6, %v1701_v41, %v4298_v45  ;;  %v1719_v30 = vsel %vm1710_vm6, %v4298_v45, %v4300_v46 }
  0xe0   : > { %3272 = vrot.lane.b32.xlu1 %v3953_v22, %s3879_s4  ;;  %1483 = vmatprep.mubr.bf16.mxu0 %v3871_v14  ;;  %v1714_v22 = vsel %vm1710_vm6, %v4252_v32, %v4254_v33  ;;  %v1747_v0 = vand.u32 %v1718_v58, %v4013_v29  ;;  %v1750_v9 = vand.u32 %v1719_v30, %v4013_v29 }
  0xe1   : > { %1547 = vmatprep.subr.bf16.mxu0 %v1361_v44  ;;  %1524 = vmatprep.mubr.bf16.mxu1 %v3871_v14  ;;  %v1735_v54 = vand.u32 %v1714_v22, %v4013_v29 }
  0xe2   : > { %1588 = vmatprep.subr.bf16.mxu1 %v1367_v20  ;;  %3274 = vrot.lane.b32.xlu0 %v3955_v23, %s3879_s4  ;;  %v1707_v49 = vpop.permute.xlu0 %1706  ;;  %v1709_v50 = vpop.permute.xlu1 %1708 }
  0xe3   : > { %v1720_v4 = vsel %vm1710_vm6, %v4300_v46, %v1707_v49  ;;  %v1759_v21 = vand.u32 %v1709_v50, %v4013_v29  ;;  %v1721_v27 = vsel %vm1710_vm6, %v1707_v49, %v1709_v50 }
  0xe4   : > { %3276 = vrot.lane.b32.xlu1 %v3961_v24, %s3879_s4  ;;  %v1716_v24 = vsel %vm1710_vm6, %v4269_v38, %v1699_v40  ;;  %v1753_v12 = vand.u32 %v1720_v4, %v4013_v29  ;;  %v1756_v33 = vand.u32 %v1721_v27, %v4013_v29 }
  0xe5   : > { %v1741_v62 = vand.u32 %v1716_v24, %v4013_v29 }
  0xe6   : > { %3759 = vmatmul.mubr.msk.bf16.vlgmr.msra.gmra.mxu0 %vm268_vm3, %v3756_v42  ;;  %3760 = vmatmul.mubr.msk.bf16.vlgmr.msra.gmra.mxu1 %vm268_vm3, %v3756_v42  ;;  %v4328_v23 = vpop.permute.xlu0 %2080  ;;  %v4330_v55 = vpop.permute.xlu1 %2082 }
  0xe7   : > { %1548 = vmatpush1.bf16.msra.mxu0 %v1358_v53  ;;  %1589 = vmatpush1.bf16.msra.mxu1 %v1364_v51  ;;  %v2104_v28 = vsel %vm2102_vm7, %v4328_v23, %v4330_v55 }
  0xe8   : > { %1775 = vmatprep.subr.bf16.mxu0 %v1729_v52  ;;  %1565 = vmatprep.mubr.bf16.mxu0 %v3871_v14  ;;  %v2121_v11 = vand.u32 %v2104_v28, %v4013_v29 }
  0xe9   : > { %1606 = vmatprep.mubr.bf16.mxu1 %v3871_v14  ;;  %1816 = vmatprep.subr.bf16.mxu1 %v1735_v54 }
  0xea   : > { %v2085_v59 = vpop.permute.xlu0 %2084  ;;  %v4343_v60 = vpop.permute.xlu1 %2086  ;;  %3590 = vperm.xlu0 %3833, %v3587_v5  }
  0xeb   : > { %v2106_v15 = vsel %vm2102_vm7, %v2085_v59, %v4343_v60  ;;  %v2105_v37 = vsel %vm2102_vm7, %v4330_v55, %v2085_v59 }
  0xec   : > { %v2127_v34 = vand.u32 %v2106_v15, %v4013_v29  ;;  %v2124_v40 = vand.u32 %v2105_v37, %v4013_v29 }
  0xee   : > { %3761 = vmatmul.mubr.msk.bf16.vlgmr.msra.gmra.mxu0 %vm268_vm3, %v3756_v42  ;;  %3762 = vmatmul.mubr.msk.bf16.vlgmr.msra.gmra.mxu1 %vm268_vm3, %v3756_v42  ;;  %v2079_v1 = vpop.permute.xlu0 %2078  ;;  %v4351_v2 = vpop.permute.xlu1 %2088 }
  0xef   : > { %1776 = vmatpush1.bf16.msra.mxu0 %v1726_v63  ;;  %1817 = vmatpush1.bf16.msra.mxu1 %v1732_v61  ;;  %v2103_v8 = vsel %vm2102_vm7, %v2079_v1, %v4328_v23  ;;  %v2107_v19 = vsel %vm2102_vm7, %v4343_v60, %v4351_v2 }
  0xf0   : > { %1793 = vmatprep.mubr.bf16.mxu0 %v3871_v14  ;;  %1857 = vmatprep.subr.bf16.mxu0 %v1741_v62  ;;  %v2118_v42 = vand.u32 %v2103_v8, %v4013_v29  ;;  %v2130_v50 = vand.u32 %v2107_v19, %v4013_v29 }
  0xf1   : > { %1834 = vmatprep.mubr.bf16.mxu1 %v3871_v14  ;;  %1898 = vmatprep.subr.bf16.mxu1 %v1747_v0 }
  0xf2   : > { %v2091_v6 = vpop.permute.xlu0 %2090  ;;  %v2093_v7 = vpop.permute.xlu1 %2092 }
  0xf3   : > { %v2108_v38 = vsel %vm2102_vm7, %v4351_v2, %v2091_v6  ;;  %v2109_v20 = vsel %vm2102_vm7, %v2091_v6, %v2093_v7 }
  0xf4   : > { %v2133_v16 = vand.u32 %v2108_v38, %v4013_v29  ;;  %v2136_v47 = vand.u32 %v2109_v20, %v4013_v29 }
  0xf6   : > { %3764 = vmatmul.mubr.msk.bf16.vlgmr.msra.gmra.mxu0 %vm268_vm3, %v3763_v13  ;;  %3765 = vmatmul.mubr.msk.bf16.vlgmr.msra.gmra.mxu1 %vm268_vm3, %v3763_v13  ;;  %v4370_v25 = vpop.permute.xlu0 %2094  ;;  %v4372_v26 = vpop.permute.xlu1 %2096 }
  0xf7   : > { %1858 = vmatpush1.bf16.msra.mxu0 %v1738_v18  ;;  %1899 = vmatpush1.bf16.msra.mxu1 %v1744_v10  ;;  %v2110_v17 = vsel %vm2102_vm7, %v2093_v7, %v4370_v25  ;;  %v2111_v55 = vsel %vm2102_vm7, %v4370_v25, %v4372_v26 }
  0xf8   : > { %1875 = vmatprep.mubr.bf16.mxu0 %v3871_v14  ;;  %1939 = vmatprep.subr.bf16.mxu0 %v1753_v12  ;;  %v2139_v43 = vand.u32 %v2110_v17, %v4013_v29  ;;  %v2142_v58 = vand.u32 %v2111_v55, %v4013_v29 }
  0xf9   : > { %1916 = vmatprep.mubr.bf16.mxu1 %v3871_v14  ;;  %1980 = vmatprep.subr.bf16.mxu1 %v1759_v21 }
  0xfa   : > { %v2099_v31 = vpop.permute.xlu0 %2098  ;;  %v2101_v32 = vpop.permute.xlu1 %2100 }
  0xfb   : > { %v2112_v45 = vsel %vm2102_vm7, %v4372_v26, %v2099_v31  ;;  %v2151_v51 = vand.u32 %v2101_v32, %v4013_v29  ;;  %v2113_v53 = vsel %vm2102_vm7, %v2099_v31, %v2101_v32  ;;  %v3777_v26 = vld [vmem:[%s4659_s1 + $0x18] sm:$0xf] }
  0xfc   : > { %v2145_v49 = vand.u32 %v2112_v45, %v4013_v29  ;;  %v2148_v24 = vand.u32 %v2113_v53, %v4013_v29 }
  0xfe   : > { %3766 = vmatmul.mubr.msk.bf16.vlgmr.msra.gmra.mxu0 %vm268_vm3, %v3763_v13  ;;  %3767 = vmatmul.mubr.msk.bf16.vlgmr.msra.gmra.mxu1 %vm268_vm3, %v3763_v13  ;;  %v4391_v35 = vpop.permute.xlu0 %2472  ;;  %v2475_v36 = vpop.permute.xlu1 %2474 }
  0xff   : > { %1940 = vmatpush1.bf16.msra.mxu0 %v1750_v9  ;;  %1981 = vmatpush1.bf16.msra.mxu1 %v1756_v33  ;;  %v2496_v54 = vsel %vm2494_vm8, %v4391_v35, %v2475_v36 }
 0x100   : > { %2167 = vmatprep.subr.bf16.mxu0 %v2121_v11  ;;  %1957 = vmatprep.mubr.bf16.mxu0 %v3871_v14  ;;  %v2513_v57 = vand.u32 %v2496_v54, %v4013_v29 }
 0x101   : > { %1998 = vmatprep.mubr.bf16.mxu1 %v3871_v14  ;;  %2208 = vmatprep.subr.bf16.mxu1 %v2127_v34 }
 0x102   : > { %v2477_v39 = vpop.permute.xlu0 %2476  ;;  %v4404_v41 = vpop.permute.xlu1 %2478 }
 0x103   : > { %v2498_v56 = vsel %vm2494_vm8, %v2477_v39, %v4404_v41  ;;  %v2497_v62 = vsel %vm2494_vm8, %v2475_v36, %v2477_v39 }
 0x104   : > { %v2519_v59 = vand.u32 %v2498_v56, %v4013_v29  ;;  %v2516_v2 = vand.u32 %v2497_v62, %v4013_v29 }
 0x106   : > { %3768 = vmatmul.mubr.msk.bf16.vlgmr.msra.gmra.mxu0 %vm268_vm3, %v3763_v13  ;;  %3769 = vmatmul.mubr.msk.bf16.vlgmr.msra.gmra.mxu1 %vm268_vm3, %v3763_v13  ;;  %v2471_v44 = vpop.permute.xlu0 %2470  ;;  %v2481_v46 = vpop.permute.xlu1 %2480 }
 0x107   : > { %2168 = vmatpush1.bf16.msra.mxu0 %v2118_v42  ;;  %2209 = vmatpush1.bf16.msra.mxu1 %v2124_v40  ;;  %v2495_v0 = vsel %vm2494_vm8, %v2471_v44, %v4391_v35  ;;  %v2499_v21 = vsel %vm2494_vm8, %v4404_v41, %v2481_v46 }
 0x108   : > { %2185 = vmatprep.mubr.bf16.mxu0 %v3871_v14  ;;  %2249 = vmatprep.subr.bf16.mxu0 %v2133_v16  ;;  %v2510_v6 = vand.u32 %v2495_v0, %v4013_v29  ;;  %v2522_v30 = vand.u32 %v2499_v21, %v4013_v29 }
 0x109   : > { %2226 = vmatprep.mubr.bf16.mxu1 %v3871_v14  ;;  %2290 = vmatprep.subr.bf16.mxu1 %v2139_v43 }
 0x10a   : > { %v2483_v22 = vpop.permute.xlu0 %2482 }
 0x10b   : > { %v2485_v52 = vpop.permute.xlu1 %2484  ;;  %v2500_v63 = vsel %vm2494_vm8, %v2481_v46, %v2483_v22 }
 0x10c   : > { %v2525_v4 = vand.u32 %v2500_v63, %v4013_v29  ;;  %v2501_v13 = vsel %vm2494_vm8, %v2483_v22, %v2485_v52 }
 0x10d   : > { %v2528_v25 = vand.u32 %v2501_v13, %v4013_v29 }
 0x10e   : > { %3771 = vmatmul.mubr.msk.bf16.vlgmr.msra.gmra.mxu0 %vm268_vm3, %v3770_v48  ;;  %3772 = vmatmul.mubr.msk.bf16.vlgmr.msra.gmra.mxu1 %vm268_vm3, %v3770_v48  ;;  %v2487_v23 = vpop.permute.xlu0 %2486 }
 0x10f   : > { %2250 = vmatpush1.bf16.msra.mxu0 %v2130_v50  ;;  %2291 = vmatpush1.bf16.msra.mxu1 %v2136_v47  ;;  %v2489_v60 = vpop.permute.xlu1 %2488  ;;  %v2502_v1 = vsel %vm2494_vm8, %v2485_v52, %v2487_v23  ;;  %v3784_v52 = vld [vmem:[%s4659_s1 + $0x1c] sm:$0xf] }
 0x110   : > { %2267 = vmatprep.mubr.bf16.mxu0 %v3871_v14  ;;  %2331 = vmatprep.subr.bf16.mxu0 %v2145_v49  ;;  %v2531_v7 = vand.u32 %v2502_v1, %v4013_v29  ;;  %v2503_v9 = vsel %vm2494_vm8, %v2487_v23, %v2489_v60 }
 0x111   : > { %2308 = vmatprep.mubr.bf16.mxu1 %v3871_v14  ;;  %2372 = vmatprep.subr.bf16.mxu1 %v2151_v51  ;;  %v2534_v38 = vand.u32 %v2503_v9, %v4013_v29 }
 0x114   : > { %v2491_v61 = vpop.permute.xlu0 %2490 }
 0x115   : > { %v2493_v3 = vpop.permute.xlu1 %2492  ;;  %v2504_v12 = vsel %vm2494_vm8, %v2489_v60, %v2491_v61 }
 0x116   : > { %3773 = vmatmul.mubr.msk.bf16.vlgmr.msra.gmra.mxu0 %vm268_vm3, %v3770_v48  ;;  %3774 = vmatmul.mubr.msk.bf16.vlgmr.msra.gmra.mxu1 %vm268_vm3, %v3770_v48  ;;  %v2537_v28 = vand.u32 %v2504_v12, %v4013_v29  ;;  %v2543_v15 = vand.u32 %v2493_v3, %v4013_v29  ;;  %v2505_v33 = vsel %vm2494_vm8, %v2491_v61, %v2493_v3 }
 0x117   : > { %2332 = vmatpush1.bf16.msra.mxu0 %v2142_v58  ;;  %2373 = vmatpush1.bf16.msra.mxu1 %v2148_v24  ;;  %v2540_v35 = vand.u32 %v2505_v33, %v4013_v29 }
 0x118   : > { %2559 = vmatprep.subr.bf16.mxu0 %v2513_v57  ;;  %2349 = vmatprep.mubr.bf16.mxu0 %v3871_v14 }
 0x119   : > { %2390 = vmatprep.mubr.bf16.mxu1 %v3871_v14  ;;  %2600 = vmatprep.subr.bf16.mxu1 %v2519_v59 }
 0x11c   : > { %v2865_v10 = vpop.permute.xlu0 %2864  ;;  %v2867_v18 = vpop.permute.xlu1 %2866 }
 0x11d   : > { %v2888_v11 = vsel %vm2886_vm9, %v2865_v10, %v2867_v18 }
 0x11e   : > { %3775 = vmatmul.mubr.msk.bf16.vlgmr.msra.gmra.mxu0 %vm268_vm3, %v3770_v48  ;;  %3776 = vmatmul.mubr.msk.bf16.vlgmr.msra.gmra.mxu1 %vm268_vm3, %v3770_v48  ;;  %v2905_v36 = vand.u32 %v2888_v11, %v4013_v29 }
 0x11f   : > { %2560 = vmatpush1.bf16.msra.mxu0 %v2510_v6  ;;  %2601 = vmatpush1.bf16.msra.mxu1 %v2516_v2 }
 0x120   : > { %2577 = vmatprep.mubr.bf16.mxu0 %v3871_v14  ;;  %2641 = vmatprep.subr.bf16.mxu0 %v2525_v4 }
 0x121   : > { %2618 = vmatprep.mubr.bf16.mxu1 %v3871_v14  ;;  %2682 = vmatprep.subr.bf16.mxu1 %v2531_v7 }
 0x123   : > { %v2869_v27 = vpop.permute.xlu0 %2868 }
 0x124   : > { %v2871_v32 = vpop.permute.xlu1 %2870  ;;  %v2889_v39 = vsel %vm2886_vm9, %v2867_v18, %v2869_v27 }
 0x125   : > { %v2890_v34 = vsel %vm2886_vm9, %v2869_v27, %v2871_v32  ;;  %v2908_v42 = vand.u32 %v2889_v39, %v4013_v29 }
 0x126   : > { %3778 = vmatmul.mubr.msk.bf16.vlgmr.msra.gmra.mxu0 %vm268_vm3, %v3777_v26  ;;  %3779 = vmatmul.mubr.msk.bf16.vlgmr.msra.gmra.mxu1 %vm268_vm3, %v3777_v26  ;;  %v2911_v8 = vand.u32 %v2890_v34, %v4013_v29 }
 0x127   : > { %2642 = vmatpush1.bf16.msra.mxu0 %v2522_v30  ;;  %2683 = vmatpush1.bf16.msra.mxu1 %v2528_v25  ;;  %v2863_v31 = vpop.permute.xlu0 %2862 }
 0x128   : > { %2659 = vmatprep.mubr.bf16.mxu0 %v3871_v14  ;;  %2723 = vmatprep.subr.bf16.mxu0 %v2537_v28  ;;  %v2887_v41 = vsel %vm2886_vm9, %v2863_v31, %v2865_v10  ;;  %v3791_v31 = vld [vmem:[%s4659_s1 + $0x20] sm:$0xf] }
 0x129   : > { %2700 = vmatprep.mubr.bf16.mxu1 %v3871_v14  ;;  %2764 = vmatprep.subr.bf16.mxu1 %v2543_v15  ;;  %v2902_v20 = vand.u32 %v2887_v41, %v4013_v29 }
 0x12c   : > { %v2875_v37 = vpop.permute.xlu0 %2874  ;;  %v2873_v17 = vpop.permute.xlu1 %2872 }
 0x12d   : > { %v2892_v40 = vsel %vm2886_vm9, %v2873_v17, %v2875_v37  ;;  %v2891_v48 = vsel %vm2886_vm9, %v2871_v32, %v2873_v17 }
 0x12e   : > { %3780 = vmatmul.mubr.msk.bf16.vlgmr.msra.gmra.mxu0 %vm268_vm3, %v3777_v26  ;;  %3781 = vmatmul.mubr.msk.bf16.vlgmr.msra.gmra.mxu1 %vm268_vm3, %v3777_v26  ;;  %v2917_v43 = vand.u32 %v2892_v40, %v4013_v29  ;;  %v2914_v54 = vand.u32 %v2891_v48, %v4013_v29 }
 0x12f   : > { %2724 = vmatpush1.bf16.msra.mxu0 %v2534_v38  ;;  %2765 = vmatpush1.bf16.msra.mxu1 %v2540_v35 }
 0x130   : > { %2951 = vmatprep.subr.bf16.mxu0 %v2905_v36  ;;  %2741 = vmatprep.mubr.bf16.mxu0 %v3871_v14 }
 0x131   : > { %2782 = vmatprep.mubr.bf16.mxu1 %v3871_v14  ;;  %2992 = vmatprep.subr.bf16.mxu1 %v2911_v8 }
 0x132   : > { %v2879_v16 = vpop.permute.xlu0 %2878 }
 0x134   : > { %v2877_v44 = vpop.permute.xlu1 %2876 }
 0x135   : > { %v2894_v45 = vsel %vm2886_vm9, %v2877_v44, %v2879_v16  ;;  %v2893_v47 = vsel %vm2886_vm9, %v2875_v37, %v2877_v44 }
 0x136   : > { %3782 = vmatmul.mubr.msk.bf16.vlgmr.msra.gmra.mxu0 %vm268_vm3, %v3777_v26  ;;  %3783 = vmatmul.mubr.msk.bf16.vlgmr.msra.gmra.mxu1 %vm268_vm3, %v3777_v26  ;;  %v2923_v46 = vand.u32 %v2894_v45, %v4013_v29  ;;  %v2883_v19 = vpop.permute.xlu0 %2882  ;;  %v2920_v50 = vand.u32 %v2893_v47, %v4013_v29 }
 0x137   : > { %2952 = vmatpush1.bf16.msra.mxu0 %v2902_v20  ;;  %2993 = vmatpush1.bf16.msra.mxu1 %v2908_v42 }
 0x138   : > { %2969 = vmatprep.mubr.bf16.mxu0 %v3871_v14  ;;  %3033 = vmatprep.subr.bf16.mxu0 %v2917_v43 }
 0x139   : > { %3010 = vmatprep.mubr.bf16.mxu1 %v3871_v14  ;;  %3074 = vmatprep.subr.bf16.mxu1 %v2923_v46 }
 0x13a   : > { %v2881_v22 = vpop.permute.xlu1 %2880  ;;  %v3257_v49 = vpop.permute.xlu0 %3256 }
 0x13b   : > { %v2896_v51 = vsel %vm2886_vm9, %v2881_v22, %v2883_v19  ;;  %v2895_v57 = vsel %vm2886_vm9, %v2879_v16, %v2881_v22 }
 0x13c   : > { %v2929_v53 = vand.u32 %v2896_v51, %v4013_v29  ;;  %v2926_v63 = vand.u32 %v2895_v57, %v4013_v29 }
 0x13e   : > { %3785 = vmatmul.mubr.msk.bf16.vlgmr.msra.gmra.mxu0 %vm268_vm3, %v3784_v52  ;;  %3786 = vmatmul.mubr.msk.bf16.vlgmr.msra.gmra.mxu1 %vm268_vm3, %v3784_v52  ;;  %v2885_v23 = vpop.permute.xlu1 %2884  ;;  %v3261_v55 = vpop.permute.xlu0 %3260 }
 0x13f   : > { %3034 = vmatpush1.bf16.msra.mxu0 %v2914_v54  ;;  %3075 = vmatpush1.bf16.msra.mxu1 %v2920_v50  ;;  %v2935_v56 = vand.u32 %v2885_v23, %v4013_v29  ;;  %v2897_v24 = vsel %vm2886_vm9, %v2883_v19, %v2885_v23 }
 0x140   : > { %3051 = vmatprep.mubr.bf16.mxu0 %v3871_v14  ;;  %3115 = vmatprep.subr.bf16.mxu0 %v2929_v53  ;;  %v2932_v59 = vand.u32 %v2897_v24, %v4013_v29 }
 0x141   : > { %3092 = vmatprep.mubr.bf16.mxu1 %v3871_v14  ;;  %3156 = vmatprep.subr.bf16.mxu1 %v2935_v56 }
 0x142   : > { %v3259_v58 = vpop.permute.xlu1 %3258 }
 0x143   : > { %v3280_v60 = vsel %vm3278_vm10, %v3257_v49, %v3259_v58  ;;  %v3255_v61 = vpop.permute.xlu0 %3254  ;;  %v3281_v3 = vsel %vm3278_vm10, %v3259_v58, %v3261_v55 }
 0x144   : > { %v3297_v62 = vand.u32 %v3280_v60, %v4013_v29  ;;  %v3279_v5 = vsel %vm3278_vm10, %v3255_v61, %v3257_v49  ;;  %v3300_v7 = vand.u32 %v3281_v3, %v4013_v29 }
 0x145   : > { %v3294_v12 = vand.u32 %v3279_v5, %v4013_v29 }
 0x146   : > { %3787 = vmatmul.mubr.msk.bf16.vlgmr.msra.gmra.mxu0 %vm268_vm3, %v3784_v52  ;;  %3788 = vmatmul.mubr.msk.bf16.vlgmr.msra.gmra.mxu1 %vm268_vm3, %v3784_v52  ;;  %v3263_v0 = vpop.permute.xlu1 %3262 }
 0x147   : > { %3116 = vmatpush1.bf16.msra.mxu0 %v2926_v63  ;;  %3157 = vmatpush1.bf16.msra.mxu1 %v2932_v59  ;;  %v3282_v1 = vsel %vm3278_vm10, %v3261_v55, %v3263_v0  ;;  %v3267_v2 = vpop.permute.xlu0 %3266 }
 0x148   : > { %v3303_v4 = vand.u32 %v3282_v1, %v4013_v29  ;;  %3343 = vmatprep.subr.bf16.mxu0 %v3297_v62  ;;  %3133 = vmatprep.mubr.bf16.mxu0 %v3871_v14 }
 0x149   : > { %3174 = vmatprep.mubr.bf16.mxu1 %v3871_v14 }
 0x14a   : > { %v3265_v6 = vpop.permute.xlu1 %3264  ;;  %3384 = vmatprep.subr.bf16.mxu1 %v3303_v4 }
 0x14b   : > { %v3284_v10 = vsel %vm3278_vm10, %v3265_v6, %v3267_v2  ;;  %v3283_v28 = vsel %vm3278_vm10, %v3263_v0, %v3265_v6 }
 0x14c   : > { %v3271_v13 = vpop.permute.xlu0 %3270  ;;  %v3309_v18 = vand.u32 %v3284_v10, %v4013_v29  ;;  %v3306_v33 = vand.u32 %v3283_v28, %v4013_v29 }
 0x14e   : > { %3789 = vmatmul.mubr.msk.bf16.vlgmr.msra.gmra.mxu0 %vm268_vm3, %v3784_v52  ;;  %3790 = vmatmul.mubr.msk.bf16.vlgmr.msra.gmra.mxu1 %vm268_vm3, %v3784_v52  ;;  %v3269_v21 = vpop.permute.xlu1 %3268 }
 0x14f   : > { %3344 = vmatpush1.bf16.msra.mxu0 %v3294_v12  ;;  %3385 = vmatpush1.bf16.msra.mxu1 %v3300_v7  ;;  %v3286_v25 = vsel %vm3278_vm10, %v3269_v21, %v3271_v13  ;;  %v3285_v26 = vsel %vm3278_vm10, %v3267_v2, %v3269_v21 }
 0x150   : > { %v3315_v27 = vand.u32 %v3286_v25, %v4013_v29  ;;  %3361 = vmatprep.mubr.bf16.mxu0 %v3871_v14  ;;  %3402 = vmatprep.mubr.bf16.mxu1 %v3871_v14  ;;  %v3312_v15 = vand.u32 %v3285_v26, %v4013_v29 }
 0x151   : > { %3425 = vmatprep.subr.bf16.mxu0 %v3309_v18 }
 0x152   : > { %3466 = vmatprep.subr.bf16.mxu1 %v3315_v27  ;;  %v3273_v30 = vpop.permute.xlu1 %3272 }
 0x153   : > { %v3287_v40 = vsel %vm3278_vm10, %v3271_v13, %v3273_v30 }
 0x154   : > { %v3275_v32 = vpop.permute.xlu0 %3274  ;;  %v3318_v44 = vand.u32 %v3287_v40, %v4013_v29 }
 0x155   : > { %v387_v11 = vpop.f32.mrf.mxu1  ;;  %v3288_v9 = vsel %vm3278_vm10, %v3273_v30, %v3275_v32 }
 0x156   : > { %v346_v34 = vpop.f32.mrf.mxu0  ;;  %3792 = vmatmul.mubr.msk.bf16.vlgmr.msra.gmra.mxu0 %vm268_vm3, %v3791_v31  ;;  %3793 = vmatmul.mubr.msk.bf16.vlgmr.msra.gmra.mxu1 %vm268_vm3, %v3791_v31  ;;  %v3321_v35 = vand.u32 %v3288_v9, %v4013_v29  ;;  %v3277_v36 = vpop.permute.xlu1 %3276 }
 0x157   : > { %3426 = vmatpush1.bf16.msra.mxu0 %v3306_v33  ;;  %3467 = vmatpush1.bf16.msra.mxu1 %v3312_v15  ;;  %v389_v37 = vpop.f32.mrf.mxu1  ;;  %v3327_v38 = vand.u32 %v3277_v36, %v4013_v29  ;;  %v3289_v17 = vsel %vm3278_vm10, %v3275_v32, %v3277_v36 }
 0x158   : > { %v348_v8 = vpop.f32.mrf.mxu0  ;;  %3443 = vmatprep.mubr.bf16.mxu0 %v3871_v14  ;;  %3484 = vmatprep.mubr.bf16.mxu1 %v3871_v14  ;;  %v3324_v42 = vand.u32 %v3289_v17, %v4013_v29 }
 0x159   : > { %v391_v39 = vpop.f32.mrf.mxu1  ;;  %3507 = vmatprep.subr.bf16.mxu0 %v3321_v35  ;;  %3548 = vmatprep.subr.bf16.mxu1 %v3327_v38 }
 0x15a   : > { %v350_v41 = vpop.f32.mrf.mxu0 }
 0x15b   : > { %v392_v16 = vpop.f32.mrf.mxu1 }
 0x15c   : > { %v351_v43 = vpop.f32.mrf.mxu0 }
 0x15e   : > { %v428_v20 = vpop.f32.mrf.mxu0  ;;  %v469_v45 = vpop.f32.mrf.mxu1  ;;  %3794 = vmatmul.mubr.msk.bf16.vlgmr.msra.gmra.mxu0 %vm268_vm3, %v3791_v31  ;;  %3795 = vmatmul.mubr.msk.bf16.vlgmr.msra.gmra.mxu1 %vm268_vm3, %v3791_v31 }
 0x15f   : > { %3508 = vmatpush1.bf16.msra.mxu0 %v3318_v44  ;;  %3549 = vmatpush1.bf16.msra.mxu1 %v3324_v42 }
 0x160   : > { %v430_v46 = vpop.f32.mrf.mxu0  ;;  %v471_v19 = vpop.f32.mrf.mxu1  ;;  %3525 = vmatprep.mubr.bf16.mxu0 %v3871_v14  ;;  %3566 = vmatprep.mubr.bf16.mxu1 %v3871_v14 }
 0x162   : > { %v432_v47 = vpop.f32.mrf.mxu0  ;;  %v473_v48 = vpop.f32.mrf.mxu1 }
 0x164   : > { %v433_v22 = vpop.f32.mrf.mxu0  ;;  %v474_v49 = vpop.f32.mrf.mxu1 }
 0x166   : > { %v510_v50 = vpop.f32.mrf.mxu0  ;;  %v551_v29 = vpop.f32.mrf.mxu1  ;;  %3796 = vmatmul.mubr.msk.bf16.vlgmr.msra.gmra.mxu0 %vm268_vm3, %v3791_v31  ;;  %3797 = vmatmul.mubr.msk.bf16.vlgmr.msra.gmra.mxu1 %vm268_vm3, %v3791_v31 }
 0x168   : > { %v512_v51 = vpop.f32.mrf.mxu0  ;;  %v553_v52 = vpop.f32.mrf.mxu1 }
 0x16a   : > { %v514_v53 = vpop.f32.mrf.mxu0  ;;  %v555_v54 = vpop.f32.mrf.mxu1 }
 0x16c   : > { %v515_v23 = vpop.f32.mrf.mxu0  ;;  %v556_v55 = vpop.f32.mrf.mxu1 }
 0x16e   : > { %v631_v56 = vpop.f32.mrf.mxu0  ;;  %v672_v24 = vpop.f32.mrf.mxu1 }
 0x16f   : > { %v632_v57 = vadd.f32 %v631_v56, %v346_v34  ;;  %v673_v14 = vadd.f32 %v672_v24, %v387_v11 }
 0x170   : > { %v633_v58 = vpop.f32.mrf.mxu0  ;;  %v674_v59 = vpop.f32.mrf.mxu1 }
 0x171   : > { %v634_v60 = vadd.f32 %v633_v58, %v348_v8  ;;  %v675_v61 = vadd.f32 %v674_v59, %v389_v37 }
 0x172   : > { %v635_v62 = vpop.f32.mrf.mxu0  ;;  %v676_v63 = vpop.f32.mrf.mxu1 }
 0x174   : > { %v636_v0 = vpop.f32.mrf.mxu0  ;;  %v677_v1 = vpop.f32.mrf.mxu1 }
 0x176   : > { %v713_v2 = vpop.f32.mrf.mxu0  ;;  %v754_v3 = vpop.f32.mrf.mxu1 }
 0x177   : > { %v714_v4 = vadd.f32 %v713_v2, %v428_v20  ;;  %v755_v5 = vadd.f32 %v754_v3, %v469_v45 }
 0x178   : > { %v715_v6 = vpop.f32.mrf.mxu0  ;;  %v756_v7 = vpop.f32.mrf.mxu1 }
 0x179   : > { %v716_v10 = vadd.f32 %v715_v6, %v430_v46  ;;  %v757_v13 = vadd.f32 %v756_v7, %v471_v19 }
 0x17a   : > { %v717_v12 = vpop.f32.mrf.mxu0  ;;  %v758_v18 = vpop.f32.mrf.mxu1 }
 0x17c   : > { %v718_v21 = vpop.f32.mrf.mxu0  ;;  %v759_v25 = vpop.f32.mrf.mxu1 }
 0x17e   : > { %v795_v26 = vpop.f32.mrf.mxu0  ;;  %v836_v27 = vpop.f32.mrf.mxu1 }
 0x17f   : > { %v796_v28 = vadd.f32 %v795_v26, %v510_v50  ;;  %v837_v30 = vadd.f32 %v836_v27, %v551_v29 }
 0x180   : > { %v797_v15 = vpop.f32.mrf.mxu0  ;;  %v838_v31 = vpop.f32.mrf.mxu1 }
 0x181   : > { %v798_v32 = vadd.f32 %v797_v15, %v512_v51  ;;  %v839_v33 = vadd.f32 %v838_v31, %v553_v52 }
 0x182   : > { %v799_v11 = vpop.f32.mrf.mxu0  ;;  %v840_v9 = vpop.f32.mrf.mxu1 }
 0x184   : > { %v800_v34 = vpop.f32.mrf.mxu0  ;;  %v841_v35 = vpop.f32.mrf.mxu1 }
 0x186   : > { %v1011_v36 = vpop.f32.mrf.mxu0  ;;  %v1052_v37 = vpop.f32.mrf.mxu1 }
 0x187   : > { %v1223_v38 = vadd.f32 %v1011_v36, %v632_v57  ;;  %v1225_v8 = vadd.f32 %v1052_v37, %v673_v14 }
 0x188   : > { %v1013_v17 = vpop.f32.mrf.mxu0  ;;  %v1054_v39 = vpop.f32.mrf.mxu1 }
 0x189   : > { %v1224_v40 = vadd.f32 %v1013_v17, %v634_v60  ;;  %v1226_v41 = vadd.f32 %v1054_v39, %v675_v61 }
 0x18a   : > { %v1015_v16 = vpop.f32.mrf.mxu0  ;;  %v1056_v42 = vpop.f32.mrf.mxu1 }
 0x18c   : > { %v1016_v43 = vpop.f32.mrf.mxu0  ;;  %v1057_v44 = vpop.f32.mrf.mxu1 }
 0x18e   : > { %v1093_v20 = vpop.f32.mrf.mxu0  ;;  %v1134_v45 = vpop.f32.mrf.mxu1 }
 0x18f   : > { %v1227_v46 = vadd.f32 %v1093_v20, %v714_v4  ;;  %v1229_v19 = vadd.f32 %v1134_v45, %v755_v5 }
 0x190   : > { %v1095_v47 = vpop.f32.mrf.mxu0  ;;  %v1136_v48 = vpop.f32.mrf.mxu1 }
 0x191   : > { %v1228_v22 = vadd.f32 %v1095_v47, %v716_v10  ;;  %v1230_v49 = vadd.f32 %v1136_v48, %v757_v13 }
 0x192   : > { %v1097_v50 = vpop.f32.mrf.mxu0  ;;  %v1138_v29 = vpop.f32.mrf.mxu1 }
 0x194   : > { %v1098_v51 = vpop.f32.mrf.mxu0  ;;  %v1139_v52 = vpop.f32.mrf.mxu1 }
 0x196   : > { %v1175_v53 = vpop.f32.mrf.mxu0  ;;  %v1216_v54 = vpop.f32.mrf.mxu1 }
 0x197   : > { %v1231_v23 = vadd.f32 %v1175_v53, %v796_v28  ;;  %v1233_v55 = vadd.f32 %v1216_v54, %v837_v30 }
 0x198   : > { %v1177_v56 = vpop.f32.mrf.mxu0  ;;  %v1218_v24 = vpop.f32.mrf.mxu1 }
 0x199   : > { %v1232_v57 = vadd.f32 %v1177_v56, %v798_v32  ;;  %v1234_v14 = vadd.f32 %v1218_v24, %v839_v33 }
 0x19a   : > { %v1179_v58 = vpop.f32.mrf.mxu0  ;;  %v1220_v59 = vpop.f32.mrf.mxu1 }
 0x19c   : > { %v1180_v60 = vpop.f32.mrf.mxu0  ;;  %v1221_v61 = vpop.f32.mrf.mxu1 }
 0x19e   : > { %v1403_v62 = vpop.f32.mrf.mxu0  ;;  %v1444_v63 = vpop.f32.mrf.mxu1 }
 0x19f   : > { %v1615_v0 = vadd.f32 %v1403_v62, %v1223_v38  ;;  %v1617_v1 = vadd.f32 %v1444_v63, %v1225_v8 }
 0x1a0   : > { %v1405_v2 = vpop.f32.mrf.mxu0  ;;  %v1446_v3 = vpop.f32.mrf.mxu1 }
 0x1a1   : > { %v1616_v4 = vadd.f32 %v1405_v2, %v1224_v40  ;;  %v1618_v5 = vadd.f32 %v1446_v3, %v1226_v41 }
 0x1a2   : > { %v1407_v6 = vpop.f32.mrf.mxu0  ;;  %v1448_v7 = vpop.f32.mrf.mxu1 }
 0x1a4   : > { %v1408_v10 = vpop.f32.mrf.mxu0  ;;  %v1449_v13 = vpop.f32.mrf.mxu1 }
 0x1a6   : > { %v1485_v12 = vpop.f32.mrf.mxu0  ;;  %v1526_v18 = vpop.f32.mrf.mxu1 }
 0x1a7   : > { %v1619_v21 = vadd.f32 %v1485_v12, %v1227_v46  ;;  %v1621_v25 = vadd.f32 %v1526_v18, %v1229_v19 }
 0x1a8   : > { %v1487_v26 = vpop.f32.mrf.mxu0  ;;  %v1528_v27 = vpop.f32.mrf.mxu1 }
 0x1a9   : > { %v1620_v28 = vadd.f32 %v1487_v26, %v1228_v22  ;;  %v1622_v30 = vadd.f32 %v1528_v27, %v1230_v49 }
 0x1aa   : > { %v1489_v15 = vpop.f32.mrf.mxu0  ;;  %v1530_v31 = vpop.f32.mrf.mxu1 }
 0x1ac   : > { %v1490_v32 = vpop.f32.mrf.mxu0  ;;  %v1531_v33 = vpop.f32.mrf.mxu1 }
 0x1ae   : > { %v1567_v11 = vpop.f32.mrf.mxu0  ;;  %v1608_v9 = vpop.f32.mrf.mxu1 }
 0x1af   : > { %v1623_v34 = vadd.f32 %v1567_v11, %v1231_v23  ;;  %v1625_v35 = vadd.f32 %v1608_v9, %v1233_v55 }
 0x1b0   : > { %v1569_v36 = vpop.f32.mrf.mxu0  ;;  %v1610_v37 = vpop.f32.mrf.mxu1 }
 0x1b1   : > { %v1624_v38 = vadd.f32 %v1569_v36, %v1232_v57  ;;  %v1626_v8 = vadd.f32 %v1610_v37, %v1234_v14 }
 0x1b2   : > { %v1571_v17 = vpop.f32.mrf.mxu0  ;;  %v1612_v39 = vpop.f32.mrf.mxu1 }
 0x1b4   : > { %v1572_v40 = vpop.f32.mrf.mxu0  ;;  %v1613_v41 = vpop.f32.mrf.mxu1 }
 0x1b6   : > { %v1795_v16 = vpop.f32.mrf.mxu0  ;;  %v1836_v42 = vpop.f32.mrf.mxu1 }
 0x1b7   : > { %v2007_v43 = vadd.f32 %v1795_v16, %v1615_v0  ;;  %v2009_v44 = vadd.f32 %v1836_v42, %v1617_v1 }
 0x1b8   : > { %v1797_v20 = vpop.f32.mrf.mxu0  ;;  %v1838_v45 = vpop.f32.mrf.mxu1 }
 0x1b9   : > { %v2008_v46 = vadd.f32 %v1797_v20, %v1616_v4  ;;  %v2010_v19 = vadd.f32 %v1838_v45, %v1618_v5 }
 0x1ba   : > { %v1799_v47 = vpop.f32.mrf.mxu0  ;;  %v1840_v48 = vpop.f32.mrf.mxu1 }
 0x1bc   : > { %v1800_v22 = vpop.f32.mrf.mxu0  ;;  %v1841_v49 = vpop.f32.mrf.mxu1 }
 0x1be   : > { %v1877_v50 = vpop.f32.mrf.mxu0  ;;  %v1918_v29 = vpop.f32.mrf.mxu1 }
 0x1bf   : > { %v2011_v51 = vadd.f32 %v1877_v50, %v1619_v21  ;;  %v2013_v52 = vadd.f32 %v1918_v29, %v1621_v25 }
 0x1c0   : > { %v1879_v53 = vpop.f32.mrf.mxu0  ;;  %v1920_v54 = vpop.f32.mrf.mxu1 }
 0x1c1   : > { %v2012_v23 = vadd.f32 %v1879_v53, %v1620_v28  ;;  %v2014_v55 = vadd.f32 %v1920_v54, %v1622_v30 }
 0x1c2   : > { %v1881_v56 = vpop.f32.mrf.mxu0  ;;  %v1922_v24 = vpop.f32.mrf.mxu1 }
 0x1c4   : > { %v1882_v57 = vpop.f32.mrf.mxu0  ;;  %v1923_v14 = vpop.f32.mrf.mxu1 }
 0x1c6   : > { %v1959_v58 = vpop.f32.mrf.mxu0  ;;  %v2000_v59 = vpop.f32.mrf.mxu1 }
 0x1c7   : > { %v2015_v60 = vadd.f32 %v1959_v58, %v1623_v34  ;;  %v2017_v61 = vadd.f32 %v2000_v59, %v1625_v35 }
 0x1c8   : > { %v1961_v62 = vpop.f32.mrf.mxu0  ;;  %v2002_v63 = vpop.f32.mrf.mxu1 }
 0x1c9   : > { %v2016_v0 = vadd.f32 %v1961_v62, %v1624_v38  ;;  %v2018_v1 = vadd.f32 %v2002_v63, %v1626_v8 }
 0x1ca   : > { %v1963_v2 = vpop.f32.mrf.mxu0  ;;  %v2004_v3 = vpop.f32.mrf.mxu1 }
 0x1cc   : > { %v1964_v4 = vpop.f32.mrf.mxu0  ;;  %v2005_v5 = vpop.f32.mrf.mxu1 }
 0x1ce   : > { %v2187_v6 = vpop.f32.mrf.mxu0  ;;  %v2228_v7 = vpop.f32.mrf.mxu1 }
 0x1cf   : > { %v4563_v10 = vadd.f32 %v2187_v6, %v2007_v43  ;;  %v4565_v13 = vadd.f32 %v2228_v7, %v2009_v44 }
 0x1d0   : > { %v2189_v12 = vpop.f32.mrf.mxu0  ;;  %v2230_v18 = vpop.f32.mrf.mxu1 }
 0x1d1   : > { %v4567_v21 = vadd.f32 %v2189_v12, %v2008_v46  ;;  %v4569_v25 = vadd.f32 %v2230_v18, %v2010_v19 }
 0x1d2   : > { %v2191_v26 = vpop.f32.mrf.mxu0  ;;  %v2232_v27 = vpop.f32.mrf.mxu1 }
 0x1d4   : > { %v2192_v28 = vpop.f32.mrf.mxu0  ;;  %v2233_v30 = vpop.f32.mrf.mxu1 }
 0x1d6   : > { %v2269_v15 = vpop.f32.mrf.mxu0  ;;  %v2310_v31 = vpop.f32.mrf.mxu1 }
 0x1d7   : > { %v4571_v32 = vadd.f32 %v2269_v15, %v2011_v51  ;;  %v4573_v33 = vadd.f32 %v2310_v31, %v2013_v52 }
 0x1d8   : > { %v2271_v11 = vpop.f32.mrf.mxu0  ;;  %v2312_v9 = vpop.f32.mrf.mxu1 }
 0x1d9   : > { %v4575_v34 = vadd.f32 %v2271_v11, %v2012_v23  ;;  %v4577_v35 = vadd.f32 %v2312_v9, %v2014_v55 }
 0x1da   : > { %v2273_v36 = vpop.f32.mrf.mxu0  ;;  %v2314_v37 = vpop.f32.mrf.mxu1 }
 0x1dc   : > { %v2274_v38 = vpop.f32.mrf.mxu0  ;;  %v2315_v8 = vpop.f32.mrf.mxu1 }
 0x1de   : > { %v2351_v17 = vpop.f32.mrf.mxu0  ;;  %v2392_v39 = vpop.f32.mrf.mxu1 }
 0x1df   : > { %v4579_v40 = vadd.f32 %v2351_v17, %v2015_v60  ;;  %v4581_v41 = vadd.f32 %v2392_v39, %v2017_v61 }
 0x1e0   : > { %v2353_v16 = vpop.f32.mrf.mxu0  ;;  %v2394_v42 = vpop.f32.mrf.mxu1 }
 0x1e1   : > { %v4583_v43 = vadd.f32 %v2353_v16, %v2016_v0  ;;  %v4585_v44 = vadd.f32 %v2394_v42, %v2018_v1 }
 0x1e2   : > { %v2355_v20 = vpop.f32.mrf.mxu0  ;;  %v2396_v45 = vpop.f32.mrf.mxu1 }
 0x1e4   : > { %v2356_v46 = vpop.f32.mrf.mxu0  ;;  %v2397_v19 = vpop.f32.mrf.mxu1 }
 0x1e6   : > { %v2579_v47 = vpop.f32.mrf.mxu0  ;;  %v2620_v48 = vpop.f32.mrf.mxu1 }
 0x1e7   : > { %v2791_v16 = vadd.f32 %v2579_v47, %v4563_v10  ;;  %v2793_v42 = vadd.f32 %v2620_v48, %v4565_v13 }
 0x1e8   : > { %v2581_v22 = vpop.f32.mrf.mxu0  ;;  %v2622_v49 = vpop.f32.mrf.mxu1 }
 0x1e9   : > { %v2792_v46 = vadd.f32 %v2581_v22, %v4567_v21  ;;  %v2794_v19 = vadd.f32 %v2622_v49, %v4569_v25 }
 0x1ea   : > { %v2583_v50 = vpop.f32.mrf.mxu0  ;;  %v2624_v29 = vpop.f32.mrf.mxu1 }
 0x1ec   : > { %v2584_v51 = vpop.f32.mrf.mxu0  ;;  %v2625_v52 = vpop.f32.mrf.mxu1 }
 0x1ed   : > { %v4611_v51 = vpop.permute.xlu0 %3590 }
 0x1ee   : > { %v2661_v53 = vpop.f32.mrf.mxu0  ;;  %v2702_v54 = vpop.f32.mrf.mxu1 }
 0x1ef   : > { %v2795_v25 = vadd.f32 %v2661_v53, %v4571_v32 }
 0x1f0   : > { %v4587_v23 = vpop.f32.mrf.mxu0  ;;  %v4589_v55 = vpop.f32.mrf.mxu1 }
 0x1f2   : > { %v2665_v56 = vpop.f32.mrf.mxu0  ;;  %v2706_v24 = vpop.f32.mrf.mxu1 }
 0x1f4   : > { %v2666_v57 = vpop.f32.mrf.mxu0  ;;  %v2707_v14 = vpop.f32.mrf.mxu1 }
 0x1f6   : > { %v4591_v58 = vpop.f32.mrf.mxu0  ;;  %v4593_v59 = vpop.f32.mrf.mxu1 }
 0x1f8   : > { %v4595_v60 = vpop.f32.mrf.mxu0  ;;  %v4597_v61 = vpop.f32.mrf.mxu1 }
 0x1fa   : > { %v2747_v62 = vpop.f32.mrf.mxu0  ;;  %v2788_v63 = vpop.f32.mrf.mxu1 }
 0x1fc   : > { %v2748_v0 = vpop.f32.mrf.mxu0  ;;  %v2789_v1 = vpop.f32.mrf.mxu1 }
 0x1fd   : > { %v2797_v0 = vadd.f32 %v2702_v54, %v4573_v33 }
 0x1fe   : > { %v2971_v2 = vpop.f32.mrf.mxu0  ;;  %v3012_v3 = vpop.f32.mrf.mxu1 }
 0x1ff   : > { %v3183_v50 = vadd.f32 %v2971_v2, %v2791_v16  ;;  %v3185_v29 = vadd.f32 %v3012_v3, %v2793_v42  ;;  %v2796_v3 = vadd.f32 %v4587_v23, %v4575_v34 }
 0x200   : > { %v2973_v4 = vpop.f32.mrf.mxu0  ;;  %v3014_v5 = vpop.f32.mrf.mxu1 }
 0x201   : > { %v3184_v24 = vadd.f32 %v2973_v4, %v2792_v46  ;;  %v3186_v57 = vadd.f32 %v3014_v5, %v2794_v19 }
 0x202   : > { %v2975_v6 = vpop.f32.mrf.mxu0  ;;  %v3016_v7 = vpop.f32.mrf.mxu1 }
 0x203   : > { %v2798_v6 = vadd.f32 %v4589_v55, %v4577_v35  ;;  %v2799_v35 = vadd.f32 %v4591_v58, %v4579_v40 }
 0x204   : > { %v2976_v12 = vpop.f32.mrf.mxu0  ;;  %v3017_v18 = vpop.f32.mrf.mxu1 }
 0x206   : > { %v3053_v26 = vpop.f32.mrf.mxu0  ;;  %v3094_v27 = vpop.f32.mrf.mxu1 }
 0x207   : > { %v3187_v7 = vadd.f32 %v3053_v26, %v2795_v25  ;;  %v3189_v32 = vadd.f32 %v3094_v27, %v2797_v0  ;;  %v2801_v27 = vadd.f32 %v4593_v59, %v4581_v41 }
 0x208   : > { %v3055_v28 = vpop.f32.mrf.mxu0  ;;  %v3096_v30 = vpop.f32.mrf.mxu1 }
 0x209   : > { %v3188_v54 = vadd.f32 %v3055_v28, %v2796_v3  ;;  %v3190_v12 = vadd.f32 %v3096_v30, %v2798_v6 }
 0x20a   : > { %v3057_v15 = vpop.f32.mrf.mxu0  ;;  %v3098_v31 = vpop.f32.mrf.mxu1 }
 0x20c   : > { %v3058_v11 = vpop.f32.mrf.mxu0  ;;  %v3099_v9 = vpop.f32.mrf.mxu1 }
 0x20e   : > { %v4599_v36 = vpop.f32.mrf.mxu0  ;;  %v4601_v37 = vpop.f32.mrf.mxu1 }
 0x20f   : > { %v3191_v40 = vadd.f32 %v4599_v36, %v2799_v35  ;;  %v3193_v58 = vadd.f32 %v4601_v37, %v2801_v27 }
 0x210   : > { %v4603_v38 = vpop.f32.mrf.mxu0  ;;  %v4605_v8 = vpop.f32.mrf.mxu1 }
 0x212   : > { %v3139_v17 = vpop.f32.mrf.mxu0  ;;  %v3180_v39 = vpop.f32.mrf.mxu1 }
 0x213   : > { %v2800_v39 = vadd.f32 %v4595_v60, %v4583_v43 }
 0x214   : > { %v3140_v20 = vpop.f32.mrf.mxu0  ;;  %v3181_v45 = vpop.f32.mrf.mxu1 }
 0x215   : > { %v2802_v20 = vadd.f32 %v4597_v61, %v4585_v44  ;;  %v3192_v45 = vadd.f32 %v4603_v38, %v2800_v39 }
 0x216   : > { %v3363_v52 = vpop.f32.mrf.mxu0  ;;  %v3404_v56 = vpop.f32.mrf.mxu1 }
 0x217   : > { %v3575_v14 = vadd.f32 %v3363_v52, %v3183_v50  ;;  %v3577_v62 = vadd.f32 %v3404_v56, %v3185_v29  ;;  %v3194_v46 = vadd.f32 %v4605_v8, %v2802_v20 }
 0x218   : > { %v3365_v63 = vpop.f32.mrf.mxu0  ;;  %v3406_v10 = vpop.f32.mrf.mxu1 }
 0x219   : > { %v3576_v47 = vadd.f32 %v3365_v63, %v3184_v24  ;;  %v3593_v13 = vadd.f32 %v4611_v51, %v3575_v14  ;;  %v3578_v48 = vadd.f32 %v3406_v10, %v3186_v57  ;;  %v3595_v21 = vadd.f32 %v4611_v51, %v3577_v62 }
 0x21a   : > { %v3367_v22 = vpop.f32.mrf.mxu0  ;;  %v3408_v49 = vpop.f32.mrf.mxu1 }
 0x21b   : > { %v3594_v1 = vadd.f32 %v4611_v51, %v3576_v47  ;;  %3837 = vtanh.f32 %v3593_v13  ;;  %v3596_v2 = vadd.f32 %v4611_v51, %v3578_v48 }
 0x21c   : > { %3839 = vtanh.f32 %v3595_v21  ;;  %v3368_v4 = vpop.f32.mrf.mxu0  ;;  %v3409_v5 = vpop.f32.mrf.mxu1 }
 0x21d   : > { %3841 = vtanh.f32 %v3594_v1 }
 0x21e   : > { %3843 = vtanh.f32 %v3596_v2  ;;  %v3445_v53 = vpop.f32.mrf.mxu0  ;;  %v3486_v33 = vpop.f32.mrf.mxu1 }
 0x21f   : > { %v3579_v18 = vadd.f32 %v3445_v53, %v3187_v7  ;;  %v3581_v15 = vadd.f32 %v3486_v33, %v3189_v32 }
 0x220   : > { %v3447_v31 = vpop.f32.mrf.mxu0  ;;  %v3488_v11 = vpop.f32.mrf.mxu1 }
 0x221   : > { %v3597_v34 = vadd.f32 %v4611_v51, %v3579_v18  ;;  %v3599_v23 = vadd.f32 %v4611_v51, %v3581_v15  ;;  %v3580_v9 = vadd.f32 %v3447_v31, %v3188_v54  ;;  %v3582_v17 = vadd.f32 %v3488_v11, %v3190_v12 }
 0x222   : > { %v3449_v55 = vpop.f32.mrf.mxu0  ;;  %v3490_v26 = vpop.f32.mrf.mxu1 }
 0x223   : > { %3845 = vtanh.f32 %v3597_v34  ;;  %v3598_v28 = vadd.f32 %v4611_v51, %v3580_v9  ;;  %v3600_v30 = vadd.f32 %v4611_v51, %v3582_v17 }
 0x224   : > { %3847 = vtanh.f32 %v3599_v23  ;;  %v3450_v16 = vpop.f32.mrf.mxu0  ;;  %v3491_v42 = vpop.f32.mrf.mxu1 }
 0x225   : > { %3849 = vtanh.f32 %v3598_v28 }
 0x226   : > { %3851 = vtanh.f32 %v3600_v30  ;;  %v3527_v41 = vpop.f32.mrf.mxu0  ;;  %v3568_v59 = vpop.f32.mrf.mxu1 }
 0x227   : > { %v3583_v43 = vadd.f32 %v3527_v41, %v3191_v40  ;;  %v3585_v60 = vadd.f32 %v3568_v59, %v3193_v58 }
 0x228   : > { %v3838_v19 = vpop.eup %3837  ;;  %v3529_v50 = vpop.f32.mrf.mxu0 }
 0x229   : > { %v3570_v29 = vpop.f32.mrf.mxu1  ;;  %v3840_v52 = vpop.eup %3839  ;;  %v3601_v44 = vadd.f32 %v4611_v51, %v3583_v43  ;;  %v3603_v61 = vadd.f32 %v4611_v51, %v3585_v60  ;;  %v3584_v36 = vadd.f32 %v3529_v50, %v3192_v45 }
 0x22a   : > { %v3586_v37 = vadd.f32 %v3570_v29, %v3194_v46  ;;  %v3842_v56 = vpop.eup %3841  ;;  %v3531_v38 = vpop.f32.mrf.mxu0 }
 0x22b   : > { %v3572_v8 = vpop.f32.mrf.mxu1  ;;  %v3844_v24 = vpop.eup %3843  ;;  %v3806_v57 = vpack.c.bf16 %v3842_v56, %v3838_v19  ;;  %3853 = vtanh.f32 %v3601_v44  ;;  %v3602_v14 = vadd.f32 %v4611_v51, %v3584_v36 }
 0x22c   : > { %v3604_v62 = vadd.f32 %v4611_v51, %v3586_v37  ;;  %v3807_v63 = vpack.c.bf16 %v3844_v24, %v3840_v52  ;;  %3855 = vtanh.f32 %v3603_v61  ;;  %v3532_v10 = vpop.f32.mrf.mxu0 }
 0x22d   : > { %v3573_v47 = vpop.f32.mrf.mxu1  ;;  %3665 = vst [vmem:[%s4645_s23] sm:$0xff] %v3806_v57  ;;  %3857 = vtanh.f32 %v3602_v14 }
 0x22e   : > { %3666 = vst [vmem:[%s4645_s23 + $0x8] sm:$0xff] %v3807_v63  ;;  %3859 = vtanh.f32 %v3604_v62 }
 0x230   : > { %v3846_v13 = vpop.eup %3845 }
 0x231   : > { %v3848_v48 = vpop.eup %3847 }
 0x232   : > { %v3850_v21 = vpop.eup %3849 }
 0x233   : > { %v3852_v25 = vpop.eup %3851  ;;  %v3808_v22 = vpack.c.bf16 %v3850_v21, %v3846_v13 }
 0x234   : > { %v3809_v49 = vpack.c.bf16 %v3852_v25, %v3848_v48 }
 0x235   : > { %3667 = vst [vmem:[%s4645_s23 + $0x10] sm:$0xff] %v3808_v22 }
 0x236   : > { %3668 = vst [vmem:[%s4645_s23 + $0x18] sm:$0xff] %v3809_v49 }
 0x238   : > { %v3854_v51 = vpop.eup %3853 }
 0x239   : > { %v3856_v0 = vpop.eup %3855 }
 0x23a   : > { %v3858_v1 = vpop.eup %3857 }
 0x23b   : > { %v3860_v2 = vpop.eup %3859  ;;  %v3810_v3 = vpack.c.bf16 %v3858_v1, %v3854_v51 }
 0x23c   : > { %v3811_v4 = vpack.c.bf16 %v3860_v2, %v3856_v0 }
 0x23d   : > { %3669 = vst [vmem:[%s4645_s23 + $0x20] sm:$0xff] %v3810_v3 }
 0x23e   : > { %3673 = vst.msk [vmem:[%s4645_s23 + $0x28] sm:$0xff] %vm3672_vm13, %v3811_v4 }
 0x23f PF: > { %s13_s12 = sadd.s32 1, %s3867_s12  }
 0x240   : > { %p10_p4 = scmp.ge.s32.totalorder %s13_s12, 10  }
 0x242   :  { %12 = sbr.rel (!%p10_p4) target bundleno = 1 (0x1), region = 70 }

// kernel: temporal_shift_can_forward.16
= control target key start
LH: loop header
LB: loop body
LE: loop exit
PB: predicated region body
PF: predicated region fallthrough
CT: control target
= control target key end

     0   :  { %s3534_s12 = smov 0   ;;  %s4254_s0 = inlined_call_operand.vmem [shape: bf16[8,8,1404], index: 0, kind: input, shape index: {}]   ;;  %s4255_s1 = inlined_call_operand.vmem [shape: bf16[9,8,8], index: 1, kind: input, shape index: {}]   ;;  %s4256_s2 = inlined_call_operand.vmem [shape: f32[8,1], index: 2, kind: input, shape index: {}]   ;;  %s4257_s3 = inlined_call_operand.vmem [shape: bf16[8,8,1296], index: 3, kind: output, shape index: {}]  }
   0x1 LB: > { %s3230_s13 = sadd.s32 4294967295, %s3501_s12   ;;  %p3234_p0 = scmp.ge.s32.totalorder %s3501_s12, 1  ;;  %s3501_s12 = sphi %s3534_s12, %s13_s12  }
   0x2   : > { %p137_p1 = scmp.lt.s32.totalorder %s3501_s12, 9 }
   0x4   : > { %p138_p2 = pnand %p3234_p0, %p137_p1 }
   0x5   : > { %p161_p3 = scmp.lt.s32.totalorder (!%p138_p2), %s3230_s13, 7  ;;  %s3504_s18 = smov (!%p138_p2), 127  }
   0x6   : > { %141 = sbr.rel (%p138_p2) target bundleno = 568 (0x238), region = 32  ;;  %s3505_s19 = smov (!%p138_p2), 126  }
   0x7   : > { %s3506_s20 = smov (!%p138_p2), 92   ;;  %s3507_s21 = smov (!%p138_p2), 91  }
   0x8   : > { %s3508_s22 = smov (!%p138_p2), 90   ;;  %s3509_s23 = smov (!%p138_p2), 56  }
   0x9   : > { %s3511_s26 = smov (!%p138_p2), 55   ;;  %s3513_s29 = smov (!%p138_p2), 54  }
   0xb   : > { %s4259_s13 = smov (!%p161_p3, %s3230_s13), 7  ;;  %v3503_v0 = vmov 0   ;;  %vm231_vm0 = vcmask 1039360   ;;  %vm246_vm1 = vcmask 1043456   ;;  %v3649_v24 = vld [vmem:[%s4255_s1 + $0x4] sm:$0xf] }
   0xc   : > { %s3441_s14 = smul.u32 44, %s4259_s13  ;;  %312 = vmatprep.mubr.bf16.mxu0 %v3503_v0  ;;  %353 = vmatprep.mubr.bf16.mxu1 %v3503_v0  ;;  %vm242_vm2 = vcmask 64512   ;;  %v3510_v42 = vmov 0.0   ;;  %vm3512_vm3 = vmmov 0   ;;  %v178_v53 = vld [vmem:[%s4255_s1] sm:$0xf] }
   0xd   : > { %3461 = vset.pattern.permute.xlu0 %v3503_v0  ;;  %vm830_vm4 = vcmask 1031168   ;;  %vm1157_vm5 = vcmask 752640   ;;  %vm1484_vm6 = vcmask 744448   ;;  %vm1811_vm7 = vcmask 736256  }
   0xe   : > { %s165_s17 = scalar_lea.vmem %s4254_s0, %s3441_s14  ;;  %vm2138_vm8 = vcmask 457728   ;;  %vm2465_vm9 = vcmask 449536   ;;  %vm2792_vm10 = vcmask 441344   ;;  %s4241_s24 = scalar_lea.vmem %s4257_s3, %s3441_s14  ;;  %vm3173_vm11 = vcmask 125952  }
   0xf   : > { %v173_v1 = vld [vmem:[%s165_s17 + $0x8] sm:$0xff]  ;;  %v172_v2 = vld [vmem:[%s165_s17] sm:$0xff]  ;;  %v174_v7 = vld [vmem:[%s165_s17 + $0x10] sm:$0xff] }
  0x10   : > { %v3553_v3 = vcombine.low %v173_v1, %v173_v1  ;;  %v3555_v4 = vcombine.low %v172_v2, %v172_v2  ;;  %v3559_v5 = vcombine.high %v173_v1, %v173_v1  ;;  %v3561_v6 = vcombine.high %v172_v2, %v172_v2  ;;  %v175_v10 = vld [vmem:[%s165_s17 + $0x18] sm:$0xff]  ;;  %v176_v13 = vld [vmem:[%s165_s17 + $0x20] sm:$0xff]  ;;  %v3583_v16 = vld [vmem:[%s165_s17 + $0x28] ss:$0 sps:$4 sm:$0xff]  }
  0x11   : > { %v3565_v8 = vcombine.high %v174_v7, %v174_v7  ;;  %v3567_v9 = vcombine.low %v174_v7, %v174_v7  ;;  %v3571_v11 = vcombine.high %v175_v10, %v175_v10  ;;  %v3573_v12 = vcombine.low %v175_v10, %v175_v10 }
  0x12   : > { %213 = vrot.lane.b32.xlu1 %v3553_v3, %s3504_s18  ;;  %209 = vrot.lane.b32.xlu0 %v3555_v4, %s3504_s18  ;;  %v3577_v14 = vcombine.high %v176_v13, %v176_v13  ;;  %v3579_v15 = vcombine.low %v176_v13, %v176_v13  ;;  %v529_v47 = vsel %vm246_vm1, %v3555_v4, 0  ;;  %v535_v50 = vsel %vm246_vm1, %v3553_v3, 0 }
  0x13   : > { %v541_v54 = vsel %vm246_vm1, %v3567_v9, 0  ;;  %v547_v57 = vsel %vm246_vm1, %v3573_v12, 0  ;;  %v559_v1 = vsel %vm246_vm1, %v3583_v16, 0 }
  0x14   : > { %v553_v60 = vsel %vm246_vm1, %v3579_v15, 0 }
  0x16   : > { %215 = vrot.lane.b32.xlu1 %v3559_v5, %s3504_s18  ;;  %211 = vrot.lane.b32.xlu0 %v3561_v6, %s3504_s18 }
  0x1a   : > { %219 = vrot.lane.b32.xlu1 %v3565_v8, %s3504_s18  ;;  %217 = vrot.lane.b32.xlu0 %v3567_v9, %s3504_s18 }
  0x1e   : > { %223 = vrot.lane.b32.xlu1 %v3571_v11, %s3504_s18  ;;  %221 = vrot.lane.b32.xlu0 %v3573_v12, %s3504_s18 }
  0x22   : > { %227 = vrot.lane.b32.xlu1 %v3577_v14, %s3504_s18  ;;  %225 = vrot.lane.b32.xlu0 %v3579_v15, %s3504_s18 }
  0x26   : > { %229 = vrot.lane.b32.xlu0 %v3583_v16, %s3504_s18  ;;  %808 = vrot.lane.b32.xlu1 %v3555_v4, %s3505_s19 }
  0x2a   : > { %812 = vrot.lane.b32.xlu1 %v3553_v3, %s3505_s19  ;;  %810 = vrot.lane.b32.xlu0 %v3561_v6, %s3505_s19 }
  0x2e   : > { %816 = vrot.lane.b32.xlu1 %v3567_v9, %s3505_s19  ;;  %814 = vrot.lane.b32.xlu0 %v3559_v5, %s3505_s19 }
  0x32   : > { %820 = vrot.lane.b32.xlu1 %v3573_v12, %s3505_s19  ;;  %818 = vrot.lane.b32.xlu0 %v3565_v8, %s3505_s19 }
  0x36   : > { %824 = vrot.lane.b32.xlu1 %v3579_v15, %s3505_s19  ;;  %822 = vrot.lane.b32.xlu0 %v3571_v11, %s3505_s19 }
  0x3a   : > { %828 = vrot.lane.b32.xlu1 %v3583_v16, %s3505_s19  ;;  %826 = vrot.lane.b32.xlu0 %v3577_v14, %s3505_s19 }
  0x3e   : > { %1135 = vrot.lane.b32.xlu0 %v3555_v4, %s3506_s20  ;;  %1137 = vrot.lane.b32.xlu1 %v3561_v6, %s3506_s20 }
  0x42   : > { %1139 = vrot.lane.b32.xlu0 %v3553_v3, %s3506_s20  ;;  %1141 = vrot.lane.b32.xlu1 %v3559_v5, %s3506_s20 }
  0x46   : > { %1143 = vrot.lane.b32.xlu0 %v3567_v9, %s3506_s20  ;;  %1145 = vrot.lane.b32.xlu1 %v3565_v8, %s3506_s20 }
  0x4a   : > { %1147 = vrot.lane.b32.xlu0 %v3573_v12, %s3506_s20  ;;  %1149 = vrot.lane.b32.xlu1 %v3571_v11, %s3506_s20 }
  0x4e   : > { %1151 = vrot.lane.b32.xlu0 %v3579_v15, %s3506_s20  ;;  %1153 = vrot.lane.b32.xlu1 %v3577_v14, %s3506_s20 }
  0x52   : > { %1155 = vrot.lane.b32.xlu0 %v3583_v16, %s3506_s20  ;;  %1462 = vrot.lane.b32.xlu1 %v3555_v4, %s3507_s21 }
  0x56   : > { %1466 = vrot.lane.b32.xlu1 %v3553_v3, %s3507_s21  ;;  %1464 = vrot.lane.b32.xlu0 %v3561_v6, %s3507_s21 }
  0x5a   : > { %1470 = vrot.lane.b32.xlu1 %v3567_v9, %s3507_s21  ;;  %1468 = vrot.lane.b32.xlu0 %v3559_v5, %s3507_s21 }
  0x5e   : > { %1474 = vrot.lane.b32.xlu1 %v3573_v12, %s3507_s21  ;;  %1472 = vrot.lane.b32.xlu0 %v3565_v8, %s3507_s21 }
  0x62   : > { %1478 = vrot.lane.b32.xlu1 %v3579_v15, %s3507_s21  ;;  %1476 = vrot.lane.b32.xlu0 %v3571_v11, %s3507_s21 }
  0x66   : > { %1482 = vrot.lane.b32.xlu1 %v3583_v16, %s3507_s21  ;;  %1480 = vrot.lane.b32.xlu0 %v3577_v14, %s3507_s21 }
  0x6a   : > { %1789 = vrot.lane.b32.xlu0 %v3555_v4, %s3508_s22  ;;  %1791 = vrot.lane.b32.xlu1 %v3561_v6, %s3508_s22 }
  0x6e   : > { %1793 = vrot.lane.b32.xlu0 %v3553_v3, %s3508_s22  ;;  %1795 = vrot.lane.b32.xlu1 %v3559_v5, %s3508_s22 }
  0x72   : > { %1797 = vrot.lane.b32.xlu0 %v3567_v9, %s3508_s22  ;;  %1799 = vrot.lane.b32.xlu1 %v3565_v8, %s3508_s22 }
  0x76   : > { %1801 = vrot.lane.b32.xlu0 %v3573_v12, %s3508_s22  ;;  %1803 = vrot.lane.b32.xlu1 %v3571_v11, %s3508_s22 }
  0x7a   : > { %1805 = vrot.lane.b32.xlu0 %v3579_v15, %s3508_s22  ;;  %1807 = vrot.lane.b32.xlu1 %v3577_v14, %s3508_s22 }
  0x7e   : > { %1809 = vrot.lane.b32.xlu0 %v3583_v16, %s3508_s22  ;;  %2116 = vrot.lane.b32.xlu1 %v3555_v4, %s3509_s23 }
  0x82   : > { %2120 = vrot.lane.b32.xlu1 %v3553_v3, %s3509_s23  ;;  %2118 = vrot.lane.b32.xlu0 %v3561_v6, %s3509_s23 }
  0x84   : > { %v214_v17 = vpop.permute.xlu1 %213  ;;  %v210_v18 = vpop.permute.xlu0 %209 }
  0x86   : > { %2124 = vrot.lane.b32.xlu1 %v3567_v9, %s3509_s23  ;;  %2122 = vrot.lane.b32.xlu0 %v3559_v5, %s3509_s23 }
  0x88   : > { %v216_v19 = vpop.permute.xlu1 %215  ;;  %v212_v20 = vpop.permute.xlu0 %211 }
  0x89   : > { %v233_v21 = vsel %vm231_vm0, %v212_v20, %v214_v17  ;;  %v232_v22 = vsel %vm231_vm0, %v210_v18, %v212_v20  ;;  %v234_v25 = vsel %vm231_vm0, %v214_v17, %v216_v19 }
  0x8a   : > { %3249 = vmatprep.subr.msk.bf16.mxu0 %vm246_vm1, %v233_v21  ;;  %v248_v23 = vsel %vm246_vm1, %v232_v22, 0  ;;  %2128 = vrot.lane.b32.xlu1 %v3573_v12, %s3509_s23  ;;  %v254_v29 = vsel %vm246_vm1, %v234_v25, 0 }
  0x8b   : > { %295 = vmatpush1.bf16.msra.mxu0 %v248_v23  ;;  %2126 = vrot.lane.b32.xlu0 %v3565_v8, %s3509_s23 }
  0x8c   : > { %v220_v26 = vpop.permute.xlu1 %219  ;;  %v218_v27 = vpop.permute.xlu0 %217 }
  0x8d   : > { %v235_v28 = vsel %vm231_vm0, %v216_v19, %v218_v27  ;;  %v236_v30 = vsel %vm231_vm0, %v218_v27, %v220_v26 }
  0x8e   : > { %3250 = vmatmul.mubr.msk.bf16.vlgmr.msra.gmra.mxu0 %vm242_vm2, %v3649_v24  ;;  %3251 = vmatprep.subr.msk.bf16.mxu1 %vm246_vm1, %v235_v28  ;;  %v260_v34 = vsel %vm246_vm1, %v236_v30, 0 }
  0x8f   : > { %336 = vmatpush1.bf16.msra.mxu1 %v254_v29  ;;  %394 = vmatprep.mubr.bf16.mxu0 %v3503_v0 }
  0x90   : > { %v224_v31 = vpop.permute.xlu1 %223  ;;  %v222_v32 = vpop.permute.xlu0 %221  ;;  %2132 = vrot.lane.b32.xlu1 %v3579_v15, %s3509_s23  ;;  %2130 = vrot.lane.b32.xlu0 %v3571_v11, %s3509_s23 }
  0x91   : > { %v237_v33 = vsel %vm231_vm0, %v220_v26, %v222_v32  ;;  %v238_v35 = vsel %vm231_vm0, %v222_v32, %v224_v31 }
  0x92   : > { %3252 = vmatmul.mubr.msk.bf16.vlgmr.msra.gmra.mxu1 %vm242_vm2, %v3649_v24  ;;  %3253 = vmatprep.subr.msk.bf16.mxu0 %vm246_vm1, %v237_v33  ;;  %v266_v39 = vsel %vm246_vm1, %v238_v35, 0 }
  0x93   : > { %377 = vmatpush1.bf16.msra.mxu0 %v260_v34  ;;  %435 = vmatprep.mubr.bf16.mxu1 %v3503_v0 }
  0x94   : > { %v228_v36 = vpop.permute.xlu1 %227  ;;  %v226_v37 = vpop.permute.xlu0 %225  ;;  %2136 = vrot.lane.b32.xlu1 %v3583_v16, %s3509_s23  ;;  %2134 = vrot.lane.b32.xlu0 %v3577_v14, %s3509_s23 }
  0x95   : > { %v239_v38 = vsel %vm231_vm0, %v224_v31, %v226_v37  ;;  %v240_v40 = vsel %vm231_vm0, %v226_v37, %v228_v36 }
  0x96   : > { %3254 = vmatmul.mubr.msk.bf16.vlgmr.msra.gmra.mxu0 %vm242_vm2, %v3649_v24  ;;  %3255 = vmatprep.subr.msk.bf16.mxu1 %vm246_vm1, %v239_v38  ;;  %v272_v46 = vsel %vm246_vm1, %v240_v40, 0 }
  0x97   : > { %418 = vmatpush1.bf16.msra.mxu1 %v266_v39  ;;  %476 = vmatprep.mubr.bf16.mxu0 %v3503_v0 }
  0x98   : > { %v230_v41 = vpop.permute.xlu0 %229  ;;  %3387 = vmatprep.subr.bf16.mxu1 %v3510_v42  ;;  %v3684_v43 = vpop.permute.xlu1 %808  ;;  %2443 = vrot.lane.b32.xlu0 %v3555_v4, %s3511_s26 }
  0x99   : > { %v241_v44 = vsel %vm231_vm0, %v228_v36, %v230_v41  ;;  %v278_v45 = vsel %vm246_vm1, %v230_v41, 0  ;;  %2445 = vrot.lane.b32.xlu1 %v3561_v6, %s3511_s26 }
  0x9a   : > { %3256 = vmatmul.mubr.msk.bf16.vlgmr.msra.gmra.mxu1 %vm242_vm2, %v3649_v24  ;;  %3257 = vmatprep.subr.msk.bf16.mxu0 %vm246_vm1, %v241_v44 }
  0x9b   : > { %459 = vmatpush1.bf16.msra.mxu0 %v272_v46  ;;  %3388 = vmatpush3.bf16.msra.mxu1 %v278_v45  ;;  %v3283_v46 = vld [vmem:[%s4255_s1 + $0xc] sm:$0xf] }
  0x9c   : > { %3389 = vmatprep.mubr.msk.bf16.mxu1 %vm3512_vm3, %v3510_v42  ;;  %3260 = vmatprep.subr.msk.bf16.mxu0 %vm246_vm1, %v3561_v6  ;;  %v3702_v48 = vpop.permute.xlu1 %812  ;;  %v811_v49 = vpop.permute.xlu0 %810 }
  0x9d   : > { %3262 = vmatprep.subr.msk.bf16.mxu1 %vm246_vm1, %v3559_v5  ;;  %2447 = vrot.lane.b32.xlu0 %v3553_v3, %s3511_s26  ;;  %v832_v63 = vsel %vm830_vm4, %v811_v49, %v3702_v48  ;;  %v831_v10 = vsel %vm830_vm4, %v3684_v43, %v811_v49 }
  0x9e   : > { %3258 = vmatmul.mubr.msk.bf16.vlgmr.msra.gmra.mxu0 %vm242_vm2, %v3649_v24  ;;  %2449 = vrot.lane.b32.xlu1 %v3559_v5, %s3511_s26 }
  0x9f   : > { %576 = vmatpush1.bf16.msra.mxu0 %v529_v47  ;;  %593 = vmatprep.mubr.bf16.mxu0 %v3503_v0 }
  0xa0   : > { %3264 = vmatprep.subr.msk.bf16.mxu0 %vm246_vm1, %v3565_v8  ;;  %v3717_v51 = vpop.permute.xlu1 %816  ;;  %v815_v52 = vpop.permute.xlu0 %814 }
  0xa1   : > { %2451 = vrot.lane.b32.xlu0 %v3567_v9, %s3511_s26  ;;  %v834_v13 = vsel %vm830_vm4, %v815_v52, %v3717_v51 }
  0xa2   : > { %3390 = vmatmul.mubr.msk.bf16.vlgmr.msra.gmra.mxu1 %vm242_vm2, %v3649_v24  ;;  %2453 = vrot.lane.b32.xlu1 %v3565_v8, %s3511_s26 }
  0xa3   : > { %617 = vmatpush1.bf16.msra.mxu1 %v535_v50  ;;  %634 = vmatprep.mubr.bf16.mxu1 %v3503_v0 }
  0xa4   : > { %3266 = vmatprep.subr.msk.bf16.mxu1 %vm246_vm1, %v3571_v11  ;;  %v3733_v55 = vpop.permute.xlu1 %820  ;;  %v819_v56 = vpop.permute.xlu0 %818 }
  0xa5   : > { %2455 = vrot.lane.b32.xlu0 %v3573_v12, %s3511_s26  ;;  %v836_v19 = vsel %vm830_vm4, %v819_v56, %v3733_v55  ;;  %v835_v22 = vsel %vm830_vm4, %v3717_v51, %v819_v56 }
  0xa6   : > { %3261 = vmatmul.mubr.msk.bf16.vlgmr.msra.gmra.mxu0 %vm242_vm2, %v178_v53  ;;  %2457 = vrot.lane.b32.xlu1 %v3571_v11, %s3511_s26  ;;  %v857_v23 = vsel %vm246_vm1, %v835_v22, 0 }
  0xa7   : > { %658 = vmatpush1.bf16.msra.mxu0 %v541_v54  ;;  %675 = vmatprep.mubr.bf16.mxu0 %v3503_v0 }
  0xa8   : > { %3268 = vmatprep.subr.msk.bf16.mxu0 %vm246_vm1, %v3577_v14  ;;  %v3745_v58 = vpop.permute.xlu1 %824  ;;  %v823_v59 = vpop.permute.xlu0 %822 }
  0xa9   : > { %2459 = vrot.lane.b32.xlu0 %v3579_v15, %s3511_s26 }
  0xaa   : > { %3263 = vmatmul.mubr.msk.bf16.vlgmr.msra.gmra.mxu1 %vm242_vm2, %v178_v53  ;;  %2461 = vrot.lane.b32.xlu1 %v3577_v14, %s3511_s26 }
  0xab   : > { %699 = vmatpush1.bf16.msra.mxu1 %v547_v57  ;;  %716 = vmatprep.mubr.bf16.mxu1 %v3503_v0 }
  0xac   : > { %3393 = vmatprep.subr.bf16.mxu1 %v3510_v42  ;;  %v3756_v61 = vpop.permute.xlu1 %828  ;;  %v827_v62 = vpop.permute.xlu0 %826 }
  0xad   : > { %2463 = vrot.lane.b32.xlu0 %v3583_v16, %s3511_s26  ;;  %v840_v26 = vsel %vm830_vm4, %v827_v62, %v3756_v61  ;;  %v839_v29 = vsel %vm830_vm4, %v3745_v58, %v827_v62 }
  0xae   : > { %3265 = vmatmul.mubr.msk.bf16.vlgmr.msra.gmra.mxu0 %vm242_vm2, %v178_v53  ;;  %2770 = vrot.lane.b32.xlu1 %v3555_v4, %s3513_s29  ;;  %v845_v4 = vsel %vm246_vm1, %v831_v10, 0 }
  0xaf   : > { %740 = vmatpush1.bf16.msra.mxu0 %v553_v60  ;;  %757 = vmatprep.mubr.bf16.mxu0 %v3503_v0 }
  0xb0   : > { %3272 = vmatprep.subr.msk.bf16.mxu0 %vm246_vm1, %v832_v63  ;;  %v3769_v2 = vpop.permute.xlu0 %1135  ;;  %v3771_v7 = vpop.permute.xlu1 %1137 }
  0xb1   : > { %2772 = vrot.lane.b32.xlu0 %v3561_v6, %s3513_s29  ;;  %v833_v6 = vsel %vm830_vm4, %v3702_v48, %v815_v52  ;;  %v1158_v33 = vsel %vm1157_vm5, %v3769_v2, %v3771_v7 }
  0xb2   : > { %3267 = vmatmul.mubr.msk.bf16.vlgmr.msra.gmra.mxu1 %vm242_vm2, %v178_v53  ;;  %2774 = vrot.lane.b32.xlu1 %v3553_v3, %s3513_s29  ;;  %v851_v3 = vsel %vm246_vm1, %v833_v6, 0  ;;  %v1172_v35 = vsel %vm246_vm1, %v1158_v33, 0 }
  0xb3   : > { %3394 = vmatpush3.bf16.msra.mxu1 %v559_v1  ;;  %3395 = vmatprep.mubr.msk.bf16.mxu1 %vm3512_vm3, %v3510_v42 }
  0xb4   : > { %3274 = vmatprep.subr.msk.bf16.mxu1 %vm246_vm1, %v834_v13  ;;  %v3786_v17 = vpop.permute.xlu0 %1139  ;;  %v3788_v18 = vpop.permute.xlu1 %1141 }
  0xb5   : > { %2776 = vrot.lane.b32.xlu0 %v3559_v5, %s3513_s29  ;;  %v838_v5 = vsel %vm830_vm4, %v823_v59, %v3745_v58  ;;  %v1160_v38 = vsel %vm1157_vm5, %v3786_v17, %v3788_v18 }
  0xb6   : > { %3269 = vmatmul.mubr.msk.bf16.vlgmr.msra.gmra.mxu0 %vm242_vm2, %v178_v53  ;;  %2778 = vrot.lane.b32.xlu1 %v3567_v9, %s3513_s29  ;;  %v3271_v9 = vld [vmem:[%s4255_s1 + $0x8] sm:$0xf]  ;;  %v1178_v40 = vsel %vm246_vm1, %v1160_v38, 0 }
  0xb7   : > { %892 = vmatpush1.bf16.msra.mxu0 %v845_v4  ;;  %909 = vmatprep.mubr.bf16.mxu0 %v3503_v0 }
  0xb8   : > { %3276 = vmatprep.subr.msk.bf16.mxu0 %vm246_vm1, %v836_v19  ;;  %v3802_v20 = vpop.permute.xlu0 %1143  ;;  %v1146_v21 = vpop.permute.xlu1 %1145 }
  0xb9   : > { %2780 = vrot.lane.b32.xlu0 %v3565_v8, %s3513_s29  ;;  %v837_v8 = vsel %vm830_vm4, %v3733_v55, %v823_v59  ;;  %v1161_v34 = vsel %vm1157_vm5, %v3788_v18, %v3802_v20  ;;  %v1162_v44 = vsel %vm1157_vm5, %v3802_v20, %v1146_v21  ;;  %v3295_v20 = vld [vmem:[%s4255_s1 + $0x10] sm:$0xf] }
  0xba   : > { %3396 = vmatmul.mubr.msk.bf16.vlgmr.msra.gmra.mxu1 %vm242_vm2, %v178_v53  ;;  %2782 = vrot.lane.b32.xlu1 %v3573_v12, %s3513_s29  ;;  %v863_v12 = vsel %vm246_vm1, %v837_v8, 0  ;;  %v1184_v47 = vsel %vm246_vm1, %v1162_v44, 0 }
  0xbb   : > { %933 = vmatpush1.bf16.msra.mxu1 %v851_v3  ;;  %950 = vmatprep.mubr.bf16.mxu1 %v3503_v0 }
  0xbc   : > { %3278 = vmatprep.subr.msk.bf16.mxu1 %vm246_vm1, %v838_v5  ;;  %v1148_v24 = vpop.permute.xlu0 %1147  ;;  %v1150_v25 = vpop.permute.xlu1 %1149 }
  0xbd   : > { %2784 = vrot.lane.b32.xlu0 %v3571_v11, %s3513_s29  ;;  %v869_v11 = vsel %vm246_vm1, %v839_v29, 0  ;;  %v1163_v39 = vsel %vm1157_vm5, %v1146_v21, %v1148_v24  ;;  %v1164_v50 = vsel %vm1157_vm5, %v1148_v24, %v1150_v25 }
  0xbe   : > { %3273 = vmatmul.mubr.msk.bf16.vlgmr.msra.gmra.mxu0 %vm242_vm2, %v3271_v9  ;;  %2786 = vrot.lane.b32.xlu1 %v3579_v15, %s3513_s29  ;;  %v1190_v52 = vsel %vm246_vm1, %v1164_v50, 0 }
  0xbf   : > { %974 = vmatpush1.bf16.msra.mxu0 %v857_v23  ;;  %991 = vmatprep.mubr.bf16.mxu0 %v3503_v0 }
  0xc0   : > { %3280 = vmatprep.subr.msk.bf16.mxu0 %vm246_vm1, %v840_v26  ;;  %v1152_v27 = vpop.permute.xlu0 %1151  ;;  %v1154_v28 = vpop.permute.xlu1 %1153 }
  0xc1   : > { %2788 = vrot.lane.b32.xlu0 %v3577_v14, %s3513_s29  ;;  %v1159_v14 = vsel %vm1157_vm5, %v3771_v7, %v3786_v17  ;;  %v1165_v45 = vsel %vm1157_vm5, %v1150_v25, %v1152_v27  ;;  %v1166_v55 = vsel %vm1157_vm5, %v1152_v27, %v1154_v28 }
  0xc2   : > { %3275 = vmatmul.mubr.msk.bf16.vlgmr.msra.gmra.mxu1 %vm242_vm2, %v3271_v9  ;;  %2790 = vrot.lane.b32.xlu1 %v3583_v16, %s3513_s29  ;;  %v875_v16 = vsel %vm246_vm1, %v3756_v61, 0  ;;  %v1196_v56 = vsel %vm246_vm1, %v1166_v55, 0 }
  0xc3   : > { %1015 = vmatpush1.bf16.msra.mxu1 %v863_v12  ;;  %1032 = vmatprep.mubr.bf16.mxu1 %v3503_v0 }
  0xc4   : > { %3399 = vmatprep.subr.bf16.mxu1 %v3510_v42  ;;  %v1156_v15 = vpop.permute.xlu0 %1155  ;;  %v3841_v30 = vpop.permute.xlu1 %1462 }
  0xc5   : > { %v1167_v51 = vsel %vm1157_vm5, %v1154_v28, %v1156_v15  ;;  %v1202_v60 = vsel %vm246_vm1, %v1156_v15, 0 }
  0xc6   : > { %3277 = vmatmul.mubr.msk.bf16.vlgmr.msra.gmra.mxu0 %vm242_vm2, %v3271_v9 }
  0xc7   : > { %1056 = vmatpush1.bf16.msra.mxu0 %v869_v11  ;;  %1073 = vmatprep.mubr.bf16.mxu0 %v3503_v0 }
  0xc8   : > { %3284 = vmatprep.subr.msk.bf16.mxu0 %vm246_vm1, %v1159_v14  ;;  %v3851_v31 = vpop.permute.xlu1 %1466  ;;  %v1465_v32 = vpop.permute.xlu0 %1464 }
  0xc9   : > { %v1486_v59 = vsel %vm1484_vm6, %v1465_v32, %v3851_v31  ;;  %v1485_v63 = vsel %vm1484_vm6, %v3841_v30, %v1465_v32 }
  0xca   : > { %3279 = vmatmul.mubr.msk.bf16.vlgmr.msra.gmra.mxu1 %vm242_vm2, %v3271_v9  ;;  %v1499_v2 = vsel %vm246_vm1, %v1485_v63, 0 }
  0xcb   : > { %3400 = vmatpush3.bf16.msra.mxu1 %v875_v16  ;;  %3401 = vmatprep.mubr.msk.bf16.mxu1 %vm3512_vm3, %v3510_v42 }
  0xcc   : > { %3286 = vmatprep.subr.msk.bf16.mxu1 %vm246_vm1, %v1161_v34  ;;  %v3864_v36 = vpop.permute.xlu1 %1470  ;;  %v1469_v37 = vpop.permute.xlu0 %1468 }
  0xcd   : > { %v1488_v1 = vsel %vm1484_vm6, %v1469_v37, %v3864_v36  ;;  %v1487_v13 = vsel %vm1484_vm6, %v3851_v31, %v1469_v37 }
  0xce   : > { %3281 = vmatmul.mubr.msk.bf16.vlgmr.msra.gmra.mxu0 %vm242_vm2, %v3271_v9  ;;  %v1505_v17 = vsel %vm246_vm1, %v1487_v13, 0 }
  0xcf   : > { %1219 = vmatpush1.bf16.msra.mxu0 %v1172_v35  ;;  %1236 = vmatprep.mubr.bf16.mxu0 %v3503_v0 }
  0xd0   : > { %3288 = vmatprep.subr.msk.bf16.mxu0 %vm246_vm1, %v1163_v39  ;;  %v3874_v41 = vpop.permute.xlu1 %1474  ;;  %v1473_v43 = vpop.permute.xlu0 %1472  ;;  %v3307_v39 = vld [vmem:[%s4255_s1 + $0x14] sm:$0xf] }
  0xd1   : > { %v1490_v4 = vsel %vm1484_vm6, %v1473_v43, %v3874_v41  ;;  %v1489_v19 = vsel %vm1484_vm6, %v3864_v36, %v1473_v43 }
  0xd2   : > { %3402 = vmatmul.mubr.msk.bf16.vlgmr.msra.gmra.mxu1 %vm242_vm2, %v3271_v9  ;;  %v1511_v21 = vsel %vm246_vm1, %v1489_v19, 0 }
  0xd3   : > { %1260 = vmatpush1.bf16.msra.mxu1 %v1178_v40  ;;  %1277 = vmatprep.mubr.bf16.mxu1 %v3503_v0 }
  0xd4   : > { %3290 = vmatprep.subr.msk.bf16.mxu1 %vm246_vm1, %v1165_v45  ;;  %v3886_v48 = vpop.permute.xlu1 %1478  ;;  %v1477_v49 = vpop.permute.xlu0 %1476 }
  0xd5   : > { %v1492_v3 = vsel %vm1484_vm6, %v1477_v49, %v3886_v48  ;;  %v1491_v9 = vsel %vm1484_vm6, %v3874_v41, %v1477_v49 }
  0xd6   : > { %3285 = vmatmul.mubr.msk.bf16.vlgmr.msra.gmra.mxu0 %vm242_vm2, %v3283_v46  ;;  %v1517_v24 = vsel %vm246_vm1, %v1491_v9, 0 }
  0xd7   : > { %1301 = vmatpush1.bf16.msra.mxu0 %v1184_v47  ;;  %1318 = vmatprep.mubr.bf16.mxu0 %v3503_v0 }
  0xd8   : > { %3292 = vmatprep.subr.msk.bf16.mxu0 %vm246_vm1, %v1167_v51  ;;  %v3894_v53 = vpop.permute.xlu1 %1482  ;;  %v1481_v54 = vpop.permute.xlu0 %1480 }
  0xd9   : > { %v1494_v23 = vsel %vm1484_vm6, %v1481_v54, %v3894_v53  ;;  %v1493_v26 = vsel %vm1484_vm6, %v3886_v48, %v1481_v54  ;;  %v1529_v11 = vsel %vm246_vm1, %v3894_v53, 0 }
  0xda   : > { %3287 = vmatmul.mubr.msk.bf16.vlgmr.msra.gmra.mxu1 %vm242_vm2, %v3283_v46  ;;  %v1523_v12 = vsel %vm246_vm1, %v1493_v26, 0 }
  0xdb   : > { %1342 = vmatpush1.bf16.msra.mxu1 %v1190_v52  ;;  %1359 = vmatprep.mubr.bf16.mxu1 %v3503_v0 }
  0xdc   : > { %3405 = vmatprep.subr.bf16.mxu1 %v3510_v42  ;;  %v3901_v57 = vpop.permute.xlu0 %1789  ;;  %v3903_v58 = vpop.permute.xlu1 %1791 }
  0xdd   : > { %v1812_v14 = vsel %vm1811_vm7, %v3901_v57, %v3903_v58 }
  0xde   : > { %3289 = vmatmul.mubr.msk.bf16.vlgmr.msra.gmra.mxu0 %vm242_vm2, %v3283_v46  ;;  %v1826_v31 = vsel %vm246_vm1, %v1812_v14, 0 }
  0xdf   : > { %1383 = vmatpush1.bf16.msra.mxu0 %v1196_v56  ;;  %1400 = vmatprep.mubr.bf16.mxu0 %v3503_v0 }
  0xe0   : > { %3296 = vmatprep.subr.msk.bf16.mxu0 %vm246_vm1, %v1486_v59  ;;  %v3911_v61 = vpop.permute.xlu0 %1793  ;;  %v3913_v62 = vpop.permute.xlu1 %1795  ;;  %v3095_v59 = vld [vmem:[%s4256_s2] sm:$0xff] }
  0xe1   : > { %v1813_v29 = vsel %vm1811_vm7, %v3903_v58, %v3911_v61  ;;  %v1814_v32 = vsel %vm1811_vm7, %v3911_v61, %v3913_v62  ;;  %3098 = vperm.xlu0 %3461, %v3095_v59  }
  0xe2   : > { %3291 = vmatmul.mubr.msk.bf16.vlgmr.msra.gmra.mxu1 %vm242_vm2, %v3283_v46  ;;  %v1832_v36 = vsel %vm246_vm1, %v1814_v32, 0 }
  0xe3   : > { %3406 = vmatpush3.bf16.msra.mxu1 %v1202_v60  ;;  %3407 = vmatprep.mubr.msk.bf16.mxu1 %vm3512_vm3, %v3510_v42 }
  0xe4   : > { %3298 = vmatprep.subr.msk.bf16.mxu1 %vm246_vm1, %v1488_v1  ;;  %v3924_v7 = vpop.permute.xlu0 %1797  ;;  %v3926_v10 = vpop.permute.xlu1 %1799 }
  0xe5   : > { %v1815_v16 = vsel %vm1811_vm7, %v3913_v62, %v3924_v7  ;;  %v1816_v37 = vsel %vm1811_vm7, %v3924_v7, %v3926_v10 }
  0xe6   : > { %3293 = vmatmul.mubr.msk.bf16.vlgmr.msra.gmra.mxu0 %vm242_vm2, %v3283_v46  ;;  %v1838_v40 = vsel %vm246_vm1, %v1816_v37, 0 }
  0xe7   : > { %1546 = vmatpush1.bf16.msra.mxu0 %v1499_v2  ;;  %1563 = vmatprep.mubr.bf16.mxu0 %v3503_v0 }
  0xe8   : > { %3300 = vmatprep.subr.msk.bf16.mxu0 %vm246_vm1, %v1490_v4  ;;  %v3936_v18 = vpop.permute.xlu0 %1801  ;;  %v3938_v6 = vpop.permute.xlu1 %1803 }
  0xe9   : > { %v1817_v33 = vsel %vm1811_vm7, %v3926_v10, %v3936_v18  ;;  %v1818_v44 = vsel %vm1811_vm7, %v3936_v18, %v3938_v6  ;;  %v3319_v10 = vld [vmem:[%s4255_s1 + $0x18] sm:$0xf] }
  0xea   : > { %3408 = vmatmul.mubr.msk.bf16.vlgmr.msra.gmra.mxu1 %vm242_vm2, %v3283_v46  ;;  %v1844_v46 = vsel %vm246_vm1, %v1818_v44, 0 }
  0xeb   : > { %1587 = vmatpush1.bf16.msra.mxu1 %v1505_v17  ;;  %1604 = vmatprep.mubr.bf16.mxu1 %v3503_v0 }
  0xec   : > { %3302 = vmatprep.subr.msk.bf16.mxu1 %vm246_vm1, %v1492_v3  ;;  %v1806_v22 = vpop.permute.xlu0 %1805  ;;  %v1808_v5 = vpop.permute.xlu1 %1807 }
  0xed   : > { %v1819_v38 = vsel %vm1811_vm7, %v3938_v6, %v1806_v22  ;;  %v1820_v47 = vsel %vm1811_vm7, %v1806_v22, %v1808_v5 }
  0xee   : > { %3297 = vmatmul.mubr.msk.bf16.vlgmr.msra.gmra.mxu0 %vm242_vm2, %v3295_v20  ;;  %v1850_v50 = vsel %vm246_vm1, %v1820_v47, 0 }
  0xef   : > { %1628 = vmatpush1.bf16.msra.mxu0 %v1511_v21  ;;  %1645 = vmatprep.mubr.bf16.mxu0 %v3503_v0 }
  0xf0   : > { %3304 = vmatprep.subr.msk.bf16.mxu0 %vm246_vm1, %v1494_v23  ;;  %v3959_v25 = vpop.permute.xlu0 %1809  ;;  %v3961_v8 = vpop.permute.xlu1 %2116 }
  0xf1   : > { %v1821_v45 = vsel %vm1811_vm7, %v1808_v5, %v3959_v25  ;;  %v1856_v53 = vsel %vm246_vm1, %v3959_v25, 0 }
  0xf2   : > { %3299 = vmatmul.mubr.msk.bf16.vlgmr.msra.gmra.mxu1 %vm242_vm2, %v3295_v20 }
  0xf3   : > { %1669 = vmatpush1.bf16.msra.mxu1 %v1517_v24  ;;  %1686 = vmatprep.mubr.bf16.mxu1 %v3503_v0 }
  0xf4   : > { %3411 = vmatprep.subr.bf16.mxu1 %v3510_v42  ;;  %v3969_v27 = vpop.permute.xlu1 %2120  ;;  %v2119_v28 = vpop.permute.xlu0 %2118 }
  0xf5   : > { %v2140_v51 = vsel %vm2138_vm8, %v2119_v28, %v3969_v27  ;;  %v2139_v55 = vsel %vm2138_vm8, %v3961_v8, %v2119_v28 }
  0xf6   : > { %3301 = vmatmul.mubr.msk.bf16.vlgmr.msra.gmra.mxu0 %vm242_vm2, %v3295_v20  ;;  %v2153_v57 = vsel %vm246_vm1, %v2139_v55, 0 }
  0xf7   : > { %1710 = vmatpush1.bf16.msra.mxu0 %v1523_v12  ;;  %1727 = vmatprep.mubr.bf16.mxu0 %v3503_v0 }
  0xf8   : > { %3308 = vmatprep.subr.msk.bf16.mxu0 %vm246_vm1, %v1813_v29  ;;  %v3979_v15 = vpop.permute.xlu1 %2124  ;;  %v2123_v30 = vpop.permute.xlu0 %2122 }
  0xf9   : > { %v2142_v56 = vsel %vm2138_vm8, %v2123_v30, %v3979_v15  ;;  %v2141_v60 = vsel %vm2138_vm8, %v3969_v27, %v2123_v30 }
  0xfa   : > { %3303 = vmatmul.mubr.msk.bf16.vlgmr.msra.gmra.mxu1 %vm242_vm2, %v3295_v20  ;;  %v2159_v63 = vsel %vm246_vm1, %v2141_v60, 0 }
  0xfb   : > { %3412 = vmatpush3.bf16.msra.mxu1 %v1529_v11  ;;  %3413 = vmatprep.mubr.msk.bf16.mxu1 %vm3512_vm3, %v3510_v42 }
  0xfc   : > { %3310 = vmatprep.subr.msk.bf16.mxu1 %vm246_vm1, %v1815_v16  ;;  %v3999_v34 = vpop.permute.xlu1 %2128  ;;  %v3331_v16 = vld [vmem:[%s4255_s1 + $0x1c] sm:$0xf] }
  0xfd   : > { %v2127_v35 = vpop.permute.xlu0 %2126 }
  0xfe   : > { %3305 = vmatmul.mubr.msk.bf16.vlgmr.msra.gmra.mxu0 %vm242_vm2, %v3295_v20  ;;  %v2144_v61 = vsel %vm2138_vm8, %v2127_v35, %v3999_v34  ;;  %v2143_v1 = vsel %vm2138_vm8, %v3979_v15, %v2127_v35 }
  0xff   : > { %1873 = vmatpush1.bf16.msra.mxu0 %v1826_v31  ;;  %1890 = vmatprep.mubr.bf16.mxu0 %v3503_v0  ;;  %v2165_v13 = vsel %vm246_vm1, %v2143_v1, 0 }
 0x100   : > { %3312 = vmatprep.subr.msk.bf16.mxu0 %vm246_vm1, %v1817_v33 }
 0x102   : > { %3414 = vmatmul.mubr.msk.bf16.vlgmr.msra.gmra.mxu1 %vm242_vm2, %v3295_v20  ;;  %v4016_v41 = vpop.permute.xlu1 %2132  ;;  %v2131_v43 = vpop.permute.xlu0 %2130 }
 0x103   : > { %1914 = vmatpush1.bf16.msra.mxu1 %v1832_v36  ;;  %1931 = vmatprep.mubr.bf16.mxu1 %v3503_v0  ;;  %v2146_v2 = vsel %vm2138_vm8, %v2131_v43, %v4016_v41  ;;  %v2145_v17 = vsel %vm2138_vm8, %v3999_v34, %v2131_v43 }
 0x104   : > { %3314 = vmatprep.subr.msk.bf16.mxu1 %vm246_vm1, %v1819_v38  ;;  %v2171_v6 = vsel %vm246_vm1, %v2145_v17, 0 }
 0x106   : > { %3309 = vmatmul.mubr.msk.bf16.vlgmr.msra.gmra.mxu0 %vm242_vm2, %v3307_v39  ;;  %v4029_v48 = vpop.permute.xlu1 %2136  ;;  %v2135_v49 = vpop.permute.xlu0 %2134 }
 0x107   : > { %1955 = vmatpush1.bf16.msra.mxu0 %v1838_v40  ;;  %1972 = vmatprep.mubr.bf16.mxu0 %v3503_v0  ;;  %v2148_v18 = vsel %vm2138_vm8, %v2135_v49, %v4029_v48  ;;  %v2147_v3 = vsel %vm2138_vm8, %v4016_v41, %v2135_v49  ;;  %v2183_v9 = vsel %vm246_vm1, %v4029_v48, 0 }
 0x108   : > { %3316 = vmatprep.subr.msk.bf16.mxu0 %vm246_vm1, %v1821_v45  ;;  %v2177_v21 = vsel %vm246_vm1, %v2147_v3, 0 }
 0x10a   : > { %3311 = vmatmul.mubr.msk.bf16.vlgmr.msra.gmra.mxu1 %vm242_vm2, %v3307_v39  ;;  %v2444_v54 = vpop.permute.xlu0 %2443 }
 0x10b   : > { %1996 = vmatpush1.bf16.msra.mxu1 %v1844_v46  ;;  %2013 = vmatprep.mubr.bf16.mxu1 %v3503_v0  ;;  %v2446_v52 = vpop.permute.xlu1 %2445 }
 0x10c   : > { %3417 = vmatprep.subr.bf16.mxu1 %v3510_v42  ;;  %v2466_v24 = vsel %vm2465_vm9, %v2444_v54, %v2446_v52 }
 0x10d   : > { %v2480_v8 = vsel %vm246_vm1, %v2466_v24, 0 }
 0x10e   : > { %3313 = vmatmul.mubr.msk.bf16.vlgmr.msra.gmra.mxu0 %vm242_vm2, %v3307_v39 }
 0x10f   : > { %2037 = vmatpush1.bf16.msra.mxu0 %v1850_v50  ;;  %2054 = vmatprep.mubr.bf16.mxu0 %v3503_v0  ;;  %v2448_v62 = vpop.permute.xlu0 %2447 }
 0x110   : > { %3320 = vmatprep.subr.msk.bf16.mxu0 %vm246_vm1, %v2140_v51  ;;  %v2450_v58 = vpop.permute.xlu1 %2449  ;;  %v2467_v22 = vsel %vm2465_vm9, %v2446_v52, %v2448_v62 }
 0x111   : > { %v2468_v12 = vsel %vm2465_vm9, %v2448_v62, %v2450_v58 }
 0x112   : > { %3315 = vmatmul.mubr.msk.bf16.vlgmr.msra.gmra.mxu1 %vm242_vm2, %v3307_v39  ;;  %v2486_v29 = vsel %vm246_vm1, %v2468_v12, 0 }
 0x113   : > { %3418 = vmatpush3.bf16.msra.mxu1 %v1856_v53  ;;  %3419 = vmatprep.mubr.msk.bf16.mxu1 %vm3512_vm3, %v3510_v42  ;;  %v2452_v4 = vpop.permute.xlu0 %2451 }
 0x114   : > { %3322 = vmatprep.subr.msk.bf16.mxu1 %vm246_vm1, %v2142_v56  ;;  %v2454_v7 = vpop.permute.xlu1 %2453  ;;  %v2469_v25 = vsel %vm2465_vm9, %v2450_v58, %v2452_v4  ;;  %v3343_v56 = vld [vmem:[%s4255_s1 + $0x20] sm:$0xf] }
 0x115   : > { %v2470_v11 = vsel %vm2465_vm9, %v2452_v4, %v2454_v7 }
 0x116   : > { %3317 = vmatmul.mubr.msk.bf16.vlgmr.msra.gmra.mxu0 %vm242_vm2, %v3307_v39  ;;  %v2492_v31 = vsel %vm246_vm1, %v2470_v11, 0 }
 0x117   : > { %2200 = vmatpush1.bf16.msra.mxu0 %v2153_v57  ;;  %2217 = vmatprep.mubr.bf16.mxu0 %v3503_v0  ;;  %v2456_v20 = vpop.permute.xlu0 %2455 }
 0x118   : > { %3324 = vmatprep.subr.msk.bf16.mxu0 %vm246_vm1, %v2144_v61  ;;  %v2458_v19 = vpop.permute.xlu1 %2457  ;;  %v2471_v27 = vsel %vm2465_vm9, %v2454_v7, %v2456_v20 }
 0x119   : > { %v2472_v32 = vsel %vm2465_vm9, %v2456_v20, %v2458_v19 }
 0x11a   : > { %3420 = vmatmul.mubr.msk.bf16.vlgmr.msra.gmra.mxu1 %vm242_vm2, %v3307_v39  ;;  %v2498_v34 = vsel %vm246_vm1, %v2472_v32, 0 }
 0x11b   : > { %2241 = vmatpush1.bf16.msra.mxu1 %v2159_v63  ;;  %2258 = vmatprep.mubr.bf16.mxu1 %v3503_v0  ;;  %v2460_v23 = vpop.permute.xlu0 %2459 }
 0x11c   : > { %3326 = vmatprep.subr.msk.bf16.mxu1 %vm246_vm1, %v2146_v2  ;;  %v2462_v5 = vpop.permute.xlu1 %2461  ;;  %v2473_v15 = vsel %vm2465_vm9, %v2458_v19, %v2460_v23 }
 0x11d   : > { %v2474_v37 = vsel %vm2465_vm9, %v2460_v23, %v2462_v5 }
 0x11e   : > { %3321 = vmatmul.mubr.msk.bf16.vlgmr.msra.gmra.mxu0 %vm242_vm2, %v3319_v10  ;;  %v2504_v38 = vsel %vm246_vm1, %v2474_v37, 0 }
 0x11f   : > { %2282 = vmatpush1.bf16.msra.mxu0 %v2165_v13  ;;  %2299 = vmatprep.mubr.bf16.mxu0 %v3503_v0  ;;  %v2464_v28 = vpop.permute.xlu0 %2463 }
 0x120   : > { %3328 = vmatprep.subr.msk.bf16.mxu0 %vm246_vm1, %v2148_v18  ;;  %v2771_v26 = vpop.permute.xlu1 %2770  ;;  %v2475_v33 = vsel %vm2465_vm9, %v2462_v5, %v2464_v28  ;;  %v2510_v43 = vsel %vm246_vm1, %v2464_v28, 0 }
 0x122   : > { %3323 = vmatmul.mubr.msk.bf16.vlgmr.msra.gmra.mxu1 %vm242_vm2, %v3319_v10 }
 0x123   : > { %2323 = vmatpush1.bf16.msra.mxu1 %v2171_v6  ;;  %2340 = vmatprep.mubr.bf16.mxu1 %v3503_v0  ;;  %v2773_v14 = vpop.permute.xlu0 %2772 }
 0x124   : > { %3423 = vmatprep.subr.bf16.mxu1 %v3510_v42  ;;  %v2775_v30 = vpop.permute.xlu1 %2774  ;;  %v2793_v44 = vsel %vm2792_vm10, %v2771_v26, %v2773_v14 }
 0x125   : > { %v2794_v39 = vsel %vm2792_vm10, %v2773_v14, %v2775_v30  ;;  %v2807_v46 = vsel %vm246_vm1, %v2793_v44, 0 }
 0x126   : > { %3325 = vmatmul.mubr.msk.bf16.vlgmr.msra.gmra.mxu0 %vm242_vm2, %v3319_v10 }
 0x127   : > { %2364 = vmatpush1.bf16.msra.mxu0 %v2177_v21  ;;  %2381 = vmatprep.mubr.bf16.mxu0 %v3503_v0  ;;  %v2777_v36 = vpop.permute.xlu0 %2776 }
 0x128   : > { %3332 = vmatprep.subr.msk.bf16.mxu0 %vm246_vm1, %v2467_v22  ;;  %v2779_v35 = vpop.permute.xlu1 %2778  ;;  %v2795_v49 = vsel %vm2792_vm10, %v2775_v30, %v2777_v36 }
 0x129   : > { %v2796_v45 = vsel %vm2792_vm10, %v2777_v36, %v2779_v35  ;;  %v2813_v51 = vsel %vm246_vm1, %v2795_v49, 0 }
 0x12a   : > { %3327 = vmatmul.mubr.msk.bf16.vlgmr.msra.gmra.mxu1 %vm242_vm2, %v3319_v10 }
 0x12b   : > { %3424 = vmatpush3.bf16.msra.mxu1 %v2183_v9  ;;  %3425 = vmatprep.mubr.msk.bf16.mxu1 %vm3512_vm3, %v3510_v42  ;;  %v2781_v41 = vpop.permute.xlu0 %2780 }
 0x12c   : > { %3334 = vmatprep.subr.msk.bf16.mxu1 %vm246_vm1, %v2469_v25  ;;  %v2783_v40 = vpop.permute.xlu1 %2782  ;;  %v2797_v52 = vsel %vm2792_vm10, %v2779_v35, %v2781_v41 }
 0x12d   : > { %v2798_v50 = vsel %vm2792_vm10, %v2781_v41, %v2783_v40  ;;  %v2819_v57 = vsel %vm246_vm1, %v2797_v52, 0 }
 0x12e   : > { %3329 = vmatmul.mubr.msk.bf16.vlgmr.msra.gmra.mxu0 %vm242_vm2, %v3319_v10 }
 0x12f   : > { %2527 = vmatpush1.bf16.msra.mxu0 %v2480_v8  ;;  %2544 = vmatprep.mubr.bf16.mxu0 %v3503_v0  ;;  %v2785_v48 = vpop.permute.xlu0 %2784 }
 0x130   : > { %3336 = vmatprep.subr.msk.bf16.mxu0 %vm246_vm1, %v2471_v27  ;;  %v2787_v47 = vpop.permute.xlu1 %2786  ;;  %v2799_v58 = vsel %vm2792_vm10, %v2783_v40, %v2785_v48 }
 0x131   : > { %v2800_v53 = vsel %vm2792_vm10, %v2785_v48, %v2787_v47  ;;  %v2825_v62 = vsel %vm246_vm1, %v2799_v58, 0 }
 0x132   : > { %3426 = vmatmul.mubr.msk.bf16.vlgmr.msra.gmra.mxu1 %vm242_vm2, %v3319_v10 }
 0x133   : > { %2568 = vmatpush1.bf16.msra.mxu1 %v2486_v29  ;;  %2585 = vmatprep.mubr.bf16.mxu1 %v3503_v0  ;;  %v2789_v55 = vpop.permute.xlu0 %2788 }
 0x134   : > { %3338 = vmatprep.subr.msk.bf16.mxu1 %vm246_vm1, %v2473_v15  ;;  %v2791_v54 = vpop.permute.xlu1 %2790  ;;  %v2801_v63 = vsel %vm2792_vm10, %v2787_v47, %v2789_v55 }
 0x135   : > { %v2802_v59 = vsel %vm2792_vm10, %v2789_v55, %v2791_v54  ;;  %v2831_v13 = vsel %vm246_vm1, %v2801_v63, 0  ;;  %v2837_v18 = vsel %vm246_vm1, %v2791_v54, 0 }
 0x136   : > { %3333 = vmatmul.mubr.msk.bf16.vlgmr.msra.gmra.mxu0 %vm242_vm2, %v3331_v16 }
 0x137   : > { %2609 = vmatpush1.bf16.msra.mxu0 %v2492_v31  ;;  %2626 = vmatprep.mubr.bf16.mxu0 %v3503_v0 }
 0x138   : > { %3340 = vmatprep.subr.msk.bf16.mxu0 %vm246_vm1, %v2475_v33 }
 0x13a   : > { %3335 = vmatmul.mubr.msk.bf16.vlgmr.msra.gmra.mxu1 %vm242_vm2, %v3331_v16 }
 0x13b   : > { %2650 = vmatpush1.bf16.msra.mxu1 %v2498_v34  ;;  %2667 = vmatprep.mubr.bf16.mxu1 %v3503_v0 }
 0x13c   : > { %3429 = vmatprep.subr.bf16.mxu1 %v3510_v42 }
 0x13e   : > { %3337 = vmatmul.mubr.msk.bf16.vlgmr.msra.gmra.mxu0 %vm242_vm2, %v3331_v16 }
 0x13f   : > { %2691 = vmatpush1.bf16.msra.mxu0 %v2504_v38  ;;  %2708 = vmatprep.mubr.bf16.mxu0 %v3503_v0 }
 0x140   : > { %3344 = vmatprep.subr.msk.bf16.mxu0 %vm246_vm1, %v2794_v39 }
 0x142   : > { %3339 = vmatmul.mubr.msk.bf16.vlgmr.msra.gmra.mxu1 %vm242_vm2, %v3331_v16 }
 0x143   : > { %3430 = vmatpush3.bf16.msra.mxu1 %v2510_v43  ;;  %3431 = vmatprep.mubr.msk.bf16.mxu1 %vm3512_vm3, %v3510_v42 }
 0x144   : > { %3346 = vmatprep.subr.msk.bf16.mxu1 %vm246_vm1, %v2796_v45 }
 0x146   : > { %3341 = vmatmul.mubr.msk.bf16.vlgmr.msra.gmra.mxu0 %vm242_vm2, %v3331_v16 }
 0x147   : > { %2854 = vmatpush1.bf16.msra.mxu0 %v2807_v46  ;;  %2871 = vmatprep.mubr.bf16.mxu0 %v3503_v0 }
 0x148   : > { %3348 = vmatprep.subr.msk.bf16.mxu0 %vm246_vm1, %v2798_v50 }
 0x14a   : > { %3432 = vmatmul.mubr.msk.bf16.vlgmr.msra.gmra.mxu1 %vm242_vm2, %v3331_v16 }
 0x14b   : > { %2895 = vmatpush1.bf16.msra.mxu1 %v2813_v51  ;;  %2912 = vmatprep.mubr.bf16.mxu1 %v3503_v0 }
 0x14c   : > { %3350 = vmatprep.subr.msk.bf16.mxu1 %vm246_vm1, %v2800_v53 }
 0x14e   : > { %v314_v60 = vpop.f32.mrf.mxu0  ;;  %3345 = vmatmul.mubr.msk.bf16.vlgmr.msra.gmra.mxu0 %vm242_vm2, %v3343_v56 }
 0x14f   : > { %2936 = vmatpush1.bf16.msra.mxu0 %v2819_v57  ;;  %2953 = vmatprep.mubr.bf16.mxu0 %v3503_v0 }
 0x150   : > { %v316_v61 = vpop.f32.mrf.mxu0  ;;  %3352 = vmatprep.subr.msk.bf16.mxu0 %vm246_vm1, %v2802_v59 }
 0x152   : > { %v318_v1 = vpop.f32.mrf.mxu0  ;;  %v355_v2 = vpop.f32.mrf.mxu1  ;;  %3347 = vmatmul.mubr.msk.bf16.vlgmr.msra.gmra.mxu1 %vm242_vm2, %v3343_v56 }
 0x153   : > { %2977 = vmatpush1.bf16.msra.mxu1 %v2825_v62  ;;  %2994 = vmatprep.mubr.bf16.mxu1 %v3503_v0 }
 0x154   : > { %v319_v7 = vpop.f32.mrf.mxu0  ;;  %v357_v10 = vpop.f32.mrf.mxu1  ;;  %3435 = vmatprep.subr.bf16.mxu1 %v3510_v42 }
 0x156   : > { %v359_v4 = vpop.f32.mrf.mxu1  ;;  %v396_v17 = vpop.f32.mrf.mxu0  ;;  %3349 = vmatmul.mubr.msk.bf16.vlgmr.msra.gmra.mxu0 %vm242_vm2, %v3343_v56 }
 0x157   : > { %3018 = vmatpush1.bf16.msra.mxu0 %v2831_v13  ;;  %3035 = vmatprep.mubr.bf16.mxu0 %v3503_v0 }
 0x158   : > { %v360_v6 = vpop.f32.mrf.mxu1  ;;  %v398_v19 = vpop.f32.mrf.mxu0 }
 0x15a   : > { %v400_v3 = vpop.f32.mrf.mxu0  ;;  %v437_v20 = vpop.f32.mrf.mxu1  ;;  %3351 = vmatmul.mubr.msk.bf16.vlgmr.msra.gmra.mxu1 %vm242_vm2, %v3343_v56 }
 0x15b   : > { %3436 = vmatpush3.bf16.msra.mxu1 %v2837_v18  ;;  %3437 = vmatprep.mubr.msk.bf16.mxu1 %vm3512_vm3, %v3510_v42 }
 0x15c   : > { %v401_v21 = vpop.f32.mrf.mxu0  ;;  %v439_v22 = vpop.f32.mrf.mxu1 }
 0x15e   : > { %v441_v5 = vpop.f32.mrf.mxu1  ;;  %v478_v9 = vpop.f32.mrf.mxu0  ;;  %3353 = vmatmul.mubr.msk.bf16.vlgmr.msra.gmra.mxu0 %vm242_vm2, %v3343_v56 }
 0x160   : > { %v442_v23 = vpop.f32.mrf.mxu1  ;;  %v480_v0 = vpop.f32.mrf.mxu0 }
 0x162   : > { %v482_v24 = vpop.f32.mrf.mxu0  ;;  %v519_v25 = vpop.f32.mrf.mxu1  ;;  %3438 = vmatmul.mubr.msk.bf16.vlgmr.msra.gmra.mxu1 %vm242_vm2, %v3343_v56 }
 0x164   : > { %v483_v8 = vpop.f32.mrf.mxu0  ;;  %v3391_v26 = vpop.f32.mrf.mxu1 }
 0x166   : > { %v522_v12 = vpop.f32.mrf.mxu1  ;;  %v595_v27 = vpop.f32.mrf.mxu0 }
 0x167   : > { %v596_v28 = vadd.f32 %v595_v27, %v314_v60 }
 0x168   : > { %v3392_v29 = vpop.f32.mrf.mxu1  ;;  %v597_v11 = vpop.f32.mrf.mxu0 }
 0x169   : > { %v598_v42 = vadd.f32 %v597_v11, %v316_v61 }
 0x16a   : > { %v599_v15 = vpop.f32.mrf.mxu0  ;;  %v636_v30 = vpop.f32.mrf.mxu1 }
 0x16b   : > { %v637_v14 = vadd.f32 %v636_v30, %v355_v2 }
 0x16c   : > { %v600_v16 = vpop.f32.mrf.mxu0  ;;  %v638_v31 = vpop.f32.mrf.mxu1 }
 0x16d   : > { %v639_v32 = vadd.f32 %v638_v31, %v357_v10 }
 0x16e   : > { %v640_v33 = vpop.f32.mrf.mxu1  ;;  %v677_v34 = vpop.f32.mrf.mxu0 }
 0x16f   : > { %v678_v35 = vadd.f32 %v677_v34, %v396_v17 }
 0x170   : > { %v641_v36 = vpop.f32.mrf.mxu1  ;;  %v679_v37 = vpop.f32.mrf.mxu0 }
 0x171   : > { %v680_v38 = vadd.f32 %v679_v37, %v398_v19 }
 0x172   : > { %v681_v39 = vpop.f32.mrf.mxu0  ;;  %v718_v40 = vpop.f32.mrf.mxu1 }
 0x173   : > { %v719_v41 = vadd.f32 %v718_v40, %v437_v20 }
 0x174   : > { %v682_v43 = vpop.f32.mrf.mxu0  ;;  %v720_v44 = vpop.f32.mrf.mxu1 }
 0x175   : > { %v721_v45 = vadd.f32 %v720_v44, %v439_v22 }
 0x176   : > { %v722_v46 = vpop.f32.mrf.mxu1  ;;  %v759_v47 = vpop.f32.mrf.mxu0 }
 0x177   : > { %v760_v48 = vadd.f32 %v759_v47, %v478_v9 }
 0x178   : > { %v723_v49 = vpop.f32.mrf.mxu1  ;;  %v761_v50 = vpop.f32.mrf.mxu0 }
 0x179   : > { %v762_v51 = vadd.f32 %v761_v50, %v480_v0 }
 0x17a   : > { %v763_v52 = vpop.f32.mrf.mxu0  ;;  %v800_v53 = vpop.f32.mrf.mxu1 }
 0x17b   : > { %v801_v54 = vadd.f32 %v800_v53, %v519_v25 }
 0x17c   : > { %v764_v55 = vpop.f32.mrf.mxu0  ;;  %v3397_v56 = vpop.f32.mrf.mxu1 }
 0x17e   : > { %v803_v57 = vpop.f32.mrf.mxu1  ;;  %v911_v58 = vpop.f32.mrf.mxu0 }
 0x17f   : > { %v1122_v59 = vadd.f32 %v911_v58, %v596_v28 }
 0x180   : > { %v3398_v60 = vpop.f32.mrf.mxu1  ;;  %v913_v61 = vpop.f32.mrf.mxu0 }
 0x181   : > { %v1123_v62 = vadd.f32 %v913_v61, %v598_v42 }
 0x182   : > { %v915_v63 = vpop.f32.mrf.mxu0  ;;  %v952_v1 = vpop.f32.mrf.mxu1 }
 0x183   : > { %v1124_v2 = vadd.f32 %v952_v1, %v637_v14 }
 0x184   : > { %v916_v7 = vpop.f32.mrf.mxu0  ;;  %v954_v10 = vpop.f32.mrf.mxu1 }
 0x185   : > { %v1125_v13 = vadd.f32 %v954_v10, %v639_v32 }
 0x186   : > { %v956_v4 = vpop.f32.mrf.mxu1  ;;  %v993_v17 = vpop.f32.mrf.mxu0 }
 0x187   : > { %v1126_v18 = vadd.f32 %v993_v17, %v678_v35 }
 0x188   : > { %v957_v6 = vpop.f32.mrf.mxu1  ;;  %v995_v19 = vpop.f32.mrf.mxu0 }
 0x189   : > { %v1127_v3 = vadd.f32 %v995_v19, %v680_v38 }
 0x18a   : > { %v997_v20 = vpop.f32.mrf.mxu0  ;;  %v1034_v21 = vpop.f32.mrf.mxu1 }
 0x18b   : > { %v1128_v22 = vadd.f32 %v1034_v21, %v719_v41 }
 0x18c   : > { %v998_v5 = vpop.f32.mrf.mxu0  ;;  %v1036_v9 = vpop.f32.mrf.mxu1 }
 0x18d   : > { %v1129_v23 = vadd.f32 %v1036_v9, %v721_v45 }
 0x18e   : > { %v1038_v0 = vpop.f32.mrf.mxu1  ;;  %v1075_v24 = vpop.f32.mrf.mxu0 }
 0x18f   : > { %v1130_v25 = vadd.f32 %v1075_v24, %v760_v48 }
 0x190   : > { %v1039_v8 = vpop.f32.mrf.mxu1  ;;  %v1077_v26 = vpop.f32.mrf.mxu0 }
 0x191   : > { %v1131_v12 = vadd.f32 %v1077_v26, %v762_v51 }
 0x192   : > { %v1079_v27 = vpop.f32.mrf.mxu0  ;;  %v1116_v28 = vpop.f32.mrf.mxu1 }
 0x193   : > { %v1132_v29 = vadd.f32 %v1116_v28, %v801_v54 }
 0x194   : > { %v1080_v11 = vpop.f32.mrf.mxu0  ;;  %v3403_v42 = vpop.f32.mrf.mxu1 }
 0x196   : > { %v1119_v15 = vpop.f32.mrf.mxu1  ;;  %v1238_v30 = vpop.f32.mrf.mxu0 }
 0x197   : > { %v1449_v14 = vadd.f32 %v1238_v30, %v1122_v59 }
 0x198   : > { %v3404_v16 = vpop.f32.mrf.mxu1  ;;  %v1240_v31 = vpop.f32.mrf.mxu0 }
 0x199   : > { %v1450_v32 = vadd.f32 %v1240_v31, %v1123_v62 }
 0x19a   : > { %v1242_v33 = vpop.f32.mrf.mxu0  ;;  %v1279_v34 = vpop.f32.mrf.mxu1 }
 0x19b   : > { %v1451_v35 = vadd.f32 %v1279_v34, %v1124_v2 }
 0x19c   : > { %v1243_v36 = vpop.f32.mrf.mxu0  ;;  %v1281_v37 = vpop.f32.mrf.mxu1 }
 0x19d   : > { %v1452_v38 = vadd.f32 %v1281_v37, %v1125_v13 }
 0x19e   : > { %v1283_v39 = vpop.f32.mrf.mxu1  ;;  %v1320_v40 = vpop.f32.mrf.mxu0 }
 0x19f   : > { %v1453_v41 = vadd.f32 %v1320_v40, %v1126_v18 }
 0x1a0   : > { %v1284_v43 = vpop.f32.mrf.mxu1  ;;  %v1322_v44 = vpop.f32.mrf.mxu0 }
 0x1a1   : > { %v1454_v45 = vadd.f32 %v1322_v44, %v1127_v3 }
 0x1a2   : > { %v1324_v46 = vpop.f32.mrf.mxu0  ;;  %v1361_v47 = vpop.f32.mrf.mxu1 }
 0x1a3   : > { %v1455_v48 = vadd.f32 %v1361_v47, %v1128_v22 }
 0x1a4   : > { %v1325_v49 = vpop.f32.mrf.mxu0  ;;  %v1363_v50 = vpop.f32.mrf.mxu1 }
 0x1a5   : > { %v1456_v51 = vadd.f32 %v1363_v50, %v1129_v23 }
 0x1a6   : > { %v1365_v52 = vpop.f32.mrf.mxu1  ;;  %v1402_v53 = vpop.f32.mrf.mxu0 }
 0x1a7   : > { %v1457_v54 = vadd.f32 %v1402_v53, %v1130_v25 }
 0x1a8   : > { %v1366_v55 = vpop.f32.mrf.mxu1  ;;  %v1404_v56 = vpop.f32.mrf.mxu0 }
 0x1a9   : > { %v1458_v57 = vadd.f32 %v1404_v56, %v1131_v12 }
 0x1aa   : > { %v1406_v58 = vpop.f32.mrf.mxu0  ;;  %v1443_v59 = vpop.f32.mrf.mxu1 }
 0x1ab   : > { %v1459_v60 = vadd.f32 %v1443_v59, %v1132_v29 }
 0x1ac   : > { %v1407_v61 = vpop.f32.mrf.mxu0  ;;  %v3409_v62 = vpop.f32.mrf.mxu1 }
 0x1ae   : > { %v1446_v63 = vpop.f32.mrf.mxu1  ;;  %v1565_v1 = vpop.f32.mrf.mxu0 }
 0x1af   : > { %v1776_v2 = vadd.f32 %v1565_v1, %v1449_v14 }
 0x1b0   : > { %v3410_v7 = vpop.f32.mrf.mxu1  ;;  %v1567_v10 = vpop.f32.mrf.mxu0 }
 0x1b1   : > { %v1777_v13 = vadd.f32 %v1567_v10, %v1450_v32 }
 0x1b2   : > { %v1569_v4 = vpop.f32.mrf.mxu0  ;;  %v1606_v17 = vpop.f32.mrf.mxu1 }
 0x1b3   : > { %v1778_v18 = vadd.f32 %v1606_v17, %v1451_v35 }
 0x1b4   : > { %v1570_v6 = vpop.f32.mrf.mxu0  ;;  %v1608_v19 = vpop.f32.mrf.mxu1 }
 0x1b5   : > { %v1779_v3 = vadd.f32 %v1608_v19, %v1452_v38 }
 0x1b6   : > { %v1610_v20 = vpop.f32.mrf.mxu1  ;;  %v1647_v21 = vpop.f32.mrf.mxu0 }
 0x1b7   : > { %v1780_v22 = vadd.f32 %v1647_v21, %v1453_v41 }
 0x1b8   : > { %v1611_v5 = vpop.f32.mrf.mxu1  ;;  %v1649_v9 = vpop.f32.mrf.mxu0 }
 0x1b9   : > { %v1781_v23 = vadd.f32 %v1649_v9, %v1454_v45 }
 0x1ba   : > { %v1651_v0 = vpop.f32.mrf.mxu0  ;;  %v1688_v24 = vpop.f32.mrf.mxu1 }
 0x1bb   : > { %v1782_v25 = vadd.f32 %v1688_v24, %v1455_v48 }
 0x1bc   : > { %v1652_v8 = vpop.f32.mrf.mxu0  ;;  %v1690_v26 = vpop.f32.mrf.mxu1 }
 0x1bd   : > { %v1783_v12 = vadd.f32 %v1690_v26, %v1456_v51 }
 0x1be   : > { %v1692_v27 = vpop.f32.mrf.mxu1  ;;  %v1729_v28 = vpop.f32.mrf.mxu0 }
 0x1bf   : > { %v1784_v29 = vadd.f32 %v1729_v28, %v1457_v54 }
 0x1c0   : > { %v1693_v11 = vpop.f32.mrf.mxu1  ;;  %v1731_v42 = vpop.f32.mrf.mxu0 }
 0x1c1   : > { %v1785_v15 = vadd.f32 %v1731_v42, %v1458_v57 }
 0x1c2   : > { %v1733_v30 = vpop.f32.mrf.mxu0  ;;  %v1770_v14 = vpop.f32.mrf.mxu1 }
 0x1c3   : > { %v1786_v16 = vadd.f32 %v1770_v14, %v1459_v60 }
 0x1c4   : > { %v1734_v31 = vpop.f32.mrf.mxu0  ;;  %v3415_v32 = vpop.f32.mrf.mxu1 }
 0x1c6   : > { %v1773_v33 = vpop.f32.mrf.mxu1  ;;  %v1892_v34 = vpop.f32.mrf.mxu0 }
 0x1c7   : > { %v4171_v35 = vadd.f32 %v1892_v34, %v1776_v2 }
 0x1c8   : > { %v3416_v36 = vpop.f32.mrf.mxu1  ;;  %v1894_v37 = vpop.f32.mrf.mxu0 }
 0x1c9   : > { %v4173_v38 = vadd.f32 %v1894_v37, %v1777_v13 }
 0x1ca   : > { %v1896_v39 = vpop.f32.mrf.mxu0  ;;  %v1933_v40 = vpop.f32.mrf.mxu1 }
 0x1cb   : > { %v4175_v41 = vadd.f32 %v1933_v40, %v1778_v18 }
 0x1cc   : > { %v1897_v43 = vpop.f32.mrf.mxu0  ;;  %v1935_v44 = vpop.f32.mrf.mxu1 }
 0x1cd   : > { %v4177_v45 = vadd.f32 %v1935_v44, %v1779_v3 }
 0x1ce   : > { %v1937_v46 = vpop.f32.mrf.mxu1  ;;  %v1974_v47 = vpop.f32.mrf.mxu0 }
 0x1cf   : > { %v4179_v48 = vadd.f32 %v1974_v47, %v1780_v22 }
 0x1d0   : > { %v1938_v49 = vpop.f32.mrf.mxu1  ;;  %v1976_v50 = vpop.f32.mrf.mxu0 }
 0x1d1   : > { %v4181_v51 = vadd.f32 %v1976_v50, %v1781_v23 }
 0x1d2   : > { %v1978_v52 = vpop.f32.mrf.mxu0  ;;  %v2015_v53 = vpop.f32.mrf.mxu1 }
 0x1d3   : > { %v4183_v54 = vadd.f32 %v2015_v53, %v1782_v25 }
 0x1d4   : > { %v1979_v55 = vpop.f32.mrf.mxu0  ;;  %v2017_v56 = vpop.f32.mrf.mxu1 }
 0x1d5   : > { %v4185_v57 = vadd.f32 %v2017_v56, %v1783_v12 }
 0x1d6   : > { %v2019_v58 = vpop.f32.mrf.mxu1  ;;  %v2056_v59 = vpop.f32.mrf.mxu0 }
 0x1d7   : > { %v4187_v60 = vadd.f32 %v2056_v59, %v1784_v29 }
 0x1d8   : > { %v2020_v61 = vpop.f32.mrf.mxu1  ;;  %v2058_v62 = vpop.f32.mrf.mxu0 }
 0x1d9   : > { %v4189_v63 = vadd.f32 %v2058_v62, %v1785_v15 }
 0x1da   : > { %v2060_v1 = vpop.f32.mrf.mxu0  ;;  %v2097_v2 = vpop.f32.mrf.mxu1 }
 0x1db   : > { %v4191_v7 = vadd.f32 %v2097_v2, %v1786_v16 }
 0x1dc   : > { %v2061_v10 = vpop.f32.mrf.mxu0  ;;  %v3421_v13 = vpop.f32.mrf.mxu1 }
 0x1dd   : > { %v4209_v10 = vpop.permute.xlu0 %3098 }
 0x1de   : > { %v2100_v4 = vpop.f32.mrf.mxu1  ;;  %v2219_v17 = vpop.f32.mrf.mxu0 }
 0x1df   : > { %v2430_v59 = vadd.f32 %v2219_v17, %v4171_v35 }
 0x1e0   : > { %v3422_v18 = vpop.f32.mrf.mxu1  ;;  %v2221_v6 = vpop.f32.mrf.mxu0 }
 0x1e1   : > { %v2431_v1 = vadd.f32 %v2221_v6, %v4173_v38 }
 0x1e2   : > { %v2223_v19 = vpop.f32.mrf.mxu0  ;;  %v2260_v3 = vpop.f32.mrf.mxu1 }
 0x1e3   : > { %v2432_v18 = vadd.f32 %v2260_v3, %v4175_v41 }
 0x1e4   : > { %v2224_v20 = vpop.f32.mrf.mxu0  ;;  %v2262_v21 = vpop.f32.mrf.mxu1 }
 0x1e6   : > { %v2264_v22 = vpop.f32.mrf.mxu1  ;;  %v2301_v5 = vpop.f32.mrf.mxu0 }
 0x1e7   : > { %v2434_v38 = vadd.f32 %v2301_v5, %v4179_v48 }
 0x1e8   : > { %v2265_v9 = vpop.f32.mrf.mxu1  ;;  %v2303_v23 = vpop.f32.mrf.mxu0 }
 0x1e9   : > { %v2435_v41 = vadd.f32 %v2303_v23, %v4181_v51 }
 0x1ea   : > { %v2305_v0 = vpop.f32.mrf.mxu0  ;;  %v4193_v24 = vpop.f32.mrf.mxu1 }
 0x1eb   : > { %v2433_v0 = vadd.f32 %v2262_v21, %v4177_v45 }
 0x1ec   : > { %v2306_v25 = vpop.f32.mrf.mxu0  ;;  %v4195_v8 = vpop.f32.mrf.mxu1 }
 0x1ed   : > { %v2437_v51 = vadd.f32 %v4195_v8, %v4185_v57 }
 0x1ee   : > { %v2346_v26 = vpop.f32.mrf.mxu1  ;;  %v4197_v12 = vpop.f32.mrf.mxu0 }
 0x1f0   : > { %v2347_v27 = vpop.f32.mrf.mxu1  ;;  %v4199_v28 = vpop.f32.mrf.mxu0 }
 0x1f1   : > { %v2439_v57 = vadd.f32 %v4199_v28, %v4189_v63 }
 0x1f2   : > { %v2387_v29 = vpop.f32.mrf.mxu0  ;;  %v4201_v11 = vpop.f32.mrf.mxu1 }
 0x1f4   : > { %v2388_v42 = vpop.f32.mrf.mxu0  ;;  %v3427_v15 = vpop.f32.mrf.mxu1 }
 0x1f6   : > { %v2427_v30 = vpop.f32.mrf.mxu1  ;;  %v2546_v14 = vpop.f32.mrf.mxu0 }
 0x1f7   : > { %v2757_v2 = vadd.f32 %v2546_v14, %v2430_v59 }
 0x1f8   : > { %v3428_v16 = vpop.f32.mrf.mxu1  ;;  %v2548_v31 = vpop.f32.mrf.mxu0 }
 0x1f9   : > { %v2758_v19 = vadd.f32 %v2548_v31, %v2431_v1  ;;  %v2436_v31 = vadd.f32 %v4193_v24, %v4183_v54  ;;  %v2438_v54 = vadd.f32 %v4197_v12, %v4187_v60  ;;  %v2440_v60 = vadd.f32 %v4201_v11, %v4191_v7 }
 0x1fa   : > { %v2550_v32 = vpop.f32.mrf.mxu0  ;;  %v2587_v33 = vpop.f32.mrf.mxu1 }
 0x1fb   : > { %v2759_v25 = vadd.f32 %v2587_v33, %v2432_v18 }
 0x1fc   : > { %v2551_v34 = vpop.f32.mrf.mxu0  ;;  %v2589_v36 = vpop.f32.mrf.mxu1 }
 0x1fd   : > { %v2760_v6 = vadd.f32 %v2589_v36, %v2433_v0 }
 0x1fe   : > { %v2591_v37 = vpop.f32.mrf.mxu1  ;;  %v2628_v39 = vpop.f32.mrf.mxu0 }
 0x1ff   : > { %v2761_v30 = vadd.f32 %v2628_v39, %v2434_v38 }
 0x200   : > { %v2592_v40 = vpop.f32.mrf.mxu1  ;;  %v2630_v43 = vpop.f32.mrf.mxu0 }
 0x201   : > { %v2762_v48 = vadd.f32 %v2630_v43, %v2435_v41 }
 0x202   : > { %v2632_v44 = vpop.f32.mrf.mxu0  ;;  %v2669_v46 = vpop.f32.mrf.mxu1 }
 0x203   : > { %v2763_v34 = vadd.f32 %v2669_v46, %v2436_v31 }
 0x204   : > { %v2633_v47 = vpop.f32.mrf.mxu0  ;;  %v2671_v49 = vpop.f32.mrf.mxu1 }
 0x205   : > { %v2764_v24 = vadd.f32 %v2671_v49, %v2437_v51 }
 0x206   : > { %v2673_v50 = vpop.f32.mrf.mxu1  ;;  %v2710_v52 = vpop.f32.mrf.mxu0 }
 0x207   : > { %v2765_v46 = vadd.f32 %v2710_v52, %v2438_v54 }
 0x208   : > { %v2674_v53 = vpop.f32.mrf.mxu1  ;;  %v4203_v55 = vpop.f32.mrf.mxu0 }
 0x209   : > { %v2766_v12 = vadd.f32 %v4203_v55, %v2439_v57 }
 0x20a   : > { %v2714_v56 = vpop.f32.mrf.mxu0  ;;  %v4205_v58 = vpop.f32.mrf.mxu1 }
 0x20b   : > { %v2767_v52 = vadd.f32 %v4205_v58, %v2440_v60 }
 0x20c   : > { %v2715_v61 = vpop.f32.mrf.mxu0  ;;  %v3433_v62 = vpop.f32.mrf.mxu1 }
 0x20e   : > { %v2754_v13 = vpop.f32.mrf.mxu1  ;;  %v2873_v4 = vpop.f32.mrf.mxu0 }
 0x20f   : > { %v3084_v20 = vadd.f32 %v2873_v4, %v2757_v2 }
 0x210   : > { %v3434_v22 = vpop.f32.mrf.mxu1  ;;  %v2875_v9 = vpop.f32.mrf.mxu0 }
 0x211   : > { %v3101_v35 = vadd.f32 %v4209_v10, %v3084_v20  ;;  %v3085_v17 = vadd.f32 %v2875_v9, %v2758_v19 }
 0x212   : > { %v2877_v26 = vpop.f32.mrf.mxu0  ;;  %v2914_v27 = vpop.f32.mrf.mxu1 }
 0x213   : > { %v3102_v29 = vadd.f32 %v4209_v10, %v3085_v17  ;;  %v3086_v42 = vadd.f32 %v2914_v27, %v2759_v25  ;;  %3473 = vtanh.f32 %v3101_v35 }
 0x214   : > { %v2878_v3 = vpop.f32.mrf.mxu0  ;;  %v2916_v15 = vpop.f32.mrf.mxu1 }
 0x215   : > { %3475 = vtanh.f32 %v3102_v29  ;;  %v3103_v45 = vadd.f32 %v4209_v10, %v3086_v42  ;;  %v3087_v21 = vadd.f32 %v2916_v15, %v2760_v6 }
 0x216   : > { %v2918_v14 = vpop.f32.mrf.mxu1  ;;  %v2955_v16 = vpop.f32.mrf.mxu0 }
 0x217   : > { %v3104_v5 = vadd.f32 %v4209_v10, %v3087_v21  ;;  %v3088_v32 = vadd.f32 %v2955_v16, %v2761_v30  ;;  %3477 = vtanh.f32 %v3103_v45 }
 0x218   : > { %v2919_v23 = vpop.f32.mrf.mxu1  ;;  %v2957_v33 = vpop.f32.mrf.mxu0 }
 0x219   : > { %3479 = vtanh.f32 %v3104_v5  ;;  %v3105_v36 = vadd.f32 %v4209_v10, %v3088_v32  ;;  %v3089_v37 = vadd.f32 %v2957_v33, %v2762_v48 }
 0x21a   : > { %v2959_v39 = vpop.f32.mrf.mxu0  ;;  %v2996_v40 = vpop.f32.mrf.mxu1 }
 0x21b   : > { %v3106_v43 = vadd.f32 %v4209_v10, %v3089_v37  ;;  %v3090_v44 = vadd.f32 %v2996_v40, %v2763_v34  ;;  %3481 = vtanh.f32 %v3105_v36 }
 0x21c   : > { %v2960_v8 = vpop.f32.mrf.mxu0  ;;  %v2998_v47 = vpop.f32.mrf.mxu1 }
 0x21d   : > { %3483 = vtanh.f32 %v3106_v43  ;;  %v3107_v50 = vadd.f32 %v4209_v10, %v3090_v44  ;;  %v3091_v53 = vadd.f32 %v2998_v47, %v2764_v24 }
 0x21e   : > { %v3000_v56 = vpop.f32.mrf.mxu1  ;;  %v3037_v59 = vpop.f32.mrf.mxu0 }
 0x21f   : > { %v3108_v49 = vadd.f32 %v4209_v10, %v3091_v53  ;;  %v3092_v61 = vadd.f32 %v3037_v59, %v2765_v46  ;;  %3485 = vtanh.f32 %v3107_v50 }
 0x220   : > { %v3001_v63 = vpop.f32.mrf.mxu1  ;;  %v3039_v28 = vpop.f32.mrf.mxu0 }
 0x221   : > { %v3474_v62 = vpop.eup %3473  ;;  %3487 = vtanh.f32 %v3108_v49  ;;  %v3109_v1 = vadd.f32 %v4209_v10, %v3092_v61  ;;  %v3093_v2 = vadd.f32 %v3039_v28, %v2766_v12 }
 0x222   : > { %v3476_v13 = vpop.eup %3475  ;;  %v3078_v7 = vpop.f32.mrf.mxu1 }
 0x223   : > { %v3041_v11 = vpop.f32.mrf.mxu0  ;;  %v3363_v55 = vpack.c.bf16 %v3476_v13, %v3474_v62  ;;  %v3110_v4 = vadd.f32 %v4209_v10, %v3093_v2  ;;  %v3094_v18 = vadd.f32 %v3078_v7, %v2767_v52  ;;  %3489 = vtanh.f32 %v3109_v1 }
 0x224   : > { %v3439_v58 = vpop.f32.mrf.mxu1  ;;  %v3478_v20 = vpop.eup %3477 }
 0x225   : > { %v3042_v19 = vpop.f32.mrf.mxu0  ;;  %3168 = vst [vmem:[%s4241_s24] sm:$0xff] %v3363_v55  ;;  %3491 = vtanh.f32 %v3110_v4  ;;  %v3111_v22 = vadd.f32 %v4209_v10, %v3094_v18 }
 0x226   : > { %v3480_v9 = vpop.eup %3479  ;;  %v3081_v0 = vpop.f32.mrf.mxu1 }
 0x227   : > { %v3364_v25 = vpack.c.bf16 %v3480_v9, %v3478_v20  ;;  %3493 = vtanh.f32 %v3111_v22 }
 0x228   : > { %v3440_v35 = vpop.f32.mrf.mxu1  ;;  %v3482_v17 = vpop.eup %3481 }
 0x229   : > { %3169 = vst [vmem:[%s4241_s24 + $0x8] sm:$0xff] %v3364_v25 }
 0x22a   : > { %v3484_v26 = vpop.eup %3483 }
 0x22b   : > { %v3365_v27 = vpack.c.bf16 %v3484_v26, %v3482_v17 }
 0x22c   : > { %v3486_v38 = vpop.eup %3485 }
 0x22d   : > { %3170 = vst [vmem:[%s4241_s24 + $0x10] sm:$0xff] %v3365_v27 }
 0x22e   : > { %v3488_v6 = vpop.eup %3487 }
 0x22f   : > { %v3366_v29 = vpack.c.bf16 %v3488_v6, %v3486_v38 }
 0x230   : > { %v3490_v42 = vpop.eup %3489 }
 0x231   : > { %3171 = vst [vmem:[%s4241_s24 + $0x18] sm:$0xff] %v3366_v29 }
 0x232   : > { %v3492_v41 = vpop.eup %3491 }
 0x233   : > { %v3367_v3 = vpack.c.bf16 %v3492_v41, %v3490_v42 }
 0x234   : > { %v3494_v10 = vpop.eup %3493 }
 0x235   : > { %3172 = vst [vmem:[%s4241_s24 + $0x20] sm:$0xff] %v3367_v3  ;;  %v3368_v15 = vpack.c.bf16 %v3494_v10, %v3494_v10 }
 0x237   : > { %3174 = vst.msk [vmem:[%s4241_s24 + $0x28] sm:$0xf] %vm3173_vm11, %v3368_v15 }
 0x238 PF: > { %s13_s12 = sadd.s32 1, %s3501_s12  }
 0x239   : > { %p10_p4 = scmp.ge.s32.totalorder %s13_s12, 10  }
 0x23b   :  { %12 = sbr.rel (!%p10_p4) target bundleno = 1 (0x1), region = 70 }

// kernel: temporal_shift_can_forward.17
= control target key start
LH: loop header
LB: loop body
LE: loop exit
PB: predicated region body
PF: predicated region fallthrough
CT: control target
= control target key end

     0   :  { %s831_s14 = smov 0   ;;  %s914_s0 = inlined_call_operand.vmem [shape: bf16[8,8,1156], index: 0, kind: input, shape index: {}]   ;;  %s915_s1 = inlined_call_operand.vmem [shape: bf16[1,1,8], index: 1, kind: input, shape index: {}]   ;;  %s916_s2 = inlined_call_operand.<no memory space> [shape: f32[1,1], index: 2, kind: input, shape index: {}]   ;;  %s917_s3 = inlined_call_operand.vmem [shape: bf16[8,1,1156], index: 3, kind: output, shape index: {}]  }
   0x1   :  { %v8_v0 = vstv %s916_s2 }
   0x2   :  { %9 = vst [vmem:[#allocation2] sm:$0x1] %v8_v0 }
   0x3 LB: > { %s692_s15 = sadd.s32 4294967295, %s804_s14   ;;  %p696_p0 = scmp.ge.s32.totalorder %s804_s14, 1  ;;  %s804_s14 = sphi %s831_s14, %s15_s14  }
   0x4   : > { %p139_p1 = scmp.lt.s32.totalorder %s804_s14, 9 }
   0x6   : > { %p140_p2 = pnand %p696_p0, %p139_p1 }
   0x7   : > { %p162_p3 = scmp.lt.s32.totalorder (!%p140_p2), %s692_s15, 7 }
   0x8   : > { %143 = sbr.rel (%p140_p2) target bundleno = 280 (0x118), region = 32 }
   0xd   : > { %v806_v1 = vmov 0   ;;  %v178_v2 = vld [vmem:[#allocation2] sm:$0x1]  ;;  %s931_s15 = smov (!%p162_p3, %s692_s15), 7  ;;  %vm217_vm0 = vcmask 1043456   ;;  %vm213_vm1 = vcmask 64512   ;;  %v184_v24 = vlaneseq }
   0xe   : > { %280 = vmatprep.mubr.bf16.mxu0 %v806_v1  ;;  %321 = vmatprep.mubr.bf16.mxu1 %v806_v1  ;;  %s735_s2 = smul.u32 40, %s931_s15  ;;  %v177_v18 = vld [vmem:[%s915_s1] sm:$0x1]  ;;  %vm599_vm2 = vcmask 1040384   ;;  %vm600_vm3 = vsmask.f32 256 }
   0xf   : > { %747 = vset.pattern.permute.xlu0 %v806_v1  ;;  %v863_v25 = vshrl.u32 %v184_v24, 7  ;;  %vm602_vm4 = vcmask 1041409   ;;  %vm603_vm5 = vsmask.f32 1280  ;;  %vm866_vm6 = vmand %vm599_vm2, %vm600_vm3  ;;  %vm606_vm8 = vcmask 1042434   ;;  %s736_s21 = smul.u32 10, %s931_s15 }
  0x10   : > { %181 = vperm.xlu0 %747, %v178_v2   ;;  %s166_s18 = scalar_lea.vmem %s914_s0, %s735_s2  ;;  %vm871_vm7 = vmand %vm602_vm4, %vm603_vm5  ;;  %vm607_vm9 = vsmask.f32 2304  ;;  %vm610_vm12 = vcmask 1043459   ;;  %vm611_vm13 = vsmask.f32 3328  ;;  %vm618_vm4 = vcmask 1045509  }
  0x11   : > { %v172_v3 = vld [vmem:[%s166_s18] sm:$0xff]  ;;  %v173_v4 = vld [vmem:[%s166_s18 + $0x8] sm:$0xff]  ;;  %v174_v5 = vld [vmem:[%s166_s18 + $0x10] sm:$0xff]  ;;  %v186_v26 = vsub.s32 0, %v863_v25  ;;  %s170_s24 = scalar_lea.vmem %s917_s3, %s736_s21 }
  0x12   : > { %v699_v6 = vcombine.high %v172_v3, %v172_v3  ;;  %v701_v7 = vcombine.high %v173_v4, %v173_v4  ;;  %v698_v8 = vcombine.low %v172_v3, %v172_v3  ;;  %v700_v9 = vcombine.low %v173_v4, %v173_v4  ;;  %v175_v10 = vld [vmem:[%s166_s18 + $0x18] sm:$0xff]  ;;  %v176_v17 = vld [vmem:[%s166_s18 + $0x20] sm:$0xff]  ;;  %vm605_vm10 = vmor %vm871_vm7, %vm866_vm6 }
  0x13   : > { %v703_v11 = vcombine.high %v174_v5, %v174_v5  ;;  %v702_v12 = vcombine.low %v174_v5, %v174_v5  ;;  %v705_v13 = vcombine.high %v175_v10, %v175_v10  ;;  %v704_v14 = vcombine.low %v175_v10, %v175_v10  ;;  %vm608_vm11 = vmand %vm606_vm8, %vm607_vm9 }
  0x14   : > { %708 = vmatprep.subr.msk.bf16.mxu0 %vm217_vm0, %v699_v6  ;;  %710 = vmatprep.subr.msk.bf16.mxu1 %vm217_vm0, %v701_v7  ;;  %v219_v15 = vsel %vm217_vm0, %v698_v8, 0  ;;  %v225_v16 = vsel %vm217_vm0, %v700_v9, 0  ;;  %v707_v21 = vcombine.high %v176_v17, %v176_v17  ;;  %v706_v22 = vcombine.low %v176_v17, %v176_v17  ;;  %vm879_vm14 = vmor %vm608_vm11, %vm605_vm10 }
  0x15   : > { %263 = vmatpush1.bf16.msra.mxu0 %v219_v15  ;;  %304 = vmatpush1.bf16.msra.mxu1 %v225_v16  ;;  %v231_v19 = vsel %vm217_vm0, %v702_v12, 0  ;;  %v237_v20 = vsel %vm217_vm0, %v704_v14, 0  ;;  %vm883_vm15 = vmand %vm610_vm12, %vm611_vm13  ;;  %vm619_vm7 = vsmask.f32 5376  ;;  %vm622_vm10 = vcmask 1046534  }
  0x16   : > { %712 = vmatprep.subr.msk.bf16.mxu0 %vm217_vm0, %v703_v11  ;;  %714 = vmatprep.subr.msk.bf16.mxu1 %vm217_vm0, %v705_v13  ;;  %v243_v23 = vsel %vm217_vm0, %v706_v22, 0  ;;  %vm613_vm2 = vmor %vm883_vm15, %vm879_vm14  ;;  %vm623_vm11 = vsmask.f32 6400  ;;  %vm626_vm14 = vcmask 1047559   ;;  %vm627_vm15 = vsmask.f32 7424 }
  0x17   : > { %vm896_vm9 = vmand %vm618_vm4, %vm619_vm7 }
  0x18   : > { %709 = vmatmul.mubr.msk.bf16.vlgmr.msra.gmra.mxu0 %vm213_vm1, %v177_v18  ;;  %711 = vmatmul.mubr.msk.bf16.vlgmr.msra.gmra.mxu1 %vm213_vm1, %v177_v18  ;;  %vm624_vm13 = vmand %vm622_vm10, %vm623_vm11 }
  0x19   : > { %345 = vmatpush1.bf16.msra.mxu0 %v231_v19  ;;  %386 = vmatpush1.bf16.msra.mxu1 %v237_v20 }
  0x1a   : > { %362 = vmatprep.mubr.bf16.mxu0 %v806_v1  ;;  %403 = vmatprep.mubr.bf16.mxu1 %v806_v1 }
  0x1b   : > { %716 = vmatprep.subr.msk.bf16.mxu0 %vm217_vm0, %v707_v21  ;;  %vm614_vm0 = vcmask 1044484  }
  0x20   : > { %713 = vmatmul.mubr.msk.bf16.vlgmr.msra.gmra.mxu0 %vm213_vm1, %v177_v18  ;;  %715 = vmatmul.mubr.msk.bf16.vlgmr.msra.gmra.mxu1 %vm213_vm1, %v177_v18 }
  0x21   : > { %427 = vmatpush1.bf16.msra.mxu0 %v243_v23  ;;  %444 = vmatprep.mubr.bf16.mxu0 %v806_v1  ;;  %v807_v23 = vmov 1966171168  }
  0x22   : > { %v538_v24 = vunpack.c.l.s4 %v807_v23 }
  0x28   : > { %717 = vmatmul.mubr.msk.bf16.vlgmr.msra.gmra.mxu0 %vm213_vm1, %v177_v18  ;;  %vm615_vm1 = vsmask.f32 4352 }
  0x29   : > { %vm616_vm3 = vmand %vm614_vm0, %vm615_vm1 }
  0x2a   : > { %vm892_vm8 = vmor %vm616_vm3, %vm613_vm2  ;;  %vm633_vm3 = vcmask 25601  }
  0x2b   : > { %vm621_vm12 = vmor %vm896_vm9, %vm892_vm8 }
  0x2c   : > { %vm625_vm0 = vmor %vm624_vm13, %vm621_vm12 }
  0x2d   : > { %vm628_vm1 = vmand %vm626_vm14, %vm627_vm15 }
  0x2e   : > { %vm629_vm2 = vmor %vm628_vm1, %vm625_vm0 }
  0x2f   : > { %vm634_vm4 = vmand %vm633_vm3, %vm603_vm5 }
  0x30   : > { %vm635_vm7 = vmor %vm634_vm4, %vm866_vm6 }
  0x8b   : > { %v182_v27 = vpop.permute.xlu0 %181 }
  0x8c   : > { %v187_v28 = vrot.slane %v182_v27, %v186_v26 }
  0xd8   : > { %v282_v29 = vpop.f32.mrf.mxu0  ;;  %v323_v30 = vpop.f32.mrf.mxu1 }
  0xd9   : > { %v283_v31 = vadd.f32 %v282_v29, %v187_v28  ;;  %v324_v32 = vadd.f32 %v323_v30, %v187_v28 }
  0xda   : > { %v284_v33 = vpop.f32.mrf.mxu0  ;;  %v325_v34 = vpop.f32.mrf.mxu1 }
  0xdb   : > { %v718_v35 = vmul.f32 -1.442695, %v283_v31  ;;  %v720_v36 = vmul.f32 -1.442695, %v324_v32  ;;  %v285_v37 = vadd.f32 %v284_v33, %v187_v28  ;;  %v326_v38 = vadd.f32 %v325_v34, %v187_v28 }
  0xdc   : > { %v286_v39 = vpop.f32.mrf.mxu0  ;;  %v327_v40 = vpop.f32.mrf.mxu1  ;;  %v539_v31 = vunpack.c.0.s8 %v538_v24 }
  0xdd   : > { %758 = vpow2.f32 %v718_v35  ;;  %v719_v41 = vmul.f32 -1.442695, %v285_v37  ;;  %v721_v42 = vmul.f32 -1.442695, %v326_v38 }
  0xde   : > { %760 = vpow2.f32 %v720_v36  ;;  %v287_v43 = vpop.f32.mrf.mxu0  ;;  %v328_v44 = vpop.f32.mrf.mxu1  ;;  %v542_v36 = vsub.s32 %v539_v31, %v863_v25 }
  0xdf   : > { %762 = vpow2.f32 %v719_v41 }
  0xe0   : > { %764 = vpow2.f32 %v721_v42  ;;  %v364_v45 = vpop.f32.mrf.mxu0  ;;  %v405_v46 = vpop.f32.mrf.mxu1 }
  0xe1   : > { %v365_v47 = vadd.f32 %v364_v45, %v187_v28  ;;  %v406_v48 = vadd.f32 %v405_v46, %v187_v28 }
  0xe2   : > { %v366_v49 = vpop.f32.mrf.mxu0  ;;  %v407_v50 = vpop.f32.mrf.mxu1 }
  0xe3   : > { %v722_v51 = vmul.f32 -1.442695, %v365_v47  ;;  %v724_v52 = vmul.f32 -1.442695, %v406_v48  ;;  %v367_v53 = vadd.f32 %v366_v49, %v187_v28  ;;  %v408_v54 = vadd.f32 %v407_v50, %v187_v28 }
  0xe4   : > { %v368_v55 = vpop.f32.mrf.mxu0  ;;  %v409_v56 = vpop.f32.mrf.mxu1 }
  0xe5   : > { %766 = vpow2.f32 %v722_v51  ;;  %v723_v57 = vmul.f32 -1.442695, %v367_v53  ;;  %v725_v58 = vmul.f32 -1.442695, %v408_v54  ;;  %v630_v55 = vld [vmem:[%s170_s24] sm:$0xff] }
  0xe6   : > { %768 = vpow2.f32 %v724_v52  ;;  %v369_v59 = vpop.f32.mrf.mxu0  ;;  %v410_v60 = vpop.f32.mrf.mxu1 }
  0xe7   : > { %770 = vpow2.f32 %v723_v57 }
  0xe8   : > { %772 = vpow2.f32 %v725_v58  ;;  %v446_v61 = vpop.f32.mrf.mxu0 }
  0xe9   : > { %v447_v62 = vadd.f32 %v446_v61, %v187_v28 }
  0xea   : > { %v759_v63 = vpop.eup %758  ;;  %v448_v0 = vpop.f32.mrf.mxu0 }
  0xeb   : > { %v761_v1 = vpop.eup %760  ;;  %v483_v2 = vadd.f32 1.0, %v759_v63  ;;  %v449_v3 = vadd.f32 %v448_v0, %v187_v28  ;;  %v726_v9 = vmul.f32 -1.442695, %v447_v62  ;;  %v636_v62 = vld [vmem:[%s170_s24 + $0x8] sm:$0x3] }
  0xec   : > { %v763_v4 = vpop.eup %762  ;;  %v485_v5 = vadd.f32 1.0, %v761_v1  ;;  %v450_v6 = vpop.f32.mrf.mxu0 }
  0xed   : > { %v765_v7 = vpop.eup %764  ;;  %774 = vrcp.f32 %v483_v2  ;;  %v484_v8 = vadd.f32 1.0, %v763_v4  ;;  %v727_v11 = vmul.f32 -1.442695, %v449_v3 }
  0xee   : > { %776 = vrcp.f32 %v485_v5  ;;  %v486_v10 = vadd.f32 1.0, %v765_v7  ;;  %v451_v12 = vpop.f32.mrf.mxu0 }
  0xef   : > { %778 = vrcp.f32 %v484_v8 }
  0xf0   : > { %780 = vrcp.f32 %v486_v10 }
  0xf1   : > { %782 = vpow2.f32 %v726_v9 }
  0xf2   : > { %v767_v14 = vpop.eup %766  ;;  %784 = vpow2.f32 %v727_v11 }
  0xf3   : > { %v769_v16 = vpop.eup %768  ;;  %v487_v17 = vadd.f32 1.0, %v767_v14 }
  0xf4   : > { %v771_v18 = vpop.eup %770  ;;  %v489_v19 = vadd.f32 1.0, %v769_v16 }
  0xf5   : > { %v773_v20 = vpop.eup %772  ;;  %786 = vrcp.f32 %v487_v17  ;;  %v488_v21 = vadd.f32 1.0, %v771_v18 }
  0xf6   : > { %788 = vrcp.f32 %v489_v19  ;;  %v490_v22 = vadd.f32 1.0, %v773_v20 }
  0xf7   : > { %790 = vrcp.f32 %v488_v21 }
  0xf8   : > { %792 = vrcp.f32 %v490_v22 }
  0xfa   : > { %v775_v27 = vpop.eup %774 }
  0xfb   : > { %v777_v29 = vpop.eup %776 }
  0xfc   : > { %v779_v30 = vpop.eup %778 }
  0xfd   : > { %v781_v32 = vpop.eup %780  ;;  %v728_v37 = vpack.c.bf16 %v779_v30, %v775_v27 }
  0xfe   : > { %v783_v33 = vpop.eup %782  ;;  %v729_v38 = vpack.c.bf16 %v781_v32, %v777_v29 }
  0xff   : > { %v785_v34 = vpop.eup %784  ;;  %v491_v35 = vadd.f32 1.0, %v783_v33  ;;  %v543_v25 = vrot.slane %v728_v37, %v542_v36 }
 0x100   : > { %v492_v39 = vadd.f32 1.0, %v785_v34  ;;  %v550_v45 = vrot.slane %v729_v38, %v542_v36 }
 0x101   : > { %794 = vrcp.f32 %v491_v35 }
 0x102   : > { %v787_v41 = vpop.eup %786  ;;  %796 = vrcp.f32 %v492_v39  ;;  %v565_v50 = vcombine.low %v543_v25, %v550_v45 }
 0x103   : > { %v789_v43 = vpop.eup %788 }
 0x104   : > { %v791_v44 = vpop.eup %790  ;;  %v573_v53 = vrot.slane %v565_v50, %v542_v36 }
 0x105   : > { %v793_v46 = vpop.eup %792  ;;  %v730_v47 = vpack.c.bf16 %v791_v44, %v787_v41 }
 0x106   : > { %v731_v48 = vpack.c.bf16 %v793_v46, %v789_v43 }
 0x107   : > { %v557_v49 = vrot.slane %v730_v47, %v542_v36 }
 0x108   : > { %v564_v51 = vrot.slane %v731_v48, %v542_v36 }
 0x10a   : > { %v566_v52 = vcombine.low %v557_v49, %v564_v51 }
 0x10c   : > { %v580_v54 = vrot.slane %v566_v52, %v542_v36 }
 0x10e   : > { %v795_v56 = vpop.eup %794  ;;  %v581_v57 = vcombine.low %v573_v53, %v580_v54 }
 0x10f   : > { %v797_v58 = vpop.eup %796 }
 0x110   : > { %v732_v59 = vpack.c.bf16 %v797_v58, %v795_v56  ;;  %v631_v60 = vsel %vm629_vm2, %v581_v57, %v630_v55 }
 0x111   : > { %632 = vst [vmem:[%s170_s24] sm:$0xff] %v631_v60 }
 0x112   : > { %v589_v61 = vrot.slane %v732_v59, %v542_v36 }
 0x114   : > { %v596_v63 = vrot.slane %v589_v61, %v542_v36 }
 0x116   : > { %v637_v0 = vsel %vm635_vm7, %v596_v63, %v636_v62 }
 0x117   : > { %638 = vst [vmem:[%s170_s24 + $0x8] sm:$0x3] %v637_v0 }
 0x118 PF: > { %s15_s14 = sadd.s32 1, %s804_s14  }
 0x119   : > { %p12_p4 = scmp.ge.s32.totalorder %s15_s14, 10  }
 0x11b   :  { %14 = sbr.rel (!%p12_p4) target bundleno = 3 (0x3), region = 62 }

// kernel: temporal_shift_can_forward.18
= control target key start
LH: loop header
LB: loop body
LE: loop exit
PB: predicated region body
PF: predicated region fallthrough
CT: control target
= control target key end

     0   :  { %vm34_vm0 = vcmask 31744   ;;  %v1306_v25 = vmov 1966171168   ;;  %v201_v27 = vlaneseq  ;;  %vm1180_vm1 = vcmask 1043456   ;;  %s2685_s0 = inlined_call_operand.vmem [shape: bf16[8,1156], index: 0, kind: input, shape index: {}]   ;;  %s2686_s1 = inlined_call_operand.vmem [shape: bf16[8,8,1156], index: 1, kind: input, shape index: {}]   ;;  %s2687_s2 = inlined_call_operand.vmem [shape: bf16[8,8,1156], index: 2, kind: output, shape index: {}]  }
   0x1   :  { %v11_v0 = vld [vmem:[%s2685_s0] sm:$0xff]  ;;  %v12_v1 = vld [vmem:[%s2685_s0 + $0x8] sm:$0xff]  ;;  %v13_v5 = vld [vmem:[%s2685_s0 + $0x10] sm:$0xff]  ;;  %v1337_v26 = vunpack.c.l.s4 %v1306_v25  ;;  %vm1181_vm2 = vcmask 31748  }
   0x2   :  { %v16_v2 = vunpack.c.l.bf16 %v11_v0  ;;  %v17_v3 = vunpack.c.h.bf16 %v11_v0  ;;  %v18_v4 = vunpack.c.l.bf16 %v12_v1  ;;  %v19_v6 = vunpack.c.h.bf16 %v12_v1  ;;  %v14_v10 = vld [vmem:[%s2685_s0 + $0x18] sm:$0xff]  ;;  %v15_v13 = vld [vmem:[%s2685_s0 + $0x20] sm:$0xff]  ;;  %v1355_v33 = vld [vmem:[%s2686_s1 + $0x8] sm:$0xff] }
   0x3   :  { %v20_v8 = vunpack.c.l.bf16 %v13_v5  ;;  %v21_v11 = vunpack.c.h.bf16 %v13_v5  ;;  %v22_v14 = vunpack.c.l.bf16 %v14_v10  ;;  %v23_v16 = vunpack.c.h.bf16 %v14_v10  ;;  %v1350_v32 = vld [vmem:[%s2686_s1] sm:$0xff]  ;;  %v1368_v38 = vld [vmem:[%s2686_s1 + $0x10] sm:$0xff]  ;;  %v1373_v39 = vld [vmem:[%s2686_s1 + $0x18] sm:$0xff] }
   0x4   :  { %v26_v7 = vadd.f32 %v17_v3, %v16_v2  ;;  %v25_v18 = vunpack.c.h.bf16 %v15_v13  ;;  %v24_v19 = vunpack.c.l.bf16 %v15_v13  ;;  %v1339_v28 = vmul.f32 17.0, %v16_v2  ;;  %v1382_v42 = vld [vmem:[%s2686_s1 + $0x20] sm:$0xff]  ;;  %v1387_v43 = vld [vmem:[%s2686_s1 + $0x28] sm:$0xff]  ;;  %v1395_v46 = vld [vmem:[%s2686_s1 + $0x30] sm:$0xff] }
   0x5   :  { %v1341_v29 = vmul.f32 17.0, %v17_v3  ;;  %v1343_v30 = vmul.f32 17.0, %v18_v4  ;;  %v1345_v31 = vmul.f32 17.0, %v19_v6  ;;  %v1357_v34 = vmul.f32 17.0, %v20_v8  ;;  %v1400_v47 = vld [vmem:[%s2686_s1 + $0x38] sm:$0xff]  ;;  %v1409_v52 = vld [vmem:[%s2686_s1 + $0x40] sm:$0xff]  ;;  %vm2469_vm3 = vmor %vm1181_vm2, %vm1180_vm1 }
   0x6   :  { %v27_v9 = vadd.f32 %v26_v7, %v18_v4  ;;  %v35_v22 = vsel %vm34_vm0, %v25_v18, 0.0  ;;  %v1359_v35 = vmul.f32 17.0, %v21_v11  ;;  %v1361_v36 = vmul.f32 17.0, %v22_v14  ;;  %v1414_v53 = vld [vmem:[%s2686_s1 + $0x48] sm:$0xff]  ;;  %v1423_v58 = vld [vmem:[%s2686_s1 + $0x50] sm:$0xff]  ;;  %v1428_v59 = vld [vmem:[%s2686_s1 + $0x58] sm:$0xff] }
   0x7   :  { %v1363_v37 = vmul.f32 17.0, %v23_v16  ;;  %v1375_v40 = vmul.f32 17.0, %v24_v19  ;;  %v1377_v41 = vmul.f32 17.0, %v25_v18  ;;  %v200_v44 = vunpack.c.0.s8 %v1337_v26  ;;  %v1437_v0 = vld [vmem:[%s2686_s1 + $0x60] sm:$0xff]  ;;  %v1442_v1 = vld [vmem:[%s2686_s1 + $0x68] sm:$0xff]  ;;  %v1456_v7 = vld [vmem:[%s2686_s1 + $0x78] sm:$0xff] }
   0x8   :  { %v28_v12 = vadd.f32 %v27_v9, %v19_v6  ;;  %v1390_v45 = vshrl.u32 %v201_v27, 7  ;;  %v1451_v6 = vld [vmem:[%s2686_s1 + $0x70] sm:$0xff]  ;;  %v1470_v13 = vld [vmem:[%s2686_s1 + $0x88] sm:$0xff]  ;;  %v1493_v25 = vld [vmem:[%s2686_s1 + $0xa0] sm:$0xff] }
   0x9   :  { %v1479_v18 = vld [vmem:[%s2686_s1 + $0x90] sm:$0xff]  ;;  %v1498_v27 = vld [vmem:[%s2686_s1 + $0xa8] sm:$0xff]  ;;  %v1567_v5 = vld [vmem:[%s2686_s1 + $0xf8] sm:$0xff] }
   0xa   :  { %v29_v15 = vadd.f32 %v28_v12, %v20_v8  ;;  %v1465_v12 = vld [vmem:[%s2686_s1 + $0x80] sm:$0xff]  ;;  %v1553_v9 = vld [vmem:[%s2686_s1 + $0xe8] sm:$0xff]  ;;  %2708 = vst [vmem:[#allocation2_spill] sm:$0xff] %v1567_v5  ;;  %v1595_v63 = vld [vmem:[%s2686_s1 + $0x118] sm:$0xff]  ;;  %v1645_v50 = vsub.s32 %v200_v44, %v1390_v45  ;;  %v1648_v49 = vsub.s32 0, %v1390_v45  ;;  %v1651_v60 = vsub.s32 1, %v1390_v45 }
   0xb   :  { %v1581_v3 = vld [vmem:[%s2686_s1 + $0x108] sm:$0xff]  ;;  %2712 = vst [vmem:[#allocation6_spill] sm:$0xff] %v1595_v63  ;;  %v1604_v10 = vld [vmem:[%s2686_s1 + $0x120] sm:$0xff]  ;;  %v1618_v8 = vld [vmem:[%s2686_s1 + $0x130] sm:$0xff]  ;;  %v1654_v2 = vsub.s32 2, %v1390_v45  ;;  %v1657_v4 = vsub.s32 3, %v1390_v45 }
   0xc   :  { %v30_v17 = vadd.f32 %v29_v15, %v21_v11  ;;  %v1539_v11 = vld [vmem:[%s2686_s1 + $0xd8] sm:$0xff]  ;;  %v1562_v15 = vld [vmem:[%s2686_s1 + $0xf0] sm:$0xff]  ;;  %2710 = vst [vmem:[#allocation4_spill] sm:$0xff] %v1581_v3  ;;  %2713 = vst [vmem:[#allocation7_spill] sm:$0xff] %v1604_v10  ;;  %v1660_v54 = vsub.s32 4, %v1390_v45  ;;  %v1663_v26 = vsub.s32 5, %v1390_v45 }
   0xd   :  { %v1609_v61 = vld [vmem:[%s2686_s1 + $0x128] sm:$0xff]  ;;  %2715 = vst [vmem:[#allocation9_spill] sm:$0xff] %v1618_v8  ;;  %v1623_v57 = vld [vmem:[%s2686_s1 + $0x138] sm:$0xff] }
   0xe   :  { %v31_v20 = vadd.f32 %v30_v17, %v22_v14  ;;  %v1548_v17 = vld [vmem:[%s2686_s1 + $0xe0] sm:$0xff]  ;;  %2714 = vst [vmem:[#allocation8_spill] sm:$0xff] %v1609_v61  ;;  %2716 = vst [vmem:[#allocation10_spill] sm:$0xff] %v1623_v57 }
   0xf   :  { %v1576_v14 = vld [vmem:[%s2686_s1 + $0x100] sm:$0xff] }
  0x10   :  { %v32_v21 = vadd.f32 %v31_v20, %v23_v16  ;;  %v1512_v16 = vld [vmem:[%s2686_s1 + $0xb8] sm:$0xff]  ;;  %v1534_v20 = vld [vmem:[%s2686_s1 + $0xd0] sm:$0xff]  ;;  %2709 = vst [vmem:[#allocation3_spill] sm:$0xff] %v1576_v14 }
  0x12   :  { %v33_v23 = vadd.f32 %v32_v21, %v24_v19  ;;  %v1484_v19 = vld [vmem:[%s2686_s1 + $0x98] sm:$0xff]  ;;  %v1590_v21 = vld [vmem:[%s2686_s1 + $0x110] sm:$0xff] }
  0x13   :  { %2711 = vst [vmem:[#allocation5_spill] sm:$0xff] %v1590_v21 }
  0x14   :  { %v36_v24 = vadd.f32 %v35_v22, %v33_v23  ;;  %v1507_v23 = vld [vmem:[%s2686_s1 + $0xb0] sm:$0xff]  ;;  %v1525_v22 = vld [vmem:[%s2686_s1 + $0xc8] sm:$0xff] }
  0x16   :  { %37 = vadd.xlane.f32.xlu0 %v36_v24 }
  0x9f   :  { %v38_v24 = vpop.xlane.xlu0 %37 }
  0xa0   :  { %1304 = vrcp.f32 %v38_v24  ;;  %v1520_v24 = vld [vmem:[%s2686_s1 + $0xc0] sm:$0xff] }
  0xad   :  { %v1305_v62 = vpop.eup %1304 }
  0xae   :  { %v50_v44 = vmul.f32 %v1305_v62, %v1339_v28  ;;  %v51_v55 = vmul.f32 %v1305_v62, %v1341_v29  ;;  %v52_v56 = vmul.f32 %v1305_v62, %v1343_v30  ;;  %v53_v51 = vmul.f32 %v1305_v62, %v1345_v31 }
  0xaf   :  { %v54_v48 = vmul.f32 %v1305_v62, %v1357_v34  ;;  %v55_v57 = vmul.f32 %v1305_v62, %v1359_v35  ;;  %v56_v8 = vmul.f32 %v1305_v62, %v1361_v36  ;;  %v57_v61 = vmul.f32 %v1305_v62, %v1363_v37 }
  0xb0   :  { %v58_v10 = vmul.f32 %v1305_v62, %v1375_v40  ;;  %v59_v63 = vmul.f32 %v1305_v62, %v1377_v41  ;;  %v190_v21 = vcombine.low %v50_v44, %v51_v55  ;;  %v191_v28 = vcombine.high %v50_v44, %v51_v55 }
  0xb1   :  { %v192_v3 = vcombine.low %v52_v56, %v53_v51  ;;  %v193_v29 = vcombine.high %v52_v56, %v53_v51  ;;  %v194_v14 = vcombine.low %v54_v48, %v55_v57  ;;  %v195_v30 = vcombine.high %v54_v48, %v55_v57 }
  0xb2   :  { %v196_v5 = vcombine.low %v56_v8, %v57_v61  ;;  %v197_v31 = vcombine.high %v56_v8, %v57_v61  ;;  %v204_v34 = vrot.slane %v190_v21, %v1645_v50  ;;  %v211_v35 = vrot.slane %v191_v28, %v1645_v50 }
  0xb3   :  { %v218_v36 = vrot.slane %v192_v3, %v1645_v50  ;;  %v225_v37 = vrot.slane %v193_v29, %v1645_v50  ;;  %v232_v40 = vrot.slane %v194_v14, %v1645_v50  ;;  %v239_v41 = vrot.slane %v195_v30, %v1645_v50 }
  0xb4   :  { %v246_v55 = vrot.slane %v196_v5, %v1645_v50  ;;  %v253_v51 = vrot.slane %v197_v31, %v1645_v50  ;;  %v326_v56 = vcombine.low %v58_v10, %v59_v63  ;;  %v327_v48 = vcombine.high %v58_v10, %v59_v63 }
  0xb5   :  { %v254_v57 = vcombine.low %v204_v34, %v218_v36  ;;  %v255_v61 = vcombine.high %v204_v34, %v218_v36  ;;  %v256_v62 = vcombine.low %v211_v35, %v225_v37  ;;  %v257_v8 = vcombine.high %v211_v35, %v225_v37 }
  0xb6   :  { %v258_v21 = vcombine.low %v232_v40, %v246_v55  ;;  %v259_v44 = vcombine.high %v232_v40, %v246_v55  ;;  %v260_v28 = vcombine.low %v239_v41, %v253_v51  ;;  %v261_v3 = vcombine.high %v239_v41, %v253_v51 }
  0xb7   :  { %v268_v29 = vrot.slane %v254_v57, %v1645_v50  ;;  %v275_v14 = vrot.slane %v256_v62, %v1645_v50  ;;  %v282_v30 = vrot.slane %v255_v61, %v1645_v50  ;;  %v289_v5 = vrot.slane %v257_v8, %v1645_v50 }
  0xb8   :  { %v296_v31 = vrot.slane %v258_v21, %v1645_v50  ;;  %v303_v63 = vrot.slane %v260_v28, %v1645_v50  ;;  %v310_v10 = vrot.slane %v259_v44, %v1645_v50  ;;  %v317_v34 = vrot.slane %v261_v3, %v1645_v50 }
  0xb9   :  { %v334_v35 = vrot.slane %v326_v56, %v1645_v50  ;;  %v341_v36 = vrot.slane %v327_v48, %v1645_v50  ;;  %v1694_v37 = vsub.s32 6, %v1390_v45  ;;  %v1697_v40 = vsub.s32 7, %v1390_v45 }
  0xba   :  { %v1699_v41 = vcombine.low %v268_v29, %v296_v31  ;;  %v1701_v55 = vcombine.high %v268_v29, %v296_v31  ;;  %v1703_v51 = vcombine.low %v275_v14, %v303_v63  ;;  %v1705_v57 = vcombine.high %v275_v14, %v303_v63 }
  0xbb   :  { %v1707_v61 = vcombine.low %v282_v30, %v310_v10  ;;  %v1709_v62 = vcombine.high %v282_v30, %v310_v10  ;;  %v1711_v56 = vcombine.low %v289_v5, %v317_v34  ;;  %v1713_v48 = vcombine.high %v289_v5, %v317_v34 }
  0xbc   :  { %v342_v8 = vcombine.high %v334_v35, %v334_v35  ;;  %v343_v21 = vcombine.high %v341_v36, %v341_v36  ;;  %v1716_v45 = vrot.slane %v334_v35, %v1645_v50  ;;  %v1719_v44 = vrot.slane %v341_v36, %v1645_v50 }
  0xbd   :  { %v379_v28 = vrot.slane %v1699_v41, %v1648_v49  ;;  %v383_v3 = vrot.slane %v1699_v41, %v1651_v60  ;;  %v2718_v35 = vunpack.c.l.bf16 %v1350_v32  ;;  %v2719_v10 = vunpack.c.h.bf16 %v1350_v32 }
  0xbe   :  { %v1730_v30 = vrot.slane %v342_v8, %v1645_v50  ;;  %v1733_v5 = vrot.slane %v343_v21, %v1645_v50  ;;  %v1737_v31 = vcombine.high %v1716_v45, %v1716_v45  ;;  %v1741_v63 = vcombine.high %v1719_v44, %v1719_v44 }
  0xbf   :  { %v1908_v50 = vmul.f32 %v379_v28, %v2718_v35  ;;  %v1915_v14 = vmul.f32 %v383_v3, %v2719_v10  ;;  %v2721_v29 = vunpack.c.l.bf16 %v1355_v33  ;;  %v2722_v21 = vrot.slane %v1699_v41, %v1654_v2 }
  0xc0   :  { %v1753_v36 = vcombine.high %v1730_v30, %v1730_v30  ;;  %v1757_v8 = vcombine.high %v1733_v5, %v1733_v5  ;;  %v2724_v28 = vrot.slane %v1699_v41, %v1657_v4  ;;  %v2726_v32 = vunpack.c.l.bf16 %v1368_v38 }
  0xc1   :  { %2720 = vst [vmem:[#allocation12_spill] sm:$0xff] %v1915_v14  ;;  %v1922_v34 = vmul.f32 %v2722_v21, %v2721_v29  ;;  %v2727_v3 = vrot.slane %v1699_v41, %v1660_v54  ;;  %v2728_v14 = vunpack.c.h.bf16 %v1368_v38  ;;  %v2729_v29 = vrot.slane %v1699_v41, %v1663_v26 }
  0xc2   :  { %2717 = vst [vmem:[#allocation11_spill] sm:$0xff] %v1757_v8  ;;  %v2723_v8 = vunpack.c.h.bf16 %v1355_v33  ;;  %v2731_v33 = vunpack.c.l.bf16 %v1373_v39  ;;  %v2735_v38 = vunpack.c.l.bf16 %v1382_v42 }
  0xc3   :  { %v1936_v10 = vmul.f32 %v2727_v3, %v2726_v32  ;;  %v1943_v21 = vmul.f32 %v2729_v29, %v2728_v14  ;;  %v2734_v32 = vrot.slane %v1699_v41, %v1697_v40  ;;  %v2736_v14 = vrot.slane %v1716_v45, %v1648_v49 }
  0xc4   :  { %v1929_v35 = vmul.f32 %v2724_v28, %v2723_v8  ;;  %v2732_v8 = vrot.slane %v1699_v41, %v1694_v37  ;;  %v2740_v41 = vrot.slane %v1707_v61, %v1648_v49 }
  0xc5   :  { %2730 = vst [vmem:[#allocation14_spill] sm:$0xff] %v1943_v21  ;;  %v1964_v29 = vmul.f32 %v2736_v14, %v2735_v38  ;;  %v2737_v21 = vunpack.c.h.bf16 %v1382_v42  ;;  %v2742_v38 = vrot.slane %v1707_v61, %v1651_v60  ;;  %v2744_v42 = vunpack.c.l.bf16 %v1395_v46 }
  0xc6   :  { %2725 = vst [vmem:[#allocation13_spill] sm:$0xff] %v1929_v35  ;;  %v1950_v28 = vmul.f32 %v2732_v8, %v2731_v33  ;;  %v2733_v35 = vunpack.c.h.bf16 %v1373_v39  ;;  %v2738_v33 = vrot.slane %v1716_v45, %v1651_v60  ;;  %v2739_v39 = vunpack.c.l.bf16 %v1387_v43 }
  0xc7   :  { %v2745_v45 = vrot.slane %v1707_v61, %v1654_v2 }
  0xc8   :  { %v1957_v3 = vmul.f32 %v2734_v32, %v2733_v35  ;;  %v1971_v8 = vmul.f32 %v2738_v33, %v2737_v21  ;;  %v1978_v35 = vmul.f32 %v2740_v41, %v2739_v39  ;;  %v2741_v32 = vunpack.c.h.bf16 %v1387_v43 }
  0xc9   :  { %v1992_v21 = vmul.f32 %v2745_v45, %v2744_v42  ;;  %v2746_v33 = vunpack.c.h.bf16 %v1395_v46  ;;  %v2747_v39 = vrot.slane %v1707_v61, %v1657_v4  ;;  %v2749_v43 = vunpack.c.l.bf16 %v1400_v47 }
  0xca   :  { %v1985_v14 = vmul.f32 %v2742_v38, %v2741_v32  ;;  %v2750_v32 = vrot.slane %v1707_v61, %v1660_v54  ;;  %v2752_v42 = vrot.slane %v1707_v61, %v1663_v26  ;;  %v2754_v46 = vunpack.c.l.bf16 %v1409_v52 }
  0xcb   :  { %v1999_v41 = vmul.f32 %v2747_v39, %v2746_v33  ;;  %v2755_v33 = vrot.slane %v1707_v61, %v1694_v37 }
  0xcc   :  { %2743 = vst [vmem:[#allocation15_spill] sm:$0xff] %v1985_v14  ;;  %v2006_v38 = vmul.f32 %v2750_v32, %v2749_v43  ;;  %v2751_v14 = vunpack.c.h.bf16 %v1400_v47  ;;  %v2757_v43 = vrot.slane %v1707_v61, %v1697_v40  ;;  %v2758_v47 = vunpack.c.l.bf16 %v1414_v53 }
  0xcd   :  { %2748 = vst [vmem:[#allocation16_spill] sm:$0xff] %v1999_v41  ;;  %v2020_v39 = vmul.f32 %v2755_v33, %v2754_v46  ;;  %v2756_v41 = vunpack.c.h.bf16 %v1409_v52  ;;  %v2761_v46 = vrot.slane %v1730_v30, %v1651_v60  ;;  %v2762_v52 = vunpack.c.l.bf16 %v1423_v58 }
  0xce   :  { %v2013_v45 = vmul.f32 %v2752_v42, %v2751_v14  ;;  %v2759_v14 = vrot.slane %v1730_v30, %v1648_v49  ;;  %v2763_v61 = vrot.slane %v1701_v55, %v1648_v49  ;;  %v2768_v30 = vrot.slane %v1701_v55, %v1654_v2 }
  0xcf   :  { %v2027_v32 = vmul.f32 %v2757_v43, %v2756_v41  ;;  %v2764_v43 = vunpack.c.h.bf16 %v1423_v58  ;;  %v2772_v58 = vunpack.c.l.bf16 %v1437_v0 }
  0xd0   :  { %2753 = vst [vmem:[#allocation17_spill] sm:$0xff] %v2013_v45  ;;  %v2034_v42 = vmul.f32 %v2759_v14, %v2758_v47  ;;  %v2760_v45 = vunpack.c.h.bf16 %v1414_v53  ;;  %v2048_v41 = vmul.f32 %v2763_v61, %v2762_v52  ;;  %v2765_v47 = vrot.slane %v1701_v55, %v1651_v60 }
  0xd1   :  { %v2767_v53 = vunpack.c.l.bf16 %v1428_v59  ;;  %v2770_v52 = vrot.slane %v1701_v55, %v1657_v4 }
  0xd2   :  { %v2041_v33 = vmul.f32 %v2761_v46, %v2760_v45  ;;  %v2055_v14 = vmul.f32 %v2765_v47, %v2764_v43  ;;  %v2769_v46 = vunpack.c.h.bf16 %v1428_v59  ;;  %v2773_v43 = vrot.slane %v1701_v55, %v1660_v54 }
  0xd3   :  { %v2062_v45 = vmul.f32 %v2768_v30, %v2767_v53  ;;  %v2775_v53 = vrot.slane %v1701_v55, %v1663_v26  ;;  %v2777_v59 = vunpack.c.l.bf16 %v1442_v1 }
  0xd4   :  { %2766 = vst [vmem:[#allocation18_spill] sm:$0xff] %v2055_v14  ;;  %v2069_v61 = vmul.f32 %v2770_v52, %v2769_v46  ;;  %v2076_v47 = vmul.f32 %v2773_v43, %v2772_v58  ;;  %v2774_v14 = vunpack.c.h.bf16 %v1437_v0  ;;  %v2778_v46 = vrot.slane %v1701_v55, %v1694_v37 }
  0xd5   :  { %v2780_v58 = vrot.slane %v1701_v55, %v1697_v40  ;;  %v2781_v0 = vunpack.c.l.bf16 %v1451_v6  ;;  %v2786_v55 = vrot.slane %v1709_v62, %v1648_v49 }
  0xd6   :  { %2771 = vst [vmem:[#allocation19_spill] sm:$0xff] %v2069_v61  ;;  %v2083_v30 = vmul.f32 %v2775_v53, %v2774_v14  ;;  %v2090_v52 = vmul.f32 %v2778_v46, %v2777_v59  ;;  %v2779_v61 = vunpack.c.h.bf16 %v1442_v1  ;;  %v2782_v14 = vrot.slane %v1737_v31, %v1648_v49 }
  0xd7   :  { %v2784_v59 = vrot.slane %v1737_v31, %v1651_v60  ;;  %v2785_v1 = vunpack.c.l.bf16 %v1456_v7  ;;  %v2791_v31 = vrot.slane %v1709_v62, %v1654_v2 }
  0xd8   :  { %2776 = vst [vmem:[#allocation20_spill] sm:$0xff] %v2083_v30  ;;  %v2097_v43 = vmul.f32 %v2780_v58, %v2779_v61  ;;  %v2104_v53 = vmul.f32 %v2782_v14, %v2781_v0  ;;  %v2783_v30 = vunpack.c.h.bf16 %v1451_v6  ;;  %v2787_v58 = vunpack.c.h.bf16 %v1456_v7 }
  0xd9   :  { %v2118_v61 = vmul.f32 %v2786_v55, %v2785_v1  ;;  %v2788_v0 = vrot.slane %v1709_v62, %v1651_v60  ;;  %v2790_v6 = vunpack.c.l.bf16 %v1465_v12  ;;  %v2793_v1 = vrot.slane %v1709_v62, %v1657_v4 }
  0xda   :  { %v2111_v46 = vmul.f32 %v2784_v59, %v2783_v30  ;;  %v2792_v59 = vunpack.c.h.bf16 %v1465_v12  ;;  %v2795_v7 = vunpack.c.l.bf16 %v1470_v13  ;;  %v2800_v12 = vunpack.c.l.bf16 %v1479_v18 }
  0xdb   :  { %v2125_v14 = vmul.f32 %v2788_v0, %v2787_v58  ;;  %v2132_v30 = vmul.f32 %v2791_v31, %v2790_v6  ;;  %v2796_v58 = vrot.slane %v1709_v62, %v1660_v54  ;;  %v2798_v6 = vrot.slane %v1709_v62, %v1663_v26 }
  0xdc   :  { %v2139_v55 = vmul.f32 %v2793_v1, %v2792_v59  ;;  %v2801_v59 = vrot.slane %v1709_v62, %v1694_v37 }
  0xdd   :  { %2789 = vst [vmem:[#allocation21_spill] sm:$0xff] %v2125_v14  ;;  %v2146_v0 = vmul.f32 %v2796_v58, %v2795_v7  ;;  %v2797_v14 = vunpack.c.h.bf16 %v1470_v13  ;;  %v2803_v7 = vrot.slane %v1709_v62, %v1697_v40  ;;  %v2804_v13 = vunpack.c.l.bf16 %v1484_v19 }
  0xde   :  { %2794 = vst [vmem:[#allocation22_spill] sm:$0xff] %v2139_v55  ;;  %v2160_v1 = vmul.f32 %v2801_v59, %v2800_v12  ;;  %v2802_v55 = vunpack.c.h.bf16 %v1479_v18  ;;  %v2807_v12 = vrot.slane %v1753_v36, %v1651_v60  ;;  %v2808_v62 = vunpack.c.l.bf16 %v1493_v25 }
  0xdf   :  { %v2153_v31 = vmul.f32 %v2798_v6, %v2797_v14  ;;  %v2805_v14 = vrot.slane %v1753_v36, %v1648_v49  ;;  %v2814_v36 = vrot.slane %v1703_v51, %v1654_v2 }
  0xe0   :  { %v2167_v58 = vmul.f32 %v2803_v7, %v2802_v55  ;;  %v2809_v55 = vrot.slane %v1703_v51, %v1648_v49  ;;  %v2810_v7 = vunpack.c.h.bf16 %v1493_v25  ;;  %v2818_v25 = vunpack.c.l.bf16 %v1507_v23 }
  0xe1   :  { %2799 = vst [vmem:[#allocation23_spill] sm:$0xff] %v2153_v31  ;;  %v2174_v6 = vmul.f32 %v2805_v14, %v2804_v13  ;;  %v2806_v31 = vunpack.c.h.bf16 %v1484_v19  ;;  %v2811_v13 = vrot.slane %v1703_v51, %v1651_v60  ;;  %v2813_v19 = vunpack.c.l.bf16 %v1498_v27 }
  0xe2   :  { %v2188_v59 = vmul.f32 %v2809_v55, %v2808_v62  ;;  %v2816_v62 = vrot.slane %v1703_v51, %v1657_v4 }
  0xe3   :  { %v2181_v18 = vmul.f32 %v2807_v12, %v2806_v31  ;;  %v2195_v14 = vmul.f32 %v2811_v13, %v2810_v7  ;;  %v2202_v31 = vmul.f32 %v2814_v36, %v2813_v19  ;;  %v2815_v12 = vunpack.c.h.bf16 %v1498_v27 }
  0xe4   :  { %v2819_v7 = vrot.slane %v1703_v51, %v1660_v54  ;;  %v2821_v19 = vrot.slane %v1703_v51, %v1663_v26  ;;  %v2823_v27 = vunpack.c.l.bf16 %v1512_v16 }
  0xe5   :  { %2812 = vst [vmem:[#allocation24_spill] sm:$0xff] %v2195_v14  ;;  %v2209_v55 = vmul.f32 %v2816_v62, %v2815_v12  ;;  %v2820_v14 = vunpack.c.h.bf16 %v1507_v23  ;;  %v2824_v12 = vrot.slane %v1703_v51, %v1694_v37  ;;  %v2827_v23 = vunpack.c.l.bf16 %v1520_v24 }
  0xe6   :  { %v2216_v13 = vmul.f32 %v2819_v7, %v2818_v25  ;;  %v2826_v25 = vrot.slane %v1703_v51, %v1697_v40  ;;  %v2832_v51 = vrot.slane %v1711_v56, %v1648_v49 }
  0xe7   :  { %2817 = vst [vmem:[#allocation25_spill] sm:$0xff] %v2209_v55  ;;  %v2223_v36 = vmul.f32 %v2821_v19, %v2820_v14  ;;  %v2230_v62 = vmul.f32 %v2824_v12, %v2823_v27  ;;  %v2825_v55 = vunpack.c.h.bf16 %v1512_v16  ;;  %v2828_v14 = vrot.slane %v1719_v44, %v1648_v49 }
  0xe8   :  { %v2830_v27 = vrot.slane %v1719_v44, %v1651_v60  ;;  %v2831_v16 = vunpack.c.l.bf16 %v1525_v22  ;;  %v2837_v44 = vrot.slane %v1711_v56, %v1654_v2 }
  0xe9   :  { %2822 = vst [vmem:[#allocation26_spill] sm:$0xff] %v2223_v36  ;;  %v2237_v7 = vmul.f32 %v2826_v25, %v2825_v55  ;;  %v2244_v19 = vmul.f32 %v2828_v14, %v2827_v23  ;;  %v2829_v36 = vunpack.c.h.bf16 %v1520_v24  ;;  %v2833_v25 = vunpack.c.h.bf16 %v1525_v22 }
  0xea   :  { %v2258_v55 = vmul.f32 %v2832_v51, %v2831_v16  ;;  %v2834_v23 = vrot.slane %v1711_v56, %v1651_v60  ;;  %v2836_v24 = vunpack.c.l.bf16 %v1534_v20  ;;  %v2839_v16 = vrot.slane %v1711_v56, %v1657_v4 }
  0xeb   :  { %v2251_v12 = vmul.f32 %v2830_v27, %v2829_v36  ;;  %v2838_v27 = vunpack.c.h.bf16 %v1534_v20  ;;  %v2841_v22 = vunpack.c.l.bf16 %v1539_v11  ;;  %v2846_v20 = vunpack.c.l.bf16 %v1548_v17 }
  0xec   :  { %v2265_v14 = vmul.f32 %v2834_v23, %v2833_v25  ;;  %v2272_v36 = vmul.f32 %v2837_v44, %v2836_v24  ;;  %v2842_v25 = vrot.slane %v1711_v56, %v1660_v54  ;;  %v2844_v24 = vrot.slane %v1711_v56, %v1663_v26 }
  0xed   :  { %v2279_v51 = vmul.f32 %v2839_v16, %v2838_v27  ;;  %v2847_v27 = vrot.slane %v1711_v56, %v1694_v37 }
  0xee   :  { %2835 = vst [vmem:[#allocation27_spill] sm:$0xff] %v2265_v14  ;;  %v2286_v23 = vmul.f32 %v2842_v25, %v2841_v22  ;;  %v2843_v14 = vunpack.c.h.bf16 %v1539_v11  ;;  %v2849_v22 = vrot.slane %v1711_v56, %v1697_v40  ;;  %v2850_v11 = vunpack.c.l.bf16 %v1553_v9 }
  0xef   :  { %2840 = vst [vmem:[#allocation28_spill] sm:$0xff] %v2279_v51  ;;  %v2300_v16 = vmul.f32 %v2847_v27, %v2846_v20  ;;  %v2848_v51 = vunpack.c.h.bf16 %v1548_v17  ;;  %v2854_v20 = vrot.slane %v1733_v5, %v1651_v60  ;;  %v2855_v17 = vunpack.c.l.bf16 %v1562_v15 }
  0xf0   :  { %v2293_v44 = vmul.f32 %v2844_v24, %v2843_v14  ;;  %v2851_v14 = vrot.slane %v1733_v5, %v1648_v49  ;;  %v2856_v56 = vrot.slane %v1705_v57, %v1648_v49  ;;  %v2863_v5 = vrot.slane %v1705_v57, %v1654_v2 }
  0xf1   :  { %v2307_v25 = vmul.f32 %v2849_v22, %v2848_v51  ;;  %v2858_v22 = vunpack.c.h.bf16 %v1562_v15  ;;  %v2868_v15 = vld [vmem:[#allocation3_spill] sm:$0xff] }
  0xf2   :  { %2845 = vst [vmem:[#allocation29_spill] sm:$0xff] %v2293_v44  ;;  %v2314_v24 = vmul.f32 %v2851_v14, %v2850_v11  ;;  %v2853_v44 = vunpack.c.h.bf16 %v1553_v9  ;;  %v2328_v51 = vmul.f32 %v2856_v56, %v2855_v17  ;;  %v2859_v11 = vrot.slane %v1705_v57, %v1651_v60  ;;  %v2861_v9 = vld [vmem:[#allocation2_spill] sm:$0xff] }
  0xf3   :  { %v2866_v17 = vrot.slane %v1705_v57, %v1657_v4 }
  0xf4   :  { %2852 = vst [vmem:[#allocation30_spill] sm:$0xff] %v2314_v24  ;;  %v2321_v27 = vmul.f32 %v2854_v20, %v2853_v44  ;;  %2857 = vst [vmem:[#allocation31_spill] sm:$0xff] %v2328_v51  ;;  %v2335_v14 = vmul.f32 %v2859_v11, %v2858_v22  ;;  %v2862_v24 = vunpack.c.l.bf16 %v2861_v9  ;;  %v2865_v20 = vunpack.c.h.bf16 %v2861_v9  ;;  %v2875_v9 = vld [vmem:[#allocation4_spill] sm:$0xff] }
  0xf5   :  { %v2869_v51 = vunpack.c.l.bf16 %v2868_v15  ;;  %v2870_v22 = vrot.slane %v1705_v57, %v1660_v54 }
  0xf6   :  { %2860 = vst [vmem:[#allocation32_spill] sm:$0xff] %v2335_v14  ;;  %v2342_v44 = vmul.f32 %v2863_v5, %v2862_v24  ;;  %v2349_v56 = vmul.f32 %v2866_v17, %v2865_v20  ;;  %v2872_v14 = vunpack.c.h.bf16 %v2868_v15  ;;  %v2873_v24 = vrot.slane %v1705_v57, %v1663_v26  ;;  %v2881_v15 = vld [vmem:[#allocation5_spill] sm:$0xff] }
  0xf7   :  { %v2356_v11 = vmul.f32 %v2870_v22, %v2869_v51  ;;  %v2877_v20 = vrot.slane %v1705_v57, %v1694_v37  ;;  %v2880_v51 = vrot.slane %v1705_v57, %v1697_v40  ;;  %v2889_v57 = vrot.slane %v1713_v48, %v1648_v49 }
  0xf8   :  { %2864 = vst [vmem:[#allocation2_spill] sm:$0xff] %v2342_v44  ;;  %2867 = vst [vmem:[#allocation33_spill] sm:$0xff] %v2349_v56  ;;  %v2363_v5 = vmul.f32 %v2873_v24, %v2872_v14  ;;  %v2876_v44 = vunpack.c.l.bf16 %v2875_v9  ;;  %v2879_v56 = vunpack.c.h.bf16 %v2875_v9  ;;  %v2883_v14 = vrot.slane %v1741_v63, %v1648_v49  ;;  %v2887_v9 = vld [vmem:[#allocation6_spill] sm:$0xff] }
  0xf9   :  { %2871 = vst [vmem:[#allocation3_spill] sm:$0xff] %v2356_v11  ;;  %v2882_v11 = vunpack.c.l.bf16 %v2881_v15 }
  0xfa   :  { %2874 = vst [vmem:[#allocation34_spill] sm:$0xff] %v2363_v5  ;;  %v2370_v17 = vmul.f32 %v2877_v20, %v2876_v44  ;;  %v2377_v22 = vmul.f32 %v2880_v51, %v2879_v56  ;;  %v2885_v5 = vunpack.c.h.bf16 %v2881_v15  ;;  %v2886_v44 = vrot.slane %v1741_v63, %v1651_v60  ;;  %v2894_v15 = vld [vmem:[#allocation7_spill] sm:$0xff] }
  0xfb   :  { %v2384_v24 = vmul.f32 %v2883_v14, %v2882_v11  ;;  %v2891_v51 = vunpack.c.h.bf16 %v2887_v9  ;;  %v2892_v11 = vrot.slane %v1713_v48, %v1651_v60  ;;  %v2896_v63 = vrot.slane %v1713_v48, %v1654_v2 }
  0xfc   :  { %2878 = vst [vmem:[#allocation4_spill] sm:$0xff] %v2370_v17  ;;  %v2391_v20 = vmul.f32 %v2886_v44, %v2885_v5  ;;  %v2888_v17 = vunpack.c.l.bf16 %v2887_v9  ;;  %v2897_v44 = vunpack.c.h.bf16 %v2894_v15  ;;  %v2899_v9 = vld [vmem:[#allocation8_spill] sm:$0xff]  ;;  %v2904_v2 = vrot.slane %v1713_v48, %v1663_v26 }
  0xfd   :  { %2884 = vst [vmem:[#allocation5_spill] sm:$0xff] %v2384_v24  ;;  %v2405_v14 = vmul.f32 %v2892_v11, %v2891_v51  ;;  %v2895_v24 = vunpack.c.l.bf16 %v2894_v15  ;;  %v2901_v51 = vrot.slane %v1713_v48, %v1660_v54  ;;  %v2905_v15 = vld [vmem:[#allocation9_spill] sm:$0xff]  ;;  %v2909_v54 = vrot.slane %v1713_v48, %v1697_v40 }
  0xfe   :  { %v2398_v56 = vmul.f32 %v2889_v57, %v2888_v17  ;;  %v2898_v17 = vrot.slane %v1713_v48, %v1657_v4  ;;  %v2907_v4 = vrot.slane %v1713_v48, %v1694_v37  ;;  %v2917_v40 = vld [vmem:[#allocation13_spill] sm:$0xff] }
  0xff   :  { %2893 = vst [vmem:[#allocation35_spill] sm:$0xff] %v2405_v14  ;;  %v2412_v5 = vmul.f32 %v2896_v63, %v2895_v24  ;;  %v2903_v14 = vunpack.c.h.bf16 %v2899_v9  ;;  %v2906_v63 = vunpack.c.l.bf16 %v2905_v15  ;;  %v1264_v48 = vpack.c.bf16 %v2917_v40, %v1922_v34  ;;  %v2922_v34 = vld [vmem:[#allocation16_spill] sm:$0xff] }
 0x100   :  { %2890 = vst [vmem:[#allocation6_spill] sm:$0xff] %v2398_v56  ;;  %v2419_v57 = vmul.f32 %v2898_v17, %v2897_v44  ;;  %v2900_v56 = vunpack.c.l.bf16 %v2899_v9  ;;  %v2908_v17 = vunpack.c.h.bf16 %v2905_v15  ;;  %v2910_v9 = vld [vmem:[#allocation10_spill] sm:$0xff]  ;;  %v2916_v15 = vld [vmem:[#allocation12_spill] sm:$0xff] }
 0x101   :  { %v2433_v24 = vmul.f32 %v2904_v2, %v2903_v14  ;;  %v2440_v44 = vmul.f32 %v2907_v4, %v2906_v63  ;;  %v2914_v2 = vunpack.c.h.bf16 %v2910_v9  ;;  %v1263_v4 = vpack.c.bf16 %v2916_v15, %v1908_v50  ;;  %v2921_v50 = vld [vmem:[#allocation15_spill] sm:$0xff]  ;;  %1177 = vst [vmem:[%s2687_s2 + $0x8] sm:$0xff] %v1264_v48  ;;  %v2942_v40 = vld [vmem:[#allocation34_spill] sm:$0xff] }
 0x102   :  { %v2426_v11 = vmul.f32 %v2901_v51, %v2900_v56  ;;  %v2447_v56 = vmul.f32 %v2909_v54, %v2908_v17  ;;  %v2911_v51 = vunpack.c.l.bf16 %v2910_v9  ;;  %v1268_v9 = vpack.c.bf16 %v2921_v50, %v1978_v35  ;;  %v2926_v35 = vld [vmem:[#allocation20_spill] sm:$0xff] }
 0x103   :  { %1176 = vst [vmem:[%s2687_s2] sm:$0xff] %v1263_v4  ;;  %v2941_v4 = vld [vmem:[#allocation3_spill] sm:$0xff] }
 0x104   :  { %2902 = vst [vmem:[#allocation7_spill] sm:$0xff] %v2426_v11  ;;  %v2912_v11 = vld [vmem:[#allocation11_spill] sm:$0xff]  ;;  %1184 = vst [vmem:[%s2687_s2 + $0x28] sm:$0xff] %v1268_v9  ;;  %v1295_v48 = vpack.c.bf16 %v2942_v40, %v2941_v4 }
 0x105   :  { %v2913_v26 = vrot.slane %v2912_v11, %v1648_v49  ;;  %v2915_v37 = vrot.slane %v2912_v11, %v1651_v60  ;;  %v2920_v49 = vld [vmem:[#allocation14_spill] sm:$0xff]  ;;  %v1266_v60 = vpack.c.bf16 %v1957_v3, %v1950_v28  ;;  %v1267_v11 = vpack.c.bf16 %v1971_v8, %v1964_v29  ;;  %v2925_v29 = vld [vmem:[#allocation19_spill] sm:$0xff] }
 0x106   :  { %v1265_v54 = vpack.c.bf16 %v2920_v49, %v1936_v10  ;;  %v1272_v10 = vpack.c.bf16 %v2041_v33, %v2034_v42  ;;  %v2924_v28 = vld [vmem:[#allocation18_spill] sm:$0xff]  ;;  %v1274_v8 = vpack.c.bf16 %v2925_v29, %v2062_v45  ;;  %v2929_v45 = vld [vmem:[#allocation23_spill] sm:$0xff]  ;;  %v2943_v49 = vld [vmem:[#allocation4_spill] sm:$0xff]  ;;  %1211 = vst [vmem:[%s2687_s2 + $0x100] sm:$0xff] %v1295_v48 }
 0x107   :  { %v2454_v14 = vmul.f32 %v2913_v26, %v2911_v51  ;;  %v2461_v63 = vmul.f32 %v2915_v37, %v2914_v2  ;;  %v1269_v51 = vpack.c.bf16 %v2922_v34, %v1992_v21  ;;  %v2923_v26 = vld [vmem:[#allocation17_spill] sm:$0xff]  ;;  %v1271_v37 = vpack.c.bf16 %v2027_v32, %v2020_v39  ;;  %1179 = vst [vmem:[%s2687_s2 + $0x18] sm:$0xff] %v1266_v60  ;;  %v2928_v33 = vld [vmem:[#allocation22_spill] sm:$0xff]  ;;  %v2946_v50 = vld [vmem:[#allocation35_spill] sm:$0xff] }
 0x108   :  { %v1270_v2 = vpack.c.bf16 %v2923_v26, %v2006_v38  ;;  %v1273_v3 = vpack.c.bf16 %v2924_v28, %v2048_v41  ;;  %v1275_v21 = vpack.c.bf16 %v2926_v35, %v2076_v47  ;;  %v1276_v38 = vpack.c.bf16 %v2097_v43, %v2090_v52  ;;  %1178 = vst [vmem:[%s2687_s2 + $0x10] sm:$0xff] %v1265_v54  ;;  %v2927_v32 = vld [vmem:[#allocation21_spill] sm:$0xff] }
 0x109   :  { %1183 = vst.msk [vmem:[%s2687_s2 + $0x20] sm:$0xff] %vm2469_vm3, %v1267_v11  ;;  %v1277_v39 = vpack.c.bf16 %v2111_v46, %v2104_v53  ;;  %v1278_v42 = vpack.c.bf16 %v2927_v32, %v2118_v61  ;;  %v1279_v41 = vpack.c.bf16 %v2928_v33, %v2132_v30  ;;  %v1280_v47 = vpack.c.bf16 %v2929_v45, %v2146_v0  ;;  %v2930_v53 = vld [vmem:[#allocation24_spill] sm:$0xff]  ;;  %v2931_v61 = vld [vmem:[#allocation25_spill] sm:$0xff]  ;;  %v2932_v0 = vld [vmem:[#allocation26_spill] sm:$0xff] }
 0x10a   :  { %1185 = vst [vmem:[%s2687_s2 + $0x30] sm:$0xff] %v1269_v51  ;;  %1186 = vst [vmem:[%s2687_s2 + $0x38] sm:$0xff] %v1270_v2  ;;  %v1281_v52 = vpack.c.bf16 %v2167_v58, %v2160_v1  ;;  %v1282_v43 = vpack.c.bf16 %v2181_v18, %v2174_v6  ;;  %v1283_v46 = vpack.c.bf16 %v2930_v53, %v2188_v59  ;;  %v2933_v18 = vld [vmem:[#allocation27_spill] sm:$0xff]  ;;  %v2944_v60 = vld [vmem:[#allocation5_spill] sm:$0xff] }
 0x10b   :  { %1187 = vst [vmem:[%s2687_s2 + $0x40] sm:$0xff] %v1271_v37  ;;  %1188 = vst.msk [vmem:[%s2687_s2 + $0x48] sm:$0xff] %vm2469_vm3, %v1272_v10  ;;  %v1284_v30 = vpack.c.bf16 %v2931_v61, %v2202_v31  ;;  %v1285_v1 = vpack.c.bf16 %v2932_v0, %v2216_v13  ;;  %v1286_v58 = vpack.c.bf16 %v2237_v7, %v2230_v62  ;;  %v2934_v31 = vld [vmem:[#allocation28_spill] sm:$0xff]  ;;  %v2935_v62 = vld [vmem:[#allocation29_spill] sm:$0xff] }
 0x10c   :  { %1189 = vst [vmem:[%s2687_s2 + $0x50] sm:$0xff] %v1273_v3  ;;  %1190 = vst [vmem:[%s2687_s2 + $0x58] sm:$0xff] %v1274_v8  ;;  %v1287_v6 = vpack.c.bf16 %v2251_v12, %v2244_v19  ;;  %v1288_v59 = vpack.c.bf16 %v2933_v18, %v2258_v55  ;;  %v1289_v13 = vpack.c.bf16 %v2934_v31, %v2272_v36  ;;  %v2936_v12 = vld [vmem:[#allocation30_spill] sm:$0xff]  ;;  %v2937_v36 = vld [vmem:[#allocation31_spill] sm:$0xff] }
 0x10d   :  { %1191 = vst [vmem:[%s2687_s2 + $0x60] sm:$0xff] %v1275_v21  ;;  %1192 = vst [vmem:[%s2687_s2 + $0x68] sm:$0xff] %v1276_v38  ;;  %v1290_v7 = vpack.c.bf16 %v2935_v62, %v2286_v23  ;;  %v1291_v19 = vpack.c.bf16 %v2307_v25, %v2300_v16  ;;  %v1292_v55 = vpack.c.bf16 %v2321_v27, %v2936_v12  ;;  %v2938_v23 = vld [vmem:[#allocation32_spill] sm:$0xff]  ;;  %v2939_v25 = vld [vmem:[#allocation2_spill] sm:$0xff] }
 0x10e   :  { %1193 = vst.msk [vmem:[%s2687_s2 + $0x70] sm:$0xff] %vm2469_vm3, %v1277_v39  ;;  %1194 = vst [vmem:[%s2687_s2 + $0x78] sm:$0xff] %v1278_v42  ;;  %v1293_v16 = vpack.c.bf16 %v2938_v23, %v2937_v36  ;;  %v2940_v27 = vld [vmem:[#allocation33_spill] sm:$0xff]  ;;  %v1296_v54 = vpack.c.bf16 %v2377_v22, %v2943_v49  ;;  %v1297_v22 = vpack.c.bf16 %v2391_v20, %v2944_v60  ;;  %v2945_v11 = vld [vmem:[#allocation6_spill] sm:$0xff] }
 0x10f   :  { %1195 = vst [vmem:[%s2687_s2 + $0x80] sm:$0xff] %v1279_v41  ;;  %1196 = vst [vmem:[%s2687_s2 + $0x88] sm:$0xff] %v1280_v47  ;;  %v1294_v15 = vpack.c.bf16 %v2940_v27, %v2939_v25  ;;  %v1298_v9 = vpack.c.bf16 %v2946_v50, %v2945_v11  ;;  %v1299_v34 = vpack.c.bf16 %v2419_v57, %v2412_v5  ;;  %v2947_v51 = vld [vmem:[#allocation7_spill] sm:$0xff] }
 0x110   :  { %1197 = vst [vmem:[%s2687_s2 + $0x90] sm:$0xff] %v1281_v52  ;;  %1198 = vst.msk [vmem:[%s2687_s2 + $0x98] sm:$0xff] %vm2469_vm3, %v1282_v43  ;;  %v1300_v26 = vpack.c.bf16 %v2433_v24, %v2947_v51  ;;  %v1301_v20 = vpack.c.bf16 %v2447_v56, %v2440_v44  ;;  %v1302_v5 = vpack.c.bf16 %v2461_v63, %v2454_v14 }
 0x111   :  { %1199 = vst [vmem:[%s2687_s2 + $0xa0] sm:$0xff] %v1283_v46  ;;  %1200 = vst [vmem:[%s2687_s2 + $0xa8] sm:$0xff] %v1284_v30 }
 0x112   :  { %1201 = vst [vmem:[%s2687_s2 + $0xb0] sm:$0xff] %v1285_v1  ;;  %1202 = vst [vmem:[%s2687_s2 + $0xb8] sm:$0xff] %v1286_v58 }
 0x113   :  { %1203 = vst.msk [vmem:[%s2687_s2 + $0xc0] sm:$0xff] %vm2469_vm3, %v1287_v6  ;;  %1204 = vst [vmem:[%s2687_s2 + $0xc8] sm:$0xff] %v1288_v59 }
 0x114   :  { %1205 = vst [vmem:[%s2687_s2 + $0xd0] sm:$0xff] %v1289_v13  ;;  %1206 = vst [vmem:[%s2687_s2 + $0xd8] sm:$0xff] %v1290_v7 }
 0x115   :  { %1207 = vst [vmem:[%s2687_s2 + $0xe0] sm:$0xff] %v1291_v19  ;;  %1208 = vst.msk [vmem:[%s2687_s2 + $0xe8] sm:$0xff] %vm2469_vm3, %v1292_v55 }
 0x116   :  { %1209 = vst [vmem:[%s2687_s2 + $0xf0] sm:$0xff] %v1293_v16  ;;  %1210 = vst [vmem:[%s2687_s2 + $0xf8] sm:$0xff] %v1294_v15 }
 0x117   :  { %1212 = vst [vmem:[%s2687_s2 + $0x108] sm:$0xff] %v1296_v54  ;;  %1213 = vst.msk [vmem:[%s2687_s2 + $0x110] sm:$0xff] %vm2469_vm3, %v1297_v22 }
 0x118   :  { %1214 = vst [vmem:[%s2687_s2 + $0x118] sm:$0xff] %v1298_v9  ;;  %1215 = vst [vmem:[%s2687_s2 + $0x120] sm:$0xff] %v1299_v34 }
 0x119   :  { %1216 = vst [vmem:[%s2687_s2 + $0x128] sm:$0xff] %v1300_v26  ;;  %1217 = vst [vmem:[%s2687_s2 + $0x130] sm:$0xff] %v1301_v20 }
 0x11a   :  { %1218 = vst.msk [vmem:[%s2687_s2 + $0x138] sm:$0xff] %vm2469_vm3, %v1302_v5 }

// kernel: temporal_shift_can_forward.21
= control target key start
LH: loop header
LB: loop body
LE: loop exit
PB: predicated region body
PF: predicated region fallthrough
CT: control target
= control target key end

     0   :  { %s1436_s12 = smov 0   ;;  %s1594_s0 = inlined_call_operand.vmem [shape: bf16[8,8,418], index: 0, kind: input, shape index: {}]   ;;  %s1595_s1 = inlined_call_operand.vmem [shape: bf16[9,8,8], index: 1, kind: input, shape index: {}]   ;;  %s1596_s2 = inlined_call_operand.vmem [shape: f32[8,1], index: 2, kind: input, shape index: {}]   ;;  %s1597_s3 = inlined_call_operand.vmem [shape: bf16[8,8,361], index: 3, kind: output, shape index: {}]  }
   0x1 LB: > { %s1235_s13 = sadd.s32 4294967295, %s1403_s12   ;;  %p1239_p0 = scmp.ge.s32.totalorder %s1403_s12, 1  ;;  %s1403_s12 = sphi %s1436_s12, %s13_s12  }
   0x2   : > { %p137_p1 = scmp.lt.s32.totalorder %s1403_s12, 9 }
   0x4   : > { %p138_p2 = pnand %p1239_p0, %p137_p1 }
   0x5   : > { %p161_p3 = scmp.lt.s32.totalorder (!%p138_p2), %s1235_s13, 7  ;;  %s1408_s18 = smov (!%p138_p2), 127  }
   0x6   : > { %141 = sbr.rel (%p138_p2) target bundleno = 421 (0x1a5), region = 32  ;;  %s1409_s19 = smov (!%p138_p2), 126  }
   0x7   : > { %s1410_s20 = smov (!%p138_p2), 109   ;;  %s1411_s21 = smov (!%p138_p2), 108  }
   0x8   : > { %s1412_s22 = smov (!%p138_p2), 107   ;;  %s1413_s23 = smov (!%p138_p2), 90  }
   0x9   : > { %s1414_s24 = smov (!%p138_p2), 89   ;;  %s1415_s25 = smov (!%p138_p2), 88  }
   0xb   : > { %v1405_v0 = vmov 0.0   ;;  %vm1406_vm0 = vmmov 0   ;;  %s1599_s13 = smov (!%p161_p3, %s1235_s13), 7  ;;  %v1407_v1 = vmov 0   ;;  %v1152_v9 = vld [vmem:[%s1596_s2] sm:$0xff]  ;;  %vm198_vm1 = vcmask 1043456  }
   0xc   : > { %1310 = vmatprep.subr.bf16.mxu1 %v1405_v0  ;;  %1312 = vmatprep.mubr.msk.bf16.mxu1 %vm1406_vm0, %v1405_v0  ;;  %s1289_s14 = sshll.u32 %s1599_s13, 4  ;;  %v1243_v13 = vld [vmem:[%s1595_s1 + $0x4] sm:$0xf]  ;;  %vm194_vm2 = vcmask 64512   ;;  %vm191_vm3 = vcmask 1039360   ;;  %vm390_vm4 = vcmask 1031168  }
   0xd   : > { %240 = vmatprep.mubr.bf16.mxu0 %v1407_v1  ;;  %1384 = vset.pattern.permute.xlu1 %v1407_v1  ;;  %s165_s17 = scalar_lea.vmem %s1594_s0, %s1289_s14  ;;  %v174_v23 = vld [vmem:[%s1595_s1] sm:$0xf]  ;;  %vm497_vm5 = vcmask 891904   ;;  %v1253_v32 = vld [vmem:[%s1595_s1 + $0x8] sm:$0xf]  ;;  %vm604_vm6 = vcmask 883712  }
   0xe   : > { %1385 = vset.pattern.permute.xlu0 %v1407_v1  ;;  %v1386_v2 = vld [vmem:[%s165_s17 + $0x8] ss:$0 sps:$4 sm:$0xff]   ;;  %v172_v3 = vld [vmem:[%s165_s17] sm:$0xff]  ;;  %v1257_v41 = vld [vmem:[%s1595_s1 + $0xc] sm:$0xf]  ;;  %vm711_vm7 = vcmask 875520  }
   0xf   : > { %v1456_v4 = vcombine.low %v172_v3, %v172_v3  ;;  %189 = vrot.lane.b32.xlu1 %v1386_v2, %s1408_s18  ;;  %v1245_v5 = vcombine.high %v172_v3, %v172_v3  ;;  %v811_v6 = vld [vmem:[%s165_s17 + $0x8] sm:$0xff]  ;;  %v299_v14 = vsel %vm198_vm1, %v1386_v2, 0  ;;  %v1261_v50 = vld [vmem:[%s1595_s1 + $0x10] sm:$0xf]  ;;  %vm832_vm8 = vcmask 736256  }
  0x10   : > { %v1272_v7 = vcombine.low %v811_v6, %v811_v6  ;;  %v1273_v8 = vcombine.high %v811_v6, %v811_v6  ;;  %v1265_v60 = vld [vmem:[%s1595_s1 + $0x14] sm:$0xf]  ;;  %vm942_vm9 = vcmask 728064   ;;  %vm1052_vm10 = vcmask 719872  }
  0x11   : > { %185 = vrot.lane.b32.xlu0 %v1456_v4, %s1408_s18  ;;  %v293_v21 = vsel %vm198_vm1, %v1456_v4, 0  ;;  %vm1178_vm11 = vcmask 855040  }
  0x13   : > { %384 = vrot.lane.b32.xlu1 %v1456_v4, %s1409_s19 }
  0x15   : > { %187 = vrot.lane.b32.xlu0 %v1245_v5, %s1408_s18 }
  0x17   : > { %388 = vrot.lane.b32.xlu1 %v1386_v2, %s1409_s19 }
  0x19   : > { %386 = vrot.lane.b32.xlu0 %v1245_v5, %s1409_s19 }
  0x1b   : > { %493 = vrot.lane.b32.xlu1 %v1245_v5, %s1410_s20 }
  0x1d   : > { %491 = vrot.lane.b32.xlu0 %v1456_v4, %s1410_s20 }
  0x1f   : > { %598 = vrot.lane.b32.xlu1 %v1456_v4, %s1411_s21 }
  0x21   : > { %495 = vrot.lane.b32.xlu0 %v1386_v2, %s1410_s20 }
  0x23   : > { %602 = vrot.lane.b32.xlu1 %v1386_v2, %s1411_s21 }
  0x25   : > { %600 = vrot.lane.b32.xlu0 %v1245_v5, %s1411_s21  ;;  %s1364_s21 = smul.u32 12, %s1599_s13 }
  0x27   : > { %707 = vrot.lane.b32.xlu1 %v1245_v5, %s1412_s22 }
  0x29   : > { %705 = vrot.lane.b32.xlu0 %v1456_v4, %s1412_s22 }
  0x2b   : > { %824 = vrot.lane.b32.xlu1 %v1456_v4, %s1413_s23 }
  0x2d   : > { %709 = vrot.lane.b32.xlu0 %v1386_v2, %s1412_s22 }
  0x2f   : > { %828 = vrot.lane.b32.xlu1 %v1272_v7, %s1413_s23 }
  0x31   : > { %826 = vrot.lane.b32.xlu0 %v1245_v5, %s1413_s23 }
  0x33   : > { %934 = vrot.lane.b32.xlu1 %v1456_v4, %s1414_s24 }
  0x35   : > { %830 = vrot.lane.b32.xlu0 %v1273_v8, %s1413_s23 }
  0x37   : > { %938 = vrot.lane.b32.xlu1 %v1272_v7, %s1414_s24 }
  0x39   : > { %936 = vrot.lane.b32.xlu0 %v1245_v5, %s1414_s24 }
  0x3b   : > { %1044 = vrot.lane.b32.xlu1 %v1456_v4, %s1415_s25 }
  0x3d   : > { %940 = vrot.lane.b32.xlu0 %v1273_v8, %s1414_s24  ;;  %s170_s24 = scalar_lea.vmem %s1597_s3, %s1364_s21 }
  0x3f   : > { %1048 = vrot.lane.b32.xlu1 %v1272_v7, %s1415_s25  ;;  %v1269_v7 = vld [vmem:[%s1595_s1 + $0x18] sm:$0xf] }
  0x41   : > { %1046 = vrot.lane.b32.xlu0 %v1245_v5, %s1415_s25 }
  0x43   : > { %1155 = vperm.xlu1 %1384, %v1152_v9  }
  0x45   : > { %1050 = vrot.lane.b32.xlu0 %v1273_v8, %s1415_s25 }
  0x81   : > { %v190_v10 = vpop.permute.xlu1 %189 }
  0x82   : > { %v206_v12 = vsel %vm198_vm1, %v190_v10, 0 }
  0x83   : > { %v186_v11 = vpop.permute.xlu0 %185  ;;  %1311 = vmatpush3.bf16.msra.mxu1 %v206_v12 }
  0x84   : > { %1316 = vmatprep.subr.bf16.mxu1 %v1405_v0 }
  0x85   : > { %v385_v15 = vpop.permute.xlu1 %384 }
  0x86   : > { %1313 = vmatmul.mubr.msk.bf16.vlgmr.msra.gmra.mxu1 %vm194_vm2, %v1243_v13 }
  0x87   : > { %v188_v16 = vpop.permute.xlu0 %187  ;;  %1317 = vmatpush3.bf16.msra.mxu1 %v299_v14  ;;  %1318 = vmatprep.mubr.msk.bf16.mxu1 %vm1406_vm0, %v1405_v0 }
  0x88   : > { %v193_v17 = vsel %vm191_vm3, %v188_v16, %v190_v10  ;;  %v192_v18 = vsel %vm191_vm3, %v186_v11, %v188_v16  ;;  %1322 = vmatprep.subr.bf16.mxu1 %v1405_v0 }
  0x89   : > { %1247 = vmatprep.subr.msk.bf16.mxu0 %vm198_vm1, %v193_v17  ;;  %v200_v19 = vsel %vm198_vm1, %v192_v18, 0  ;;  %v389_v20 = vpop.permute.xlu1 %388 }
  0x8a   : > { %223 = vmatpush1.bf16.msra.mxu0 %v200_v19  ;;  %v403_v25 = vsel %vm198_vm1, %v389_v20, 0 }
  0x8b   : > { %1250 = vmatprep.subr.msk.bf16.mxu0 %vm198_vm1, %v1245_v5  ;;  %v387_v22 = vpop.permute.xlu0 %386 }
  0x8c   : > { %v392_v24 = vsel %vm390_vm4, %v387_v22, %v389_v20  ;;  %v391_v28 = vsel %vm390_vm4, %v385_v15, %v387_v22  ;;  %v1277_v15 = vld [vmem:[%s1595_s1 + $0x1c] sm:$0xf]  ;;  %v1281_v20 = vld [vmem:[%s1595_s1 + $0x20] sm:$0xf] }
  0x8d   : > { %1248 = vmatmul.mubr.msk.bf16.vlgmr.msra.gmra.mxu0 %vm194_vm2, %v1243_v13  ;;  %v494_v26 = vpop.permute.xlu1 %493  ;;  %v397_v30 = vsel %vm198_vm1, %v391_v28, 0 }
  0x8e   : > { %316 = vmatpush1.bf16.msra.mxu0 %v293_v21  ;;  %333 = vmatprep.mubr.bf16.mxu0 %v1407_v1 }
  0x8f   : > { %1319 = vmatmul.mubr.msk.bf16.vlgmr.msra.gmra.mxu1 %vm194_vm2, %v174_v23  ;;  %1254 = vmatprep.subr.msk.bf16.mxu0 %vm198_vm1, %v392_v24  ;;  %v492_v27 = vpop.permute.xlu0 %491 }
  0x90   : > { %1323 = vmatpush3.bf16.msra.mxu1 %v403_v25  ;;  %1324 = vmatprep.mubr.msk.bf16.mxu1 %vm1406_vm0, %v1405_v0  ;;  %v498_v37 = vsel %vm497_vm5, %v492_v27, %v494_v26 }
  0x91   : > { %1328 = vmatprep.subr.bf16.mxu1 %v1405_v0  ;;  %v599_v29 = vpop.permute.xlu1 %598  ;;  %v504_v39 = vsel %vm198_vm1, %v498_v37, 0 }
  0x93   : > { %v496_v31 = vpop.permute.xlu0 %495 }
  0x94   : > { %v499_v33 = vsel %vm497_vm5, %v494_v26, %v496_v31  ;;  %v510_v34 = vsel %vm198_vm1, %v496_v31, 0 }
  0x95   : > { %1251 = vmatmul.mubr.msk.bf16.vlgmr.msra.gmra.mxu0 %vm194_vm2, %v174_v23  ;;  %v603_v35 = vpop.permute.xlu1 %602 }
  0x96   : > { %420 = vmatpush1.bf16.msra.mxu0 %v397_v30  ;;  %437 = vmatprep.mubr.bf16.mxu0 %v1407_v1  ;;  %v617_v43 = vsel %vm198_vm1, %v603_v35, 0 }
  0x97   : > { %1325 = vmatmul.mubr.msk.bf16.vlgmr.msra.gmra.mxu1 %vm194_vm2, %v1253_v32  ;;  %1258 = vmatprep.subr.msk.bf16.mxu0 %vm198_vm1, %v499_v33  ;;  %v601_v36 = vpop.permute.xlu0 %600 }
  0x98   : > { %1329 = vmatpush3.bf16.msra.mxu1 %v510_v34  ;;  %1330 = vmatprep.mubr.msk.bf16.mxu1 %vm1406_vm0, %v1405_v0  ;;  %v606_v42 = vsel %vm604_vm6, %v601_v36, %v603_v35  ;;  %v605_v46 = vsel %vm604_vm6, %v599_v29, %v601_v36 }
  0x99   : > { %1334 = vmatprep.subr.bf16.mxu1 %v1405_v0  ;;  %v708_v38 = vpop.permute.xlu1 %707  ;;  %v611_v48 = vsel %vm198_vm1, %v605_v46, 0 }
  0x9b   : > { %v706_v40 = vpop.permute.xlu0 %705 }
  0x9c   : > { %v712_v55 = vsel %vm711_vm7, %v706_v40, %v708_v38 }
  0x9d   : > { %1255 = vmatmul.mubr.msk.bf16.vlgmr.msra.gmra.mxu0 %vm194_vm2, %v1253_v32  ;;  %v825_v44 = vpop.permute.xlu1 %824  ;;  %v718_v57 = vsel %vm198_vm1, %v712_v55, 0 }
  0x9e   : > { %527 = vmatpush1.bf16.msra.mxu0 %v504_v39  ;;  %544 = vmatprep.mubr.bf16.mxu0 %v1407_v1 }
  0x9f   : > { %1331 = vmatmul.mubr.msk.bf16.vlgmr.msra.gmra.mxu1 %vm194_vm2, %v1257_v41  ;;  %1262 = vmatprep.subr.msk.bf16.mxu0 %vm198_vm1, %v606_v42  ;;  %v710_v45 = vpop.permute.xlu0 %709 }
  0xa0   : > { %1335 = vmatpush3.bf16.msra.mxu1 %v617_v43  ;;  %1336 = vmatprep.mubr.msk.bf16.mxu1 %vm1406_vm0, %v1405_v0  ;;  %v713_v51 = vsel %vm711_vm7, %v708_v38, %v710_v45  ;;  %v724_v52 = vsel %vm198_vm1, %v710_v45, 0 }
  0xa1   : > { %1340 = vmatprep.subr.bf16.mxu1 %v1405_v0  ;;  %v829_v47 = vpop.permute.xlu1 %828 }
  0xa3   : > { %v827_v49 = vpop.permute.xlu0 %826 }
  0xa4   : > { %v834_v61 = vsel %vm832_vm8, %v827_v49, %v829_v47  ;;  %v833_v2 = vsel %vm832_vm8, %v825_v44, %v827_v49 }
  0xa5   : > { %1259 = vmatmul.mubr.msk.bf16.vlgmr.msra.gmra.mxu0 %vm194_vm2, %v1257_v41  ;;  %v935_v53 = vpop.permute.xlu1 %934  ;;  %v840_v5 = vsel %vm198_vm1, %v833_v2, 0 }
  0xa6   : > { %634 = vmatpush1.bf16.msra.mxu0 %v611_v48  ;;  %651 = vmatprep.mubr.bf16.mxu0 %v1407_v1 }
  0xa7   : > { %1337 = vmatmul.mubr.msk.bf16.vlgmr.msra.gmra.mxu1 %vm194_vm2, %v1261_v50  ;;  %1266 = vmatprep.subr.msk.bf16.mxu0 %vm198_vm1, %v713_v51  ;;  %v831_v54 = vpop.permute.xlu0 %830 }
  0xa8   : > { %1341 = vmatpush3.bf16.msra.mxu1 %v724_v52  ;;  %1342 = vmatprep.mubr.msk.bf16.mxu1 %vm1406_vm0, %v1405_v0  ;;  %v835_v56 = vsel %vm832_vm8, %v829_v47, %v831_v54 }
  0xa9   : > { %1346 = vmatprep.subr.bf16.mxu1 %v1405_v0  ;;  %v939_v59 = vpop.permute.xlu1 %938  ;;  %v846_v62 = vsel %vm198_vm1, %v835_v56, 0 }
  0xab   : > { %v937_v58 = vpop.permute.xlu0 %936 }
  0xac   : > { %v944_v8 = vsel %vm942_vm9, %v937_v58, %v939_v59  ;;  %v943_v12 = vsel %vm942_vm9, %v935_v53, %v937_v58 }
  0xad   : > { %1263 = vmatmul.mubr.msk.bf16.vlgmr.msra.gmra.mxu0 %vm194_vm2, %v1261_v50  ;;  %v1045_v3 = vpop.permute.xlu1 %1044  ;;  %v950_v14 = vsel %vm198_vm1, %v943_v12, 0 }
  0xae   : > { %741 = vmatpush1.bf16.msra.mxu0 %v718_v57  ;;  %758 = vmatprep.mubr.bf16.mxu0 %v1407_v1 }
  0xaf   : > { %1343 = vmatmul.mubr.msk.bf16.vlgmr.msra.gmra.mxu1 %vm194_vm2, %v1265_v60  ;;  %1274 = vmatprep.subr.msk.bf16.mxu0 %vm198_vm1, %v834_v61  ;;  %v941_v63 = vpop.permute.xlu0 %940 }
  0xb0   : > { %1347 = vmatpush3.bf16.msra.mxu1 %v846_v62  ;;  %1348 = vmatprep.mubr.msk.bf16.mxu1 %vm1406_vm0, %v1405_v0  ;;  %v945_v4 = vsel %vm942_vm9, %v939_v59, %v941_v63 }
  0xb1   : > { %1352 = vmatprep.subr.bf16.mxu1 %v1405_v0  ;;  %v956_v9 = vsel %vm198_vm1, %v945_v4, 0  ;;  %v1049_v10 = vpop.permute.xlu1 %1048 }
  0xb3   : > { %v1047_v6 = vpop.permute.xlu0 %1046 }
  0xb4   : > { %v1054_v16 = vsel %vm1052_vm10, %v1047_v6, %v1049_v10  ;;  %v1053_v18 = vsel %vm1052_vm10, %v1045_v3, %v1047_v6 }
  0xb5   : > { %1267 = vmatmul.mubr.msk.bf16.vlgmr.msra.gmra.mxu0 %vm194_vm2, %v1265_v60  ;;  %v1060_v19 = vsel %vm198_vm1, %v1053_v18, 0 }
  0xb6   : > { %863 = vmatpush1.bf16.msra.mxu0 %v840_v5  ;;  %880 = vmatprep.mubr.bf16.mxu0 %v1407_v1 }
  0xb7   : > { %1349 = vmatmul.mubr.msk.bf16.vlgmr.msra.gmra.mxu1 %vm194_vm2, %v1269_v7  ;;  %1278 = vmatprep.subr.msk.bf16.mxu0 %vm198_vm1, %v944_v8  ;;  %v1051_v11 = vpop.permute.xlu0 %1050 }
  0xb8   : > { %1353 = vmatpush3.bf16.msra.mxu1 %v956_v9  ;;  %1354 = vmatprep.mubr.msk.bf16.mxu1 %vm1406_vm0, %v1405_v0  ;;  %v1055_v13 = vsel %vm1052_vm10, %v1049_v10, %v1051_v11 }
  0xb9   : > { %1358 = vmatprep.subr.bf16.mxu1 %v1405_v0  ;;  %v1066_v17 = vsel %vm198_vm1, %v1055_v13, 0 }
  0xbd   : > { %1275 = vmatmul.mubr.msk.bf16.vlgmr.msra.gmra.mxu0 %vm194_vm2, %v1269_v7 }
  0xbe   : > { %973 = vmatpush1.bf16.msra.mxu0 %v950_v14  ;;  %990 = vmatprep.mubr.bf16.mxu0 %v1407_v1 }
  0xbf   : > { %1355 = vmatmul.mubr.msk.bf16.vlgmr.msra.gmra.mxu1 %vm194_vm2, %v1277_v15  ;;  %1282 = vmatprep.subr.msk.bf16.mxu0 %vm198_vm1, %v1054_v16 }
  0xc0   : > { %1359 = vmatpush3.bf16.msra.mxu1 %v1066_v17  ;;  %1360 = vmatprep.mubr.msk.bf16.mxu1 %vm1406_vm0, %v1405_v0 }
  0xc5   : > { %1279 = vmatmul.mubr.msk.bf16.vlgmr.msra.gmra.mxu0 %vm194_vm2, %v1277_v15 }
  0xc6   : > { %1083 = vmatpush1.bf16.msra.mxu0 %v1060_v19  ;;  %1100 = vmatprep.mubr.bf16.mxu0 %v1407_v1 }
  0xc7   : > { %1361 = vmatmul.mubr.msk.bf16.vlgmr.msra.gmra.mxu1 %vm194_vm2, %v1281_v20 }
  0xcd   : > { %1283 = vmatmul.mubr.msk.bf16.vlgmr.msra.gmra.mxu0 %vm194_vm2, %v1281_v20 }
 0x146   : > { %v283_v21 = vpop.f32.mrf.mxu1 }
 0x148   : > { %v1314_v22 = vpop.f32.mrf.mxu1 }
 0x14a   : > { %v286_v23 = vpop.f32.mrf.mxu1 }
 0x14c   : > { %v1315_v0 = vpop.f32.mrf.mxu1 }
 0x14d   : > { %v242_v24 = vpop.f32.mrf.mxu0 }
 0x14f   : > { %v244_v25 = vpop.f32.mrf.mxu0  ;;  %v376_v26 = vpop.f32.mrf.mxu1 }
 0x150   : > { %v377_v6 = vadd.f32 %v376_v26, %v283_v21 }
 0x151   : > { %v246_v27 = vpop.f32.mrf.mxu0  ;;  %v1320_v28 = vpop.f32.mrf.mxu1 }
 0x153   : > { %v247_v29 = vpop.f32.mrf.mxu0  ;;  %v379_v30 = vpop.f32.mrf.mxu1 }
 0x155   : > { %v335_v31 = vpop.f32.mrf.mxu0  ;;  %v1321_v32 = vpop.f32.mrf.mxu1 }
 0x156   : > { %v336_v15 = vadd.f32 %v335_v31, %v242_v24 }
 0x157   : > { %v337_v33 = vpop.f32.mrf.mxu0  ;;  %v480_v34 = vpop.f32.mrf.mxu1 }
 0x158   : > { %v488_v9 = vadd.f32 %v480_v34, %v377_v6  ;;  %v338_v19 = vadd.f32 %v337_v33, %v244_v25 }
 0x159   : > { %v339_v1 = vpop.f32.mrf.mxu0  ;;  %v1326_v35 = vpop.f32.mrf.mxu1 }
 0x15a   : > { %v1156_v1 = vpop.permute.xlu1 %1155 }
 0x15b   : > { %v340_v36 = vpop.f32.mrf.mxu0  ;;  %v483_v37 = vpop.f32.mrf.mxu1 }
 0x15d   : > { %v439_v38 = vpop.f32.mrf.mxu0  ;;  %v1327_v39 = vpop.f32.mrf.mxu1 }
 0x15e   : > { %v486_v20 = vadd.f32 %v439_v38, %v336_v15 }
 0x15f   : > { %v441_v40 = vpop.f32.mrf.mxu0  ;;  %v587_v41 = vpop.f32.mrf.mxu1 }
 0x160   : > { %v595_v12 = vadd.f32 %v587_v41, %v488_v9  ;;  %v487_v27 = vadd.f32 %v441_v40, %v338_v19 }
 0x161   : > { %v443_v42 = vpop.f32.mrf.mxu0  ;;  %v1332_v43 = vpop.f32.mrf.mxu1 }
 0x163   : > { %v444_v44 = vpop.f32.mrf.mxu0  ;;  %v590_v45 = vpop.f32.mrf.mxu1 }
 0x165   : > { %v546_v46 = vpop.f32.mrf.mxu0  ;;  %v1333_v47 = vpop.f32.mrf.mxu1 }
 0x166   : > { %v593_v28 = vadd.f32 %v546_v46, %v486_v20 }
 0x167   : > { %v548_v48 = vpop.f32.mrf.mxu0  ;;  %v694_v49 = vpop.f32.mrf.mxu1 }
 0x168   : > { %v702_v16 = vadd.f32 %v694_v49, %v595_v12  ;;  %v594_v30 = vadd.f32 %v548_v48, %v487_v27 }
 0x169   : > { %v550_v50 = vpop.f32.mrf.mxu0  ;;  %v1338_v51 = vpop.f32.mrf.mxu1 }
 0x16b   : > { %v551_v52 = vpop.f32.mrf.mxu0  ;;  %v697_v53 = vpop.f32.mrf.mxu1 }
 0x16d   : > { %v653_v54 = vpop.f32.mrf.mxu0  ;;  %v1339_v55 = vpop.f32.mrf.mxu1 }
 0x16e   : > { %v700_v32 = vadd.f32 %v653_v54, %v593_v28 }
 0x16f   : > { %v655_v56 = vpop.f32.mrf.mxu0  ;;  %v801_v57 = vpop.f32.mrf.mxu1 }
 0x170   : > { %v809_v22 = vadd.f32 %v801_v57, %v702_v16  ;;  %v701_v24 = vadd.f32 %v655_v56, %v594_v30 }
 0x171   : > { %v657_v58 = vpop.f32.mrf.mxu0  ;;  %v1344_v59 = vpop.f32.mrf.mxu1 }
 0x173   : > { %v658_v60 = vpop.f32.mrf.mxu0  ;;  %v804_v61 = vpop.f32.mrf.mxu1 }
 0x175   : > { %v760_v62 = vpop.f32.mrf.mxu0  ;;  %v1345_v63 = vpop.f32.mrf.mxu1 }
 0x176   : > { %v807_v31 = vadd.f32 %v760_v62, %v700_v32 }
 0x177   : > { %v762_v2 = vpop.f32.mrf.mxu0  ;;  %v923_v3 = vpop.f32.mrf.mxu1 }
 0x178   : > { %v931_v21 = vadd.f32 %v923_v3, %v809_v22  ;;  %v808_v33 = vadd.f32 %v762_v2, %v701_v24 }
 0x179   : > { %v764_v4 = vpop.f32.mrf.mxu0  ;;  %v1350_v5 = vpop.f32.mrf.mxu1 }
 0x17b   : > { %v765_v7 = vpop.f32.mrf.mxu0  ;;  %v926_v8 = vpop.f32.mrf.mxu1 }
 0x17d   : > { %v882_v10 = vpop.f32.mrf.mxu0  ;;  %v1351_v11 = vpop.f32.mrf.mxu1 }
 0x17e   : > { %v929_v38 = vadd.f32 %v882_v10, %v807_v31 }
 0x17f   : > { %v884_v13 = vpop.f32.mrf.mxu0  ;;  %v1033_v14 = vpop.f32.mrf.mxu1 }
 0x180   : > { %v1041_v34 = vadd.f32 %v1033_v14, %v931_v21  ;;  %v930_v43 = vadd.f32 %v884_v13, %v808_v33 }
 0x181   : > { %v886_v17 = vpop.f32.mrf.mxu0  ;;  %v1356_v18 = vpop.f32.mrf.mxu1 }
 0x183   : > { %v887_v23 = vpop.f32.mrf.mxu0  ;;  %v1036_v0 = vpop.f32.mrf.mxu1 }
 0x185   : > { %v992_v26 = vpop.f32.mrf.mxu0  ;;  %v1357_v29 = vpop.f32.mrf.mxu1 }
 0x186   : > { %v1039_v44 = vadd.f32 %v992_v26, %v929_v38 }
 0x187   : > { %v994_v35 = vpop.f32.mrf.mxu0  ;;  %v1143_v36 = vpop.f32.mrf.mxu1 }
 0x188   : > { %v1151_v37 = vadd.f32 %v1143_v36, %v1041_v34  ;;  %v1040_v47 = vadd.f32 %v994_v35, %v930_v43 }
 0x189   : > { %v996_v39 = vpop.f32.mrf.mxu0  ;;  %v1362_v25 = vpop.f32.mrf.mxu1 }
 0x18a   : > { %v1160_v41 = vadd.f32 %v1156_v1, %v1151_v37 }
 0x18b   : > { %v997_v42 = vpop.f32.mrf.mxu0  ;;  %v1146_v40 = vpop.f32.mrf.mxu1 }
 0x18c   : > { %1391 = vtanh.f32 %v1160_v41 }
 0x18d   : > { %v1102_v45 = vpop.f32.mrf.mxu0  ;;  %v1363_v46 = vpop.f32.mrf.mxu1 }
 0x18e   : > { %v1149_v48 = vadd.f32 %v1102_v45, %v1039_v44 }
 0x18f   : > { %v1104_v49 = vpop.f32.mrf.mxu0 }
 0x190   : > { %v1158_v50 = vadd.f32 %v1156_v1, %v1149_v48  ;;  %v1150_v51 = vadd.f32 %v1104_v49, %v1040_v47 }
 0x191   : > { %v1106_v52 = vpop.f32.mrf.mxu0 }
 0x192   : > { %v1159_v53 = vadd.f32 %v1156_v1, %v1150_v51  ;;  %1393 = vtanh.f32 %v1158_v50 }
 0x193   : > { %v1107_v54 = vpop.f32.mrf.mxu0 }
 0x194   : > { %1395 = vtanh.f32 %v1159_v53 }
 0x199   : > { %v1392_v55 = vpop.eup %1391 }
 0x19a   : > { %v1291_v56 = vpack.c.bf16 %v1392_v55, %v1392_v55 }
 0x19c   : > { %1179 = vst.msk [vmem:[%s170_s24 + $0x8] sm:$0xf] %vm1178_vm11, %v1291_v56 }
 0x19f   : > { %v1394_v57 = vpop.eup %1393 }
 0x1a1   : > { %v1396_v58 = vpop.eup %1395 }
 0x1a2   : > { %v1290_v59 = vpack.c.bf16 %v1396_v58, %v1394_v57 }
 0x1a4   : > { %1177 = vst [vmem:[%s170_s24] sm:$0xff] %v1290_v59 }
 0x1a5 PF: > { %s13_s12 = sadd.s32 1, %s1403_s12  }
 0x1a6   : > { %p10_p4 = scmp.ge.s32.totalorder %s13_s12, 10  }
 0x1a8   :  { %12 = sbr.rel (!%p10_p4) target bundleno = 1 (0x1), region = 70 }

// kernel: temporal_shift_can_forward.22
= control target key start
LH: loop header
LB: loop body
LE: loop exit
PB: predicated region body
PF: predicated region fallthrough
CT: control target
= control target key end

     0   :  { %s1406_s12 = smov 0   ;;  %s1544_s0 = inlined_call_operand.vmem [shape: bf16[8,8,340], index: 0, kind: input, shape index: {}]   ;;  %s1545_s1 = inlined_call_operand.vmem [shape: bf16[9,8,8], index: 1, kind: input, shape index: {}]   ;;  %s1546_s2 = inlined_call_operand.vmem [shape: f32[8,1], index: 2, kind: input, shape index: {}]   ;;  %s1547_s3 = inlined_call_operand.vmem [shape: bf16[8,8,289], index: 3, kind: output, shape index: {}]  }
   0x1 LB: > { %s1214_s13 = sadd.s32 4294967295, %s1373_s12   ;;  %p1218_p0 = scmp.ge.s32.totalorder %s1373_s12, 1  ;;  %s1373_s12 = sphi %s1406_s12, %s13_s12  }
   0x2   : > { %p137_p1 = scmp.lt.s32.totalorder %s1373_s12, 9 }
   0x4   : > { %p138_p2 = pnand %p1218_p0, %p137_p1 }
   0x5   : > { %p161_p3 = scmp.lt.s32.totalorder (!%p138_p2), %s1214_s13, 7  ;;  %s1378_s18 = smov (!%p138_p2), 127  }
   0x6   : > { %141 = sbr.rel (%p138_p2) target bundleno = 422 (0x1a6), region = 32  ;;  %s1379_s19 = smov (!%p138_p2), 126  }
   0x7   : > { %s1380_s20 = smov (!%p138_p2), 111   ;;  %s1381_s21 = smov (!%p138_p2), 110  }
   0x8   : > { %s1382_s22 = smov (!%p138_p2), 109   ;;  %s1383_s23 = smov (!%p138_p2), 94  }
   0x9   : > { %s1384_s24 = smov (!%p138_p2), 93   ;;  %s1385_s25 = smov (!%p138_p2), 92  }
   0xb   : > { %v1375_v0 = vmov 0.0   ;;  %vm1376_vm0 = vmmov 0   ;;  %s1549_s13 = smov (!%p161_p3, %s1214_s13), 7  ;;  %v1377_v1 = vmov 0   ;;  %v1131_v6 = vld [vmem:[%s1546_s2] sm:$0xff]  ;;  %vm198_vm1 = vcmask 1043456  }
   0xc   : > { %1283 = vmatprep.subr.bf16.mxu1 %v1375_v0  ;;  %1285 = vmatprep.mubr.msk.bf16.mxu1 %vm1376_vm0, %v1375_v0  ;;  %s1337_s14 = smul.u32 12, %s1549_s13  ;;  %v1221_v10 = vld [vmem:[%s1545_s1 + $0x4] sm:$0xf]  ;;  %vm194_vm2 = vcmask 64512   ;;  %vm191_vm3 = vcmask 1039360   ;;  %vm390_vm4 = vcmask 1031168  }
   0xd   : > { %240 = vmatprep.mubr.bf16.mxu0 %v1377_v1  ;;  %1357 = vset.pattern.permute.xlu0 %v1377_v1  ;;  %v174_v20 = vld [vmem:[%s1545_s1] sm:$0xf]  ;;  %vm497_vm5 = vcmask 908288   ;;  %v1231_v29 = vld [vmem:[%s1545_s1 + $0x8] sm:$0xf]  ;;  %vm604_vm6 = vcmask 900096  }
   0xe   : > { %s165_s17 = scalar_lea.vmem %s1544_s0, %s1337_s14  ;;  %v1235_v37 = vld [vmem:[%s1545_s1 + $0xc] sm:$0xf]  ;;  %vm711_vm7 = vcmask 891904   ;;  %v1239_v45 = vld [vmem:[%s1545_s1 + $0x10] sm:$0xf]  ;;  %vm818_vm8 = vcmask 769024  }
   0xf   : > { %v1358_v2 = vld [vmem:[%s165_s17 + $0x8] ss:$0 sps:$4 sm:$0xff]   ;;  %v172_v3 = vld [vmem:[%s165_s17] sm:$0xff]  ;;  %v1243_v53 = vld [vmem:[%s1545_s1 + $0x14] sm:$0xf]  ;;  %vm925_vm9 = vcmask 760832  }
  0x10   : > { %v1222_v4 = vcombine.low %v172_v3, %v172_v3  ;;  %189 = vrot.lane.b32.xlu1 %v1358_v2, %s1378_s18  ;;  %v1223_v5 = vcombine.high %v172_v3, %v172_v3  ;;  %v299_v11 = vsel %vm198_vm1, %v1358_v2, 0  ;;  %v1247_v61 = vld [vmem:[%s1545_s1 + $0x18] sm:$0xf]  ;;  %vm1032_vm10 = vcmask 752640  }
  0x11   : > { %vm1157_vm11 = vcmask 265216  }
  0x12   : > { %185 = vrot.lane.b32.xlu0 %v1222_v4, %s1378_s18  ;;  %v293_v18 = vsel %vm198_vm1, %v1222_v4, 0 }
  0x14   : > { %384 = vrot.lane.b32.xlu1 %v1222_v4, %s1379_s19 }
  0x16   : > { %187 = vrot.lane.b32.xlu0 %v1223_v5, %s1378_s18 }
  0x18   : > { %388 = vrot.lane.b32.xlu1 %v1358_v2, %s1379_s19 }
  0x1a   : > { %386 = vrot.lane.b32.xlu0 %v1223_v5, %s1379_s19 }
  0x1c   : > { %493 = vrot.lane.b32.xlu1 %v1223_v5, %s1380_s20 }
  0x1e   : > { %491 = vrot.lane.b32.xlu0 %v1222_v4, %s1380_s20 }
  0x20   : > { %598 = vrot.lane.b32.xlu1 %v1222_v4, %s1381_s21 }
  0x22   : > { %495 = vrot.lane.b32.xlu0 %v1358_v2, %s1380_s20 }
  0x24   : > { %602 = vrot.lane.b32.xlu1 %v1358_v2, %s1381_s21 }
  0x26   : > { %600 = vrot.lane.b32.xlu0 %v1223_v5, %s1381_s21 }
  0x28   : > { %707 = vrot.lane.b32.xlu1 %v1223_v5, %s1382_s22 }
  0x2a   : > { %705 = vrot.lane.b32.xlu0 %v1222_v4, %s1382_s22 }
  0x2c   : > { %812 = vrot.lane.b32.xlu1 %v1222_v4, %s1383_s23 }
  0x2e   : > { %709 = vrot.lane.b32.xlu0 %v1358_v2, %s1382_s22 }
  0x30   : > { %816 = vrot.lane.b32.xlu1 %v1358_v2, %s1383_s23 }
  0x32   : > { %814 = vrot.lane.b32.xlu0 %v1223_v5, %s1383_s23 }
  0x34   : > { %921 = vrot.lane.b32.xlu1 %v1223_v5, %s1384_s24 }
  0x36   : > { %919 = vrot.lane.b32.xlu0 %v1222_v4, %s1384_s24 }
  0x38   : > { %1026 = vrot.lane.b32.xlu1 %v1222_v4, %s1385_s25 }
  0x3a   : > { %923 = vrot.lane.b32.xlu0 %v1358_v2, %s1384_s24  ;;  %s170_s24 = scalar_lea.vmem %s1547_s3, %s1337_s14 }
  0x3c   : > { %1030 = vrot.lane.b32.xlu1 %v1358_v2, %s1385_s25 }
  0x3e   : > { %1028 = vrot.lane.b32.xlu0 %v1223_v5, %s1385_s25 }
  0x42   : > { %1134 = vperm.xlu0 %1357, %v1131_v6   ;;  %v1251_v6 = vld [vmem:[%s1545_s1 + $0x1c] sm:$0xf] }
  0x82   : > { %v190_v7 = vpop.permute.xlu1 %189 }
  0x83   : > { %v206_v9 = vsel %vm198_vm1, %v190_v7, 0 }
  0x84   : > { %v186_v8 = vpop.permute.xlu0 %185  ;;  %1284 = vmatpush3.bf16.msra.mxu1 %v206_v9 }
  0x85   : > { %1289 = vmatprep.subr.bf16.mxu1 %v1375_v0 }
  0x86   : > { %v385_v12 = vpop.permute.xlu1 %384 }
  0x87   : > { %1286 = vmatmul.mubr.msk.bf16.vlgmr.msra.gmra.mxu1 %vm194_vm2, %v1221_v10 }
  0x88   : > { %v188_v13 = vpop.permute.xlu0 %187  ;;  %1290 = vmatpush3.bf16.msra.mxu1 %v299_v11  ;;  %1291 = vmatprep.mubr.msk.bf16.mxu1 %vm1376_vm0, %v1375_v0  ;;  %v1255_v11 = vld [vmem:[%s1545_s1 + $0x20] sm:$0xf] }
  0x89   : > { %v193_v14 = vsel %vm191_vm3, %v188_v13, %v190_v7  ;;  %v192_v15 = vsel %vm191_vm3, %v186_v8, %v188_v13  ;;  %1295 = vmatprep.subr.bf16.mxu1 %v1375_v0 }
  0x8a   : > { %1225 = vmatprep.subr.msk.bf16.mxu0 %vm198_vm1, %v193_v14  ;;  %v200_v16 = vsel %vm198_vm1, %v192_v15, 0  ;;  %v389_v17 = vpop.permute.xlu1 %388 }
  0x8b   : > { %223 = vmatpush1.bf16.msra.mxu0 %v200_v16  ;;  %v403_v22 = vsel %vm198_vm1, %v389_v17, 0 }
  0x8c   : > { %1228 = vmatprep.subr.msk.bf16.mxu0 %vm198_vm1, %v1223_v5  ;;  %v387_v19 = vpop.permute.xlu0 %386 }
  0x8d   : > { %v392_v21 = vsel %vm390_vm4, %v387_v19, %v389_v17  ;;  %v391_v25 = vsel %vm390_vm4, %v385_v12, %v387_v19 }
  0x8e   : > { %1226 = vmatmul.mubr.msk.bf16.vlgmr.msra.gmra.mxu0 %vm194_vm2, %v1221_v10  ;;  %v494_v23 = vpop.permute.xlu1 %493  ;;  %v397_v26 = vsel %vm198_vm1, %v391_v25, 0 }
  0x8f   : > { %316 = vmatpush1.bf16.msra.mxu0 %v293_v18  ;;  %333 = vmatprep.mubr.bf16.mxu0 %v1377_v1 }
  0x90   : > { %1292 = vmatmul.mubr.msk.bf16.vlgmr.msra.gmra.mxu1 %vm194_vm2, %v174_v20  ;;  %1232 = vmatprep.subr.msk.bf16.mxu0 %vm198_vm1, %v392_v21  ;;  %v492_v24 = vpop.permute.xlu0 %491 }
  0x91   : > { %1296 = vmatpush3.bf16.msra.mxu1 %v403_v22  ;;  %1297 = vmatprep.mubr.msk.bf16.mxu1 %vm1376_vm0, %v1375_v0  ;;  %v498_v33 = vsel %vm497_vm5, %v492_v24, %v494_v23 }
  0x92   : > { %1301 = vmatprep.subr.bf16.mxu1 %v1375_v0  ;;  %v599_v28 = vpop.permute.xlu1 %598  ;;  %v504_v35 = vsel %vm198_vm1, %v498_v33, 0 }
  0x94   : > { %v496_v27 = vpop.permute.xlu0 %495 }
  0x95   : > { %v499_v30 = vsel %vm497_vm5, %v494_v23, %v496_v27  ;;  %v510_v31 = vsel %vm198_vm1, %v496_v27, 0 }
  0x96   : > { %1229 = vmatmul.mubr.msk.bf16.vlgmr.msra.gmra.mxu0 %vm194_vm2, %v174_v20  ;;  %v603_v34 = vpop.permute.xlu1 %602 }
  0x97   : > { %420 = vmatpush1.bf16.msra.mxu0 %v397_v26  ;;  %437 = vmatprep.mubr.bf16.mxu0 %v1377_v1  ;;  %v617_v39 = vsel %vm198_vm1, %v603_v34, 0 }
  0x98   : > { %1298 = vmatmul.mubr.msk.bf16.vlgmr.msra.gmra.mxu1 %vm194_vm2, %v1231_v29  ;;  %1236 = vmatprep.subr.msk.bf16.mxu0 %vm198_vm1, %v499_v30  ;;  %v601_v32 = vpop.permute.xlu0 %600 }
  0x99   : > { %1302 = vmatpush3.bf16.msra.mxu1 %v510_v31  ;;  %1303 = vmatprep.mubr.msk.bf16.mxu1 %vm1376_vm0, %v1375_v0  ;;  %v606_v38 = vsel %vm604_vm6, %v601_v32, %v603_v34  ;;  %v605_v41 = vsel %vm604_vm6, %v599_v28, %v601_v32 }
  0x9a   : > { %1307 = vmatprep.subr.bf16.mxu1 %v1375_v0  ;;  %v708_v40 = vpop.permute.xlu1 %707  ;;  %v611_v43 = vsel %vm198_vm1, %v605_v41, 0 }
  0x9c   : > { %v706_v36 = vpop.permute.xlu0 %705 }
  0x9d   : > { %v712_v49 = vsel %vm711_vm7, %v706_v36, %v708_v40 }
  0x9e   : > { %1233 = vmatmul.mubr.msk.bf16.vlgmr.msra.gmra.mxu0 %vm194_vm2, %v1231_v29  ;;  %v813_v44 = vpop.permute.xlu1 %812  ;;  %v718_v51 = vsel %vm198_vm1, %v712_v49, 0 }
  0x9f   : > { %527 = vmatpush1.bf16.msra.mxu0 %v504_v35  ;;  %544 = vmatprep.mubr.bf16.mxu0 %v1377_v1 }
  0xa0   : > { %1304 = vmatmul.mubr.msk.bf16.vlgmr.msra.gmra.mxu1 %vm194_vm2, %v1235_v37  ;;  %1240 = vmatprep.subr.msk.bf16.mxu0 %vm198_vm1, %v606_v38  ;;  %v710_v42 = vpop.permute.xlu0 %709 }
  0xa1   : > { %1308 = vmatpush3.bf16.msra.mxu1 %v617_v39  ;;  %1309 = vmatprep.mubr.msk.bf16.mxu1 %vm1376_vm0, %v1375_v0  ;;  %v713_v46 = vsel %vm711_vm7, %v708_v40, %v710_v42  ;;  %v724_v47 = vsel %vm198_vm1, %v710_v42, 0 }
  0xa2   : > { %1313 = vmatprep.subr.bf16.mxu1 %v1375_v0  ;;  %v817_v50 = vpop.permute.xlu1 %816 }
  0xa3   : > { %v831_v55 = vsel %vm198_vm1, %v817_v50, 0 }
  0xa4   : > { %v815_v48 = vpop.permute.xlu0 %814 }
  0xa5   : > { %v820_v54 = vsel %vm818_vm8, %v815_v48, %v817_v50  ;;  %v819_v57 = vsel %vm818_vm8, %v813_v44, %v815_v48 }
  0xa6   : > { %1237 = vmatmul.mubr.msk.bf16.vlgmr.msra.gmra.mxu0 %vm194_vm2, %v1235_v37  ;;  %v922_v56 = vpop.permute.xlu1 %921  ;;  %v825_v59 = vsel %vm198_vm1, %v819_v57, 0 }
  0xa7   : > { %634 = vmatpush1.bf16.msra.mxu0 %v611_v43  ;;  %651 = vmatprep.mubr.bf16.mxu0 %v1377_v1 }
  0xa8   : > { %1310 = vmatmul.mubr.msk.bf16.vlgmr.msra.gmra.mxu1 %vm194_vm2, %v1239_v45  ;;  %1244 = vmatprep.subr.msk.bf16.mxu0 %vm198_vm1, %v713_v46  ;;  %v920_v52 = vpop.permute.xlu0 %919 }
  0xa9   : > { %1314 = vmatpush3.bf16.msra.mxu1 %v724_v47  ;;  %1315 = vmatprep.mubr.msk.bf16.mxu1 %vm1376_vm0, %v1375_v0  ;;  %v926_v2 = vsel %vm925_vm9, %v920_v52, %v922_v56 }
  0xaa   : > { %1319 = vmatprep.subr.bf16.mxu1 %v1375_v0  ;;  %v1027_v60 = vpop.permute.xlu1 %1026  ;;  %v932_v5 = vsel %vm198_vm1, %v926_v2, 0 }
  0xac   : > { %v924_v58 = vpop.permute.xlu0 %923 }
  0xad   : > { %v927_v62 = vsel %vm925_vm9, %v922_v56, %v924_v58  ;;  %v938_v63 = vsel %vm198_vm1, %v924_v58, 0 }
  0xae   : > { %1241 = vmatmul.mubr.msk.bf16.vlgmr.msra.gmra.mxu0 %vm194_vm2, %v1239_v45  ;;  %v1031_v4 = vpop.permute.xlu1 %1030 }
  0xaf   : > { %741 = vmatpush1.bf16.msra.mxu0 %v718_v51  ;;  %758 = vmatprep.mubr.bf16.mxu0 %v1377_v1  ;;  %v1045_v8 = vsel %vm198_vm1, %v1031_v4, 0 }
  0xb0   : > { %1316 = vmatmul.mubr.msk.bf16.vlgmr.msra.gmra.mxu1 %vm194_vm2, %v1243_v53  ;;  %1248 = vmatprep.subr.msk.bf16.mxu0 %vm198_vm1, %v820_v54  ;;  %v1029_v3 = vpop.permute.xlu0 %1028 }
  0xb1   : > { %1320 = vmatpush3.bf16.msra.mxu1 %v831_v55  ;;  %1321 = vmatprep.mubr.msk.bf16.mxu1 %vm1376_vm0, %v1375_v0  ;;  %v1034_v7 = vsel %vm1032_vm10, %v1029_v3, %v1031_v4  ;;  %v1033_v9 = vsel %vm1032_vm10, %v1027_v60, %v1029_v3 }
  0xb2   : > { %1325 = vmatprep.subr.bf16.mxu1 %v1375_v0  ;;  %v1039_v10 = vsel %vm198_vm1, %v1033_v9, 0 }
  0xb6   : > { %1245 = vmatmul.mubr.msk.bf16.vlgmr.msra.gmra.mxu0 %vm194_vm2, %v1243_v53 }
  0xb7   : > { %848 = vmatpush1.bf16.msra.mxu0 %v825_v59  ;;  %865 = vmatprep.mubr.bf16.mxu0 %v1377_v1 }
  0xb8   : > { %1322 = vmatmul.mubr.msk.bf16.vlgmr.msra.gmra.mxu1 %vm194_vm2, %v1247_v61  ;;  %1252 = vmatprep.subr.msk.bf16.mxu0 %vm198_vm1, %v927_v62 }
  0xb9   : > { %1326 = vmatpush3.bf16.msra.mxu1 %v938_v63  ;;  %1327 = vmatprep.mubr.msk.bf16.mxu1 %vm1376_vm0, %v1375_v0 }
  0xba   : > { %1331 = vmatprep.subr.bf16.mxu1 %v1375_v0 }
  0xbe   : > { %1249 = vmatmul.mubr.msk.bf16.vlgmr.msra.gmra.mxu0 %vm194_vm2, %v1247_v61 }
  0xbf   : > { %955 = vmatpush1.bf16.msra.mxu0 %v932_v5  ;;  %972 = vmatprep.mubr.bf16.mxu0 %v1377_v1 }
  0xc0   : > { %1328 = vmatmul.mubr.msk.bf16.vlgmr.msra.gmra.mxu1 %vm194_vm2, %v1251_v6  ;;  %1256 = vmatprep.subr.msk.bf16.mxu0 %vm198_vm1, %v1034_v7 }
  0xc1   : > { %1332 = vmatpush3.bf16.msra.mxu1 %v1045_v8  ;;  %1333 = vmatprep.mubr.msk.bf16.mxu1 %vm1376_vm0, %v1375_v0 }
  0xc6   : > { %1253 = vmatmul.mubr.msk.bf16.vlgmr.msra.gmra.mxu0 %vm194_vm2, %v1251_v6 }
  0xc7   : > { %1062 = vmatpush1.bf16.msra.mxu0 %v1039_v10  ;;  %1079 = vmatprep.mubr.bf16.mxu0 %v1377_v1 }
  0xc8   : > { %1334 = vmatmul.mubr.msk.bf16.vlgmr.msra.gmra.mxu1 %vm194_vm2, %v1255_v11 }
  0xce   : > { %1257 = vmatmul.mubr.msk.bf16.vlgmr.msra.gmra.mxu0 %vm194_vm2, %v1255_v11 }
 0x147   : > { %v283_v12 = vpop.f32.mrf.mxu1 }
 0x149   : > { %v1287_v13 = vpop.f32.mrf.mxu1 }
 0x14b   : > { %v286_v14 = vpop.f32.mrf.mxu1 }
 0x14d   : > { %v1288_v0 = vpop.f32.mrf.mxu1 }
 0x14e   : > { %v242_v15 = vpop.f32.mrf.mxu0 }
 0x150   : > { %v244_v16 = vpop.f32.mrf.mxu0  ;;  %v376_v17 = vpop.f32.mrf.mxu1 }
 0x151   : > { %v377_v59 = vadd.f32 %v376_v17, %v283_v12 }
 0x152   : > { %v246_v18 = vpop.f32.mrf.mxu0  ;;  %v1293_v19 = vpop.f32.mrf.mxu1 }
 0x154   : > { %v247_v20 = vpop.f32.mrf.mxu0  ;;  %v379_v21 = vpop.f32.mrf.mxu1 }
 0x156   : > { %v335_v22 = vpop.f32.mrf.mxu0  ;;  %v1294_v23 = vpop.f32.mrf.mxu1 }
 0x157   : > { %v336_v6 = vadd.f32 %v335_v22, %v242_v15 }
 0x158   : > { %v337_v24 = vpop.f32.mrf.mxu0  ;;  %v480_v25 = vpop.f32.mrf.mxu1 }
 0x159   : > { %v488_v62 = vadd.f32 %v480_v25, %v377_v59  ;;  %v338_v10 = vadd.f32 %v337_v24, %v244_v16 }
 0x15a   : > { %v339_v1 = vpop.f32.mrf.mxu0  ;;  %v1299_v26 = vpop.f32.mrf.mxu1 }
 0x15b   : > { %v1135_v1 = vpop.permute.xlu0 %1134 }
 0x15c   : > { %v340_v27 = vpop.f32.mrf.mxu0  ;;  %v483_v28 = vpop.f32.mrf.mxu1 }
 0x15e   : > { %v439_v29 = vpop.f32.mrf.mxu0  ;;  %v1300_v30 = vpop.f32.mrf.mxu1 }
 0x15f   : > { %v486_v11 = vadd.f32 %v439_v29, %v336_v6 }
 0x160   : > { %v441_v31 = vpop.f32.mrf.mxu0  ;;  %v587_v32 = vpop.f32.mrf.mxu1 }
 0x161   : > { %v595_v3 = vadd.f32 %v587_v32, %v488_v62  ;;  %v487_v18 = vadd.f32 %v441_v31, %v338_v10 }
 0x162   : > { %v443_v33 = vpop.f32.mrf.mxu0  ;;  %v1305_v34 = vpop.f32.mrf.mxu1 }
 0x164   : > { %v444_v35 = vpop.f32.mrf.mxu0  ;;  %v590_v36 = vpop.f32.mrf.mxu1 }
 0x166   : > { %v546_v37 = vpop.f32.mrf.mxu0  ;;  %v1306_v38 = vpop.f32.mrf.mxu1 }
 0x167   : > { %v593_v19 = vadd.f32 %v546_v37, %v486_v11 }
 0x168   : > { %v548_v39 = vpop.f32.mrf.mxu0  ;;  %v694_v40 = vpop.f32.mrf.mxu1 }
 0x169   : > { %v702_v7 = vadd.f32 %v694_v40, %v595_v3  ;;  %v594_v21 = vadd.f32 %v548_v39, %v487_v18 }
 0x16a   : > { %v550_v41 = vpop.f32.mrf.mxu0  ;;  %v1311_v42 = vpop.f32.mrf.mxu1 }
 0x16c   : > { %v551_v43 = vpop.f32.mrf.mxu0  ;;  %v697_v44 = vpop.f32.mrf.mxu1 }
 0x16e   : > { %v653_v45 = vpop.f32.mrf.mxu0  ;;  %v1312_v46 = vpop.f32.mrf.mxu1 }
 0x16f   : > { %v700_v23 = vadd.f32 %v653_v45, %v593_v19 }
 0x170   : > { %v655_v47 = vpop.f32.mrf.mxu0  ;;  %v801_v48 = vpop.f32.mrf.mxu1 }
 0x171   : > { %v809_v13 = vadd.f32 %v801_v48, %v702_v7  ;;  %v701_v15 = vadd.f32 %v655_v47, %v594_v21 }
 0x172   : > { %v657_v49 = vpop.f32.mrf.mxu0  ;;  %v1317_v50 = vpop.f32.mrf.mxu1 }
 0x174   : > { %v658_v51 = vpop.f32.mrf.mxu0  ;;  %v804_v52 = vpop.f32.mrf.mxu1 }
 0x176   : > { %v760_v53 = vpop.f32.mrf.mxu0  ;;  %v1318_v54 = vpop.f32.mrf.mxu1 }
 0x177   : > { %v807_v22 = vadd.f32 %v760_v53, %v700_v23 }
 0x178   : > { %v762_v55 = vpop.f32.mrf.mxu0  ;;  %v908_v56 = vpop.f32.mrf.mxu1 }
 0x179   : > { %v916_v12 = vadd.f32 %v908_v56, %v809_v13  ;;  %v808_v24 = vadd.f32 %v762_v55, %v701_v15 }
 0x17a   : > { %v764_v57 = vpop.f32.mrf.mxu0  ;;  %v1323_v58 = vpop.f32.mrf.mxu1 }
 0x17c   : > { %v765_v60 = vpop.f32.mrf.mxu0  ;;  %v911_v61 = vpop.f32.mrf.mxu1 }
 0x17e   : > { %v867_v63 = vpop.f32.mrf.mxu0  ;;  %v1324_v2 = vpop.f32.mrf.mxu1 }
 0x17f   : > { %v914_v29 = vadd.f32 %v867_v63, %v807_v22 }
 0x180   : > { %v869_v4 = vpop.f32.mrf.mxu0  ;;  %v1015_v5 = vpop.f32.mrf.mxu1 }
 0x181   : > { %v1023_v25 = vadd.f32 %v1015_v5, %v916_v12  ;;  %v915_v34 = vadd.f32 %v869_v4, %v808_v24 }
 0x182   : > { %v871_v8 = vpop.f32.mrf.mxu0  ;;  %v1329_v9 = vpop.f32.mrf.mxu1 }
 0x184   : > { %v872_v14 = vpop.f32.mrf.mxu0  ;;  %v1018_v0 = vpop.f32.mrf.mxu1 }
 0x186   : > { %v974_v17 = vpop.f32.mrf.mxu0  ;;  %v1330_v20 = vpop.f32.mrf.mxu1 }
 0x187   : > { %v1021_v35 = vadd.f32 %v974_v17, %v914_v29 }
 0x188   : > { %v976_v26 = vpop.f32.mrf.mxu0  ;;  %v1122_v27 = vpop.f32.mrf.mxu1 }
 0x189   : > { %v1130_v28 = vadd.f32 %v1122_v27, %v1023_v25  ;;  %v1022_v38 = vadd.f32 %v976_v26, %v915_v34 }
 0x18a   : > { %v978_v30 = vpop.f32.mrf.mxu0  ;;  %v1335_v16 = vpop.f32.mrf.mxu1 }
 0x18b   : > { %v1139_v32 = vadd.f32 %v1135_v1, %v1130_v28 }
 0x18c   : > { %v979_v33 = vpop.f32.mrf.mxu0  ;;  %v1125_v31 = vpop.f32.mrf.mxu1 }
 0x18d   : > { %1361 = vtanh.f32 %v1139_v32 }
 0x18e   : > { %v1081_v36 = vpop.f32.mrf.mxu0  ;;  %v1336_v37 = vpop.f32.mrf.mxu1 }
 0x18f   : > { %v1128_v39 = vadd.f32 %v1081_v36, %v1021_v35 }
 0x190   : > { %v1083_v40 = vpop.f32.mrf.mxu0 }
 0x191   : > { %v1137_v41 = vadd.f32 %v1135_v1, %v1128_v39  ;;  %v1129_v42 = vadd.f32 %v1083_v40, %v1022_v38 }
 0x192   : > { %v1085_v43 = vpop.f32.mrf.mxu0 }
 0x193   : > { %v1138_v44 = vadd.f32 %v1135_v1, %v1129_v42  ;;  %1363 = vtanh.f32 %v1137_v41 }
 0x194   : > { %v1086_v45 = vpop.f32.mrf.mxu0 }
 0x195   : > { %1365 = vtanh.f32 %v1138_v44 }
 0x19a   : > { %v1362_v46 = vpop.eup %1361 }
 0x19b   : > { %v1264_v47 = vpack.c.bf16 %v1362_v46, %v1362_v46 }
 0x19d   : > { %1158 = vst.msk [vmem:[%s170_s24 + $0x8] sm:$0xf] %vm1157_vm11, %v1264_v47 }
 0x1a0   : > { %v1364_v48 = vpop.eup %1363 }
 0x1a2   : > { %v1366_v49 = vpop.eup %1365 }
 0x1a3   : > { %v1263_v50 = vpack.c.bf16 %v1366_v49, %v1364_v48 }
 0x1a5   : > { %1156 = vst [vmem:[%s170_s24] sm:$0xff] %v1263_v50 }
 0x1a6 PF: > { %s13_s12 = sadd.s32 1, %s1373_s12  }
 0x1a7   : > { %p10_p4 = scmp.ge.s32.totalorder %s13_s12, 10  }
 0x1a9   :  { %12 = sbr.rel (!%p10_p4) target bundleno = 1 (0x1), region = 70 }

// kernel: temporal_shift_can_forward.23
= control target key start
LH: loop header
LB: loop body
LE: loop exit
PB: predicated region body
PF: predicated region fallthrough
CT: control target
= control target key end

     0   :  { %s408_s14 = smov 0   ;;  %s432_s0 = inlined_call_operand.vmem [shape: bf16[8,8,225], index: 0, kind: input, shape index: {}]   ;;  %s433_s1 = inlined_call_operand.vmem [shape: bf16[1,1,8], index: 1, kind: input, shape index: {}]   ;;  %s434_s2 = inlined_call_operand.<no memory space> [shape: f32[1,1], index: 2, kind: input, shape index: {}]   ;;  %s435_s3 = inlined_call_operand.vmem [shape: bf16[8,1,225], index: 3, kind: output, shape index: {}]  }
   0x1   :  { %v8_v0 = vstv %s434_s2 }
   0x2   :  { %9 = vst [vmem:[#allocation2] sm:$0x1] %v8_v0 }
   0x3 LB: > { %s336_s15 = sadd.s32 4294967295, %s381_s14   ;;  %p340_p0 = scmp.ge.s32.totalorder %s381_s14, 1  ;;  %s381_s14 = sphi %s408_s14, %s15_s14  }
   0x4   : > { %p139_p1 = scmp.lt.s32.totalorder %s381_s14, 9 }
   0x6   : > { %p140_p2 = pnand %p340_p0, %p139_p1 }
   0x7   : > { %p162_p3 = scmp.lt.s32.totalorder (!%p140_p2), %s336_s15, 7 }
   0x8   : > { %143 = sbr.rel (%p140_p2) target bundleno = 260 (0x104), region = 32 }
   0xd   : > { %v383_v1 = vmov 0   ;;  %v174_v2 = vld [vmem:[#allocation2] sm:$0x1]  ;;  %s437_s15 = smov (!%p162_p3, %s336_s15), 7  ;;  %vm193_vm0 = vcmask 1043456   ;;  %vm189_vm1 = vcmask 64512   ;;  %v180_v8 = vlaneseq }
   0xe   : > { %232 = vmatprep.mubr.bf16.mxu0 %v383_v1  ;;  %364 = vset.pattern.permute.xlu0 %v383_v1  ;;  %s353_s2 = sshll.u32 %s437_s15, 3  ;;  %v173_v7 = vld [vmem:[%s433_s1] sm:$0x1]  ;;  %v384_v25 = vmov 1966171168   ;;  %vm273_vm2 = vcmask 1040384  }
   0xf   : > { %177 = vperm.xlu0 %364, %v174_v2   ;;  %s166_s18 = scalar_lea.vmem %s432_s0, %s353_s2  ;;  %v181_v9 = vshrl.u32 %v180_v8, 7  ;;  %v259_v26 = vunpack.c.l.s4 %v384_v25  ;;  %vm274_vm3 = vsmask.f32 256  ;;  %s343_s21 = sshll.u32 %s437_s15, 1  ;;  %vm276_vm4 = vcmask 787457  }
  0x10   : > { %v172_v3 = vld [vmem:[%s166_s18] sm:$0xff]  ;;  %vm277_vm5 = vsmask.f32 1280  ;;  %vm275_vm6 = vmand %vm273_vm2, %vm274_vm3  ;;  %s170_s24 = scalar_lea.vmem %s435_s3, %s343_s21 }
  0x11   : > { %v345_v4 = vcombine.high %v172_v3, %v172_v3  ;;  %v344_v5 = vcombine.low %v172_v3, %v172_v3  ;;  %v182_v10 = vsub.s32 0, %v181_v9  ;;  %v260_v27 = vunpack.c.0.s8 %v259_v26  ;;  %vm278_vm7 = vmand %vm276_vm4, %vm277_vm5  ;;  %v280_v33 = vld [vmem:[%s170_s24] sm:$0x3] }
  0x12   : > { %vm279_vm8 = vmor %vm278_vm7, %vm275_vm6 }
  0x13   : > { %346 = vmatprep.subr.msk.bf16.mxu0 %vm193_vm0, %v345_v4  ;;  %v195_v6 = vsel %vm193_vm0, %v344_v5, 0  ;;  %v263_v29 = vsub.s32 %v260_v27, %v181_v9 }
  0x14   : > { %215 = vmatpush1.bf16.msra.mxu0 %v195_v6 }
  0x17   : > { %347 = vmatmul.mubr.msk.bf16.vlgmr.msra.gmra.mxu0 %vm189_vm1, %v173_v7 }
  0x8a   : > { %v178_v11 = vpop.permute.xlu0 %177 }
  0x8b   : > { %v183_v12 = vrot.slane %v178_v11, %v182_v10 }
  0xd7   : > { %v234_v13 = vpop.f32.mrf.mxu0 }
  0xd8   : > { %v235_v14 = vadd.f32 %v234_v13, %v183_v12 }
  0xd9   : > { %v236_v15 = vpop.f32.mrf.mxu0 }
  0xda   : > { %v348_v16 = vmul.f32 -1.442695, %v235_v14  ;;  %v237_v17 = vadd.f32 %v236_v15, %v183_v12 }
  0xdb   : > { %v238_v18 = vpop.f32.mrf.mxu0 }
  0xdc   : > { %367 = vpow2.f32 %v348_v16  ;;  %v349_v19 = vmul.f32 -1.442695, %v237_v17 }
  0xdd   : > { %v239_v20 = vpop.f32.mrf.mxu0 }
  0xde   : > { %369 = vpow2.f32 %v349_v19 }
  0xe9   : > { %v368_v21 = vpop.eup %367 }
  0xea   : > { %v247_v22 = vadd.f32 1.0, %v368_v21 }
  0xeb   : > { %v370_v23 = vpop.eup %369 }
  0xec   : > { %v248_v24 = vadd.f32 1.0, %v370_v23  ;;  %371 = vrcp.f32 %v247_v22 }
  0xee   : > { %373 = vrcp.f32 %v248_v24 }
  0xf9   : > { %v372_v28 = vpop.eup %371 }
  0xfb   : > { %v374_v30 = vpop.eup %373 }
  0xfc   : > { %v350_v31 = vpack.c.bf16 %v374_v30, %v372_v28 }
  0xfe   : > { %v264_v32 = vrot.slane %v350_v31, %v263_v29 }
 0x100   : > { %v271_v34 = vrot.slane %v264_v32, %v263_v29 }
 0x102   : > { %v281_v35 = vsel %vm279_vm8, %v271_v34, %v280_v33 }
 0x103   : > { %282 = vst [vmem:[%s170_s24] sm:$0x3] %v281_v35 }
 0x104 PF: > { %s15_s14 = sadd.s32 1, %s381_s14  }
 0x105   : > { %p12_p4 = scmp.ge.s32.totalorder %s15_s14, 10  }
 0x107   :  { %14 = sbr.rel (!%p12_p4) target bundleno = 3 (0x3), region = 62 }

// kernel: temporal_shift_can_forward.24
= control target key start
LH: loop header
LB: loop body
LE: loop exit
PB: predicated region body
PF: predicated region fallthrough
CT: control target
= control target key end

     0   :  { %vm14_vm0 = vcmask 793600   ;;  %v294_v6 = vmov 1966171168   ;;  %v55_v8 = vlaneseq  ;;  %vm260_vm1 = vcmask 1043456   ;;  %s411_s0 = inlined_call_operand.vmem [shape: bf16[8,225], index: 0, kind: input, shape index: {}]   ;;  %s412_s1 = inlined_call_operand.vmem [shape: bf16[8,8,225], index: 1, kind: input, shape index: {}]   ;;  %s413_s2 = inlined_call_operand.vmem [shape: bf16[8,8,225], index: 2, kind: output, shape index: {}]  }
   0x1   :  { %v11_v0 = vld [vmem:[%s411_s0] sm:$0xff]  ;;  %v53_v7 = vunpack.c.l.s4 %v294_v6  ;;  %v321_v14 = vld [vmem:[%s412_s1 + $0x8] sm:$0xff]  ;;  %v326_v16 = vld [vmem:[%s412_s1 + $0x10] sm:$0xff]  ;;  %vm261_vm2 = vcmask 793604  }
   0x2   :  { %v12_v1 = vunpack.c.l.bf16 %v11_v0  ;;  %v13_v2 = vunpack.c.h.bf16 %v11_v0  ;;  %v56_v12 = vshrl.u32 %v55_v8, 7  ;;  %v316_v13 = vld [vmem:[%s412_s1] sm:$0xff]  ;;  %v331_v19 = vld [vmem:[%s412_s1 + $0x18] sm:$0xff]  ;;  %v341_v22 = vld [vmem:[%s412_s1 + $0x28] sm:$0xff]  ;;  %v34_v25 = vunpack.c.l.bf16 %v321_v14 }
   0x3   :  { %v54_v11 = vunpack.c.0.s8 %v53_v7  ;;  %v336_v20 = vld [vmem:[%s412_s1 + $0x20] sm:$0xff]  ;;  %v32_v23 = vunpack.c.l.bf16 %v316_v13  ;;  %v33_v24 = vunpack.c.h.bf16 %v316_v13  ;;  %v35_v26 = vunpack.c.h.bf16 %v321_v14  ;;  %v350_v27 = vld [vmem:[%s412_s1 + $0x30] sm:$0xff]  ;;  %v31_v36 = vld [vmem:[%s412_s1 + $0x38] sm:$0xff] }
   0x4   :  { %v15_v3 = vsel %vm14_vm0, %v13_v2, 0.0  ;;  %v19_v9 = vmul.f32 7.5, %v12_v1  ;;  %v20_v10 = vmul.f32 7.5, %v13_v2  ;;  %v36_v28 = vunpack.c.l.bf16 %v326_v16  ;;  %vm367_vm3 = vmor %vm261_vm2, %vm260_vm1 }
   0x5   :  { %v16_v4 = vadd.f32 %v15_v3, %v12_v1  ;;  %v57_v21 = vsub.s32 %v54_v11, %v56_v12  ;;  %v37_v29 = vunpack.c.h.bf16 %v326_v16  ;;  %v38_v32 = vunpack.c.l.bf16 %v331_v19 }
   0x6   :  { %v39_v33 = vunpack.c.h.bf16 %v331_v19  ;;  %v40_v34 = vunpack.c.l.bf16 %v336_v20  ;;  %v41_v35 = vunpack.c.h.bf16 %v336_v20  ;;  %v42_v37 = vunpack.c.l.bf16 %v341_v22 }
   0x7   :  { %17 = vadd.xlane.f32.xlu0 %v16_v4  ;;  %v43_v38 = vunpack.c.h.bf16 %v341_v22  ;;  %v44_v41 = vunpack.c.l.bf16 %v350_v27  ;;  %v45_v42 = vunpack.c.h.bf16 %v350_v27  ;;  %v102_v43 = vsub.s32 0, %v56_v12 }
   0x8   :  { %v106_v44 = vsub.s32 1, %v56_v12  ;;  %v46_v49 = vunpack.c.l.bf16 %v31_v36  ;;  %v47_v50 = vunpack.c.h.bf16 %v31_v36 }
  0x90   :  { %v18_v5 = vpop.xlane.xlu0 %17 }
  0x91   :  { %292 = vrcp.f32 %v18_v5 }
  0x9e   :  { %v293_v15 = vpop.eup %292 }
  0x9f   :  { %v22_v17 = vmul.f32 %v293_v15, %v19_v9  ;;  %v23_v18 = vmul.f32 %v293_v15, %v20_v10 }
  0xa1   :  { %v50_v30 = vcombine.low %v22_v17, %v23_v18  ;;  %v51_v31 = vcombine.high %v22_v17, %v23_v18 }
  0xa3   :  { %v58_v39 = vrot.slane %v50_v30, %v57_v21  ;;  %v65_v40 = vrot.slane %v51_v31, %v57_v21 }
  0xa5   :  { %v66_v45 = vcombine.high %v58_v39, %v58_v39  ;;  %v67_v46 = vcombine.high %v65_v40, %v65_v40  ;;  %v74_v47 = vrot.slane %v58_v39, %v57_v21  ;;  %v81_v48 = vrot.slane %v65_v40, %v57_v21 }
  0xa7   :  { %v88_v51 = vrot.slane %v66_v45, %v57_v21  ;;  %v95_v52 = vrot.slane %v67_v46, %v57_v21  ;;  %v96_v53 = vcombine.high %v74_v47, %v74_v47  ;;  %v97_v54 = vcombine.high %v81_v48, %v81_v48 }
  0xa8   :  { %v103_v55 = vrot.slane %v74_v47, %v102_v43  ;;  %v107_v56 = vrot.slane %v74_v47, %v106_v44  ;;  %v135_v57 = vrot.slane %v81_v48, %v102_v43  ;;  %v139_v58 = vrot.slane %v81_v48, %v106_v44 }
  0xa9   :  { %v98_v59 = vcombine.high %v88_v51, %v88_v51  ;;  %v99_v60 = vcombine.high %v95_v52, %v95_v52  ;;  %v111_v61 = vrot.slane %v88_v51, %v102_v43  ;;  %v115_v62 = vrot.slane %v88_v51, %v106_v44 }
  0xaa   :  { %v119_v63 = vrot.slane %v96_v53, %v102_v43  ;;  %v123_v0 = vrot.slane %v96_v53, %v106_v44  ;;  %v143_v1 = vrot.slane %v95_v52, %v102_v43  ;;  %v147_v2 = vrot.slane %v95_v52, %v106_v44 }
  0xab   :  { %v127_v3 = vrot.slane %v98_v59, %v102_v43  ;;  %v131_v4 = vrot.slane %v98_v59, %v106_v44  ;;  %v151_v5 = vrot.slane %v97_v54, %v102_v43  ;;  %v155_v6 = vrot.slane %v97_v54, %v106_v44 }
  0xac   :  { %v159_v7 = vrot.slane %v99_v60, %v102_v43  ;;  %v163_v8 = vrot.slane %v99_v60, %v106_v44  ;;  %v180_v9 = vmul.f32 %v103_v55, %v32_v23  ;;  %v181_v10 = vmul.f32 %v107_v56, %v33_v24 }
  0xad   :  { %v182_v11 = vmul.f32 %v111_v61, %v34_v25  ;;  %v183_v12 = vmul.f32 %v115_v62, %v35_v26  ;;  %v184_v13 = vmul.f32 %v119_v63, %v36_v28  ;;  %v185_v14 = vmul.f32 %v123_v0, %v37_v29 }
  0xae   :  { %v186_v15 = vmul.f32 %v127_v3, %v38_v32  ;;  %v187_v16 = vmul.f32 %v131_v4, %v39_v33  ;;  %v188_v17 = vmul.f32 %v135_v57, %v40_v34  ;;  %v189_v18 = vmul.f32 %v139_v58, %v41_v35 }
  0xaf   :  { %v190_v19 = vmul.f32 %v143_v1, %v42_v37  ;;  %v191_v20 = vmul.f32 %v147_v2, %v43_v38  ;;  %v192_v21 = vmul.f32 %v151_v5, %v44_v41  ;;  %v193_v22 = vmul.f32 %v155_v6, %v45_v42 }
  0xb0   :  { %v194_v23 = vmul.f32 %v159_v7, %v46_v49  ;;  %v195_v24 = vmul.f32 %v163_v8, %v47_v50  ;;  %v283_v25 = vpack.c.bf16 %v181_v10, %v180_v9  ;;  %v284_v26 = vpack.c.bf16 %v183_v12, %v182_v11 }
  0xb1   :  { %v285_v28 = vpack.c.bf16 %v185_v14, %v184_v13  ;;  %v286_v29 = vpack.c.bf16 %v187_v16, %v186_v15  ;;  %v287_v30 = vpack.c.bf16 %v189_v18, %v188_v17  ;;  %v288_v31 = vpack.c.bf16 %v191_v20, %v190_v19 }
  0xb2   :  { %v289_v32 = vpack.c.bf16 %v193_v22, %v192_v21  ;;  %v290_v33 = vpack.c.bf16 %v195_v24, %v194_v23  ;;  %263 = vst.msk [vmem:[%s413_s2] sm:$0xff] %vm367_vm3, %v283_v25  ;;  %264 = vst.msk [vmem:[%s413_s2 + $0x8] sm:$0xff] %vm367_vm3, %v284_v26 }
  0xb3   :  { %265 = vst.msk [vmem:[%s413_s2 + $0x10] sm:$0xff] %vm367_vm3, %v285_v28  ;;  %266 = vst.msk [vmem:[%s413_s2 + $0x18] sm:$0xff] %vm367_vm3, %v286_v29 }
  0xb4   :  { %267 = vst.msk [vmem:[%s413_s2 + $0x20] sm:$0xff] %vm367_vm3, %v287_v30  ;;  %268 = vst.msk [vmem:[%s413_s2 + $0x28] sm:$0xff] %vm367_vm3, %v288_v31 }
  0xb5   :  { %269 = vst.msk [vmem:[%s413_s2 + $0x30] sm:$0xff] %vm367_vm3, %v289_v32  ;;  %270 = vst.msk [vmem:[%s413_s2 + $0x38] sm:$0xff] %vm367_vm3, %v290_v33 }

// kernel: temporal_shift_can_forward.25
= control target key start
LH: loop header
LB: loop body
LE: loop exit
PB: predicated region body
PF: predicated region fallthrough
CT: control target
= control target key end

     0   :  { %v371_v3 = vmov 0.0   ;;  %vm84_vm0 = vcmask 64512   ;;  %vm372_vm1 = vmmov 0   ;;  %vm238_vm2 = vcmask 130048   ;;  %s591_s1 = inlined_call_operand.vmem [shape: f32[392,16], index: 1, kind: input, shape index: {}]   ;;  %s592_s0 = inlined_call_operand.vmem [shape: bf16[8,392], index: 0, kind: input, shape index: {}]   ;;  %s593_s3 = inlined_call_operand.vmem [shape: f32[16,1], index: 3, kind: input, shape index: {}]   ;;  %s594_s4 = inlined_call_operand.<no memory space> [shape: f32[1,1], index: 4, kind: input, shape index: {}]   ;;  %s595_s2 = inlined_call_operand.vmem [shape: f32[1,16], index: 2, kind: input, shape index: {}]   ;;  %s596_s5 = inlined_call_operand.vmem [shape: f32[8,1], index: 5, kind: output, shape index: {}]  }
   0x1   :  { %v59_v0 = vld [vmem:[%s591_s1 + $0xf8] sm:$0xff]  ;;  %v58_v2 = vld [vmem:[%s591_s1 + $0xf0] sm:$0xff]  ;;  %158 = vmatprep.subr.mxu1 %v371_v3  ;;  %v57_v6 = vld [vmem:[%s591_s1 + $0xe8] sm:$0xff]  ;;  %v10_v58 = vstv %s594_s4  ;;  %vm312_vm3 = vcmask 7168  }
   0x2   :  { %v43_v1 = vld [vmem:[%s591_s1 + $0x78] sm:$0xff]  ;;  %322 = vmatprep.subr.mxu0 %v59_v0  ;;  %v42_v4 = vld [vmem:[%s591_s1 + $0x70] sm:$0xff]  ;;  %v41_v8 = vld [vmem:[%s591_s1 + $0x68] sm:$0xff]  ;;  %11 = vst [vmem:[#allocation2] sm:$0x1] %v10_v58 }
   0x3   :  { %v75_v5 = vld [vmem:[%s591_s1 + $0x178] sm:$0xff]  ;;  %323 = vmatpush3.msra.mxu0 %v43_v1  ;;  %v74_v7 = vld [vmem:[%s591_s1 + $0x170] sm:$0xff]  ;;  %v73_v9 = vld [vmem:[%s591_s1 + $0x168] sm:$0xff] }
   0x4   :  { %159 = vmatpush1.msra.mxu1 %v75_v5  ;;  %324 = vmatprep.subr.mxu0 %v58_v2  ;;  %v56_v10 = vld [vmem:[%s591_s1 + $0xe0] sm:$0xff]  ;;  %v55_v13 = vld [vmem:[%s591_s1 + $0xd8] sm:$0xff]  ;;  %v54_v16 = vld [vmem:[%s591_s1 + $0xd0] sm:$0xff] }
   0x5   :  { %160 = vmatprep.subr.mxu1 %v371_v3  ;;  %325 = vmatpush3.msra.mxu0 %v42_v4  ;;  %v40_v11 = vld [vmem:[%s591_s1 + $0x60] sm:$0xff]  ;;  %v39_v14 = vld [vmem:[%s591_s1 + $0x58] sm:$0xff]  ;;  %v38_v17 = vld [vmem:[%s591_s1 + $0x50] sm:$0xff] }
   0x6   :  { %161 = vmatpush1.msra.mxu1 %v74_v7  ;;  %326 = vmatprep.subr.mxu0 %v57_v6  ;;  %v72_v12 = vld [vmem:[%s591_s1 + $0x160] sm:$0xff]  ;;  %v71_v15 = vld [vmem:[%s591_s1 + $0x158] sm:$0xff]  ;;  %v70_v18 = vld [vmem:[%s591_s1 + $0x150] sm:$0xff] }
   0x7   :  { %162 = vmatprep.subr.mxu1 %v371_v3  ;;  %327 = vmatpush3.msra.mxu0 %v41_v8  ;;  %v53_v19 = vld [vmem:[%s591_s1 + $0xc8] sm:$0xff]  ;;  %v52_v22 = vld [vmem:[%s591_s1 + $0xc0] sm:$0xff]  ;;  %v51_v25 = vld [vmem:[%s591_s1 + $0xb8] sm:$0xff] }
   0x8   :  { %163 = vmatpush1.msra.mxu1 %v73_v9  ;;  %328 = vmatprep.subr.mxu0 %v56_v10  ;;  %v37_v20 = vld [vmem:[%s591_s1 + $0x48] sm:$0xff]  ;;  %v36_v23 = vld [vmem:[%s591_s1 + $0x40] sm:$0xff]  ;;  %v35_v26 = vld [vmem:[%s591_s1 + $0x38] sm:$0xff] }
   0x9   :  { %164 = vmatprep.subr.mxu1 %v371_v3  ;;  %329 = vmatpush3.msra.mxu0 %v40_v11  ;;  %v69_v21 = vld [vmem:[%s591_s1 + $0x148] sm:$0xff]  ;;  %v68_v24 = vld [vmem:[%s591_s1 + $0x140] sm:$0xff]  ;;  %v67_v27 = vld [vmem:[%s591_s1 + $0x138] sm:$0xff] }
   0xa   :  { %165 = vmatpush1.msra.mxu1 %v72_v12  ;;  %330 = vmatprep.subr.mxu0 %v55_v13  ;;  %v50_v28 = vld [vmem:[%s591_s1 + $0xb0] sm:$0xff]  ;;  %v49_v31 = vld [vmem:[%s591_s1 + $0xa8] sm:$0xff]  ;;  %v48_v34 = vld [vmem:[%s591_s1 + $0xa0] sm:$0xff] }
   0xb   :  { %166 = vmatprep.subr.mxu1 %v371_v3  ;;  %331 = vmatpush3.msra.mxu0 %v39_v14  ;;  %v34_v29 = vld [vmem:[%s591_s1 + $0x30] sm:$0xff]  ;;  %v33_v32 = vld [vmem:[%s591_s1 + $0x28] sm:$0xff]  ;;  %v32_v35 = vld [vmem:[%s591_s1 + $0x20] sm:$0xff] }
   0xc   :  { %167 = vmatpush1.msra.mxu1 %v71_v15  ;;  %332 = vmatprep.subr.mxu0 %v54_v16  ;;  %v66_v30 = vld [vmem:[%s591_s1 + $0x130] sm:$0xff]  ;;  %v65_v33 = vld [vmem:[%s591_s1 + $0x128] sm:$0xff]  ;;  %v64_v36 = vld [vmem:[%s591_s1 + $0x120] sm:$0xff] }
   0xd   :  { %168 = vmatprep.subr.mxu1 %v371_v3  ;;  %333 = vmatpush3.msra.mxu0 %v38_v17  ;;  %v47_v37 = vld [vmem:[%s591_s1 + $0x98] sm:$0xff]  ;;  %v22_v40 = vld [vmem:[%s592_s0] sm:$0xff]  ;;  %v46_v41 = vld [vmem:[%s591_s1 + $0x90] sm:$0xff] }
   0xe   :  { %169 = vmatpush1.msra.mxu1 %v70_v18  ;;  %334 = vmatprep.subr.mxu0 %v53_v19  ;;  %v31_v38 = vld [vmem:[%s591_s1 + $0x18] sm:$0xff]  ;;  %v30_v42 = vld [vmem:[%s591_s1 + $0x10] sm:$0xff]  ;;  %v45_v44 = vld [vmem:[%s591_s1 + $0x88] sm:$0xff]  ;;  %v25_v45 = vunpack.c.h.bf16 %v22_v40  ;;  %v24_v51 = vunpack.c.l.bf16 %v22_v40 }
   0xf   :  { %170 = vmatprep.subr.mxu1 %v371_v3  ;;  %335 = vmatpush3.msra.mxu0 %v37_v20  ;;  %v63_v39 = vld [vmem:[%s591_s1 + $0x118] sm:$0xff]  ;;  %v62_v43 = vld [vmem:[%s591_s1 + $0x110] sm:$0xff]  ;;  %v29_v46 = vld [vmem:[%s591_s1 + $0x8] sm:$0xff] }
  0x10   :  { %171 = vmatpush1.msra.mxu1 %v69_v21  ;;  %336 = vmatprep.subr.mxu0 %v52_v22  ;;  %v23_v47 = vld [vmem:[%s592_s0 + $0x8] sm:$0xff]  ;;  %v44_v48 = vld [vmem:[%s591_s1 + $0x80] sm:$0xff] }
  0x11   :  { %172 = vmatprep.subr.mxu1 %v371_v3  ;;  %337 = vmatpush3.msra.mxu0 %v36_v23  ;;  %v61_v49 = vld [vmem:[%s591_s1 + $0x108] sm:$0xff]  ;;  %v28_v50 = vld [vmem:[%s591_s1] sm:$0xff]  ;;  %v27_v53 = vunpack.c.h.bf16 %v23_v47  ;;  %v26_v55 = vunpack.c.l.bf16 %v23_v47 }
  0x12   :  { %173 = vmatpush1.msra.mxu1 %v68_v24  ;;  %338 = vmatprep.subr.mxu0 %v51_v25  ;;  %v60_v52 = vld [vmem:[%s591_s1 + $0x100] sm:$0xff]  ;;  %v230_v56 = vld [vmem:[%s593_s3 + $0x8] sm:$0xff] }
  0x13   :  { %174 = vmatprep.subr.mxu1 %v371_v3  ;;  %339 = vmatpush3.msra.mxu0 %v35_v26  ;;  %v76_v54 = vld [vmem:[%s591_s1 + $0x180] sm:$0xff] }
  0x14   :  { %175 = vmatpush1.msra.mxu1 %v67_v27  ;;  %340 = vmatprep.subr.mxu0 %v50_v28  ;;  %v229_v57 = vld [vmem:[%s593_s3] sm:$0xff] }
  0x15   :  { %176 = vmatprep.subr.mxu1 %v371_v3  ;;  %341 = vmatpush3.msra.mxu0 %v34_v29  ;;  %v318_v61 = vld [vmem:[%s595_s2] ss:$0 sm:$0xff] }
  0x16   :  { %177 = vmatpush1.msra.mxu1 %v66_v30  ;;  %342 = vmatprep.subr.mxu0 %v49_v31  ;;  %v320_v4 = vld [vmem:[#allocation2] ss:$0 sm:$0xff] }
  0x17   :  { %178 = vmatprep.subr.mxu1 %v371_v3  ;;  %343 = vmatpush3.msra.mxu0 %v33_v32 }
  0x18   :  { %179 = vmatpush1.msra.mxu1 %v65_v33  ;;  %344 = vmatprep.subr.mxu0 %v48_v34 }
  0x19   :  { %180 = vmatprep.subr.mxu1 %v371_v3  ;;  %345 = vmatpush3.msra.mxu0 %v32_v35 }
  0x1a   :  { %181 = vmatpush1.msra.mxu1 %v64_v36  ;;  %346 = vmatprep.subr.mxu0 %v47_v37 }
  0x1b   :  { %182 = vmatprep.subr.mxu1 %v371_v3  ;;  %347 = vmatpush3.msra.mxu0 %v31_v38 }
  0x1c   :  { %183 = vmatpush1.msra.mxu1 %v63_v39  ;;  %348 = vmatprep.subr.mxu0 %v46_v41 }
  0x1d   :  { %184 = vmatprep.subr.mxu1 %v371_v3  ;;  %349 = vmatpush3.msra.mxu0 %v30_v42 }
  0x1e   :  { %185 = vmatpush1.msra.mxu1 %v62_v43  ;;  %350 = vmatprep.subr.mxu0 %v45_v44 }
  0x1f   :  { %186 = vmatprep.subr.mxu1 %v371_v3  ;;  %351 = vmatpush3.msra.mxu0 %v29_v46 }
  0x20   :  { %152 = vmatprep.mubr.f32.mxu0 %v25_v45  ;;  %352 = vmatprep.subr.mxu0 %v44_v48 }
  0x21   :  { %187 = vmatpush1.msra.mxu1 %v61_v49  ;;  %353 = vmatpush3.msra.mxu0 %v28_v50 }
  0x22   :  { %188 = vmatprep.subr.mxu1 %v371_v3  ;;  %153 = vmatmul.mubr.f32.vlgmr.msra.gmra.mxu0 %v24_v51 }
  0x23   :  { %189 = vmatpush1.msra.mxu1 %v60_v52  ;;  %319 = vmatprep.mubr.msk.f32.mxu1 %vm84_vm0, %v27_v53 }
  0x24   :  { %220 = vmatprep.subr.mxu1 %v371_v3  ;;  %360 = vmatprep.subr.mxu0 %v371_v3 }
  0x25   :  { %221 = vmatpush2.msra.mxu1 %v76_v54  ;;  %364 = vmatprep.mubr.msk.f32.mxu0 %vm372_vm1, %v371_v3 }
  0x26   :  { %223 = vmatmul.mubr.f32.vlgmr.msra.gmra.mxu1 %v26_v55  ;;  %361 = vmatpush3.msra.mxu0 %v230_v56 }
  0x27   :  { %362 = vmatprep.subr.mxu0 %v371_v3 }
  0x28   :  { %363 = vmatpush3.msra.mxu0 %v229_v57 }
  0xe2   :  { %v354_v59 = vpop.f32.mrf.mxu0 }
  0xe4   :  { %v355_v60 = vpop.f32.mrf.mxu0 }
  0xe5   :  { %v356_v62 = vadd.f32 %v355_v60, %v354_v59 }
  0xe6   :  { %v224_v63 = vpop.f32.mrf.mxu1 }
  0xe7   :  { %v155_v0 = vadd.f32 %v356_v62, %v318_v61 }
  0xe8   :  { %v226_v1 = vpop.f32.mrf.mxu1 }
  0xe9   :  { %v225_v2 = vadd.f32 %v224_v63, %v155_v0 }
  0xeb   :  { %369 = vtanh.f32 %v225_v2 }
  0xf8   :  { %v370_v3 = vpop.eup %369 }
  0xf9   :  { %365 = vmatmul.mubr.msk.f32.vlgmr.msra.gmra.mxu0 %vm238_vm2, %v370_v3 }
 0x1b9   :  { %v308_v5 = vpop.f32.mrf.mxu0 }
 0x1ba   :  { %v309_v6 = vadd.f32 %v320_v4, %v308_v5 }
 0x1bb   :  { %v366_v7 = vpop.f32.mrf.mxu0 }
 0x1bc   :  { %313 = vst.msk [vmem:[%s596_s5] sm:$0xff] %vm312_vm3, %v309_v6 }

</bundles_post_ra>
